<compile_context>
chip_gen: v7x
topology: tpu7x:2x2x1
jax: 0.10.0
libtpu: 0.0.40
codegen_flags: <defaults>
</compile_context>

<pallas_src>
import functools

import jax
import jax.numpy as jnp
from jax.experimental import pallas as pl
from jax.experimental.pallas import tpu as pltpu

EPS = 1e-5          # nn.BatchNorm2d default eps
LANE = 128          # TPU lane width: channel dims padded to this


def _round_up(x, m):
    return ((x + m - 1) // m) * m


def _vmem_limit_bytes():
    """Generation-aware scoped-VMEM budget: ~3/4 of physical VMEM, capped at
    96 MiB (v5e/v6e -> 96 MiB, v7x -> 48 MiB).  Conservative 48 MiB fallback."""
    cap = None
    try:
        cap = int(getattr(pltpu.get_tpu_info(), "vmem_capacity_bytes", 0)) or None
    except Exception:
        cap = None
    if cap is None:
        return 48 * 1024 * 1024
    return min(cap * 3 // 4, 96 * 1024 * 1024)


VMEM_LIMIT = _vmem_limit_bytes()


# ----------------------------------------------------------------------------
# Tile-size selection (derived from the per-generation VMEM budget).
# ----------------------------------------------------------------------------
def _pick_tile_m(M, cin, cout, budget):
    for t in (2048, 1024, 512, 256, 128, 64, 32, 16, 8):
        if M % t:
            continue
        # dbl-buffered bf16 in/out tiles + dbl-buffered bf16 weights + f32 work.
        footprint = 2 * 2 * t * (cin + cout) + 2 * 2 * cin * cout + 8 * t * cout
        if footprint <= budget:
            return t
    return M  # TODO(synk): mask remainder rows for M with no aligned divisor


def _pick_b_tile(N, H, W, cin, cout, budget):
    for b in range(N, 0, -1):
        if N % b:
            continue
        rows = b * H * W
        if rows % 8:
            continue
        footprint = (2 * 2 * rows * cin              # dbl-buffered bf16 input
                     + 2 * 2 * rows * cout           # dbl-buffered bf16 output
                     + 2 * b * (H + 2) * (W + 2) * cin   # bf16 halo scratch
                     + 2 * rows * 9 * cin            # bf16 im2col scratch
                     + 2 * 2 * 9 * cin * cout        # dbl-buffered weights
                     + 4 * rows * cout)              # f32 matmul result
        if footprint <= budget:
            return b
    return 1  # TODO(synk): pad rows when even B=1 violates (rows % 8 == 0)


# ----------------------------------------------------------------------------
# Kernel 1: 1x1-conv stage.
#   optional fused BN-apply+ReLU of the producer (f32)  ->  bf16 MXU matmul
#   (f32 acc)  ->  bf16 output tile + per-channel sum / sum-of-squares
#   accumulated across the M grid axis (grid-resident outputs, init via pl.when).
# ----------------------------------------------------------------------------
def _mm_stats_kernel(x_ref, w_ref, scale_ref, shift_ref,
                     y_ref, ssum_ref, ssq_ref, *, apply_preact):
    i = pl.program_id(0)
    if apply_preact:
        act = jnp.maximum(
            x_ref[...].astype(jnp.float32) * scale_ref[...] + shift_ref[...], 0.0)
        lhs = act.astype(jnp.bfloat16)
    else:
        lhs = x_ref[...]                                   # already bf16
    y = jnp.dot(lhs, w_ref[...], preferred_element_type=jnp.float32)

    @pl.when(i == 0)
    def _init():
        ssum_ref[...] = jnp.zeros_like(ssum_ref)
        ssq_ref[...] = jnp.zeros_like(ssq_ref)

    ssum_ref[...] = ssum_ref[...] + jnp.sum(y, axis=0, keepdims=True)
    ssq_ref[...] = ssq_ref[...] + jnp.sum(y * y, axis=0, keepdims=True)
    y_ref[...] = y.astype(y_ref.dtype)                     # bf16 to HBM


def _mm_stats(x2d, w, scale, shift, *, apply_preact, tile_m):
    M, cin = x2d.shape
    cout = w.shape[1]
    assert M % tile_m == 0, "TODO(synk): mask remainder rows for arbitrary M"
    kernel = functools.partial(_mm_stats_kernel, apply_preact=apply_preact)
    return pl.pallas_call(
        kernel,
        out_shape=(jax.ShapeDtypeStruct((M, cout), jnp.bfloat16),
                   jax.ShapeDtypeStruct((1, cout), jnp.float32),
                   jax.ShapeDtypeStruct((1, cout), jnp.float32)),
        grid_spec=pltpu.PrefetchScalarGridSpec(
            num_scalar_prefetch=0,
            grid=(M // tile_m,),
            in_specs=[
                pl.BlockSpec((tile_m, cin), lambda i: (i, 0)),
                pl.BlockSpec((cin, cout), lambda i: (0, 0)),
                pl.BlockSpec((1, cin), lambda i: (0, 0)),
                pl.BlockSpec((1, cin), lambda i: (0, 0)),
            ],
            out_specs=[
                pl.BlockSpec((tile_m, cout), lambda i: (i, 0)),
                pl.BlockSpec((1, cout), lambda i: (0, 0)),  # grid-resident accum
                pl.BlockSpec((1, cout), lambda i: (0, 0)),  # grid-resident accum
            ],
        ),
        compiler_params=pltpu.CompilerParams(
            dimension_semantics=("arbitrary",),   # stats accumulate across M axis
            vmem_limit_bytes=VMEM_LIMIT),
        cost_estimate=pl.CostEstimate(
            flops=2 * M * cin * cout,
            transcendentals=0,
            bytes_accessed=2 * M * (cin + cout) + 2 * cin * cout),
    )(x2d, w, scale, shift)


# ----------------------------------------------------------------------------
# Kernel 2: 3x3-conv stage (B_TILE images per grid step).
#   fused BN1-apply+ReLU (f32) -> bf16 halo scratch -> bf16 im2col scratch ->
#   ONE (B*H*W, 9*cin) x (9*cin, cout) MXU matmul (f32 acc) + BN2 stats.
# ----------------------------------------------------------------------------
def _conv3x3_stats_kernel(h1_ref, w2_ref, scale_ref, shift_ref,
                          y_ref, ssum_ref, ssq_ref, pad_ref, col_ref,
                          *, B, H, W):
    n = pl.program_id(0)
    cin = h1_ref.shape[-1]

    # Fused BN1-apply + ReLU in f32, cast once to bf16 for the MXU.
    scale = scale_ref[...].reshape(1, 1, 1, cin)
    shift = shift_ref[...].reshape(1, 1, 1, cin)
    act = jnp.maximum(h1_ref[...].astype(jnp.float32) * scale + shift, 0.0)

    # bf16 halo scratch: borders are zeroed once (serial grid) and stay zero;
    # the interior is rewritten each step.
    @pl.when(n == 0)
    def _zero():
        pad_ref[...] = jnp.zeros_like(pad_ref)

    pad_ref[:, 1:H + 1, 1:W + 1, :] = act.astype(jnp.bfloat16)

    # im2col: 9 shifted taps packed along K in a bf16 VMEM scratch, then one
    # long-K matmul -> no per-tap f32 accumulator round-trips through VMEM.
    for k in range(9):
        dy, dx = divmod(k, 3)
        col_ref[:, k * cin:(k + 1) * cin] = (
            pad_ref[:, dy:dy + H, dx:dx + W, :].reshape(B * H * W, cin))
    y = jnp.dot(col_ref[...], w2_ref[...], preferred_element_type=jnp.float32)

    @pl.when(n == 0)
    def _init():
        ssum_ref[...] = jnp.zeros_like(ssum_ref)
        ssq_ref[...] = jnp.zeros_like(ssq_ref)

    ssum_ref[...] = ssum_ref[...] + jnp.sum(y, axis=0, keepdims=True)
    ssq_ref[...] = ssq_ref[...] + jnp.sum(y * y, axis=0, keepdims=True)
    y_ref[...] = y.astype(y_ref.dtype)                     # bf16 to HBM


def _conv3x3_stats(h1_img, w2_flat, scale, shift, *, b_tile):
    N, H, W, cin = h1_img.shape
    cout = w2_flat.shape[1]
    assert N % b_tile == 0
    rows = b_tile * H * W
    assert rows % 8 == 0, "TODO(synk): pad rows when B*H*W % 8 != 0"
    M = N * H * W
    kernel = functools.partial(_conv3x3_stats_kernel, B=b_tile, H=H, W=W)
    return pl.pallas_call(
        kernel,
        out_shape=(jax.ShapeDtypeStruct((M, cout), jnp.bfloat16),
                   jax.ShapeDtypeStruct((1, cout), jnp.float32),
                   jax.ShapeDtypeStruct((1, cout), jnp.float32)),
        grid_spec=pltpu.PrefetchScalarGridSpec(
            num_scalar_prefetch=0,
            grid=(N // b_tile,),
            in_specs=[
                pl.BlockSpec((b_tile, H, W, cin), lambda n: (n, 0, 0, 0)),
                pl.BlockSpec((9 * cin, cout), lambda n: (0, 0)),
                pl.BlockSpec((1, cin), lambda n: (0, 0)),
                pl.BlockSpec((1, cin), lambda n: (0, 0)),
            ],
            out_specs=[
                pl.BlockSpec((rows, cout), lambda n: (n, 0)),
                pl.BlockSpec((1, cout), lambda n: (0, 0)),
                pl.BlockSpec((1, cout), lambda n: (0, 0)),
            ],
            scratch_shapes=[
                pltpu.VMEM((b_tile, H + 2, W + 2, cin), jnp.bfloat16),  # halo
                pltpu.VMEM((rows, 9 * cin), jnp.bfloat16),              # im2col
            ],
        ),
        compiler_params=pltpu.CompilerParams(
            dimension_semantics=("arbitrary",),
            vmem_limit_bytes=VMEM_LIMIT),
        cost_estimate=pl.CostEstimate(
            flops=2 * 9 * M * cin * cout,
            transcendentals=0,
            bytes_accessed=2 * M * (cin + cout) + 2 * 9 * cin * cout),
    )(h1_img, w2_flat, scale, shift)


# ----------------------------------------------------------------------------
# Kernel 3: final BN3-apply + residual add + ReLU (pure elementwise, parallel).
# ----------------------------------------------------------------------------
def _bn_apply_residual_relu_kernel(y_ref, scale_ref, shift_ref, r_ref, o_ref):
    o_ref[...] = jnp.maximum(
        y_ref[...].astype(jnp.float32) * scale_ref[...] + shift_ref[...]
        + r_ref[...].astype(jnp.float32), 0.0)


def _bn_apply_residual_relu(y, scale, shift, res, *, tile_m):
    M, c = y.shape
    assert M % tile_m == 0
    return pl.pallas_call(
        _bn_apply_residual_relu_kernel,
        out_shape=jax.ShapeDtypeStruct((M, c), jnp.float32),
        grid_spec=pltpu.PrefetchScalarGridSpec(
            num_scalar_prefetch=0,
            grid=(M // tile_m,),
            in_specs=[
                pl.BlockSpec((tile_m, c), lambda i: (i, 0)),
                pl.BlockSpec((1, c), lambda i: (0, 0)),
                pl.BlockSpec((1, c), lambda i: (0, 0)),
                pl.BlockSpec((tile_m, c), lambda i: (i, 0)),
            ],
            out_specs=pl.BlockSpec((tile_m, c), lambda i: (i, 0)),
        ),
        compiler_params=pltpu.CompilerParams(
            dimension_semantics=("parallel",),   # no reduction: megacore-shardable
            vmem_limit_bytes=VMEM_LIMIT),
        cost_estimate=pl.CostEstimate(
            flops=4 * M * c, transcendentals=0,
            bytes_accessed=2 * M * c + 2 * M * c + 4 * M * c),
    )(y, scale, shift, res)


# ----------------------------------------------------------------------------
# Per-channel BN finalisation (tiny (1, C) glue between kernels, plain JAX).
# ----------------------------------------------------------------------------
def _bn_scale_shift(ssum, ssq, gamma, beta, m):
    mean = ssum / m                                         # (1, C)
    var = jnp.maximum(ssq / m - mean * mean, 0.0)           # clamp E[y^2]-mean^2
    scale = gamma[None, :] * jax.lax.rsqrt(var + EPS)
    shift = beta[None, :] - mean * scale
    return scale, shift


# ----------------------------------------------------------------------------
# Bottleneck forward (layout glue + 4 pallas_calls)
# ----------------------------------------------------------------------------
def bottleneck_forward(x_nchw, params, *, planes):
    N, cin, H, W = x_nchw.shape
    assert cin == 4 * planes, "downsample=None requires inplanes == planes * 4"
    cp_in = _round_up(cin, LANE)
    cp_mid = _round_up(planes, LANE)
    M = N * H * W

    budget = VMEM_LIMIT // 2           # headroom for pipeline bookkeeping
    tile_m1 = _pick_tile_m(M, cp_in, cp_mid, budget)
    tile_m3 = _pick_tile_m(M, cp_mid, cp_in, budget)
    tile_m4 = _pick_tile_m(M, cp_in, cp_in, budget)
    b_tile = _pick_b_tile(N, H, W, cp_mid, cp_mid, budget)

    # NCHW -> NHWC -> (M, C), cast once to bf16; channel zero-pad only when
    # channels aren't already lane-aligned (real ResNet stages are).
    # TODO(synk): keep activations NHWC across consecutive blocks to drop the
    #             per-block NCHW<->NHWC transposes.
    x2d = jnp.transpose(x_nchw, (0, 2, 3, 1)).astype(jnp.float32).reshape(M, cin)
    if cp_in == cin:
        x_res = x2d.astype(jnp.bfloat16)
    else:
        x_res = jnp.pad(x2d, ((0, 0), (0, cp_in - cin))).astype(jnp.bfloat16)

    # ---- stage 1: 1x1 conv, accumulate BN1 stats ---------------------------
    dummy = jnp.zeros((1, cp_in), jnp.float32)        # preact disabled here
    y1, s1, q1 = _mm_stats(x_res, params["w1p"], dummy, dummy,
                           apply_preact=False, tile_m=tile_m1)
    sc1, sh1 = _bn_scale_shift(s1, q1, params["g1p"], params["b1p"], M)

    # ---- stage 2: fused BN1+ReLU -> 3x3 conv (one long-K matmul), BN2 stats -
    y2, s2, q2 = _conv3x3_stats(y1.reshape(N, H, W, cp_mid), params["w2p"],
                                sc1, sh1, b_tile=b_tile)
    sc2, sh2 = _bn_scale_shift(s2, q2, params["g2p"], params["b2p"], M)

    # ---- stage 3: fused BN2+ReLU -> 1x1 conv, BN3 stats --------------------
    y3, s3, q3 = _mm_stats(y2, params["w3p"], sc2, sh2,
                           apply_preact=True, tile_m=tile_m3)
    sc3, sh3 = _bn_scale_shift(s3, q3, params["g3p"], params["b3p"], M)

    # ---- final: BN3 apply + identity residual + ReLU -----------------------
    out2d = _bn_apply_residual_relu(y3, sc3, sh3, x_res, tile_m=tile_m4)
    if cp_in != cin:
        out2d = out2d[:, :cin]
    out = out2d.reshape(N, H, W, cin)
    return jnp.transpose(out, (0, 3, 1, 2))           # back to NCHW


def prepare_params(pt, planes):
    """PyTorch OIHW conv weights / BN params -> lane-padded bf16 matmul layout."""
    cin = 4 * planes
    cp_in = _round_up(cin, LANE)
    cp_mid = _round_up(planes, LANE)

    w1 = jnp.transpose(pt["w1"][:, :, 0, 0], (1, 0))                       # (cin, planes)
    w1p = jnp.zeros((cp_in, cp_mid), jnp.float32).at[:cin, :planes].set(w1)
    w2 = jnp.transpose(pt["w2"], (2, 3, 1, 0)).reshape(9, planes, planes)  # (kh*kw, in, out)
    w2p = jnp.zeros((9, cp_mid, cp_mid), jnp.float32).at[:, :planes, :planes].set(w2)
    w2p = w2p.reshape(9 * cp_mid, cp_mid)                                  # long-K layout
    w3 = jnp.transpose(pt["w3"][:, :, 0, 0], (1, 0))                       # (planes, cin)
    w3p = jnp.zeros((cp_mid, cp_in), jnp.float32).at[:planes, :cin].set(w3)

    def padc(v, c):
        return jnp.zeros((c,), jnp.float32).at[:v.shape[0]].set(v)

    return dict(
        w1p=w1p.astype(jnp.bfloat16),
        w2p=w2p.astype(jnp.bfloat16),
        w3p=w3p.astype(jnp.bfloat16),
        g1p=padc(pt["g1"], cp_mid), b1p=padc(pt["b1"], cp_mid),
        g2p=padc(pt["g2"], cp_mid), b2p=padc(pt["b2"], cp_mid),
        g3p=padc(pt["g3"], cp_in), b3p=padc(pt["b3"], cp_in),
    )


# ----------------------------------------------------------------------------
# Pure-JAX reference (PyTorch training-mode BN semantics).
#   mxu_dtype / store_dtype = bfloat16 mirrors the kernel's MXU operand and
#   HBM intermediate precision (stats always from the f32 conv output).
# ----------------------------------------------------------------------------
def reference_forward(x_nchw, pt, mxu_dtype=jnp.float32, store_dtype=jnp.float32):
    f32 = jnp.float32
    x = jnp.transpose(x_nchw, (0, 2, 3, 1)).astype(f32)
    xs = x.astype(store_dtype).astype(f32)        # residual as stored by kernel

    def conv(h, w_oihw, pad):
        w_hwio = jnp.transpose(w_oihw, (2, 3, 1, 0))
        return jax.lax.conv_general_dilated(
            h.astype(mxu_dtype), w_hwio.astype(mxu_dtype), (1, 1),
            [(pad, pad), (pad, pad)],
            dimension_numbers=("NHWC", "HWIO", "NHWC"),
            preferred_element_type=f32)

    def bn_stats(h):
        mean = jnp.mean(h, axis=(0, 1, 2), keepdims=True)
        var = jnp.maximum(jnp.mean(h * h, axis=(0, 1, 2), keepdims=True)
                          - mean * mean, 0.0)
        return mean, var

    def bn_apply(hq, mean, var, g, b):
        return (hq - mean) * jax.lax.rsqrt(var + EPS) * g + b

    h = conv(xs, pt["w1"], 0)
    m, v = bn_stats(h)
    h = h.astype(store_dtype).astype(f32)
    h = jax.nn.relu(bn_apply(h, m, v, pt["g1"], pt["b1"]))

    h = conv(h, pt["w2"], 1)
    m, v = bn_stats(h)
    h = h.astype(store_dtype).astype(f32)
    h = jax.nn.relu(bn_apply(h, m, v, pt["g2"], pt["b2"]))

    h = conv(h, pt["w3"], 0)
    m, v = bn_stats(h)
    h = h.astype(store_dtype).astype(f32)
    h = bn_apply(h, m, v, pt["g3"], pt["b3"])

    out = jax.nn.relu(h + xs)
    return jnp.transpose(out, (0, 3, 1, 2))


if __name__ == "__main__":
    key = jax.random.PRNGKey(0)
    N, H, W = 2, 16, 16
    planes = 4
    inplanes = planes * 4          # 16 (downsample=None configuration)

    ks = jax.random.split(key, 10)
    x = jax.random.normal(ks[0], (N, inplanes, H, W), jnp.float32)
    pt = dict(
        w1=0.1 * jax.random.normal(ks[1], (planes, inplanes, 1, 1), jnp.float32),
        w2=0.1 * jax.random.normal(ks[2], (planes, planes, 3, 3), jnp.float32),
        w3=0.1 * jax.random.normal(ks[3], (planes * 4, planes, 1, 1), jnp.float32),
        g1=1.0 + 0.1 * jax.random.normal(ks[4], (planes,), jnp.float32),
        b1=0.1 * jax.random.normal(ks[5], (planes,), jnp.float32),
        g2=1.0 + 0.1 * jax.random.normal(ks[6], (planes,), jnp.float32),
        b2=0.1 * jax.random.normal(ks[7], (planes,), jnp.float32),
        g3=1.0 + 0.1 * jax.random.normal(ks[8], (planes * 4,), jnp.float32),
        b3=0.1 * jax.random.normal(ks[9], (planes * 4,), jnp.float32),
    )
    params = prepare_params(pt, planes)

    fwd = jax.jit(functools.partial(bottleneck_forward, planes=planes))
    out = jax.block_until_ready(fwd(x, params))
    assert out.shape == (N, planes * 4, H, W), out.shape

    # Tight check vs a reference with matched precision (bf16 MXU operands and
    # bf16-stored intermediates), plus a loose sanity check vs pure f32.
    ref_match = reference_forward(x, pt, mxu_dtype=jnp.bfloat16,
                                  store_dtype=jnp.bfloat16)
    ref_f32 = reference_forward(x, pt)
    err_match = float(jnp.max(jnp.abs(out - ref_match)))
    err_f32 = float(jnp.max(jnp.abs(out - ref_f32)))

    if err_match > 2e-2:
        raise AssertionError(f"mismatch vs matched-precision reference: {err_match}")
    if err_f32 > 2.5e-1:
        raise AssertionError(f"mismatch vs f32 reference: {err_f32}")
    print("KERNEL_OK")
</pallas_src>

<mosaic_0001>
module attributes {stable_mosaic.version = 11 : i64} {
  func.func @_mm_stats_kernel(%arg0: i32, %arg1: memref<512x128xbf16, #tpu.memory_space<vmem>>, %arg2: memref<128x128xbf16, #tpu.memory_space<vmem>>, %arg3: memref<1x128xf32, #tpu.memory_space<vmem>>, %arg4: memref<1x128xf32, #tpu.memory_space<vmem>>, %arg5: memref<512x128xbf16, #tpu.memory_space<vmem>>, %arg6: memref<1x128xf32, #tpu.memory_space<vmem>>, %arg7: memref<1x128xf32, #tpu.memory_space<vmem>>) attributes {dimension_semantics = [#tpu.dimension_semantics<arbitrary>], iteration_bounds = array<i64: 1>, scalar_prefetch = 0 : i64, scratch_operands = 0 : i64, tpu.core_type = #tpu.core_type<tc>, window_params = [{transform_indices = @transform_0, window_bounds = array<i64: 512, 128>}, {pipeline_mode = #tpu.pipeline_mode<synchronous>, transform_indices = @transform_1, window_bounds = array<i64: 128, 128>}, {pipeline_mode = #tpu.pipeline_mode<synchronous>, transform_indices = @transform_2, window_bounds = array<i64: 1, 128>}, {pipeline_mode = #tpu.pipeline_mode<synchronous>, transform_indices = @transform_3, window_bounds = array<i64: 1, 128>}, {transform_indices = @transform_4, window_bounds = array<i64: 512, 128>}, {pipeline_mode = #tpu.pipeline_mode<synchronous>, transform_indices = @transform_5, window_bounds = array<i64: 1, 128>}, {pipeline_mode = #tpu.pipeline_mode<synchronous>, transform_indices = @transform_6, window_bounds = array<i64: 1, 128>}]} {
    %c0 = arith.constant 0 : index
    %c0_0 = arith.constant 0 : index
    %0 = vector.load %arg1[%c0, %c0_0] : memref<512x128xbf16, #tpu.memory_space<vmem>>, vector<512x128xbf16>
    %c0_1 = arith.constant 0 : index
    %c0_2 = arith.constant 0 : index
    %1 = vector.load %arg2[%c0_1, %c0_2] : memref<128x128xbf16, #tpu.memory_space<vmem>>, vector<128x128xbf16>
    %cst = arith.constant dense<0.000000e+00> : vector<512x128xf32>
    %2 = tpu.matmul %0, %1, %cst {dimension_numbers = #tpu.dot_dimension_numbers<[1], [0], [0], [1], [0, 0, 1, 1], [], []>} : vector<512x128xbf16>, vector<128x128xbf16>, vector<512x128xf32> -> vector<512x128xf32>
    %c0_i32 = arith.constant 0 : i32
    %3 = arith.cmpi eq, %arg0, %c0_i32 : i32
    %4 = arith.extui %3 : i1 to i32
    %c0_i32_3 = arith.constant 0 : i32
    %5 = arith.cmpi ne, %4, %c0_i32_3 : i32
    scf.if %5 {
      %cst_16 = arith.constant 0.000000e+00 : f32
      %19 = vector.broadcast %cst_16 : f32 to vector<1x128xf32>
      %c0_17 = arith.constant 0 : index
      %c0_18 = arith.constant 0 : index
      %20 = vector.load %arg6[%c0_17, %c0_18] : memref<1x128xf32, #tpu.memory_space<vmem>>, vector<1x128xf32>
      tpu.vector_store %arg6[%c0_17, %c0_18], %19 {strides = array<i32>} : memref<1x128xf32, #tpu.memory_space<vmem>>, vector<1x128xf32>,
      %cst_19 = arith.constant 0.000000e+00 : f32
      %21 = vector.broadcast %cst_19 : f32 to vector<1x128xf32>
      %c0_20 = arith.constant 0 : index
      %c0_21 = arith.constant 0 : index
      %22 = vector.load %arg7[%c0_20, %c0_21] : memref<1x128xf32, #tpu.memory_space<vmem>>, vector<1x128xf32>
      tpu.vector_store %arg7[%c0_20, %c0_21], %21 {strides = array<i32>} : memref<1x128xf32, #tpu.memory_space<vmem>>, vector<1x128xf32>,
    } else {
    }
    %c0_4 = arith.constant 0 : index
    %c0_5 = arith.constant 0 : index
    %6 = vector.load %arg6[%c0_4, %c0_5] : memref<1x128xf32, #tpu.memory_space<vmem>>, vector<1x128xf32>
    %cst_6 = arith.constant dense<0.000000e+00> : vector<128xf32>
    %7 = vector.multi_reduction <add>, %2, %cst_6 [0] : vector<512x128xf32> to vector<128xf32>
    %8 = vector.shape_cast %7 : vector<128xf32> to vector<1x128xf32>
    %9 = arith.addf %6, %8 : vector<1x128xf32>
    %c0_7 = arith.constant 0 : index
    %c0_8 = arith.constant 0 : index
    %10 = vector.load %arg6[%c0_7, %c0_8] : memref<1x128xf32, #tpu.memory_space<vmem>>, vector<1x128xf32>
    tpu.vector_store %arg6[%c0_7, %c0_8], %9 {strides = array<i32>} : memref<1x128xf32, #tpu.memory_space<vmem>>, vector<1x128xf32>,
    %c0_9 = arith.constant 0 : index
    %c0_10 = arith.constant 0 : index
    %11 = vector.load %arg7[%c0_9, %c0_10] : memref<1x128xf32, #tpu.memory_space<vmem>>, vector<1x128xf32>
    %12 = arith.mulf %2, %2 : vector<512x128xf32>
    %cst_11 = arith.constant dense<0.000000e+00> : vector<128xf32>
    %13 = vector.multi_reduction <add>, %12, %cst_11 [0] : vector<512x128xf32> to vector<128xf32>
    %14 = vector.shape_cast %13 : vector<128xf32> to vector<1x128xf32>
    %15 = arith.addf %11, %14 : vector<1x128xf32>
    %c0_12 = arith.constant 0 : index
    %c0_13 = arith.constant 0 : index
    %16 = vector.load %arg7[%c0_12, %c0_13] : memref<1x128xf32, #tpu.memory_space<vmem>>, vector<1x128xf32>
    tpu.vector_store %arg7[%c0_12, %c0_13], %15 {strides = array<i32>} : memref<1x128xf32, #tpu.memory_space<vmem>>, vector<1x128xf32>,
    %17 = arith.truncf %2 : vector<512x128xf32> to vector<512x128xbf16>
    %c0_14 = arith.constant 0 : index
    %c0_15 = arith.constant 0 : index
    %18 = vector.load %arg5[%c0_14, %c0_15] : memref<512x128xbf16, #tpu.memory_space<vmem>>, vector<512x128xbf16>
    tpu.vector_store %arg5[%c0_14, %c0_15], %17 {strides = array<i32>} : memref<512x128xbf16, #tpu.memory_space<vmem>>, vector<512x128xbf16>,
    return
  }
  func.func @transform_0(%arg0: i32) -> (i32, i32) {
    %c0_i32 = arith.constant 0 : i32
    %c0_i32_0 = arith.constant 0 : i32
    return %arg0, %c0_i32 : i32, i32
  }
  func.func @transform_1(%arg0: i32) -> (i32, i32) {
    %c0_i32 = arith.constant 0 : i32
    %c0_i32_0 = arith.constant 0 : i32
    %c0_i32_1 = arith.constant 0 : i32
    return %c0_i32, %c0_i32_0 : i32, i32
  }
  func.func @transform_2(%arg0: i32) -> (i32, i32) {
    %c0_i32 = arith.constant 0 : i32
    %c0_i32_0 = arith.constant 0 : i32
    %c0_i32_1 = arith.constant 0 : i32
    return %c0_i32, %c0_i32_0 : i32, i32
  }
  func.func @transform_3(%arg0: i32) -> (i32, i32) {
    %c0_i32 = arith.constant 0 : i32
    %c0_i32_0 = arith.constant 0 : i32
    %c0_i32_1 = arith.constant 0 : i32
    return %c0_i32, %c0_i32_0 : i32, i32
  }
  func.func @transform_4(%arg0: i32) -> (i32, i32) {
    %c0_i32 = arith.constant 0 : i32
    %c0_i32_0 = arith.constant 0 : i32
    return %arg0, %c0_i32 : i32, i32
  }
  func.func @transform_5(%arg0: i32) -> (i32, i32) {
    %c0_i32 = arith.constant 0 : i32
    %c0_i32_0 = arith.constant 0 : i32
    %c0_i32_1 = arith.constant 0 : i32
    return %c0_i32, %c0_i32_0 : i32, i32
  }
  func.func @transform_6(%arg0: i32) -> (i32, i32) {
    %c0_i32 = arith.constant 0 : i32
    %c0_i32_0 = arith.constant 0 : i32
    %c0_i32_1 = arith.constant 0 : i32
    return %c0_i32, %c0_i32_0 : i32, i32
  }
}

module attributes {stable_mosaic.version = 11 : i64} {
  func.func @_mm_stats_kernel(%arg0: i32, %arg1: memref<512x128xbf16, #tpu.memory_space<vmem>>, %arg2: memref<128x128xbf16, #tpu.memory_space<vmem>>, %arg3: memref<1x128xf32, #tpu.memory_space<vmem>>, %arg4: memref<1x128xf32, #tpu.memory_space<vmem>>, %arg5: memref<512x128xbf16, #tpu.memory_space<vmem>>, %arg6: memref<1x128xf32, #tpu.memory_space<vmem>>, %arg7: memref<1x128xf32, #tpu.memory_space<vmem>>) attributes {dimension_semantics = [#tpu.dimension_semantics<arbitrary>], iteration_bounds = array<i64: 1>, scalar_prefetch = 0 : i64, scratch_operands = 0 : i64, tpu.core_type = #tpu.core_type<tc>, window_params = [{transform_indices = @transform_0, window_bounds = array<i64: 512, 128>}, {pipeline_mode = #tpu.pipeline_mode<synchronous>, transform_indices = @transform_1, window_bounds = array<i64: 128, 128>}, {pipeline_mode = #tpu.pipeline_mode<synchronous>, transform_indices = @transform_2, window_bounds = array<i64: 1, 128>}, {pipeline_mode = #tpu.pipeline_mode<synchronous>, transform_indices = @transform_3, window_bounds = array<i64: 1, 128>}, {transform_indices = @transform_4, window_bounds = array<i64: 512, 128>}, {pipeline_mode = #tpu.pipeline_mode<synchronous>, transform_indices = @transform_5, window_bounds = array<i64: 1, 128>}, {pipeline_mode = #tpu.pipeline_mode<synchronous>, transform_indices = @transform_6, window_bounds = array<i64: 1, 128>}]} {
    %c0 = arith.constant 0 : index
    %c0_0 = arith.constant 0 : index
    %0 = vector.load %arg1[%c0, %c0_0] : memref<512x128xbf16, #tpu.memory_space<vmem>>, vector<512x128xbf16>
    %1 = arith.extf %0 : vector<512x128xbf16> to vector<512x128xf32>
    %c0_1 = arith.constant 0 : index
    %c0_2 = arith.constant 0 : index
    %2 = vector.load %arg3[%c0_1, %c0_2] : memref<1x128xf32, #tpu.memory_space<vmem>>, vector<1x128xf32>
    %3 = vector.broadcast %2 : vector<1x128xf32> to vector<512x128xf32>
    %4 = arith.mulf %1, %3 : vector<512x128xf32>
    %c0_3 = arith.constant 0 : index
    %c0_4 = arith.constant 0 : index
    %5 = vector.load %arg4[%c0_3, %c0_4] : memref<1x128xf32, #tpu.memory_space<vmem>>, vector<1x128xf32>
    %6 = vector.broadcast %5 : vector<1x128xf32> to vector<512x128xf32>
    %7 = arith.addf %4, %6 : vector<512x128xf32>
    %cst = arith.constant 0.000000e+00 : f32
    %8 = vector.broadcast %cst : f32 to vector<512x128xf32>
    %9 = arith.maximumf %7, %8 : vector<512x128xf32>
    %10 = arith.truncf %9 : vector<512x128xf32> to vector<512x128xbf16>
    %c0_5 = arith.constant 0 : index
    %c0_6 = arith.constant 0 : index
    %11 = vector.load %arg2[%c0_5, %c0_6] : memref<128x128xbf16, #tpu.memory_space<vmem>>, vector<128x128xbf16>
    %cst_7 = arith.constant dense<0.000000e+00> : vector<512x128xf32>
    %12 = tpu.matmul %10, %11, %cst_7 {dimension_numbers = #tpu.dot_dimension_numbers<[1], [0], [0], [1], [0, 0, 1, 1], [], []>} : vector<512x128xbf16>, vector<128x128xbf16>, vector<512x128xf32> -> vector<512x128xf32>
    %c0_i32 = arith.constant 0 : i32
    %13 = arith.cmpi eq, %arg0, %c0_i32 : i32
    %14 = arith.extui %13 : i1 to i32
    %c0_i32_8 = arith.constant 0 : i32
    %15 = arith.cmpi ne, %14, %c0_i32_8 : i32
    scf.if %15 {
      %cst_21 = arith.constant 0.000000e+00 : f32
      %29 = vector.broadcast %cst_21 : f32 to vector<1x128xf32>
      %c0_22 = arith.constant 0 : index
      %c0_23 = arith.constant 0 : index
      %30 = vector.load %arg6[%c0_22, %c0_23] : memref<1x128xf32, #tpu.memory_space<vmem>>, vector<1x128xf32>
      tpu.vector_store %arg6[%c0_22, %c0_23], %29 {strides = array<i32>} : memref<1x128xf32, #tpu.memory_space<vmem>>, vector<1x128xf32>,
      %cst_24 = arith.constant 0.000000e+00 : f32
      %31 = vector.broadcast %cst_24 : f32 to vector<1x128xf32>
      %c0_25 = arith.constant 0 : index
      %c0_26 = arith.constant 0 : index
      %32 = vector.load %arg7[%c0_25, %c0_26] : memref<1x128xf32, #tpu.memory_space<vmem>>, vector<1x128xf32>
      tpu.vector_store %arg7[%c0_25, %c0_26], %31 {strides = array<i32>} : memref<1x128xf32, #tpu.memory_space<vmem>>, vector<1x128xf32>,
    } else {
    }
    %c0_9 = arith.constant 0 : index
    %c0_10 = arith.constant 0 : index
    %16 = vector.load %arg6[%c0_9, %c0_10] : memref<1x128xf32, #tpu.memory_space<vmem>>, vector<1x128xf32>
    %cst_11 = arith.constant dense<0.000000e+00> : vector<128xf32>
    %17 = vector.multi_reduction <add>, %12, %cst_11 [0] : vector<512x128xf32> to vector<128xf32>
    %18 = vector.shape_cast %17 : vector<128xf32> to vector<1x128xf32>
    %19 = arith.addf %16, %18 : vector<1x128xf32>
    %c0_12 = arith.constant 0 : index
    %c0_13 = arith.constant 0 : index
    %20 = vector.load %arg6[%c0_12, %c0_13] : memref<1x128xf32, #tpu.memory_space<vmem>>, vector<1x128xf32>
    tpu.vector_store %arg6[%c0_12, %c0_13], %19 {strides = array<i32>} : memref<1x128xf32, #tpu.memory_space<vmem>>, vector<1x128xf32>,
    %c0_14 = arith.constant 0 : index
    %c0_15 = arith.constant 0 : index
    %21 = vector.load %arg7[%c0_14, %c0_15] : memref<1x128xf32, #tpu.memory_space<vmem>>, vector<1x128xf32>
    %22 = arith.mulf %12, %12 : vector<512x128xf32>
    %cst_16 = arith.constant dense<0.000000e+00> : vector<128xf32>
    %23 = vector.multi_reduction <add>, %22, %cst_16 [0] : vector<512x128xf32> to vector<128xf32>
    %24 = vector.shape_cast %23 : vector<128xf32> to vector<1x128xf32>
    %25 = arith.addf %21, %24 : vector<1x128xf32>
    %c0_17 = arith.constant 0 : index
    %c0_18 = arith.constant 0 : index
    %26 = vector.load %arg7[%c0_17, %c0_18] : memref<1x128xf32, #tpu.memory_space<vmem>>, vector<1x128xf32>
    tpu.vector_store %arg7[%c0_17, %c0_18], %25 {strides = array<i32>} : memref<1x128xf32, #tpu.memory_space<vmem>>, vector<1x128xf32>,
    %27 = arith.truncf %12 : vector<512x128xf32> to vector<512x128xbf16>
    %c0_19 = arith.constant 0 : index
    %c0_20 = arith.constant 0 : index
    %28 = vector.load %arg5[%c0_19, %c0_20] : memref<512x128xbf16, #tpu.memory_space<vmem>>, vector<512x128xbf16>
    tpu.vector_store %arg5[%c0_19, %c0_20], %27 {strides = array<i32>} : memref<512x128xbf16, #tpu.memory_space<vmem>>, vector<512x128xbf16>,
    return
  }
  func.func @transform_0(%arg0: i32) -> (i32, i32) {
    %c0_i32 = arith.constant 0 : i32
    %c0_i32_0 = arith.constant 0 : i32
    return %arg0, %c0_i32 : i32, i32
  }
  func.func @transform_1(%arg0: i32) -> (i32, i32) {
    %c0_i32 = arith.constant 0 : i32
    %c0_i32_0 = arith.constant 0 : i32
    %c0_i32_1 = arith.constant 0 : i32
    return %c0_i32, %c0_i32_0 : i32, i32
  }
  func.func @transform_2(%arg0: i32) -> (i32, i32) {
    %c0_i32 = arith.constant 0 : i32
    %c0_i32_0 = arith.constant 0 : i32
    %c0_i32_1 = arith.constant 0 : i32
    return %c0_i32, %c0_i32_0 : i32, i32
  }
  func.func @transform_3(%arg0: i32) -> (i32, i32) {
    %c0_i32 = arith.constant 0 : i32
    %c0_i32_0 = arith.constant 0 : i32
    %c0_i32_1 = arith.constant 0 : i32
    return %c0_i32, %c0_i32_0 : i32, i32
  }
  func.func @transform_4(%arg0: i32) -> (i32, i32) {
    %c0_i32 = arith.constant 0 : i32
    %c0_i32_0 = arith.constant 0 : i32
    return %arg0, %c0_i32 : i32, i32
  }
  func.func @transform_5(%arg0: i32) -> (i32, i32) {
    %c0_i32 = arith.constant 0 : i32
    %c0_i32_0 = arith.constant 0 : i32
    %c0_i32_1 = arith.constant 0 : i32
    return %c0_i32, %c0_i32_0 : i32, i32
  }
  func.func @transform_6(%arg0: i32) -> (i32, i32) {
    %c0_i32 = arith.constant 0 : i32
    %c0_i32_0 = arith.constant 0 : i32
    %c0_i32_1 = arith.constant 0 : i32
    return %c0_i32, %c0_i32_0 : i32, i32
  }
}

module attributes {stable_mosaic.version = 11 : i64} {
  func.func @_conv3x3_stats_kernel(%arg0: i32, %arg1: memref<2x16x16x128xbf16, #tpu.memory_space<vmem>>, %arg2: memref<1152x128xbf16, #tpu.memory_space<vmem>>, %arg3: memref<1x128xf32, #tpu.memory_space<vmem>>, %arg4: memref<1x128xf32, #tpu.memory_space<vmem>>, %arg5: memref<512x128xbf16, #tpu.memory_space<vmem>>, %arg6: memref<1x128xf32, #tpu.memory_space<vmem>>, %arg7: memref<1x128xf32, #tpu.memory_space<vmem>>, %arg8: memref<2x18x18x128xbf16, #tpu.memory_space<vmem>>, %arg9: memref<512x1152xbf16, #tpu.memory_space<vmem>>) attributes {dimension_semantics = [#tpu.dimension_semantics<arbitrary>], iteration_bounds = array<i64: 1>, scalar_prefetch = 0 : i64, scratch_operands = 2 : i64, tpu.core_type = #tpu.core_type<tc>, window_params = [{transform_indices = @transform_0, window_bounds = array<i64: 2, 16, 16, 128>}, {pipeline_mode = #tpu.pipeline_mode<synchronous>, transform_indices = @transform_1, window_bounds = array<i64: 1152, 128>}, {pipeline_mode = #tpu.pipeline_mode<synchronous>, transform_indices = @transform_2, window_bounds = array<i64: 1, 128>}, {pipeline_mode = #tpu.pipeline_mode<synchronous>, transform_indices = @transform_3, window_bounds = array<i64: 1, 128>}, {transform_indices = @transform_4, window_bounds = array<i64: 512, 128>}, {pipeline_mode = #tpu.pipeline_mode<synchronous>, transform_indices = @transform_5, window_bounds = array<i64: 1, 128>}, {pipeline_mode = #tpu.pipeline_mode<synchronous>, transform_indices = @transform_6, window_bounds = array<i64: 1, 128>}]} {
    %c0 = arith.constant 0 : index
    %c0_0 = arith.constant 0 : index
    %0 = vector.load %arg3[%c0, %c0_0] : memref<1x128xf32, #tpu.memory_space<vmem>>, vector<1x128xf32>
    %1 = vector.shape_cast %0 : vector<1x128xf32> to vector<1x1x1x128xf32>
    %c0_1 = arith.constant 0 : index
    %c0_2 = arith.constant 0 : index
    %2 = vector.load %arg4[%c0_1, %c0_2] : memref<1x128xf32, #tpu.memory_space<vmem>>, vector<1x128xf32>
    %3 = vector.shape_cast %2 : vector<1x128xf32> to vector<1x1x1x128xf32>
    %c0_3 = arith.constant 0 : index
    %c0_4 = arith.constant 0 : index
    %c0_5 = arith.constant 0 : index
    %c0_6 = arith.constant 0 : index
    %4 = vector.load %arg1[%c0_3, %c0_4, %c0_5, %c0_6] : memref<2x16x16x128xbf16, #tpu.memory_space<vmem>>, vector<2x16x16x128xbf16>
    %5 = arith.extf %4 : vector<2x16x16x128xbf16> to vector<2x16x16x128xf32>
    %6 = vector.broadcast %1 : vector<1x1x1x128xf32> to vector<2x16x16x128xf32>
    %7 = arith.mulf %5, %6 : vector<2x16x16x128xf32>
    %8 = vector.broadcast %3 : vector<1x1x1x128xf32> to vector<2x16x16x128xf32>
    %9 = arith.addf %7, %8 : vector<2x16x16x128xf32>
    %cst = arith.constant 0.000000e+00 : f32
    %10 = vector.broadcast %cst : f32 to vector<2x16x16x128xf32>
    %11 = arith.maximumf %9, %10 : vector<2x16x16x128xf32>
    %c0_i32 = arith.constant 0 : i32
    %12 = arith.cmpi eq, %arg0, %c0_i32 : i32
    %13 = arith.extui %12 : i1 to i32
    %c0_i32_7 = arith.constant 0 : i32
    %14 = arith.cmpi ne, %13, %c0_i32_7 : i32
    scf.if %14 {
      %cst_75 = arith.constant 0.000000e+00 : bf16
      %63 = vector.broadcast %cst_75 : bf16 to vector<2x18x18x128xbf16>
      %c0_76 = arith.constant 0 : index
      %c0_77 = arith.constant 0 : index
      %c0_78 = arith.constant 0 : index
      %c0_79 = arith.constant 0 : index
      %64 = vector.load %arg8[%c0_76, %c0_77, %c0_78, %c0_79] : memref<2x18x18x128xbf16, #tpu.memory_space<vmem>>, vector<2x18x18x128xbf16>
      tpu.vector_store %arg8[%c0_76, %c0_77, %c0_78, %c0_79], %63 {strides = array<i32>} : memref<2x18x18x128xbf16, #tpu.memory_space<vmem>>, vector<2x18x18x128xbf16>,
    } else {
    }
    %15 = arith.truncf %11 : vector<2x16x16x128xf32> to vector<2x16x16x128xbf16>
    %c0_8 = arith.constant 0 : index
    %c1 = arith.constant 1 : index
    %c1_9 = arith.constant 1 : index
    %c0_10 = arith.constant 0 : index
    %16 = vector.load %arg8[%c0_8, %c1, %c1_9, %c0_10] : memref<2x18x18x128xbf16, #tpu.memory_space<vmem>>, vector<2x16x16x128xbf16>
    tpu.vector_store %arg8[%c0_8, %c1, %c1_9, %c0_10], %15 {strides = array<i32>} : memref<2x18x18x128xbf16, #tpu.memory_space<vmem>>, vector<2x16x16x128xbf16>,
    %c0_11 = arith.constant 0 : index
    %c0_12 = arith.constant 0 : index
    %c0_13 = arith.constant 0 : index
    %c0_14 = arith.constant 0 : index
    %17 = vector.load %arg8[%c0_11, %c0_12, %c0_13, %c0_14] : memref<2x18x18x128xbf16, #tpu.memory_space<vmem>>, vector<2x16x16x128xbf16>
    %18 = vector.shape_cast %17 : vector<2x16x16x128xbf16> to vector<512x128xbf16>
    %c0_15 = arith.constant 0 : index
    %c0_16 = arith.constant 0 : index
    %19 = vector.load %arg9[%c0_15, %c0_16] : memref<512x1152xbf16, #tpu.memory_space<vmem>>, vector<512x128xbf16>
    tpu.vector_store %arg9[%c0_15, %c0_16], %18 {strides = array<i32>} : memref<512x1152xbf16, #tpu.memory_space<vmem>>, vector<512x128xbf16>,
    %c0_17 = arith.constant 0 : index
    %c0_18 = arith.constant 0 : index
    %c1_19 = arith.constant 1 : index
    %c0_20 = arith.constant 0 : index
    %20 = vector.load %arg8[%c0_17, %c0_18, %c1_19, %c0_20] : memref<2x18x18x128xbf16, #tpu.memory_space<vmem>>, vector<2x16x16x128xbf16>
    %21 = vector.shape_cast %20 : vector<2x16x16x128xbf16> to vector<512x128xbf16>
    %c0_21 = arith.constant 0 : index
    %c128 = arith.constant 128 : index
    %22 = vector.load %arg9[%c0_21, %c128] : memref<512x1152xbf16, #tpu.memory_space<vmem>>, vector<512x128xbf16>
    tpu.vector_store %arg9[%c0_21, %c128], %21 {strides = array<i32>} : memref<512x1152xbf16, #tpu.memory_space<vmem>>, vector<512x128xbf16>,
    %c0_22 = arith.constant 0 : index
    %c0_23 = arith.constant 0 : index
    %c2 = arith.constant 2 : index
    %c0_24 = arith.constant 0 : index
    %23 = vector.load %arg8[%c0_22, %c0_23, %c2, %c0_24] : memref<2x18x18x128xbf16, #tpu.memory_space<vmem>>, vector<2x16x16x128xbf16>
    %24 = vector.shape_cast %23 : vector<2x16x16x128xbf16> to vector<512x128xbf16>
    %c0_25 = arith.constant 0 : index
    %c256 = arith.constant 256 : index
    %25 = vector.load %arg9[%c0_25, %c256] : memref<512x1152xbf16, #tpu.memory_space<vmem>>, vector<512x128xbf16>
    tpu.vector_store %arg9[%c0_25, %c256], %24 {strides = array<i32>} : memref<512x1152xbf16, #tpu.memory_space<vmem>>, vector<512x128xbf16>,
    %c0_26 = arith.constant 0 : index
    %c1_27 = arith.constant 1 : index
    %c0_28 = arith.constant 0 : index
    %c0_29 = arith.constant 0 : index
    %26 = vector.load %arg8[%c0_26, %c1_27, %c0_28, %c0_29] : memref<2x18x18x128xbf16, #tpu.memory_space<vmem>>, vector<2x16x16x128xbf16>
    %27 = vector.shape_cast %26 : vector<2x16x16x128xbf16> to vector<512x128xbf16>
    %c0_30 = arith.constant 0 : index
    %c384 = arith.constant 384 : index
    %28 = vector.load %arg9[%c0_30, %c384] : memref<512x1152xbf16, #tpu.memory_space<vmem>>, vector<512x128xbf16>
    tpu.vector_store %arg9[%c0_30, %c384], %27 {strides = array<i32>} : memref<512x1152xbf16, #tpu.memory_space<vmem>>, vector<512x128xbf16>,
    %c0_31 = arith.constant 0 : index
    %c1_32 = arith.constant 1 : index
    %c1_33 = arith.constant 1 : index
    %c0_34 = arith.constant 0 : index
    %29 = vector.load %arg8[%c0_31, %c1_32, %c1_33, %c0_34] : memref<2x18x18x128xbf16, #tpu.memory_space<vmem>>, vector<2x16x16x128xbf16>
    %30 = vector.shape_cast %29 : vector<2x16x16x128xbf16> to vector<512x128xbf16>
    %c0_35 = arith.constant 0 : index
    %c512 = arith.constant 512 : index
    %31 = vector.load %arg9[%c0_35, %c512] : memref<512x1152xbf16, #tpu.memory_space<vmem>>, vector<512x128xbf16>
    tpu.vector_store %arg9[%c0_35, %c512], %30 {strides = array<i32>} : memref<512x1152xbf16, #tpu.memory_space<vmem>>, vector<512x128xbf16>,
    %c0_36 = arith.constant 0 : index
    %c1_37 = arith.constant 1 : index
    %c2_38 = arith.constant 2 : index
    %c0_39 = arith.constant 0 : index
    %32 = vector.load %arg8[%c0_36, %c1_37, %c2_38, %c0_39] : memref<2x18x18x128xbf16, #tpu.memory_space<vmem>>, vector<2x16x16x128xbf16>
    %33 = vector.shape_cast %32 : vector<2x16x16x128xbf16> to vector<512x128xbf16>
    %c0_40 = arith.constant 0 : index
    %c640 = arith.constant 640 : index
    %34 = vector.load %arg9[%c0_40, %c640] : memref<512x1152xbf16, #tpu.memory_space<vmem>>, vector<512x128xbf16>
    tpu.vector_store %arg9[%c0_40, %c640], %33 {strides = array<i32>} : memref<512x1152xbf16, #tpu.memory_space<vmem>>, vector<512x128xbf16>,
    %c0_41 = arith.constant 0 : index
    %c2_42 = arith.constant 2 : index
    %c0_43 = arith.constant 0 : index
    %c0_44 = arith.constant 0 : index
    %35 = vector.load %arg8[%c0_41, %c2_42, %c0_43, %c0_44] : memref<2x18x18x128xbf16, #tpu.memory_space<vmem>>, vector<2x16x16x128xbf16>
    %36 = vector.shape_cast %35 : vector<2x16x16x128xbf16> to vector<512x128xbf16>
    %c0_45 = arith.constant 0 : index
    %c768 = arith.constant 768 : index
    %37 = vector.load %arg9[%c0_45, %c768] : memref<512x1152xbf16, #tpu.memory_space<vmem>>, vector<512x128xbf16>
    tpu.vector_store %arg9[%c0_45, %c768], %36 {strides = array<i32>} : memref<512x1152xbf16, #tpu.memory_space<vmem>>, vector<512x128xbf16>,
    %c0_46 = arith.constant 0 : index
    %c2_47 = arith.constant 2 : index
    %c1_48 = arith.constant 1 : index
    %c0_49 = arith.constant 0 : index
    %38 = vector.load %arg8[%c0_46, %c2_47, %c1_48, %c0_49] : memref<2x18x18x128xbf16, #tpu.memory_space<vmem>>, vector<2x16x16x128xbf16>
    %39 = vector.shape_cast %38 : vector<2x16x16x128xbf16> to vector<512x128xbf16>
    %c0_50 = arith.constant 0 : index
    %c896 = arith.constant 896 : index
    %40 = vector.load %arg9[%c0_50, %c896] : memref<512x1152xbf16, #tpu.memory_space<vmem>>, vector<512x128xbf16>
    tpu.vector_store %arg9[%c0_50, %c896], %39 {strides = array<i32>} : memref<512x1152xbf16, #tpu.memory_space<vmem>>, vector<512x128xbf16>,
    %c0_51 = arith.constant 0 : index
    %c2_52 = arith.constant 2 : index
    %c2_53 = arith.constant 2 : index
    %c0_54 = arith.constant 0 : index
    %41 = vector.load %arg8[%c0_51, %c2_52, %c2_53, %c0_54] : memref<2x18x18x128xbf16, #tpu.memory_space<vmem>>, vector<2x16x16x128xbf16>
    %42 = vector.shape_cast %41 : vector<2x16x16x128xbf16> to vector<512x128xbf16>
    %c0_55 = arith.constant 0 : index
    %c1024 = arith.constant 1024 : index
    %43 = vector.load %arg9[%c0_55, %c1024] : memref<512x1152xbf16, #tpu.memory_space<vmem>>, vector<512x128xbf16>
    tpu.vector_store %arg9[%c0_55, %c1024], %42 {strides = array<i32>} : memref<512x1152xbf16, #tpu.memory_space<vmem>>, vector<512x128xbf16>,
    %c0_56 = arith.constant 0 : index
    %c0_57 = arith.constant 0 : index
    %44 = vector.load %arg9[%c0_56, %c0_57] : memref<512x1152xbf16, #tpu.memory_space<vmem>>, vector<512x1152xbf16>
    %c0_58 = arith.constant 0 : index
    %c0_59 = arith.constant 0 : index
    %45 = vector.load %arg2[%c0_58, %c0_59] : memref<1152x128xbf16, #tpu.memory_space<vmem>>, vector<1152x128xbf16>
    %cst_60 = arith.constant dense<0.000000e+00> : vector<512x128xf32>
    %46 = tpu.matmul %44, %45, %cst_60 {dimension_numbers = #tpu.dot_dimension_numbers<[1], [0], [0], [1], [0, 0, 1, 1], [], []>} : vector<512x1152xbf16>, vector<1152x128xbf16>, vector<512x128xf32> -> vector<512x128xf32>
    %c0_i32_61 = arith.constant 0 : i32
    %47 = arith.cmpi eq, %arg0, %c0_i32_61 : i32
    %48 = arith.extui %47 : i1 to i32
    %c0_i32_62 = arith.constant 0 : i32
    %49 = arith.cmpi ne, %48, %c0_i32_62 : i32
    scf.if %49 {
      %cst_75 = arith.constant 0.000000e+00 : f32
      %63 = vector.broadcast %cst_75 : f32 to vector<1x128xf32>
      %c0_76 = arith.constant 0 : index
      %c0_77 = arith.constant 0 : index
      %64 = vector.load %arg6[%c0_76, %c0_77] : memref<1x128xf32, #tpu.memory_space<vmem>>, vector<1x128xf32>
      tpu.vector_store %arg6[%c0_76, %c0_77], %63 {strides = array<i32>} : memref<1x128xf32, #tpu.memory_space<vmem>>, vector<1x128xf32>,
      %cst_78 = arith.constant 0.000000e+00 : f32
      %65 = vector.broadcast %cst_78 : f32 to vector<1x128xf32>
      %c0_79 = arith.constant 0 : index
      %c0_80 = arith.constant 0 : index
      %66 = vector.load %arg7[%c0_79, %c0_80] : memref<1x128xf32, #tpu.memory_space<vmem>>, vector<1x128xf32>
      tpu.vector_store %arg7[%c0_79, %c0_80], %65 {strides = array<i32>} : memref<1x128xf32, #tpu.memory_space<vmem>>, vector<1x128xf32>,
    } else {
    }
    %c0_63 = arith.constant 0 : index
    %c0_64 = arith.constant 0 : index
    %50 = vector.load %arg6[%c0_63, %c0_64] : memref<1x128xf32, #tpu.memory_space<vmem>>, vector<1x128xf32>
    %cst_65 = arith.constant dense<0.000000e+00> : vector<128xf32>
    %51 = vector.multi_reduction <add>, %46, %cst_65 [0] : vector<512x128xf32> to vector<128xf32>
    %52 = vector.shape_cast %51 : vector<128xf32> to vector<1x128xf32>
    %53 = arith.addf %50, %52 : vector<1x128xf32>
    %c0_66 = arith.constant 0 : index
    %c0_67 = arith.constant 0 : index
    %54 = vector.load %arg6[%c0_66, %c0_67] : memref<1x128xf32, #tpu.memory_space<vmem>>, vector<1x128xf32>
    tpu.vector_store %arg6[%c0_66, %c0_67], %53 {strides = array<i32>} : memref<1x128xf32, #tpu.memory_space<vmem>>, vector<1x128xf32>,
    %c0_68 = arith.constant 0 : index
    %c0_69 = arith.constant 0 : index
    %55 = vector.load %arg7[%c0_68, %c0_69] : memref<1x128xf32, #tpu.memory_space<vmem>>, vector<1x128xf32>
    %56 = arith.mulf %46, %46 : vector<512x128xf32>
    %cst_70 = arith.constant dense<0.000000e+00> : vector<128xf32>
    %57 = vector.multi_reduction <add>, %56, %cst_70 [0] : vector<512x128xf32> to vector<128xf32>
    %58 = vector.shape_cast %57 : vector<128xf32> to vector<1x128xf32>
    %59 = arith.addf %55, %58 : vector<1x128xf32>
    %c0_71 = arith.constant 0 : index
    %c0_72 = arith.constant 0 : index
    %60 = vector.load %arg7[%c0_71, %c0_72] : memref<1x128xf32, #tpu.memory_space<vmem>>, vector<1x128xf32>
    tpu.vector_store %arg7[%c0_71, %c0_72], %59 {strides = array<i32>} : memref<1x128xf32, #tpu.memory_space<vmem>>, vector<1x128xf32>,
    %61 = arith.truncf %46 : vector<512x128xf32> to vector<512x128xbf16>
    %c0_73 = arith.constant 0 : index
    %c0_74 = arith.constant 0 : index
    %62 = vector.load %arg5[%c0_73, %c0_74] : memref<512x128xbf16, #tpu.memory_space<vmem>>, vector<512x128xbf16>
    tpu.vector_store %arg5[%c0_73, %c0_74], %61 {strides = array<i32>} : memref<512x128xbf16, #tpu.memory_space<vmem>>, vector<512x128xbf16>,
    return
  }
  func.func @transform_0(%arg0: i32) -> (i32, i32, i32, i32) {
    %c0_i32 = arith.constant 0 : i32
    %c0_i32_0 = arith.constant 0 : i32
    %c0_i32_1 = arith.constant 0 : i32
    %c0_i32_2 = arith.constant 0 : i32
    return %arg0, %c0_i32, %c0_i32_0, %c0_i32_1 : i32, i32, i32, i32
  }
  func.func @transform_1(%arg0: i32) -> (i32, i32) {
    %c0_i32 = arith.constant 0 : i32
    %c0_i32_0 = arith.constant 0 : i32
    %c0_i32_1 = arith.constant 0 : i32
    return %c0_i32, %c0_i32_0 : i32, i32
  }
  func.func @transform_2(%arg0: i32) -> (i32, i32) {
    %c0_i32 = arith.constant 0 : i32
    %c0_i32_0 = arith.constant 0 : i32
    %c0_i32_1 = arith.constant 0 : i32
    return %c0_i32, %c0_i32_0 : i32, i32
  }
  func.func @transform_3(%arg0: i32) -> (i32, i32) {
    %c0_i32 = arith.constant 0 : i32
    %c0_i32_0 = arith.constant 0 : i32
    %c0_i32_1 = arith.constant 0 : i32
    return %c0_i32, %c0_i32_0 : i32, i32
  }
  func.func @transform_4(%arg0: i32) -> (i32, i32) {
    %c0_i32 = arith.constant 0 : i32
    %c0_i32_0 = arith.constant 0 : i32
    return %arg0, %c0_i32 : i32, i32
  }
  func.func @transform_5(%arg0: i32) -> (i32, i32) {
    %c0_i32 = arith.constant 0 : i32
    %c0_i32_0 = arith.constant 0 : i32
    %c0_i32_1 = arith.constant 0 : i32
    return %c0_i32, %c0_i32_0 : i32, i32
  }
  func.func @transform_6(%arg0: i32) -> (i32, i32) {
    %c0_i32 = arith.constant 0 : i32
    %c0_i32_0 = arith.constant 0 : i32
    %c0_i32_1 = arith.constant 0 : i32
    return %c0_i32, %c0_i32_0 : i32, i32
  }
}

module attributes {stable_mosaic.version = 11 : i64} {
  func.func @_bn_apply_residual_relu_kernel(%arg0: i32, %arg1: memref<512x128xbf16, #tpu.memory_space<vmem>>, %arg2: memref<1x128xf32, #tpu.memory_space<vmem>>, %arg3: memref<1x128xf32, #tpu.memory_space<vmem>>, %arg4: memref<512x128xbf16, #tpu.memory_space<vmem>>, %arg5: memref<512x128xf32, #tpu.memory_space<vmem>>) attributes {dimension_semantics = [#tpu.dimension_semantics<parallel>], iteration_bounds = array<i64: 1>, scalar_prefetch = 0 : i64, scratch_operands = 0 : i64, tpu.core_type = #tpu.core_type<tc>, window_params = [{transform_indices = @transform_0, window_bounds = array<i64: 512, 128>}, {pipeline_mode = #tpu.pipeline_mode<synchronous>, transform_indices = @transform_1, window_bounds = array<i64: 1, 128>}, {pipeline_mode = #tpu.pipeline_mode<synchronous>, transform_indices = @transform_2, window_bounds = array<i64: 1, 128>}, {transform_indices = @transform_3, window_bounds = array<i64: 512, 128>}, {transform_indices = @transform_4, window_bounds = array<i64: 512, 128>}]} {
    %c0 = arith.constant 0 : index
    %c0_0 = arith.constant 0 : index
    %0 = vector.load %arg1[%c0, %c0_0] : memref<512x128xbf16, #tpu.memory_space<vmem>>, vector<512x128xbf16>
    %1 = arith.extf %0 : vector<512x128xbf16> to vector<512x128xf32>
    %c0_1 = arith.constant 0 : index
    %c0_2 = arith.constant 0 : index
    %2 = vector.load %arg2[%c0_1, %c0_2] : memref<1x128xf32, #tpu.memory_space<vmem>>, vector<1x128xf32>
    %3 = vector.broadcast %2 : vector<1x128xf32> to vector<512x128xf32>
    %4 = arith.mulf %1, %3 : vector<512x128xf32>
    %c0_3 = arith.constant 0 : index
    %c0_4 = arith.constant 0 : index
    %5 = vector.load %arg3[%c0_3, %c0_4] : memref<1x128xf32, #tpu.memory_space<vmem>>, vector<1x128xf32>
    %6 = vector.broadcast %5 : vector<1x128xf32> to vector<512x128xf32>
    %7 = arith.addf %4, %6 : vector<512x128xf32>
    %c0_5 = arith.constant 0 : index
    %c0_6 = arith.constant 0 : index
    %8 = vector.load %arg4[%c0_5, %c0_6] : memref<512x128xbf16, #tpu.memory_space<vmem>>, vector<512x128xbf16>
    %9 = arith.extf %8 : vector<512x128xbf16> to vector<512x128xf32>
    %10 = arith.addf %7, %9 : vector<512x128xf32>
    %cst = arith.constant 0.000000e+00 : f32
    %11 = vector.broadcast %cst : f32 to vector<512x128xf32>
    %12 = arith.maximumf %10, %11 : vector<512x128xf32>
    %c0_7 = arith.constant 0 : index
    %c0_8 = arith.constant 0 : index
    %13 = vector.load %arg5[%c0_7, %c0_8] : memref<512x128xf32, #tpu.memory_space<vmem>>, vector<512x128xf32>
    tpu.vector_store %arg5[%c0_7, %c0_8], %12 {strides = array<i32>} : memref<512x128xf32, #tpu.memory_space<vmem>>, vector<512x128xf32>,
    return
  }
  func.func @transform_0(%arg0: i32) -> (i32, i32) {
    %c0_i32 = arith.constant 0 : i32
    %c0_i32_0 = arith.constant 0 : i32
    return %arg0, %c0_i32 : i32, i32
  }
  func.func @transform_1(%arg0: i32) -> (i32, i32) {
    %c0_i32 = arith.constant 0 : i32
    %c0_i32_0 = arith.constant 0 : i32
    %c0_i32_1 = arith.constant 0 : i32
    return %c0_i32, %c0_i32_0 : i32, i32
  }
  func.func @transform_2(%arg0: i32) -> (i32, i32) {
    %c0_i32 = arith.constant 0 : i32
    %c0_i32_0 = arith.constant 0 : i32
    %c0_i32_1 = arith.constant 0 : i32
    return %c0_i32, %c0_i32_0 : i32, i32
  }
  func.func @transform_3(%arg0: i32) -> (i32, i32) {
    %c0_i32 = arith.constant 0 : i32
    %c0_i32_0 = arith.constant 0 : i32
    return %arg0, %c0_i32 : i32, i32
  }
  func.func @transform_4(%arg0: i32) -> (i32, i32) {
    %c0_i32 = arith.constant 0 : i32
    %c0_i32_0 = arith.constant 0 : i32
    return %arg0, %c0_i32 : i32, i32
  }
}

</mosaic_0001>

<bundles_post_ra>
// kernel: bottleneck_forward.4
= control target key start
LH: loop header
LB: loop body
LE: loop exit
PB: predicated region body
PF: predicated region fallthrough
CT: control target
= control target key end

     0   :  { %v1712_v40 = vmov 0.0   ;;  %s2174_s1 = inlined_call_operand.vmem [shape: bf16[128,128], index: 1, kind: input, shape index: {}]   ;;  %s2175_s2 = inlined_call_operand.vmem [shape: f32[1,128], index: 2, kind: input, shape index: {}, may-alias: {2,3}]   ;;  %s2176_s3 = inlined_call_operand.vmem [shape: f32[1,128], index: 3, kind: input, shape index: {}, may-alias: {2,3}]   ;;  %s2177_s0 = inlined_call_operand.vmem [shape: bf16[512,128], index: 0, kind: input, shape index: {}]   ;;  %s2178_s5 = inlined_call_operand.vmem [shape: f32[1,128], index: 5, kind: output, shape index: {1}]   ;;  %s2179_s6 = inlined_call_operand.vmem [shape: f32[1,128], index: 6, kind: output, shape index: {2}]   ;;  %s2180_s4 = inlined_call_operand.vmem [shape: bf16[512,128], index: 4, kind: output, shape index: {0}]  }
   0x1   :  { %v1672_v0 = vld [vmem:[%s2174_s1] sm:$0xff]   ;;  %v1673_v1 = vld [vmem:[%s2174_s1 + $0x8] sm:$0xff]   ;;  %v1674_v2 = vld [vmem:[%s2174_s1 + $0x10] sm:$0xff]   ;;  %634 = vst [vmem:[%s2178_s5] sm:$0x1] %v1712_v40 }
   0x2   :  { %1575 = vmatprep.subr.bf16.mxu0 %v1672_v0  ;;  %1655 = vmatprep.subr.bf16.mxu1 %v1672_v0  ;;  %v1675_v3 = vld [vmem:[%s2174_s1 + $0x18] sm:$0xff]   ;;  %v1680_v4 = vld [vmem:[%s2177_s0] sm:$0xff]   ;;  %v1677_v6 = vld [vmem:[%s2174_s1 + $0x28] sm:$0xff]   ;;  %635 = vst [vmem:[%s2179_s6] sm:$0x1] %v1712_v40 }
   0x3   :  { %1576 = vmatpush3.bf16.msra.mxu0 %v1672_v0  ;;  %1663 = vmatpush3.bf16.msra.mxu1 %v1672_v0  ;;  %v1676_v5 = vld [vmem:[%s2174_s1 + $0x20] sm:$0xff]   ;;  %v1678_v7 = vld [vmem:[%s2174_s1 + $0x30] sm:$0xff]   ;;  %v1679_v8 = vld [vmem:[%s2174_s1 + $0x38] sm:$0xff]  }
   0x4   :  { %1577 = vmatprep.subr.bf16.mxu0 %v1673_v1  ;;  %1656 = vmatprep.subr.bf16.mxu1 %v1673_v1  ;;  %v1696_v9 = vld [vmem:[%s2177_s0 + $0x80] sm:$0xff]   ;;  %v1681_v10 = vld [vmem:[%s2177_s0 + $0x8] sm:$0xff]   ;;  %v1682_v11 = vld [vmem:[%s2177_s0 + $0x10] sm:$0xff]  }
   0x5   :  { %1591 = vmatprep.mubr.bf16.mxu0 %v1680_v4  ;;  %1623 = vmatprep.mubr.bf16.mxu1 %v1696_v9  ;;  %v1697_v12 = vld [vmem:[%s2177_s0 + $0x88] sm:$0xff]   ;;  %v1698_v13 = vld [vmem:[%s2177_s0 + $0x90] sm:$0xff]   ;;  %v1683_v14 = vld [vmem:[%s2177_s0 + $0x18] sm:$0xff]  }
   0x6   :  { %v1684_v15 = vld [vmem:[%s2177_s0 + $0x20] sm:$0xff]   ;;  %v1699_v16 = vld [vmem:[%s2177_s0 + $0x98] sm:$0xff]   ;;  %v1685_v18 = vld [vmem:[%s2177_s0 + $0x28] sm:$0xff]  }
   0x7   :  { %1578 = vmatpush3.bf16.msra.mxu0 %v1673_v1  ;;  %1664 = vmatpush3.bf16.msra.mxu1 %v1673_v1  ;;  %v1700_v17 = vld [vmem:[%s2177_s0 + $0xa0] sm:$0xff]   ;;  %v1701_v19 = vld [vmem:[%s2177_s0 + $0xa8] sm:$0xff]   ;;  %v1686_v20 = vld [vmem:[%s2177_s0 + $0x30] sm:$0xff]  }
   0x8   :  { %1579 = vmatprep.subr.bf16.mxu0 %v1674_v2  ;;  %1657 = vmatprep.subr.bf16.mxu1 %v1674_v2  ;;  %v1702_v21 = vld [vmem:[%s2177_s0 + $0xb0] sm:$0xff]   ;;  %v1687_v22 = vld [vmem:[%s2177_s0 + $0x38] sm:$0xff]   ;;  %v1688_v24 = vld [vmem:[%s2177_s0 + $0x40] sm:$0xff]  }
   0x9   :  { %v1703_v23 = vld [vmem:[%s2177_s0 + $0xb8] sm:$0xff]   ;;  %v1704_v25 = vld [vmem:[%s2177_s0 + $0xc0] sm:$0xff]   ;;  %v1689_v26 = vld [vmem:[%s2177_s0 + $0x48] sm:$0xff]  }
   0xa   :  { %v1705_v27 = vld [vmem:[%s2177_s0 + $0xc8] sm:$0xff]   ;;  %v1690_v28 = vld [vmem:[%s2177_s0 + $0x50] sm:$0xff]   ;;  %v1691_v30 = vld [vmem:[%s2177_s0 + $0x58] sm:$0xff]  }
   0xb   :  { %1580 = vmatpush3.bf16.msra.mxu0 %v1674_v2  ;;  %1665 = vmatpush3.bf16.msra.mxu1 %v1674_v2  ;;  %v1706_v29 = vld [vmem:[%s2177_s0 + $0xd0] sm:$0xff]   ;;  %v1707_v31 = vld [vmem:[%s2177_s0 + $0xd8] sm:$0xff]   ;;  %v1692_v32 = vld [vmem:[%s2177_s0 + $0x60] sm:$0xff]  }
   0xc   :  { %1581 = vmatprep.subr.bf16.mxu0 %v1675_v3  ;;  %1658 = vmatprep.subr.bf16.mxu1 %v1675_v3  ;;  %v1708_v33 = vld [vmem:[%s2177_s0 + $0xe0] sm:$0xff]   ;;  %v1693_v34 = vld [vmem:[%s2177_s0 + $0x68] sm:$0xff]   ;;  %v1694_v36 = vld [vmem:[%s2177_s0 + $0x70] sm:$0xff]  }
   0xd   :  { %v1709_v35 = vld [vmem:[%s2177_s0 + $0xe8] sm:$0xff]   ;;  %v1710_v37 = vld [vmem:[%s2177_s0 + $0xf0] sm:$0xff]   ;;  %v1695_v38 = vld [vmem:[%s2177_s0 + $0x78] sm:$0xff]  }
   0xe   :  { %v1711_v39 = vld [vmem:[%s2177_s0 + $0xf8] sm:$0xff]  }
   0xf   :  { %1582 = vmatpush3.bf16.msra.mxu0 %v1675_v3  ;;  %1666 = vmatpush3.bf16.msra.mxu1 %v1675_v3 }
  0x10   :  { %1583 = vmatprep.subr.bf16.mxu0 %v1676_v5  ;;  %1659 = vmatprep.subr.bf16.mxu1 %v1676_v5 }
  0x13   :  { %1584 = vmatpush3.bf16.msra.mxu0 %v1676_v5  ;;  %1667 = vmatpush3.bf16.msra.mxu1 %v1676_v5 }
  0x14   :  { %1585 = vmatprep.subr.bf16.mxu0 %v1677_v6  ;;  %1660 = vmatprep.subr.bf16.mxu1 %v1677_v6 }
  0x17   :  { %1586 = vmatpush3.bf16.msra.mxu0 %v1677_v6  ;;  %1668 = vmatpush3.bf16.msra.mxu1 %v1677_v6 }
  0x18   :  { %1587 = vmatprep.subr.bf16.mxu0 %v1678_v7  ;;  %1661 = vmatprep.subr.bf16.mxu1 %v1678_v7 }
  0x1b   :  { %1588 = vmatpush3.bf16.msra.mxu0 %v1678_v7  ;;  %1669 = vmatpush3.bf16.msra.mxu1 %v1678_v7 }
  0x1c   :  { %1589 = vmatprep.subr.bf16.mxu0 %v1679_v8  ;;  %1662 = vmatprep.subr.bf16.mxu1 %v1679_v8 }
  0x1f   :  { %1590 = vmatpush3.bf16.msra.mxu0 %v1679_v8  ;;  %1670 = vmatpush3.bf16.msra.mxu1 %v1679_v8 }
  0x22   :  { %1592 = vmatmul.mubr.bf16.vlgmr.msra.gmra.mrb[0].mxu0 %v1681_v10  ;;  %1624 = vmatmul.mubr.bf16.vlgmr.msra.gmra.mrb[0].mxu1 %v1697_v12 }
  0x23   :  { %1595 = vmatprep.mubr.bf16.mxu0 %v1682_v11  ;;  %1627 = vmatprep.mubr.bf16.mxu1 %v1698_v13 }
  0x2a   :  { %1596 = vmatmul.mubr.bf16.gmra.mrb[4].mxu0 %v1683_v14  ;;  %1628 = vmatmul.mubr.bf16.gmra.mrb[4].mxu1 %v1699_v16 }
  0x2b   :  { %1599 = vmatprep.mubr.bf16.mxu0 %v1684_v15  ;;  %1631 = vmatprep.mubr.bf16.mxu1 %v1700_v17 }
  0x32   :  { %1600 = vmatmul.mubr.bf16.gmra.mrb[8].mxu0 %v1685_v18  ;;  %1632 = vmatmul.mubr.bf16.gmra.mrb[8].mxu1 %v1701_v19 }
  0x33   :  { %1603 = vmatprep.mubr.bf16.mxu0 %v1686_v20  ;;  %1635 = vmatprep.mubr.bf16.mxu1 %v1702_v21 }
  0x3a   :  { %1604 = vmatmul.mubr.bf16.gmra.mrb[12].mxu0 %v1687_v22  ;;  %1636 = vmatmul.mubr.bf16.gmra.mrb[12].mxu1 %v1703_v23 }
  0x3b   :  { %1607 = vmatprep.mubr.bf16.mxu0 %v1688_v24  ;;  %1639 = vmatprep.mubr.bf16.mxu1 %v1704_v25 }
  0x42   :  { %1608 = vmatmul.mubr.bf16.gmra.mrb[16].mxu0 %v1689_v26  ;;  %1640 = vmatmul.mubr.bf16.gmra.mrb[16].mxu1 %v1705_v27 }
  0x43   :  { %1611 = vmatprep.mubr.bf16.mxu0 %v1690_v28  ;;  %1643 = vmatprep.mubr.bf16.mxu1 %v1706_v29 }
  0x4a   :  { %1612 = vmatmul.mubr.bf16.gmra.mrb[20].mxu0 %v1691_v30  ;;  %1644 = vmatmul.mubr.bf16.gmra.mrb[20].mxu1 %v1707_v31 }
  0x4b   :  { %1615 = vmatprep.mubr.bf16.mxu0 %v1692_v32  ;;  %1647 = vmatprep.mubr.bf16.mxu1 %v1708_v33 }
  0x52   :  { %1616 = vmatmul.mubr.bf16.gmra.mrb[24].mxu0 %v1693_v34  ;;  %1648 = vmatmul.mubr.bf16.gmra.mrb[24].mxu1 %v1709_v35 }
  0x53   :  { %1619 = vmatprep.mubr.bf16.mxu0 %v1694_v36  ;;  %1651 = vmatprep.mubr.bf16.mxu1 %v1710_v37 }
  0x5a   :  { %1620 = vmatmul.mubr.bf16.gmra.mrb[28].mxu0 %v1695_v38  ;;  %1652 = vmatmul.mubr.bf16.gmra.mrb[28].mxu1 %v1711_v39 }
  0xf5   :  { %v1593_v41 = vpop.f32.mrb[0].mxu0  ;;  %v1874_v42 = vpop.f32.mrb[0].mxu1 }
  0xf6   :  { %v375_v43 = vpop.f32.mrb[1].mxu0  ;;  %v1876_v44 = vpop.f32.mrb[1].mxu1  ;;  %v711_v56 = vmul.f32 %v1593_v41, %v1593_v41 }
  0xf7   :  { %v1594_v45 = vpop.f32.mrb[2].mxu0  ;;  %v1878_v46 = vpop.f32.mrb[2].mxu1  ;;  %v709_v51 = vmul.f32 %v375_v43, %v375_v43 }
  0xf8   :  { %v1352_v47 = vpack.c.bf16 %v1594_v45, %v1593_v41  ;;  %v378_v48 = vpop.f32.mrb[3].mxu0  ;;  %v1432_v49 = vpack.c.bf16 %v1878_v46, %v1874_v42  ;;  %v1882_v50 = vpop.f32.mrb[3].mxu1  ;;  %v712_v59 = vmul.f32 %v1594_v45, %v1594_v45 }
  0xf9   :  { %v637_v52 = vadd.f32 %v378_v48, %v375_v43  ;;  %v710_v53 = vmul.f32 %v378_v48, %v378_v48  ;;  %v1347_v54 = vpack.c.bf16 %v378_v48, %v375_v43  ;;  %v1427_v55 = vpack.c.bf16 %v1882_v50, %v1876_v44 }
  0xfa   :  { %1504 = vst [vmem:[%s2180_s4 + $0x8] sm:$0xff] %v1352_v47   ;;  %1520 = vst [vmem:[%s2180_s4 + $0x88] sm:$0xff] %v1432_v49  }
  0xfb   :  { %v638_v57 = vadd.f32 %v1593_v41, %v637_v52  ;;  %v773_v58 = vadd.f32 %v710_v53, %v709_v51  ;;  %1348 = vst [vmem:[%s2180_s4] sm:$0xff] %v1347_v54   ;;  %1519 = vst [vmem:[%s2180_s4 + $0x80] sm:$0xff] %v1427_v55  }
  0xfd   :  { %v774_v60 = vadd.f32 %v773_v58, %v711_v56  ;;  %v1597_v61 = vpop.f32.mrb[4].mxu0  ;;  %v639_v62 = vadd.f32 %v1594_v45, %v638_v57  ;;  %v1898_v63 = vpop.f32.mrb[4].mxu1 }
  0xfe   :  { %v391_v0 = vpop.f32.mrb[5].mxu0  ;;  %v1900_v1 = vpop.f32.mrb[5].mxu1  ;;  %v715_v16 = vmul.f32 %v1597_v61, %v1597_v61 }
  0xff   :  { %v640_v2 = vadd.f32 %v639_v62, %v391_v0  ;;  %v713_v3 = vmul.f32 %v391_v0, %v391_v0  ;;  %v775_v4 = vadd.f32 %v774_v60, %v712_v59  ;;  %v1598_v5 = vpop.f32.mrb[6].mxu0  ;;  %v1902_v6 = vpop.f32.mrb[6].mxu1 }
 0x100   :  { %v1362_v7 = vpack.c.bf16 %v1598_v5, %v1597_v61  ;;  %v394_v8 = vpop.f32.mrb[7].mxu0  ;;  %v1442_v9 = vpack.c.bf16 %v1902_v6, %v1898_v63  ;;  %v1906_v10 = vpop.f32.mrb[7].mxu1  ;;  %v716_v19 = vmul.f32 %v1598_v5, %v1598_v5 }
 0x101   :  { %v776_v11 = vadd.f32 %v775_v4, %v713_v3  ;;  %v641_v12 = vadd.f32 %v640_v2, %v394_v8  ;;  %v714_v13 = vmul.f32 %v394_v8, %v394_v8  ;;  %v1357_v14 = vpack.c.bf16 %v394_v8, %v391_v0 }
 0x102   :  { %1506 = vst [vmem:[%s2180_s4 + $0x18] sm:$0xff] %v1362_v7   ;;  %1522 = vst [vmem:[%s2180_s4 + $0x98] sm:$0xff] %v1442_v9   ;;  %v1437_v15 = vpack.c.bf16 %v1906_v10, %v1900_v1 }
 0x103   :  { %v642_v17 = vadd.f32 %v1597_v61, %v641_v12  ;;  %v777_v18 = vadd.f32 %v776_v11, %v714_v13  ;;  %1505 = vst [vmem:[%s2180_s4 + $0x10] sm:$0xff] %v1357_v14  }
 0x104   :  { %1521 = vst [vmem:[%s2180_s4 + $0x90] sm:$0xff] %v1437_v15  }
 0x105   :  { %v778_v20 = vadd.f32 %v777_v18, %v715_v16  ;;  %v1601_v21 = vpop.f32.mrb[8].mxu0  ;;  %v643_v22 = vadd.f32 %v1598_v5, %v642_v17  ;;  %v1922_v23 = vpop.f32.mrb[8].mxu1 }
 0x106   :  { %v407_v24 = vpop.f32.mrb[9].mxu0  ;;  %v1924_v25 = vpop.f32.mrb[9].mxu1  ;;  %v719_v40 = vmul.f32 %v1601_v21, %v1601_v21 }
 0x107   :  { %v644_v26 = vadd.f32 %v643_v22, %v407_v24  ;;  %v717_v27 = vmul.f32 %v407_v24, %v407_v24  ;;  %v779_v28 = vadd.f32 %v778_v20, %v716_v19  ;;  %v1602_v29 = vpop.f32.mrb[10].mxu0  ;;  %v1926_v30 = vpop.f32.mrb[10].mxu1 }
 0x108   :  { %v1372_v31 = vpack.c.bf16 %v1602_v29, %v1601_v21  ;;  %v410_v32 = vpop.f32.mrb[11].mxu0  ;;  %v1452_v33 = vpack.c.bf16 %v1926_v30, %v1922_v23  ;;  %v1930_v34 = vpop.f32.mrb[11].mxu1  ;;  %v720_v45 = vmul.f32 %v1602_v29, %v1602_v29 }
 0x109   :  { %v780_v35 = vadd.f32 %v779_v28, %v717_v27  ;;  %v645_v36 = vadd.f32 %v644_v26, %v410_v32  ;;  %v718_v37 = vmul.f32 %v410_v32, %v410_v32  ;;  %v1367_v38 = vpack.c.bf16 %v410_v32, %v407_v24 }
 0x10a   :  { %1508 = vst [vmem:[%s2180_s4 + $0x28] sm:$0xff] %v1372_v31   ;;  %1524 = vst [vmem:[%s2180_s4 + $0xa8] sm:$0xff] %v1452_v33   ;;  %v1447_v39 = vpack.c.bf16 %v1930_v34, %v1924_v25 }
 0x10b   :  { %v646_v41 = vadd.f32 %v1601_v21, %v645_v36  ;;  %v781_v43 = vadd.f32 %v780_v35, %v718_v37  ;;  %1507 = vst [vmem:[%s2180_s4 + $0x20] sm:$0xff] %v1367_v38  }
 0x10c   :  { %1523 = vst [vmem:[%s2180_s4 + $0xa0] sm:$0xff] %v1447_v39  }
 0x10d   :  { %v782_v47 = vadd.f32 %v781_v43, %v719_v40  ;;  %v1605_v48 = vpop.f32.mrb[12].mxu0  ;;  %v647_v49 = vadd.f32 %v1602_v29, %v646_v41  ;;  %v1946_v51 = vpop.f32.mrb[12].mxu1 }
 0x10e   :  { %v423_v52 = vpop.f32.mrb[13].mxu0  ;;  %v1948_v53 = vpop.f32.mrb[13].mxu1  ;;  %v723_v7 = vmul.f32 %v1605_v48, %v1605_v48 }
 0x10f   :  { %v648_v54 = vadd.f32 %v647_v49, %v423_v52  ;;  %v721_v55 = vmul.f32 %v423_v52, %v423_v52  ;;  %v783_v56 = vadd.f32 %v782_v47, %v720_v45  ;;  %v1606_v57 = vpop.f32.mrb[14].mxu0  ;;  %v1950_v58 = vpop.f32.mrb[14].mxu1 }
 0x110   :  { %v1382_v59 = vpack.c.bf16 %v1606_v57, %v1605_v48  ;;  %v426_v60 = vpop.f32.mrb[15].mxu0  ;;  %v1462_v61 = vpack.c.bf16 %v1950_v58, %v1946_v51  ;;  %v1954_v62 = vpop.f32.mrb[15].mxu1  ;;  %v724_v11 = vmul.f32 %v1606_v57, %v1606_v57 }
 0x111   :  { %v784_v0 = vadd.f32 %v783_v56, %v721_v55  ;;  %v649_v2 = vadd.f32 %v648_v54, %v426_v60  ;;  %v722_v3 = vmul.f32 %v426_v60, %v426_v60  ;;  %v1377_v4 = vpack.c.bf16 %v426_v60, %v423_v52 }
 0x112   :  { %1510 = vst [vmem:[%s2180_s4 + $0x38] sm:$0xff] %v1382_v59   ;;  %1526 = vst [vmem:[%s2180_s4 + $0xb8] sm:$0xff] %v1462_v61   ;;  %v1457_v5 = vpack.c.bf16 %v1954_v62, %v1948_v53 }
 0x113   :  { %v650_v8 = vadd.f32 %v1605_v48, %v649_v2  ;;  %v785_v9 = vadd.f32 %v784_v0, %v722_v3  ;;  %1509 = vst [vmem:[%s2180_s4 + $0x30] sm:$0xff] %v1377_v4  }
 0x114   :  { %1525 = vst [vmem:[%s2180_s4 + $0xb0] sm:$0xff] %v1457_v5  }
 0x115   :  { %v786_v12 = vadd.f32 %v785_v9, %v723_v7  ;;  %v1609_v13 = vpop.f32.mrb[16].mxu0  ;;  %v651_v14 = vadd.f32 %v1606_v57, %v650_v8  ;;  %v1970_v15 = vpop.f32.mrb[16].mxu1 }
 0x116   :  { %v439_v16 = vpop.f32.mrb[17].mxu0  ;;  %v1972_v17 = vpop.f32.mrb[17].mxu1  ;;  %v727_v36 = vmul.f32 %v1609_v13, %v1609_v13 }
 0x117   :  { %v652_v18 = vadd.f32 %v651_v14, %v439_v16  ;;  %v725_v19 = vmul.f32 %v439_v16, %v439_v16  ;;  %v787_v20 = vadd.f32 %v786_v12, %v724_v11  ;;  %v1610_v21 = vpop.f32.mrb[18].mxu0  ;;  %v1974_v22 = vpop.f32.mrb[18].mxu1 }
 0x118   :  { %v1392_v24 = vpack.c.bf16 %v1610_v21, %v1609_v13  ;;  %v442_v26 = vpop.f32.mrb[19].mxu0  ;;  %v1472_v27 = vpack.c.bf16 %v1974_v22, %v1970_v15  ;;  %v1978_v28 = vpop.f32.mrb[19].mxu1  ;;  %v728_v39 = vmul.f32 %v1610_v21, %v1610_v21 }
 0x119   :  { %v788_v29 = vadd.f32 %v787_v20, %v725_v19  ;;  %v653_v31 = vadd.f32 %v652_v18, %v442_v26  ;;  %v726_v32 = vmul.f32 %v442_v26, %v442_v26  ;;  %v1387_v33 = vpack.c.bf16 %v442_v26, %v439_v16 }
 0x11a   :  { %1512 = vst [vmem:[%s2180_s4 + $0x48] sm:$0xff] %v1392_v24   ;;  %1528 = vst [vmem:[%s2180_s4 + $0xc8] sm:$0xff] %v1472_v27   ;;  %v1467_v35 = vpack.c.bf16 %v1978_v28, %v1972_v17 }
 0x11b   :  { %v654_v37 = vadd.f32 %v1609_v13, %v653_v31  ;;  %v789_v38 = vadd.f32 %v788_v29, %v726_v32  ;;  %1511 = vst [vmem:[%s2180_s4 + $0x40] sm:$0xff] %v1387_v33  }
 0x11c   :  { %1527 = vst [vmem:[%s2180_s4 + $0xc0] sm:$0xff] %v1467_v35  }
 0x11d   :  { %v790_v40 = vadd.f32 %v789_v38, %v727_v36  ;;  %v1613_v41 = vpop.f32.mrb[20].mxu0  ;;  %v655_v43 = vadd.f32 %v1610_v21, %v654_v37  ;;  %v1994_v45 = vpop.f32.mrb[20].mxu1 }
 0x11e   :  { %v455_v47 = vpop.f32.mrb[21].mxu0  ;;  %v1996_v48 = vpop.f32.mrb[21].mxu1  ;;  %v731_v7 = vmul.f32 %v1613_v41, %v1613_v41 }
 0x11f   :  { %v656_v49 = vadd.f32 %v655_v43, %v455_v47  ;;  %v729_v52 = vmul.f32 %v455_v47, %v455_v47  ;;  %v791_v54 = vadd.f32 %v790_v40, %v728_v39  ;;  %v1614_v55 = vpop.f32.mrb[22].mxu0  ;;  %v1998_v56 = vpop.f32.mrb[22].mxu1 }
 0x120   :  { %v1402_v57 = vpack.c.bf16 %v1614_v55, %v1613_v41  ;;  %v458_v59 = vpop.f32.mrb[23].mxu0  ;;  %v1482_v60 = vpack.c.bf16 %v1998_v56, %v1994_v45  ;;  %v2002_v61 = vpop.f32.mrb[23].mxu1  ;;  %v732_v11 = vmul.f32 %v1614_v55, %v1614_v55 }
 0x121   :  { %v792_v0 = vadd.f32 %v791_v54, %v729_v52  ;;  %v657_v2 = vadd.f32 %v656_v49, %v458_v59  ;;  %v730_v3 = vmul.f32 %v458_v59, %v458_v59  ;;  %v1397_v4 = vpack.c.bf16 %v458_v59, %v455_v47 }
 0x122   :  { %1514 = vst [vmem:[%s2180_s4 + $0x58] sm:$0xff] %v1402_v57   ;;  %1530 = vst [vmem:[%s2180_s4 + $0xd8] sm:$0xff] %v1482_v60   ;;  %v1477_v5 = vpack.c.bf16 %v2002_v61, %v1996_v48 }
 0x123   :  { %v658_v8 = vadd.f32 %v1613_v41, %v657_v2  ;;  %v793_v9 = vadd.f32 %v792_v0, %v730_v3  ;;  %1513 = vst [vmem:[%s2180_s4 + $0x50] sm:$0xff] %v1397_v4  }
 0x124   :  { %1529 = vst [vmem:[%s2180_s4 + $0xd0] sm:$0xff] %v1477_v5  }
 0x125   :  { %v794_v12 = vadd.f32 %v793_v9, %v731_v7  ;;  %v1617_v13 = vpop.f32.mrb[24].mxu0  ;;  %v659_v14 = vadd.f32 %v1614_v55, %v658_v8  ;;  %v2018_v16 = vpop.f32.mrb[24].mxu1 }
 0x126   :  { %v471_v18 = vpop.f32.mrb[25].mxu0  ;;  %v2020_v19 = vpop.f32.mrb[25].mxu1  ;;  %v735_v40 = vmul.f32 %v1617_v13, %v1617_v13 }
 0x127   :  { %v660_v20 = vadd.f32 %v659_v14, %v471_v18  ;;  %v733_v21 = vmul.f32 %v471_v18, %v471_v18  ;;  %v795_v24 = vadd.f32 %v794_v12, %v732_v11  ;;  %v1618_v26 = vpop.f32.mrb[26].mxu0  ;;  %v2022_v27 = vpop.f32.mrb[26].mxu1 }
 0x128   :  { %v1412_v29 = vpack.c.bf16 %v1618_v26, %v1617_v13  ;;  %v474_v31 = vpop.f32.mrb[27].mxu0  ;;  %v1492_v32 = vpack.c.bf16 %v2022_v27, %v2018_v16  ;;  %v2026_v33 = vpop.f32.mrb[27].mxu1  ;;  %v736_v47 = vmul.f32 %v1618_v26, %v1618_v26 }
 0x129   :  { %v796_v35 = vadd.f32 %v795_v24, %v733_v21  ;;  %v661_v36 = vadd.f32 %v660_v20, %v474_v31  ;;  %v734_v37 = vmul.f32 %v474_v31, %v474_v31  ;;  %v1407_v38 = vpack.c.bf16 %v474_v31, %v471_v18 }
 0x12a   :  { %1516 = vst [vmem:[%s2180_s4 + $0x68] sm:$0xff] %v1412_v29   ;;  %1532 = vst [vmem:[%s2180_s4 + $0xe8] sm:$0xff] %v1492_v32   ;;  %v1487_v39 = vpack.c.bf16 %v2026_v33, %v2020_v19  ;;  %v741_v32 = vmul.f32 %v1876_v44, %v1876_v44 }
 0x12b   :  { %v662_v41 = vadd.f32 %v1617_v13, %v661_v36  ;;  %v797_v43 = vadd.f32 %v796_v35, %v734_v37  ;;  %1515 = vst [vmem:[%s2180_s4 + $0x60] sm:$0xff] %v1407_v38  }
 0x12c   :  { %1531 = vst [vmem:[%s2180_s4 + $0xe0] sm:$0xff] %v1487_v39   ;;  %v742_v39 = vmul.f32 %v1882_v50, %v1882_v50 }
 0x12d   :  { %v798_v49 = vadd.f32 %v797_v43, %v735_v40  ;;  %v1621_v52 = vpop.f32.mrb[28].mxu0  ;;  %v663_v54 = vadd.f32 %v1618_v26, %v662_v41  ;;  %v2042_v55 = vpop.f32.mrb[28].mxu1  ;;  %v743_v40 = vmul.f32 %v1874_v42, %v1874_v42 }
 0x12e   :  { %v487_v57 = vpop.f32.mrb[29].mxu0  ;;  %v2044_v59 = vpop.f32.mrb[29].mxu1  ;;  %v739_v20 = vmul.f32 %v1621_v52, %v1621_v52 }
 0x12f   :  { %v664_v60 = vadd.f32 %v663_v54, %v487_v57  ;;  %v737_v0 = vmul.f32 %v487_v57, %v487_v57  ;;  %v799_v2 = vadd.f32 %v798_v49, %v736_v47  ;;  %v1622_v3 = vpop.f32.mrb[30].mxu0  ;;  %v2046_v4 = vpop.f32.mrb[30].mxu1  ;;  %v744_v47 = vmul.f32 %v1878_v46, %v1878_v46 }
 0x130   :  { %v1422_v5 = vpack.c.bf16 %v1622_v3, %v1621_v52  ;;  %v490_v7 = vpop.f32.mrb[31].mxu0  ;;  %v1502_v8 = vpack.c.bf16 %v2046_v4, %v2042_v55  ;;  %v2050_v9 = vpop.f32.mrb[31].mxu1  ;;  %v740_v26 = vmul.f32 %v1622_v3, %v1622_v3 }
 0x131   :  { %v800_v11 = vadd.f32 %v799_v2, %v737_v0  ;;  %v665_v12 = vadd.f32 %v664_v60, %v490_v7  ;;  %v738_v13 = vmul.f32 %v490_v7, %v490_v7  ;;  %v1417_v14 = vpack.c.bf16 %v490_v7, %v487_v57 }
 0x132   :  { %1518 = vst [vmem:[%s2180_s4 + $0x78] sm:$0xff] %v1422_v5   ;;  %1534 = vst [vmem:[%s2180_s4 + $0xf8] sm:$0xff] %v1502_v8   ;;  %v1497_v18 = vpack.c.bf16 %v2050_v9, %v2044_v59  ;;  %v746_v0 = vmul.f32 %v1906_v10, %v1906_v10 }
 0x133   :  { %v666_v21 = vadd.f32 %v1621_v52, %v665_v12  ;;  %v801_v24 = vadd.f32 %v800_v11, %v738_v13  ;;  %1517 = vst [vmem:[%s2180_s4 + $0x70] sm:$0xff] %v1417_v14   ;;  %v750_v13 = vmul.f32 %v1930_v34, %v1930_v34 }
 0x134   :  { %1533 = vst [vmem:[%s2180_s4 + $0xf0] sm:$0xff] %v1497_v18  }
 0x135   :  { %v802_v29 = vadd.f32 %v801_v24, %v739_v20  ;;  %v667_v31 = vadd.f32 %v1622_v3, %v666_v21 }
 0x137   :  { %v668_v35 = vadd.f32 %v667_v31, %v1876_v44  ;;  %v803_v36 = vadd.f32 %v802_v29, %v740_v26  ;;  %v745_v44 = vmul.f32 %v1900_v1, %v1900_v1  ;;  %v754_v31 = vmul.f32 %v1954_v62, %v1954_v62 }
 0x139   :  { %v804_v37 = vadd.f32 %v803_v36, %v741_v32  ;;  %v669_v38 = vadd.f32 %v668_v35, %v1882_v50 }
 0x13b   :  { %v670_v41 = vadd.f32 %v1874_v42, %v669_v38  ;;  %v805_v43 = vadd.f32 %v804_v37, %v742_v39  ;;  %v747_v42 = vmul.f32 %v1898_v63, %v1898_v63 }
 0x13d   :  { %v806_v49 = vadd.f32 %v805_v43, %v743_v40  ;;  %v671_v52 = vadd.f32 %v1878_v46, %v670_v41  ;;  %v748_v46 = vmul.f32 %v1902_v6, %v1902_v6  ;;  %v758_v41 = vmul.f32 %v1978_v28, %v1978_v28 }
 0x13f   :  { %v672_v54 = vadd.f32 %v671_v52, %v1900_v1  ;;  %v807_v57 = vadd.f32 %v806_v49, %v744_v47  ;;  %v749_v1 = vmul.f32 %v1924_v25, %v1924_v25 }
 0x141   :  { %v808_v60 = vadd.f32 %v807_v57, %v745_v44  ;;  %v673_v50 = vadd.f32 %v672_v54, %v1906_v10 }
 0x143   :  { %v674_v2 = vadd.f32 %v1898_v63, %v673_v50  ;;  %v809_v3 = vadd.f32 %v808_v60, %v746_v0  ;;  %v751_v63 = vmul.f32 %v1922_v23, %v1922_v23  ;;  %v762_v60 = vmul.f32 %v2002_v61, %v2002_v61 }
 0x145   :  { %v810_v5 = vadd.f32 %v809_v3, %v747_v42  ;;  %v675_v7 = vadd.f32 %v1902_v6, %v674_v2  ;;  %v752_v6 = vmul.f32 %v1926_v30, %v1926_v30 }
 0x147   :  { %v676_v8 = vadd.f32 %v675_v7, %v1924_v25  ;;  %v811_v11 = vadd.f32 %v810_v5, %v748_v46  ;;  %v753_v25 = vmul.f32 %v1948_v53, %v1948_v53  ;;  %v766_v7 = vmul.f32 %v2026_v33, %v2026_v33 }
 0x149   :  { %v812_v12 = vadd.f32 %v811_v11, %v749_v1  ;;  %v677_v10 = vadd.f32 %v676_v8, %v1930_v34 }
 0x14b   :  { %v678_v14 = vadd.f32 %v1922_v23, %v677_v10  ;;  %v813_v18 = vadd.f32 %v812_v12, %v750_v13  ;;  %v755_v23 = vmul.f32 %v1946_v51, %v1946_v51 }
 0x14d   :  { %v814_v20 = vadd.f32 %v813_v18, %v751_v63  ;;  %v679_v21 = vadd.f32 %v1926_v30, %v678_v14  ;;  %v756_v30 = vmul.f32 %v1950_v58, %v1950_v58  ;;  %v770_v14 = vmul.f32 %v2050_v9, %v2050_v9 }
 0x14f   :  { %v680_v24 = vadd.f32 %v679_v21, %v1948_v53  ;;  %v815_v26 = vadd.f32 %v814_v20, %v752_v6  ;;  %v757_v53 = vmul.f32 %v1972_v17, %v1972_v17 }
 0x151   :  { %v816_v29 = vadd.f32 %v815_v26, %v753_v25  ;;  %v681_v34 = vadd.f32 %v680_v24, %v1954_v62 }
 0x153   :  { %v682_v32 = vadd.f32 %v1946_v51, %v681_v34  ;;  %v817_v35 = vadd.f32 %v816_v29, %v754_v31  ;;  %v759_v51 = vmul.f32 %v1970_v15, %v1970_v15 }
 0x155   :  { %v818_v36 = vadd.f32 %v817_v35, %v755_v23  ;;  %v683_v37 = vadd.f32 %v1950_v58, %v682_v32  ;;  %v760_v58 = vmul.f32 %v1974_v22, %v1974_v22 }
 0x157   :  { %v684_v38 = vadd.f32 %v683_v37, %v1972_v17  ;;  %v819_v39 = vadd.f32 %v818_v36, %v756_v30  ;;  %v761_v17 = vmul.f32 %v1996_v48, %v1996_v48 }
 0x159   :  { %v820_v40 = vadd.f32 %v819_v39, %v757_v53  ;;  %v685_v62 = vadd.f32 %v684_v38, %v1978_v28 }
 0x15b   :  { %v686_v43 = vadd.f32 %v1970_v15, %v685_v62  ;;  %v821_v47 = vadd.f32 %v820_v40, %v758_v41  ;;  %v763_v15 = vmul.f32 %v1994_v45, %v1994_v45 }
 0x15d   :  { %v822_v49 = vadd.f32 %v821_v47, %v759_v51  ;;  %v687_v52 = vadd.f32 %v1974_v22, %v686_v43  ;;  %v764_v22 = vmul.f32 %v1998_v56, %v1998_v56 }
 0x15f   :  { %v688_v44 = vadd.f32 %v687_v52, %v1996_v48  ;;  %v823_v54 = vadd.f32 %v822_v49, %v760_v58  ;;  %v765_v48 = vmul.f32 %v2020_v19, %v2020_v19 }
 0x161   :  { %v824_v57 = vadd.f32 %v823_v54, %v761_v17  ;;  %v689_v28 = vadd.f32 %v688_v44, %v2002_v61 }
 0x163   :  { %v690_v50 = vadd.f32 %v1994_v45, %v689_v28  ;;  %v825_v0 = vadd.f32 %v824_v57, %v762_v60  ;;  %v767_v45 = vmul.f32 %v2018_v16, %v2018_v16 }
 0x165   :  { %v826_v42 = vadd.f32 %v825_v0, %v763_v15  ;;  %v691_v2 = vadd.f32 %v1998_v56, %v690_v50  ;;  %v768_v56 = vmul.f32 %v2022_v27, %v2022_v27 }
 0x167   :  { %v692_v3 = vadd.f32 %v691_v2, %v2020_v19  ;;  %v827_v46 = vadd.f32 %v826_v42, %v764_v22  ;;  %v769_v19 = vmul.f32 %v2044_v59, %v2044_v59 }
 0x169   :  { %v828_v5 = vadd.f32 %v827_v46, %v765_v48  ;;  %v693_v61 = vadd.f32 %v692_v3, %v2026_v33 }
 0x16b   :  { %v694_v1 = vadd.f32 %v2018_v16, %v693_v61  ;;  %v829_v8 = vadd.f32 %v828_v5, %v766_v7  ;;  %v771_v16 = vmul.f32 %v2042_v55, %v2042_v55 }
 0x16d   :  { %v830_v11 = vadd.f32 %v829_v8, %v767_v45  ;;  %v695_v12 = vadd.f32 %v2022_v27, %v694_v1  ;;  %v772_v27 = vmul.f32 %v2046_v4, %v2046_v4 }
 0x16f   :  { %v696_v10 = vadd.f32 %v695_v12, %v2044_v59  ;;  %v831_v13 = vadd.f32 %v830_v11, %v768_v56 }
 0x171   :  { %v832_v63 = vadd.f32 %v831_v13, %v769_v19  ;;  %v697_v33 = vadd.f32 %v696_v10, %v2050_v9 }
 0x173   :  { %v698_v18 = vadd.f32 %v2042_v55, %v697_v33  ;;  %v833_v6 = vadd.f32 %v832_v63, %v770_v14  ;;  %v636_v55 = vld [vmem:[%s2178_s5] sm:$0x1] }
 0x175   :  { %v699_v20 = vadd.f32 %v2046_v4, %v698_v18  ;;  %v834_v21 = vadd.f32 %v833_v6, %v771_v16  ;;  %v708_v4 = vld [vmem:[%s2179_s6] sm:$0x1] }
 0x177   :  { %v700_v59 = vrot.slane %v699_v20, 4  ;;  %v835_v25 = vadd.f32 %v834_v21, %v772_v27 }
 0x179   :  { %v701_v24 = vadd.f32 %v700_v59, %v699_v20  ;;  %v836_v26 = vrot.slane %v835_v25, 4 }
 0x17b   :  { %v702_v29 = vrot.slane %v701_v24, 2  ;;  %v837_v34 = vadd.f32 %v836_v26, %v835_v25 }
 0x17d   :  { %v703_v31 = vadd.f32 %v702_v29, %v701_v24  ;;  %v838_v9 = vrot.slane %v837_v34, 2 }
 0x17f   :  { %v704_v23 = vrot.slane %v703_v31, 1  ;;  %v839_v32 = vadd.f32 %v838_v9, %v837_v34 }
 0x181   :  { %v705_v35 = vadd.f32 %v704_v23, %v703_v31  ;;  %v840_v30 = vrot.slane %v839_v32, 1 }
 0x183   :  { %v706_v36 = vadd.f32 %v705_v35, %v636_v55  ;;  %v841_v37 = vadd.f32 %v840_v30, %v839_v32 }
 0x185   :  { %707 = vst [vmem:[%s2178_s5] sm:$0x1] %v706_v36  ;;  %v842_v53 = vadd.f32 %v841_v37, %v708_v4 }
 0x187   :  { %843 = vst [vmem:[%s2179_s6] sm:$0x1] %v842_v53 }

// kernel: bottleneck_forward.6
= control target key start
LH: loop header
LB: loop body
LE: loop exit
PB: predicated region body
PF: predicated region fallthrough
CT: control target
= control target key end

     0   :  { %s2553_s1 = inlined_call_operand.vmem [shape: bf16[128,128], index: 1, kind: input, shape index: {}]   ;;  %s2554_s0 = inlined_call_operand.vmem [shape: bf16[512,128], index: 0, kind: input, shape index: {}]   ;;  %s2555_s2 = inlined_call_operand.vmem [shape: f32[1,128], index: 2, kind: input, shape index: {}]   ;;  %s2556_s3 = inlined_call_operand.vmem [shape: f32[1,128], index: 3, kind: input, shape index: {}]   ;;  %s2557_s5 = inlined_call_operand.vmem [shape: f32[1,128], index: 5, kind: output, shape index: {1}]   ;;  %s2558_s6 = inlined_call_operand.vmem [shape: f32[1,128], index: 6, kind: output, shape index: {2}]   ;;  %s2559_s4 = inlined_call_operand.vmem [shape: bf16[512,128], index: 4, kind: output, shape index: {0}]  }
   0x1   :  { %v1911_v0 = vld [vmem:[%s2553_s1] sm:$0xff]   ;;  %v1912_v1 = vld [vmem:[%s2553_s1 + $0x8] sm:$0xff]   ;;  %v1913_v2 = vld [vmem:[%s2553_s1 + $0x10] sm:$0xff]  }
   0x2   :  { %1814 = vmatprep.subr.bf16.mxu0 %v1911_v0  ;;  %1894 = vmatprep.subr.bf16.mxu1 %v1911_v0  ;;  %v1914_v3 = vld [vmem:[%s2553_s1 + $0x18] sm:$0xff]   ;;  %v1425_v4 = vld [vmem:[%s2554_s0] sm:$0xff]   ;;  %v1712_v8 = vld [vmem:[%s2554_s0 + $0x8] sm:$0xff]  }
   0x3   :  { %1815 = vmatpush3.bf16.msra.mxu0 %v1911_v0  ;;  %1902 = vmatpush3.bf16.msra.mxu1 %v1911_v0  ;;  %v1973_v5 = vld [vmem:[%s2555_s2] ss:$0 sm:$0xff]  ;;  %v1426_v6 = vunpack.c.l.bf16 %v1425_v4  ;;  %v1427_v7 = vunpack.c.h.bf16 %v1425_v4  ;;  %v1713_v9 = vld [vmem:[%s2554_s0 + $0x10] sm:$0xff]   ;;  %v1430_v14 = vunpack.c.l.bf16 %v1712_v8  ;;  %v1431_v15 = vunpack.c.h.bf16 %v1712_v8  ;;  %v1916_v22 = vld [vmem:[%s2553_s1 + $0x28] sm:$0xff]  }
   0x4   :  { %1816 = vmatprep.subr.bf16.mxu0 %v1912_v1  ;;  %1895 = vmatprep.subr.bf16.mxu1 %v1912_v1  ;;  %v1984_v10 = vld [vmem:[%s2556_s3] ss:$0 sm:$0xff]  ;;  %v1434_v16 = vunpack.c.l.bf16 %v1713_v9  ;;  %v1435_v19 = vunpack.c.h.bf16 %v1713_v9  ;;  %v1714_v26 = vld [vmem:[%s2554_s0 + $0x18] sm:$0xff]   ;;  %v1917_v31 = vld [vmem:[%s2553_s1 + $0x30] sm:$0xff]  }
   0x5   :  { %v156_v11 = vmul.f32 %v1426_v6, %v1973_v5  ;;  %v157_v12 = vmul.f32 %v1427_v7, %v1973_v5  ;;  %v1915_v13 = vld [vmem:[%s2553_s1 + $0x20] sm:$0xff]   ;;  %v158_v23 = vmul.f32 %v1430_v14, %v1973_v5  ;;  %v159_v24 = vmul.f32 %v1431_v15, %v1973_v5  ;;  %v1716_v38 = vld [vmem:[%s2554_s0 + $0x28] sm:$0xff]   ;;  %v1717_v41 = vld [vmem:[%s2554_s0 + $0x30] sm:$0xff]  }
   0x6   :  { %v160_v25 = vmul.f32 %v1434_v16, %v1973_v5  ;;  %v161_v28 = vmul.f32 %v1435_v19, %v1973_v5  ;;  %v1715_v29 = vld [vmem:[%s2554_s0 + $0x20] sm:$0xff]   ;;  %v1438_v30 = vunpack.c.l.bf16 %v1714_v26  ;;  %v1439_v35 = vunpack.c.h.bf16 %v1714_v26  ;;  %v1718_v42 = vld [vmem:[%s2554_s0 + $0x38] sm:$0xff]   ;;  %v1720_v63 = vld [vmem:[%s2554_s0 + $0x48] sm:$0xff]  }
   0x7   :  { %1817 = vmatpush3.bf16.msra.mxu0 %v1912_v1  ;;  %1903 = vmatpush3.bf16.msra.mxu1 %v1912_v1  ;;  %v227_v17 = vadd.f32 %v1984_v10, %v156_v11  ;;  %v228_v18 = vadd.f32 %v1984_v10, %v157_v12  ;;  %v229_v32 = vadd.f32 %v1984_v10, %v158_v23  ;;  %v1442_v37 = vunpack.c.l.bf16 %v1715_v29  ;;  %v1918_v43 = vld [vmem:[%s2553_s1 + $0x38] sm:$0xff]   ;;  %v1719_v48 = vld [vmem:[%s2554_s0 + $0x40] sm:$0xff]   ;;  %v1721_v4 = vld [vmem:[%s2554_s0 + $0x50] sm:$0xff]  }
   0x8   :  { %1818 = vmatprep.subr.bf16.mxu0 %v1913_v2  ;;  %1896 = vmatprep.subr.bf16.mxu1 %v1913_v2  ;;  %v230_v33 = vadd.f32 %v1984_v10, %v159_v24  ;;  %v231_v34 = vadd.f32 %v1984_v10, %v160_v25  ;;  %v232_v36 = vadd.f32 %v1984_v10, %v161_v28  ;;  %v1443_v40 = vunpack.c.h.bf16 %v1715_v29  ;;  %v1722_v23 = vld [vmem:[%s2554_s0 + $0x58] sm:$0xff]  }
   0x9   :  { %v291_v20 = vmax.f32 %v227_v17, 0.0  ;;  %v292_v21 = vmax.f32 %v228_v18, 0.0  ;;  %v162_v39 = vmul.f32 %v1438_v30, %v1973_v5  ;;  %v293_v44 = vmax.f32 %v229_v32, 0.0 }
   0xa   :  { %v294_v45 = vmax.f32 %v230_v33, 0.0  ;;  %v295_v46 = vmax.f32 %v231_v34, 0.0  ;;  %v163_v47 = vmul.f32 %v1439_v35, %v1973_v5  ;;  %v296_v49 = vmax.f32 %v232_v36, 0.0 }
   0xb   :  { %1819 = vmatpush3.bf16.msra.mxu0 %v1913_v2  ;;  %1904 = vmatpush3.bf16.msra.mxu1 %v1913_v2  ;;  %v355_v27 = vpack.c.bf16 %v292_v21, %v291_v20  ;;  %v164_v50 = vmul.f32 %v1442_v37, %v1973_v5  ;;  %v1446_v51 = vunpack.c.l.bf16 %v1716_v38  ;;  %v1447_v52 = vunpack.c.h.bf16 %v1716_v38 }
   0xc   :  { %1820 = vmatprep.subr.bf16.mxu0 %v1914_v3  ;;  %1897 = vmatprep.subr.bf16.mxu1 %v1914_v3  ;;  %v1450_v53 = vunpack.c.l.bf16 %v1717_v41  ;;  %v1451_v54 = vunpack.c.h.bf16 %v1717_v41  ;;  %v1454_v55 = vunpack.c.l.bf16 %v1718_v42  ;;  %v1455_v56 = vunpack.c.h.bf16 %v1718_v42 }
   0xd   :  { %1830 = vmatprep.mubr.bf16.mxu0 %v355_v27  ;;  %v165_v57 = vmul.f32 %v1443_v40, %v1973_v5  ;;  %v1458_v58 = vunpack.c.l.bf16 %v1719_v48  ;;  %v1459_v59 = vunpack.c.h.bf16 %v1719_v48  ;;  %v356_v60 = vpack.c.bf16 %v294_v45, %v293_v44  ;;  %v1727_v44 = vld [vmem:[%s2554_s0 + $0x80] sm:$0xff]  }
   0xe   :  { %v233_v61 = vadd.f32 %v1984_v10, %v162_v39  ;;  %v234_v62 = vadd.f32 %v1984_v10, %v163_v47  ;;  %v357_v0 = vpack.c.bf16 %v296_v49, %v295_v46  ;;  %v235_v1 = vadd.f32 %v1984_v10, %v164_v50 }
   0xf   :  { %1821 = vmatpush3.bf16.msra.mxu0 %v1914_v3  ;;  %1905 = vmatpush3.bf16.msra.mxu1 %v1914_v3  ;;  %v166_v2 = vmul.f32 %v1446_v51, %v1973_v5  ;;  %v167_v3 = vmul.f32 %v1447_v52, %v1973_v5  ;;  %v168_v6 = vmul.f32 %v1450_v53, %v1973_v5  ;;  %v1462_v14 = vunpack.c.l.bf16 %v1720_v63  ;;  %v2077_v52 = vld [vmem:[%s2554_s0 + $0x60] sm:$0xff]  }
  0x10   :  { %1822 = vmatprep.subr.bf16.mxu0 %v1915_v13  ;;  %1898 = vmatprep.subr.bf16.mxu1 %v1915_v13  ;;  %v169_v7 = vmul.f32 %v1451_v54, %v1973_v5  ;;  %v170_v8 = vmul.f32 %v1454_v55, %v1973_v5  ;;  %v171_v9 = vmul.f32 %v1455_v56, %v1973_v5  ;;  %v297_v15 = vmax.f32 %v233_v61, 0.0 }
  0x11   :  { %v236_v11 = vadd.f32 %v1984_v10, %v165_v57  ;;  %v172_v12 = vmul.f32 %v1458_v58, %v1973_v5  ;;  %v298_v16 = vmax.f32 %v234_v62, 0.0  ;;  %v1463_v17 = vunpack.c.h.bf16 %v1720_v63 }
  0x12   :  { %v1466_v18 = vunpack.c.l.bf16 %v1721_v4  ;;  %v299_v19 = vmax.f32 %v235_v1, 0.0  ;;  %v237_v20 = vadd.f32 %v1984_v10, %v166_v2  ;;  %v238_v21 = vadd.f32 %v1984_v10, %v167_v3 }
  0x13   :  { %1823 = vmatpush3.bf16.msra.mxu0 %v1915_v13  ;;  %1906 = vmatpush3.bf16.msra.mxu1 %v1915_v13  ;;  %v173_v13 = vmul.f32 %v1459_v59, %v1973_v5  ;;  %v239_v24 = vadd.f32 %v1984_v10, %v168_v6  ;;  %v240_v25 = vadd.f32 %v1984_v10, %v169_v7  ;;  %v300_v28 = vmax.f32 %v236_v11, 0.0  ;;  %v1728_v59 = vld [vmem:[%s2554_s0 + $0x88] sm:$0xff]   ;;  %v1730_v11 = vld [vmem:[%s2554_s0 + $0x98] sm:$0xff]  }
  0x14   :  { %1824 = vmatprep.subr.bf16.mxu0 %v1916_v22  ;;  %1899 = vmatprep.subr.bf16.mxu1 %v1916_v22  ;;  %v241_v26 = vadd.f32 %v1984_v10, %v170_v8  ;;  %v242_v27 = vadd.f32 %v1984_v10, %v171_v9  ;;  %v243_v29 = vadd.f32 %v1984_v10, %v172_v12  ;;  %v1470_v35 = vunpack.c.l.bf16 %v1722_v23 }
  0x15   :  { %v244_v30 = vadd.f32 %v1984_v10, %v173_v13  ;;  %v358_v32 = vpack.c.bf16 %v298_v16, %v297_v15  ;;  %v175_v33 = vmul.f32 %v1463_v17, %v1973_v5  ;;  %v176_v34 = vmul.f32 %v1466_v18, %v1973_v5 }
  0x16   :  { %v301_v36 = vmax.f32 %v237_v20, 0.0  ;;  %v302_v37 = vmax.f32 %v238_v21, 0.0  ;;  %v1471_v39 = vunpack.c.h.bf16 %v1722_v23  ;;  %v303_v40 = vmax.f32 %v239_v24, 0.0  ;;  %v1731_v24 = vld [vmem:[%s2554_s0 + $0xa0] sm:$0xff]  }
  0x17   :  { %1825 = vmatpush3.bf16.msra.mxu0 %v1916_v22  ;;  %1907 = vmatpush3.bf16.msra.mxu1 %v1916_v22  ;;  %v1467_v22 = vunpack.c.h.bf16 %v1721_v4  ;;  %v304_v41 = vmax.f32 %v240_v25, 0.0  ;;  %v305_v42 = vmax.f32 %v241_v26, 0.0  ;;  %v359_v45 = vpack.c.bf16 %v300_v28, %v299_v19 }
  0x18   :  { %1826 = vmatprep.subr.bf16.mxu0 %v1917_v31  ;;  %1900 = vmatprep.subr.bf16.mxu1 %v1917_v31  ;;  %v307_v46 = vmax.f32 %v243_v29, 0.0  ;;  %v308_v47 = vmax.f32 %v244_v30, 0.0  ;;  %v246_v49 = vadd.f32 %v1984_v10, %v175_v33  ;;  %v2071_v50 = vadd.f32 %v1984_v10, %v176_v34  ;;  %v1732_v33 = vld [vmem:[%s2554_s0 + $0xa8] sm:$0xff]  }
  0x19   :  { %v177_v38 = vmul.f32 %v1467_v22, %v1973_v5  ;;  %v178_v51 = vmul.f32 %v1470_v35, %v1973_v5  ;;  %v179_v54 = vmul.f32 %v1471_v39, %v1973_v5  ;;  %v1490_v55 = vunpack.c.l.bf16 %v1727_v44 }
  0x1a   :  { %v360_v56 = vpack.c.bf16 %v302_v37, %v301_v36  ;;  %v361_v57 = vpack.c.bf16 %v304_v41, %v303_v40  ;;  %v1474_v62 = vunpack.c.l.bf16 %v2077_v52  ;;  %v1491_v63 = vunpack.c.h.bf16 %v1727_v44 }
  0x1b   :  { %1827 = vmatpush3.bf16.msra.mxu0 %v1917_v31  ;;  %1908 = vmatpush3.bf16.msra.mxu1 %v1917_v31  ;;  %v174_v31 = vmul.f32 %v1462_v14, %v1973_v5  ;;  %v2080_v53 = vadd.f32 %v1984_v10, %v177_v38  ;;  %v310_v1 = vmax.f32 %v246_v49, 0.0  ;;  %v311_v2 = vmax.f32 %v2071_v50, 0.0 }
  0x1c   :  { %1828 = vmatprep.subr.bf16.mxu0 %v1918_v43  ;;  %1901 = vmatprep.subr.bf16.mxu1 %v1918_v43  ;;  %v2096_v3 = vadd.f32 %v1984_v10, %v178_v51  ;;  %v188_v4 = vmul.f32 %v1490_v55, %v1973_v5  ;;  %v2101_v7 = vadd.f32 %v1984_v10, %v179_v54  ;;  %v1494_v9 = vunpack.c.l.bf16 %v1728_v59 }
  0x1d   :  { %v245_v48 = vadd.f32 %v1984_v10, %v174_v31  ;;  %v312_v6 = vmax.f32 %v2080_v53, 0.0  ;;  %v189_v8 = vmul.f32 %v1491_v63, %v1973_v5  ;;  %v1475_v12 = vunpack.c.h.bf16 %v2077_v52 }
  0x1e   :  { %v259_v13 = vadd.f32 %v1984_v10, %v188_v4  ;;  %v1495_v14 = vunpack.c.h.bf16 %v1728_v59  ;;  %v2110_v16 = vmul.f32 %v1474_v62, %v1973_v5  ;;  %v190_v18 = vmul.f32 %v1494_v9, %v1973_v5 }
  0x1f   :  { %1829 = vmatpush3.bf16.msra.mxu0 %v1918_v43  ;;  %1909 = vmatpush3.bf16.msra.mxu1 %v1918_v43  ;;  %v306_v43 = vmax.f32 %v242_v27, 0.0  ;;  %v309_v61 = vmax.f32 %v245_v48, 0.0  ;;  %v260_v17 = vadd.f32 %v1984_v10, %v189_v8  ;;  %v1502_v23 = vunpack.c.l.bf16 %v1730_v11 }
  0x20   :  { %v323_v20 = vmax.f32 %v259_v13, 0.0  ;;  %v191_v21 = vmul.f32 %v1495_v14, %v1973_v5  ;;  %v261_v27 = vadd.f32 %v1984_v10, %v190_v18  ;;  %v1503_v31 = vunpack.c.h.bf16 %v1730_v11  ;;  %v1735_v18 = vld [vmem:[%s2554_s0 + $0xc0] sm:$0xff]  }
  0x21   :  { %v2083_v58 = vpack.c.bf16 %v306_v43, %v305_v42  ;;  %v2119_v25 = vpack.c.bf16 %v310_v1, %v309_v61  ;;  %v324_v26 = vmax.f32 %v260_v17, 0.0  ;;  %v1506_v37 = vunpack.c.l.bf16 %v1731_v24  ;;  %v1734_v1 = vld [vmem:[%s2554_s0 + $0xb8] sm:$0xff]  }
  0x22   :  { %1831 = vmatmul.mubr.bf16.vlgmr.msra.gmra.mrb[0].mxu0 %v356_v60  ;;  %v2088_v60 = vpack.c.bf16 %v308_v47, %v307_v46  ;;  %v262_v29 = vadd.f32 %v1984_v10, %v191_v21  ;;  %v325_v35 = vmax.f32 %v261_v27, 0.0  ;;  %v195_v40 = vmul.f32 %v1503_v31, %v1973_v5  ;;  %v1733_v46 = vld [vmem:[%s2554_s0 + $0xb0] sm:$0xff]   ;;  %v1724_v47 = vld [vmem:[%s2554_s0 + $0x68] sm:$0xff]  }
  0x23   :  { %1834 = vmatprep.mubr.bf16.mxu0 %v357_v0  ;;  %v1729_v0 = vld [vmem:[%s2554_s0 + $0x90] sm:$0xff]   ;;  %v371_v34 = vpack.c.bf16 %v324_v26, %v323_v20  ;;  %v1507_v43 = vunpack.c.h.bf16 %v1731_v24  ;;  %v196_v44 = vmul.f32 %v1506_v37, %v1973_v5  ;;  %v1511_v54 = vunpack.c.h.bf16 %v1732_v33 }
  0x24   :  { %v1498_v15 = vunpack.c.l.bf16 %v1729_v0  ;;  %v1499_v19 = vunpack.c.h.bf16 %v1729_v0  ;;  %v326_v38 = vmax.f32 %v262_v29, 0.0  ;;  %v266_v49 = vadd.f32 %v1984_v10, %v195_v40  ;;  %v1737_v40 = vld [vmem:[%s2554_s0 + $0xd0] sm:$0xff]  }
  0x25   :  { %1862 = vmatprep.mubr.bf16.mxu1 %v371_v34  ;;  %v199_v62 = vmul.f32 %v1511_v54, %v1973_v5  ;;  %v1514_v63 = vunpack.c.l.bf16 %v1733_v46  ;;  %v1515_v0 = vunpack.c.h.bf16 %v1733_v46  ;;  %v313_v4 = vmax.f32 %v2096_v3, 0.0 }
  0x26   :  { %v192_v22 = vmul.f32 %v1498_v15, %v1973_v5  ;;  %v193_v28 = vmul.f32 %v1499_v19, %v1973_v5  ;;  %v372_v48 = vpack.c.bf16 %v326_v38, %v325_v35  ;;  %v330_v61 = vmax.f32 %v266_v49, 0.0 }
  0x27   :  { %v1478_v8 = vunpack.c.l.bf16 %v1724_v47  ;;  %v314_v13 = vmax.f32 %v2101_v7, 0.0  ;;  %v1479_v14 = vunpack.c.h.bf16 %v1724_v47  ;;  %v200_v15 = vmul.f32 %v1514_v63, %v1973_v5 }
  0x28   :  { %v263_v30 = vadd.f32 %v1984_v10, %v192_v22  ;;  %v264_v36 = vadd.f32 %v1984_v10, %v193_v28  ;;  %1863 = vmatmul.mubr.bf16.vlgmr.msra.gmra.mrb[0].mxu1 %v372_v48  ;;  %v201_v17 = vmul.f32 %v1515_v0, %v1973_v5  ;;  %v181_v3 = vmul.f32 %v1475_v12, %v1973_v5 }
  0x29   :  { %v1518_v19 = vunpack.c.l.bf16 %v1734_v1  ;;  %v1519_v20 = vunpack.c.h.bf16 %v1734_v1  ;;  %v271_v24 = vadd.f32 %v1984_v10, %v200_v15  ;;  %v1522_v27 = vunpack.c.l.bf16 %v1735_v18  ;;  %v1738_v15 = vld [vmem:[%s2554_s0 + $0xd8] sm:$0xff]  }
  0x2a   :  { %1835 = vmatmul.mubr.bf16.gmra.mrb[4].mxu0 %v358_v32  ;;  %v194_v32 = vmul.f32 %v1502_v23, %v1973_v5  ;;  %v327_v39 = vmax.f32 %v263_v30, 0.0  ;;  %v328_v42 = vmax.f32 %v264_v36, 0.0  ;;  %v270_v23 = vadd.f32 %v1984_v10, %v199_v62 }
  0x2b   :  { %1838 = vmatprep.mubr.bf16.mxu0 %v359_v45  ;;  %v1510_v45 = vunpack.c.l.bf16 %v1732_v33  ;;  %v1523_v52 = vunpack.c.h.bf16 %v1735_v18  ;;  %v365_v12 = vpack.c.bf16 %v312_v6, %v311_v2  ;;  %v251_v28 = vadd.f32 %v1984_v10, %v2110_v16  ;;  %v1726_v33 = vld [vmem:[%s2554_s0 + $0x78] sm:$0xff]   ;;  %v1736_v16 = vld [vmem:[%s2554_s0 + $0xc8] sm:$0xff]  }
  0x2c   :  { %v265_v41 = vadd.f32 %v1984_v10, %v194_v32  ;;  %v373_v55 = vpack.c.bf16 %v328_v42, %v327_v39  ;;  %v252_v31 = vadd.f32 %v1984_v10, %v181_v3  ;;  %v182_v32 = vmul.f32 %v1478_v8, %v1973_v5 }
  0x2d   :  { %v198_v59 = vmul.f32 %v1510_v45, %v1973_v5  ;;  %v202_v34 = vmul.f32 %v1518_v19, %v1973_v5  ;;  %v203_v50 = vmul.f32 %v1519_v20, %v1973_v5  ;;  %v366_v35 = vpack.c.bf16 %v314_v13, %v313_v4 }
  0x2e   :  { %v329_v51 = vmax.f32 %v265_v41, 0.0  ;;  %1866 = vmatprep.mubr.bf16.mxu1 %v373_v55  ;;  %v183_v53 = vmul.f32 %v1479_v14, %v1973_v5  ;;  %v334_v6 = vmax.f32 %v270_v23, 0.0  ;;  %v335_v36 = vmax.f32 %v271_v24, 0.0 }
  0x2f   :  { %v269_v22 = vadd.f32 %v1984_v10, %v198_v59  ;;  %v204_v38 = vmul.f32 %v1522_v27, %v1973_v5  ;;  %v205_v39 = vmul.f32 %v1523_v52, %v1973_v5  ;;  %v315_v41 = vmax.f32 %v251_v28, 0.0 }
  0x30   :  { %v374_v21 = vpack.c.bf16 %v330_v61, %v329_v51  ;;  %v316_v45 = vmax.f32 %v252_v31, 0.0  ;;  %v273_v46 = vadd.f32 %v1984_v10, %v202_v34  ;;  %v274_v47 = vadd.f32 %v1984_v10, %v203_v50 }
  0x31   :  { %v333_v2 = vmax.f32 %v269_v22, 0.0  ;;  %v1526_v48 = vunpack.c.l.bf16 %v1736_v16  ;;  %v1527_v51 = vunpack.c.h.bf16 %v1736_v16  ;;  %v1530_v54 = vunpack.c.l.bf16 %v1737_v40 }
  0x32   :  { %1839 = vmatmul.mubr.bf16.gmra.mrb[8].mxu0 %v360_v56  ;;  %v197_v56 = vmul.f32 %v1507_v43, %v1973_v5  ;;  %1867 = vmatmul.mubr.bf16.gmra.mrb[4].mxu1 %v374_v21  ;;  %v1531_v55 = vunpack.c.h.bf16 %v1737_v40  ;;  %v276_v59 = vadd.f32 %v1984_v10, %v205_v39  ;;  %v254_v61 = vadd.f32 %v1984_v10, %v183_v53  ;;  %v1739_v21 = vld [vmem:[%s2554_s0 + $0xe0] sm:$0xff]  }
  0x33   :  { %1842 = vmatprep.mubr.bf16.mxu0 %v361_v57  ;;  %v267_v57 = vadd.f32 %v1984_v10, %v196_v44  ;;  %v1486_v44 = vunpack.c.l.bf16 %v1726_v33  ;;  %v376_v49 = vpack.c.bf16 %v334_v6, %v333_v2  ;;  %v1487_v0 = vunpack.c.h.bf16 %v1726_v33 }
  0x34   :  { %v268_v9 = vadd.f32 %v1984_v10, %v197_v56  ;;  %v253_v56 = vadd.f32 %v1984_v10, %v182_v32  ;;  %v367_v1 = vpack.c.bf16 %v316_v45, %v315_v41  ;;  %v337_v4 = vmax.f32 %v273_v46, 0.0  ;;  %v1741_v41 = vld [vmem:[%s2554_s0 + $0xf0] sm:$0xff]  }
  0x35   :  { %v331_v11 = vmax.f32 %v267_v57, 0.0  ;;  %v275_v57 = vadd.f32 %v1984_v10, %v204_v38  ;;  %v338_v8 = vmax.f32 %v274_v47, 0.0  ;;  %v208_v13 = vmul.f32 %v1530_v54, %v1973_v5 }
  0x36   :  { %v332_v7 = vmax.f32 %v268_v9, 0.0  ;;  %v206_v9 = vmul.f32 %v1526_v48, %v1973_v5  ;;  %v209_v14 = vmul.f32 %v1531_v55, %v1973_v5  ;;  %v340_v3 = vmax.f32 %v276_v59, 0.0 }
  0x37   :  { %v339_v18 = vmax.f32 %v275_v57, 0.0  ;;  %v187_v20 = vmul.f32 %v1487_v0, %v1973_v5  ;;  %v378_v23 = vpack.c.bf16 %v338_v8, %v337_v4  ;;  %v279_v27 = vadd.f32 %v1984_v10, %v208_v13 }
  0x38   :  { %v375_v26 = vpack.c.bf16 %v332_v7, %v331_v11  ;;  %v207_v11 = vmul.f32 %v1527_v51, %v1973_v5  ;;  %v318_v7 = vmax.f32 %v254_v61, 0.0  ;;  %v277_v24 = vadd.f32 %v1984_v10, %v206_v9 }
  0x39   :  { %v280_v52 = vadd.f32 %v1984_v10, %v209_v14  ;;  %v379_v28 = vpack.c.bf16 %v340_v3, %v339_v18  ;;  %v258_v33 = vadd.f32 %v1984_v10, %v187_v20  ;;  %v343_v2 = vmax.f32 %v279_v27, 0.0 }
  0x3a   :  { %1843 = vmatmul.mubr.bf16.gmra.mrb[12].mxu0 %v2083_v58  ;;  %v1725_v58 = vld [vmem:[%s2554_s0 + $0x70] sm:$0xff]   ;;  %1870 = vmatprep.mubr.bf16.mxu1 %v375_v26  ;;  %v1534_v26 = vunpack.c.l.bf16 %v1738_v15  ;;  %v341_v50 = vmax.f32 %v277_v24, 0.0  ;;  %v1546_v51 = vunpack.c.l.bf16 %v1741_v41  ;;  %v1547_v54 = vunpack.c.h.bf16 %v1741_v41 }
  0x3b   :  { %1846 = vmatprep.mubr.bf16.mxu0 %v2088_v60  ;;  %v272_v60 = vadd.f32 %v1984_v10, %v201_v17  ;;  %v1482_v29 = vunpack.c.l.bf16 %v1725_v58  ;;  %v1483_v30 = vunpack.c.h.bf16 %v1725_v58  ;;  %1871 = vmatmul.mubr.bf16.gmra.mrb[8].mxu1 %v376_v49  ;;  %v186_v17 = vmul.f32 %v1486_v44, %v1973_v5 }
  0x3c   :  { %v317_v58 = vmax.f32 %v253_v56, 0.0  ;;  %v344_v6 = vmax.f32 %v280_v52, 0.0  ;;  %v322_v40 = vmax.f32 %v258_v33, 0.0  ;;  %v217_v0 = vmul.f32 %v1547_v54, %v1973_v5 }
  0x3d   :  { %v336_v37 = vmax.f32 %v272_v60, 0.0  ;;  %v184_v42 = vmul.f32 %v1482_v29, %v1973_v5  ;;  %v185_v43 = vmul.f32 %v1483_v30, %v1973_v5  ;;  %v278_v60 = vadd.f32 %v1984_v10, %v207_v11 }
  0x3e   :  { %v1538_v29 = vunpack.c.l.bf16 %v1739_v21  ;;  %v1539_v30 = vunpack.c.h.bf16 %v1739_v21  ;;  %v368_v31 = vpack.c.bf16 %v318_v7, %v317_v58  ;;  %v257_v32 = vadd.f32 %v1984_v10, %v186_v17 }
  0x3f   :  { %v255_v62 = vadd.f32 %v1984_v10, %v184_v42  ;;  %v256_v63 = vadd.f32 %v1984_v10, %v185_v43  ;;  %v342_v53 = vmax.f32 %v278_v60, 0.0  ;;  %v381_v45 = vpack.c.bf16 %v344_v6, %v343_v2 }
  0x40   :  { %v213_v38 = vmul.f32 %v1539_v30, %v1973_v5  ;;  %v321_v39 = vmax.f32 %v257_v32, 0.0  ;;  %v288_v17 = vadd.f32 %v1984_v10, %v217_v0  ;;  %v1919_v52 = vmov 0.0  }
  0x41   :  { %v319_v19 = vmax.f32 %v255_v62, 0.0  ;;  %v320_v22 = vmax.f32 %v256_v63, 0.0  ;;  %v380_v44 = vpack.c.bf16 %v342_v53, %v341_v50  ;;  %v216_v63 = vmul.f32 %v1546_v51, %v1973_v5  ;;  %744 = vst [vmem:[%s2557_s5] sm:$0x1] %v1919_v52  ;;  %745 = vst [vmem:[%s2558_s6] sm:$0x1] %v1919_v52 }
  0x42   :  { %1847 = vmatmul.mubr.bf16.gmra.mrb[16].mxu0 %v2119_v25  ;;  %v377_v25 = vpack.c.bf16 %v336_v37, %v335_v36  ;;  %v1740_v36 = vld [vmem:[%s2554_s0 + $0xe8] sm:$0xff]   ;;  %v212_v37 = vmul.f32 %v1538_v29, %v1973_v5  ;;  %v284_v49 = vadd.f32 %v1984_v10, %v213_v38  ;;  %v370_v55 = vpack.c.bf16 %v322_v40, %v321_v39 }
  0x43   :  { %1850 = vmatprep.mubr.bf16.mxu0 %v365_v12  ;;  %v1535_v12 = vunpack.c.h.bf16 %v1738_v15  ;;  %v369_v34 = vpack.c.bf16 %v320_v22, %v319_v19  ;;  %v1542_v43 = vunpack.c.l.bf16 %v1740_v36  ;;  %v1543_v47 = vunpack.c.h.bf16 %v1740_v36 }
  0x44   :  { %1874 = vmatprep.mubr.bf16.mxu1 %v377_v25  ;;  %v283_v48 = vadd.f32 %v1984_v10, %v212_v37  ;;  %v348_v62 = vmax.f32 %v284_v49, 0.0  ;;  %v287_v15 = vadd.f32 %v1984_v10, %v216_v63  ;;  %v352_v20 = vmax.f32 %v288_v17, 0.0 }
  0x45   :  { %1875 = vmatmul.mubr.bf16.gmra.mrb[12].mxu1 %v378_v23  ;;  %v211_v16 = vmul.f32 %v1535_v12, %v1973_v5  ;;  %v214_v56 = vmul.f32 %v1542_v43, %v1973_v5  ;;  %v215_v59 = vmul.f32 %v1543_v47, %v1973_v5 }
  0x46   :  { %1878 = vmatprep.mubr.bf16.mxu1 %v379_v28  ;;  %v347_v61 = vmax.f32 %v283_v48, 0.0  ;;  %v351_v19 = vmax.f32 %v287_v15, 0.0 }
  0x47   :  { %v282_v46 = vadd.f32 %v1984_v10, %v211_v16  ;;  %v285_v4 = vadd.f32 %v1984_v10, %v214_v56  ;;  %v286_v9 = vadd.f32 %v1984_v10, %v215_v59 }
  0x48   :  { %v383_v14 = vpack.c.bf16 %v348_v62, %v347_v61  ;;  %v385_v24 = vpack.c.bf16 %v352_v20, %v351_v19 }
  0x49   :  { %v346_v57 = vmax.f32 %v282_v46, 0.0  ;;  %v349_v18 = vmax.f32 %v285_v4, 0.0  ;;  %v350_v3 = vmax.f32 %v286_v9, 0.0 }
  0x4a   :  { %1851 = vmatmul.mubr.bf16.gmra.mrb[20].mxu0 %v366_v35  ;;  %v210_v35 = vmul.f32 %v1534_v26, %v1973_v5 }
  0x4b   :  { %1854 = vmatprep.mubr.bf16.mxu0 %v367_v1  ;;  %v1742_v1 = vld [vmem:[%s2554_s0 + $0xf8] sm:$0xff]   ;;  %v384_v21 = vpack.c.bf16 %v350_v3, %v349_v18 }
  0x4c   :  { %v281_v42 = vadd.f32 %v1984_v10, %v210_v35  ;;  %v1550_v11 = vunpack.c.l.bf16 %v1742_v1  ;;  %v1551_v13 = vunpack.c.h.bf16 %v1742_v1 }
  0x4d   :  { %1879 = vmatmul.mubr.bf16.gmra.mrb[16].mxu1 %v380_v44 }
  0x4e   :  { %v345_v25 = vmax.f32 %v281_v42, 0.0  ;;  %1882 = vmatprep.mubr.bf16.mxu1 %v381_v45  ;;  %v218_v58 = vmul.f32 %v1550_v11, %v1973_v5  ;;  %v219_v7 = vmul.f32 %v1551_v13, %v1973_v5 }
  0x50   :  { %v382_v8 = vpack.c.bf16 %v346_v57, %v345_v25  ;;  %v289_v22 = vadd.f32 %v1984_v10, %v218_v58  ;;  %v290_v23 = vadd.f32 %v1984_v10, %v219_v7 }
  0x52   :  { %1855 = vmatmul.mubr.bf16.gmra.mrb[24].mxu0 %v368_v31  ;;  %v353_v26 = vmax.f32 %v289_v22, 0.0  ;;  %v354_v60 = vmax.f32 %v290_v23, 0.0 }
  0x53   :  { %1858 = vmatprep.mubr.bf16.mxu0 %v369_v34 }
  0x54   :  { %v386_v27 = vpack.c.bf16 %v354_v60, %v353_v26 }
  0x55   :  { %1883 = vmatmul.mubr.bf16.gmra.mrb[20].mxu1 %v382_v8 }
  0x56   :  { %1886 = vmatprep.mubr.bf16.mxu1 %v383_v14 }
  0x5a   :  { %1859 = vmatmul.mubr.bf16.gmra.mrb[28].mxu0 %v370_v55 }
  0x5d   :  { %1887 = vmatmul.mubr.bf16.gmra.mrb[24].mxu1 %v384_v21 }
  0x5e   :  { %1890 = vmatprep.mubr.bf16.mxu1 %v385_v24 }
  0x65   :  { %1891 = vmatmul.mubr.bf16.gmra.mrb[28].mxu1 %v386_v27 }
  0xf5   :  { %v1832_v5 = vpop.f32.mrb[0].mxu0 }
  0xf6   :  { %v485_v12 = vpop.f32.mrb[1].mxu0  ;;  %v821_v34 = vmul.f32 %v1832_v5, %v1832_v5 }
  0xf7   :  { %v1833_v28 = vpop.f32.mrb[2].mxu0  ;;  %v819_v30 = vmul.f32 %v485_v12, %v485_v12 }
  0xf8   :  { %v1560_v10 = vpack.c.bf16 %v1833_v28, %v1832_v5  ;;  %v488_v29 = vpop.f32.mrb[3].mxu0  ;;  %v822_v53 = vmul.f32 %v1833_v28, %v1833_v28 }
  0xf9   :  { %v747_v31 = vadd.f32 %v488_v29, %v485_v12  ;;  %v820_v32 = vmul.f32 %v488_v29, %v488_v29  ;;  %v1555_v33 = vpack.c.bf16 %v488_v29, %v485_v12 }
  0xfa   :  { %1743 = vst [vmem:[%s2559_s4 + $0x8] sm:$0xff] %v1560_v10  }
  0xfb   :  { %v748_v50 = vadd.f32 %v1832_v5, %v747_v31  ;;  %v883_v35 = vadd.f32 %v820_v32, %v819_v30  ;;  %1556 = vst [vmem:[%s2559_s4] sm:$0xff] %v1555_v33   ;;  %v2271_v15 = vpop.f32.mrb[0].mxu1 }
  0xfc   :  { %v2273_v17 = vpop.f32.mrb[1].mxu1 }
  0xfd   :  { %v884_v2 = vadd.f32 %v883_v35, %v821_v34  ;;  %v1836_v6 = vpop.f32.mrb[4].mxu0  ;;  %v749_v16 = vadd.f32 %v1833_v28, %v748_v50  ;;  %v2275_v19 = vpop.f32.mrb[2].mxu1 }
  0xfe   :  { %v501_v36 = vpop.f32.mrb[5].mxu0  ;;  %v825_v47 = vmul.f32 %v1836_v6, %v1836_v6  ;;  %v1640_v21 = vpack.c.bf16 %v2275_v19, %v2271_v15  ;;  %v2279_v22 = vpop.f32.mrb[3].mxu1 }
  0xff   :  { %v750_v37 = vadd.f32 %v749_v16, %v501_v36  ;;  %v823_v38 = vmul.f32 %v501_v36, %v501_v36  ;;  %v885_v39 = vadd.f32 %v884_v2, %v822_v53  ;;  %v1837_v40 = vpop.f32.mrb[6].mxu0  ;;  %v1635_v5 = vpack.c.bf16 %v2279_v22, %v2273_v17 }
 0x100   :  { %v1570_v41 = vpack.c.bf16 %v1837_v40, %v1836_v6  ;;  %v504_v42 = vpop.f32.mrb[7].mxu0  ;;  %v826_v51 = vmul.f32 %v1837_v40, %v1837_v40  ;;  %1759 = vst [vmem:[%s2559_s4 + $0x88] sm:$0xff] %v1640_v21  }
 0x101   :  { %v886_v43 = vadd.f32 %v885_v39, %v823_v38  ;;  %v751_v44 = vadd.f32 %v750_v37, %v504_v42  ;;  %v824_v45 = vmul.f32 %v504_v42, %v504_v42  ;;  %v1565_v46 = vpack.c.bf16 %v504_v42, %v501_v36  ;;  %1758 = vst [vmem:[%s2559_s4 + $0x80] sm:$0xff] %v1635_v5  }
 0x102   :  { %1745 = vst [vmem:[%s2559_s4 + $0x18] sm:$0xff] %v1570_v41  }
 0x103   :  { %v752_v48 = vadd.f32 %v1836_v6, %v751_v44  ;;  %v887_v49 = vadd.f32 %v886_v43, %v824_v45  ;;  %1744 = vst [vmem:[%s2559_s4 + $0x10] sm:$0xff] %v1565_v46  }
 0x105   :  { %v888_v54 = vadd.f32 %v887_v49, %v825_v47  ;;  %v1840_v55 = vpop.f32.mrb[8].mxu0  ;;  %v753_v56 = vadd.f32 %v1837_v40, %v752_v48  ;;  %v2295_v33 = vpop.f32.mrb[4].mxu1 }
 0x106   :  { %v517_v25 = vpop.f32.mrb[9].mxu0  ;;  %v829_v11 = vmul.f32 %v1840_v55, %v1840_v55  ;;  %v2297_v34 = vpop.f32.mrb[5].mxu1 }
 0x107   :  { %v754_v57 = vadd.f32 %v753_v56, %v517_v25  ;;  %v827_v59 = vmul.f32 %v517_v25, %v517_v25  ;;  %v889_v61 = vadd.f32 %v888_v54, %v826_v51  ;;  %v1841_v62 = vpop.f32.mrb[10].mxu0  ;;  %v2299_v6 = vpop.f32.mrb[6].mxu1 }
 0x108   :  { %v1580_v63 = vpack.c.bf16 %v1841_v62, %v1840_v55  ;;  %v520_v0 = vpop.f32.mrb[11].mxu0  ;;  %v830_v18 = vmul.f32 %v1841_v62, %v1841_v62  ;;  %v1650_v36 = vpack.c.bf16 %v2299_v6, %v2295_v33  ;;  %v2303_v37 = vpop.f32.mrb[7].mxu1 }
 0x109   :  { %v890_v1 = vadd.f32 %v889_v61, %v827_v59  ;;  %v755_v4 = vadd.f32 %v754_v57, %v520_v0  ;;  %v828_v8 = vmul.f32 %v520_v0, %v520_v0  ;;  %v1575_v9 = vpack.c.bf16 %v520_v0, %v517_v25 }
 0x10a   :  { %1747 = vst [vmem:[%s2559_s4 + $0x28] sm:$0xff] %v1580_v63   ;;  %1761 = vst [vmem:[%s2559_s4 + $0x98] sm:$0xff] %v1650_v36   ;;  %v1645_v44 = vpack.c.bf16 %v2303_v37, %v2297_v34 }
 0x10b   :  { %v756_v13 = vadd.f32 %v1840_v55, %v755_v4  ;;  %v891_v14 = vadd.f32 %v890_v1, %v828_v8  ;;  %1746 = vst [vmem:[%s2559_s4 + $0x20] sm:$0xff] %v1575_v9  }
 0x10c   :  { %1760 = vst [vmem:[%s2559_s4 + $0x90] sm:$0xff] %v1645_v44  }
 0x10d   :  { %v892_v3 = vadd.f32 %v891_v14, %v829_v11  ;;  %v1844_v58 = vpop.f32.mrb[12].mxu0  ;;  %v757_v7 = vadd.f32 %v1841_v62, %v756_v13 }
 0x10e   :  { %v533_v20 = vpop.f32.mrb[13].mxu0  ;;  %v833_v30 = vmul.f32 %v1844_v58, %v1844_v58  ;;  %v2319_v55 = vpop.f32.mrb[8].mxu1 }
 0x10f   :  { %v758_v23 = vadd.f32 %v757_v7, %v533_v20  ;;  %v831_v24 = vmul.f32 %v533_v20, %v533_v20  ;;  %v893_v26 = vadd.f32 %v892_v3, %v830_v18  ;;  %v1845_v60 = vpop.f32.mrb[14].mxu0  ;;  %v2321_v56 = vpop.f32.mrb[9].mxu1 }
 0x110   :  { %v1590_v27 = vpack.c.bf16 %v1845_v60, %v1844_v58  ;;  %v536_v52 = vpop.f32.mrb[15].mxu0  ;;  %v834_v50 = vmul.f32 %v1845_v60, %v1845_v60  ;;  %v2323_v62 = vpop.f32.mrb[10].mxu1 }
 0x111   :  { %v894_v12 = vadd.f32 %v893_v26, %v831_v24  ;;  %v759_v28 = vadd.f32 %v758_v23, %v536_v52  ;;  %v832_v10 = vmul.f32 %v536_v52, %v536_v52  ;;  %v1585_v29 = vpack.c.bf16 %v536_v52, %v533_v20  ;;  %v2327_v1 = vpop.f32.mrb[11].mxu1 }
 0x112   :  { %1749 = vst [vmem:[%s2559_s4 + $0x38] sm:$0xff] %v1590_v27   ;;  %v1660_v0 = vpack.c.bf16 %v2323_v62, %v2319_v55  ;;  %v1655_v18 = vpack.c.bf16 %v2327_v1, %v2321_v56 }
 0x113   :  { %v760_v31 = vadd.f32 %v1844_v58, %v759_v28  ;;  %v895_v32 = vadd.f32 %v894_v12, %v832_v10  ;;  %1748 = vst [vmem:[%s2559_s4 + $0x30] sm:$0xff] %v1585_v29  }
 0x114   :  { %1763 = vst [vmem:[%s2559_s4 + $0xa8] sm:$0xff] %v1660_v0   ;;  %1762 = vst [vmem:[%s2559_s4 + $0xa0] sm:$0xff] %v1655_v18  }
 0x115   :  { %v896_v35 = vadd.f32 %v895_v32, %v833_v30  ;;  %v1848_v53 = vpop.f32.mrb[16].mxu0  ;;  %v761_v2 = vadd.f32 %v1845_v60, %v760_v31 }
 0x116   :  { %v549_v16 = vpop.f32.mrb[17].mxu0  ;;  %v837_v49 = vmul.f32 %v1848_v53, %v1848_v53 }
 0x117   :  { %v762_v38 = vadd.f32 %v761_v2, %v549_v16  ;;  %v835_v39 = vmul.f32 %v549_v16, %v549_v16  ;;  %v897_v40 = vadd.f32 %v896_v35, %v834_v50  ;;  %v1849_v41 = vpop.f32.mrb[18].mxu0 }
 0x118   :  { %v1600_v42 = vpack.c.bf16 %v1849_v41, %v1848_v53  ;;  %v552_v43 = vpop.f32.mrb[19].mxu0  ;;  %v838_v25 = vmul.f32 %v1849_v41, %v1849_v41  ;;  %v2343_v26 = vpop.f32.mrb[12].mxu1 }
 0x119   :  { %v898_v45 = vadd.f32 %v897_v40, %v835_v39  ;;  %v763_v46 = vadd.f32 %v762_v38, %v552_v43  ;;  %v836_v47 = vmul.f32 %v552_v43, %v552_v43  ;;  %v1595_v48 = vpack.c.bf16 %v552_v43, %v549_v16  ;;  %v2345_v60 = vpop.f32.mrb[13].mxu1 }
 0x11a   :  { %1751 = vst [vmem:[%s2559_s4 + $0x48] sm:$0xff] %v1600_v42   ;;  %v2347_v28 = vpop.f32.mrb[14].mxu1 }
 0x11b   :  { %v764_v51 = vadd.f32 %v1848_v53, %v763_v46  ;;  %v899_v54 = vadd.f32 %v898_v45, %v836_v47  ;;  %1750 = vst [vmem:[%s2559_s4 + $0x40] sm:$0xff] %v1595_v48   ;;  %v1670_v29 = vpack.c.bf16 %v2347_v28, %v2343_v26  ;;  %v2351_v30 = vpop.f32.mrb[15].mxu1 }
 0x11c   :  { %v1665_v16 = vpack.c.bf16 %v2351_v30, %v2345_v60 }
 0x11d   :  { %v900_v57 = vadd.f32 %v899_v54, %v837_v49  ;;  %v1852_v59 = vpop.f32.mrb[20].mxu0  ;;  %v765_v61 = vadd.f32 %v1849_v41, %v764_v51  ;;  %1765 = vst [vmem:[%s2559_s4 + $0xb8] sm:$0xff] %v1670_v29  }
 0x11e   :  { %v565_v63 = vpop.f32.mrb[21].mxu0  ;;  %v841_v21 = vmul.f32 %v1852_v59, %v1852_v59  ;;  %1764 = vst [vmem:[%s2559_s4 + $0xb0] sm:$0xff] %v1665_v16  }
 0x11f   :  { %v766_v4 = vadd.f32 %v765_v61, %v565_v63  ;;  %v839_v8 = vmul.f32 %v565_v63, %v565_v63  ;;  %v901_v9 = vadd.f32 %v900_v57, %v838_v25  ;;  %v1853_v11 = vpop.f32.mrb[22].mxu0 }
 0x120   :  { %v1610_v13 = vpack.c.bf16 %v1853_v11, %v1852_v59  ;;  %v568_v14 = vpop.f32.mrb[23].mxu0  ;;  %v842_v27 = vmul.f32 %v1853_v11, %v1853_v11  ;;  %v2367_v44 = vpop.f32.mrb[16].mxu1 }
 0x121   :  { %v902_v3 = vadd.f32 %v901_v9, %v839_v8  ;;  %v767_v58 = vadd.f32 %v766_v4, %v568_v14  ;;  %v840_v7 = vmul.f32 %v568_v14, %v568_v14  ;;  %v1605_v20 = vpack.c.bf16 %v568_v14, %v565_v63  ;;  %v2369_v45 = vpop.f32.mrb[17].mxu1 }
 0x122   :  { %1753 = vst [vmem:[%s2559_s4 + $0x58] sm:$0xff] %v1610_v13   ;;  %v2371_v51 = vpop.f32.mrb[18].mxu1 }
 0x123   :  { %v768_v23 = vadd.f32 %v1852_v59, %v767_v58  ;;  %v903_v24 = vadd.f32 %v902_v3, %v840_v7  ;;  %1752 = vst [vmem:[%s2559_s4 + $0x50] sm:$0xff] %v1605_v20   ;;  %v1680_v25 = vpack.c.bf16 %v2371_v51, %v2367_v44  ;;  %v2375_v57 = vpop.f32.mrb[19].mxu1 }
 0x124   :  { %v1675_v9 = vpack.c.bf16 %v2375_v57, %v2369_v45 }
 0x125   :  { %v904_v52 = vadd.f32 %v903_v24, %v841_v21  ;;  %v1856_v5 = vpop.f32.mrb[24].mxu0  ;;  %v769_v12 = vadd.f32 %v1853_v11, %v768_v23  ;;  %1767 = vst [vmem:[%s2559_s4 + $0xc8] sm:$0xff] %v1680_v25  }
 0x126   :  { %v581_v10 = vpop.f32.mrb[25].mxu0  ;;  %v845_v41 = vmul.f32 %v1856_v5, %v1856_v5  ;;  %1766 = vst [vmem:[%s2559_s4 + $0xc0] sm:$0xff] %v1675_v9  }
 0x127   :  { %v770_v31 = vadd.f32 %v769_v12, %v581_v10  ;;  %v843_v32 = vmul.f32 %v581_v10, %v581_v10  ;;  %v905_v50 = vadd.f32 %v904_v52, %v842_v27  ;;  %v1857_v35 = vpop.f32.mrb[26].mxu0  ;;  %v851_v52 = vmul.f32 %v2273_v17, %v2273_v17 }
 0x128   :  { %v1620_v53 = vpack.c.bf16 %v1857_v35, %v1856_v5  ;;  %v584_v2 = vpop.f32.mrb[27].mxu0  ;;  %v846_v46 = vmul.f32 %v1857_v35, %v1857_v35  ;;  %v2391_v20 = vpop.f32.mrb[20].mxu1 }
 0x129   :  { %v906_v36 = vadd.f32 %v905_v50, %v843_v32  ;;  %v771_v38 = vadd.f32 %v770_v31, %v584_v2  ;;  %v844_v39 = vmul.f32 %v584_v2, %v584_v2  ;;  %v1615_v40 = vpack.c.bf16 %v584_v2, %v581_v10  ;;  %v2393_v21 = vpop.f32.mrb[21].mxu1 }
 0x12a   :  { %1755 = vst [vmem:[%s2559_s4 + $0x68] sm:$0xff] %v1620_v53   ;;  %v852_v53 = vmul.f32 %v2279_v22, %v2279_v22 }
 0x12b   :  { %v772_v42 = vadd.f32 %v1856_v5, %v771_v38  ;;  %v907_v43 = vadd.f32 %v906_v36, %v844_v39  ;;  %1754 = vst [vmem:[%s2559_s4 + $0x60] sm:$0xff] %v1615_v40   ;;  %v2397_v5 = vpop.f32.mrb[22].mxu1  ;;  %v854_v39 = vmul.f32 %v2275_v19, %v2275_v19 }
 0x12c   :  { %v1690_v12 = vpack.c.bf16 %v2397_v5, %v2391_v20  ;;  %v2401_v10 = vpop.f32.mrb[23].mxu1 }
 0x12d   :  { %v908_v47 = vadd.f32 %v907_v43, %v845_v41  ;;  %v1860_v48 = vpop.f32.mrb[28].mxu0  ;;  %v773_v49 = vadd.f32 %v1857_v35, %v772_v42  ;;  %v1685_v32 = vpack.c.bf16 %v2401_v10, %v2393_v21  ;;  %v855_v41 = vmul.f32 %v2297_v34, %v2297_v34 }
 0x12e   :  { %v597_v54 = vpop.f32.mrb[29].mxu0  ;;  %v849_v3 = vmul.f32 %v1860_v48, %v1860_v48  ;;  %1769 = vst [vmem:[%s2559_s4 + $0xd8] sm:$0xff] %v1690_v12   ;;  %v863_v12 = vmul.f32 %v2345_v60, %v2345_v60 }
 0x12f   :  { %v774_v59 = vadd.f32 %v773_v49, %v597_v54  ;;  %v847_v61 = vmul.f32 %v597_v54, %v597_v54  ;;  %v909_v63 = vadd.f32 %v908_v47, %v846_v46  ;;  %v1861_v0 = vpop.f32.mrb[30].mxu0  ;;  %1768 = vst [vmem:[%s2559_s4 + $0xd0] sm:$0xff] %v1685_v32  }
 0x130   :  { %v1630_v4 = vpack.c.bf16 %v1861_v0, %v1860_v48  ;;  %v600_v8 = vpop.f32.mrb[31].mxu0  ;;  %v850_v23 = vmul.f32 %v1861_v0, %v1861_v0  ;;  %v2418_v36 = vpop.f32.mrb[24].mxu1 }
 0x131   :  { %v910_v11 = vadd.f32 %v909_v63, %v847_v61  ;;  %v775_v13 = vadd.f32 %v774_v59, %v600_v8  ;;  %v848_v14 = vmul.f32 %v600_v8, %v600_v8  ;;  %v1625_v18 = vpack.c.bf16 %v600_v8, %v597_v54  ;;  %v2420_v38 = vpop.f32.mrb[25].mxu1 }
 0x132   :  { %1757 = vst [vmem:[%s2559_s4 + $0x78] sm:$0xff] %v1630_v4   ;;  %v2427_v42 = vpop.f32.mrb[26].mxu1  ;;  %v856_v54 = vmul.f32 %v2303_v37, %v2303_v37  ;;  %v859_v8 = vmul.f32 %v2321_v56, %v2321_v56 }
 0x133   :  { %v776_v58 = vadd.f32 %v1860_v48, %v775_v13  ;;  %v911_v7 = vadd.f32 %v910_v11, %v848_v14  ;;  %1756 = vst [vmem:[%s2559_s4 + $0x70] sm:$0xff] %v1625_v18   ;;  %v1700_v43 = vpack.c.bf16 %v2427_v42, %v2418_v36 }
 0x135   :  { %v912_v24 = vadd.f32 %v911_v7, %v849_v3  ;;  %v777_v27 = vadd.f32 %v1861_v0, %v776_v58  ;;  %1771 = vst [vmem:[%s2559_s4 + $0xe8] sm:$0xff] %v1700_v43   ;;  %v858_v0 = vmul.f32 %v2299_v6, %v2299_v6  ;;  %v860_v58 = vmul.f32 %v2327_v1, %v2327_v1 }
 0x137   :  { %v778_v29 = vadd.f32 %v777_v27, %v2273_v17  ;;  %v913_v31 = vadd.f32 %v912_v24, %v850_v23  ;;  %v853_v17 = vmul.f32 %v2271_v15, %v2271_v15  ;;  %v862_v24 = vmul.f32 %v2323_v62, %v2323_v62 }
 0x139   :  { %v914_v50 = vadd.f32 %v913_v31, %v851_v52  ;;  %v779_v35 = vadd.f32 %v778_v29, %v2279_v22 }
 0x13b   :  { %v780_v2 = vadd.f32 %v2271_v15, %v779_v35  ;;  %v915_v16 = vadd.f32 %v914_v50, %v852_v53  ;;  %v2431_v15 = vpop.f32.mrb[27].mxu1  ;;  %v864_v50 = vmul.f32 %v2351_v30, %v2351_v30 }
 0x13c   :  { %v1695_v48 = vpack.c.bf16 %v2431_v15, %v2420_v38  ;;  %v2448_v61 = vpop.f32.mrb[28].mxu1 }
 0x13d   :  { %v916_v40 = vadd.f32 %v915_v16, %v853_v17  ;;  %v781_v22 = vadd.f32 %v2275_v19, %v780_v2  ;;  %v2450_v63 = vpop.f32.mrb[29].mxu1 }
 0x13e   :  { %1770 = vst [vmem:[%s2559_s4 + $0xe0] sm:$0xff] %v1695_v48   ;;  %v2457_v9 = vpop.f32.mrb[30].mxu1 }
 0x13f   :  { %v782_v46 = vadd.f32 %v781_v22, %v2297_v34  ;;  %v917_v47 = vadd.f32 %v916_v40, %v854_v39  ;;  %v857_v34 = vmul.f32 %v2295_v33, %v2295_v33  ;;  %v1710_v11 = vpack.c.bf16 %v2457_v9, %v2448_v61 }
 0x140   :  { %v868_v22 = vmul.f32 %v2375_v57, %v2375_v57 }
 0x141   :  { %v918_v19 = vadd.f32 %v917_v47, %v855_v41  ;;  %v783_v49 = vadd.f32 %v782_v46, %v2303_v37  ;;  %1773 = vst [vmem:[%s2559_s4 + $0xf8] sm:$0xff] %v1710_v11   ;;  %v876_v11 = vmul.f32 %v2431_v15, %v2431_v15 }
 0x143   :  { %v784_v25 = vadd.f32 %v2295_v33, %v783_v49  ;;  %v919_v59 = vadd.f32 %v918_v19, %v856_v54  ;;  %v2461_v33 = vpop.f32.mrb[31].mxu1  ;;  %v872_v54 = vmul.f32 %v2401_v10, %v2401_v10 }
 0x144   :  { %v1705_v18 = vpack.c.bf16 %v2461_v33, %v2450_v63 }
 0x145   :  { %v920_v4 = vadd.f32 %v919_v59, %v857_v34  ;;  %v785_v37 = vadd.f32 %v2299_v6, %v784_v25 }
 0x146   :  { %1772 = vst [vmem:[%s2559_s4 + $0xf0] sm:$0xff] %v1705_v18  }
 0x147   :  { %v786_v13 = vadd.f32 %v785_v37, %v2321_v56  ;;  %v921_v14 = vadd.f32 %v920_v4, %v858_v0  ;;  %v861_v56 = vmul.f32 %v2319_v55, %v2319_v55 }
 0x149   :  { %v922_v6 = vadd.f32 %v921_v14, %v859_v8  ;;  %v787_v3 = vadd.f32 %v786_v13, %v2327_v1 }
 0x14b   :  { %v788_v7 = vadd.f32 %v2319_v55, %v787_v3  ;;  %v923_v23 = vadd.f32 %v922_v6, %v860_v58  ;;  %v865_v55 = vmul.f32 %v2343_v26, %v2343_v26 }
 0x14d   :  { %v924_v27 = vadd.f32 %v923_v23, %v861_v56  ;;  %v789_v52 = vadd.f32 %v2323_v62, %v788_v7  ;;  %v866_v62 = vmul.f32 %v2347_v28, %v2347_v28  ;;  %v880_v7 = vmul.f32 %v2461_v33, %v2461_v33 }
 0x14f   :  { %v790_v1 = vadd.f32 %v789_v52, %v2345_v60  ;;  %v925_v29 = vadd.f32 %v924_v27, %v862_v24  ;;  %v867_v60 = vmul.f32 %v2369_v45, %v2369_v45 }
 0x151   :  { %v926_v31 = vadd.f32 %v925_v29, %v863_v12  ;;  %v791_v32 = vadd.f32 %v790_v1, %v2351_v30 }
 0x153   :  { %v792_v35 = vadd.f32 %v2343_v26, %v791_v32  ;;  %v927_v53 = vadd.f32 %v926_v31, %v864_v50  ;;  %v869_v26 = vmul.f32 %v2367_v44, %v2367_v44 }
 0x155   :  { %v928_v17 = vadd.f32 %v927_v53, %v865_v55  ;;  %v793_v2 = vadd.f32 %v2347_v28, %v792_v35  ;;  %v870_v28 = vmul.f32 %v2371_v51, %v2371_v51 }
 0x157   :  { %v794_v16 = vadd.f32 %v793_v2, %v2369_v45  ;;  %v929_v39 = vadd.f32 %v928_v17, %v866_v62  ;;  %v871_v45 = vmul.f32 %v2393_v21, %v2393_v21 }
 0x159   :  { %v930_v40 = vadd.f32 %v929_v39, %v867_v60  ;;  %v795_v30 = vadd.f32 %v794_v16, %v2375_v57 }
 0x15b   :  { %v796_v41 = vadd.f32 %v2367_v44, %v795_v30  ;;  %v931_v43 = vadd.f32 %v930_v40, %v868_v22  ;;  %v873_v44 = vmul.f32 %v2391_v20, %v2391_v20 }
 0x15d   :  { %v932_v46 = vadd.f32 %v931_v43, %v869_v26  ;;  %v797_v47 = vadd.f32 %v2371_v51, %v796_v41  ;;  %v874_v51 = vmul.f32 %v2397_v5, %v2397_v5 }
 0x15f   :  { %v798_v48 = vadd.f32 %v797_v47, %v2393_v21  ;;  %v933_v19 = vadd.f32 %v932_v46, %v870_v28  ;;  %v875_v21 = vmul.f32 %v2420_v38, %v2420_v38 }
 0x161   :  { %v934_v49 = vadd.f32 %v933_v19, %v871_v45  ;;  %v799_v57 = vadd.f32 %v798_v48, %v2401_v10 }
 0x163   :  { %v800_v34 = vadd.f32 %v2391_v20, %v799_v57  ;;  %v935_v25 = vadd.f32 %v934_v49, %v872_v54  ;;  %v877_v20 = vmul.f32 %v2418_v36, %v2418_v36 }
 0x165   :  { %v936_v59 = vadd.f32 %v935_v25, %v873_v44  ;;  %v801_v0 = vadd.f32 %v2397_v5, %v800_v34  ;;  %v878_v5 = vmul.f32 %v2427_v42, %v2427_v42 }
 0x167   :  { %v802_v4 = vadd.f32 %v801_v0, %v2420_v38  ;;  %v937_v37 = vadd.f32 %v936_v59, %v874_v51  ;;  %v879_v38 = vmul.f32 %v2450_v63, %v2450_v63 }
 0x169   :  { %v938_v8 = vadd.f32 %v937_v37, %v875_v21  ;;  %v803_v10 = vadd.f32 %v802_v4, %v2431_v15 }
 0x16b   :  { %v804_v13 = vadd.f32 %v2418_v36, %v803_v10  ;;  %v939_v14 = vadd.f32 %v938_v8, %v876_v11  ;;  %v881_v36 = vmul.f32 %v2448_v61, %v2448_v61 }
 0x16d   :  { %v940_v18 = vadd.f32 %v939_v14, %v877_v20  ;;  %v805_v6 = vadd.f32 %v2427_v42, %v804_v13  ;;  %v882_v42 = vmul.f32 %v2457_v9, %v2457_v9 }
 0x16f   :  { %v806_v3 = vadd.f32 %v805_v6, %v2450_v63  ;;  %v941_v58 = vadd.f32 %v940_v18, %v878_v5 }
 0x171   :  { %v942_v56 = vadd.f32 %v941_v58, %v879_v38  ;;  %v807_v15 = vadd.f32 %v806_v3, %v2461_v33 }
 0x173   :  { %v808_v23 = vadd.f32 %v2448_v61, %v807_v15  ;;  %v943_v24 = vadd.f32 %v942_v56, %v880_v7  ;;  %v746_v61 = vld [vmem:[%s2557_s5] sm:$0x1] }
 0x175   :  { %v809_v27 = vadd.f32 %v2457_v9, %v808_v23  ;;  %v944_v52 = vadd.f32 %v943_v24, %v881_v36  ;;  %v818_v9 = vld [vmem:[%s2558_s6] sm:$0x1] }
 0x177   :  { %v810_v63 = vrot.slane %v809_v27, 4  ;;  %v945_v12 = vadd.f32 %v944_v52, %v882_v42 }
 0x179   :  { %v811_v1 = vadd.f32 %v810_v63, %v809_v27  ;;  %v946_v29 = vrot.slane %v945_v12, 4 }
 0x17b   :  { %v812_v31 = vrot.slane %v811_v1, 2  ;;  %v947_v32 = vadd.f32 %v946_v29, %v945_v12 }
 0x17d   :  { %v813_v50 = vadd.f32 %v812_v31, %v811_v1  ;;  %v948_v33 = vrot.slane %v947_v32, 2 }
 0x17f   :  { %v814_v55 = vrot.slane %v813_v50, 1  ;;  %v949_v35 = vadd.f32 %v948_v33, %v947_v32 }
 0x181   :  { %v815_v53 = vadd.f32 %v814_v55, %v813_v50  ;;  %v950_v62 = vrot.slane %v949_v35, 1 }
 0x183   :  { %v816_v17 = vadd.f32 %v815_v53, %v746_v61  ;;  %v951_v2 = vadd.f32 %v950_v62, %v949_v35 }
 0x185   :  { %817 = vst [vmem:[%s2557_s5] sm:$0x1] %v816_v17  ;;  %v952_v60 = vadd.f32 %v951_v2, %v818_v9 }
 0x187   :  { %953 = vst [vmem:[%s2558_s6] sm:$0x1] %v952_v60 }

// kernel: bottleneck_forward.7
= control target key start
LH: loop header
LB: loop body
LE: loop exit
PB: predicated region body
PF: predicated region fallthrough
CT: control target
= control target key end

     0   :  { %s1478_s0 = inlined_call_operand.vmem [shape: bf16[512,128], index: 0, kind: input, shape index: {}]   ;;  %s1479_s1 = inlined_call_operand.vmem [shape: f32[1,128], index: 1, kind: input, shape index: {}]   ;;  %s1480_s2 = inlined_call_operand.vmem [shape: f32[1,128], index: 2, kind: input, shape index: {}]   ;;  %s1481_s3 = inlined_call_operand.vmem [shape: bf16[512,128], index: 3, kind: input, shape index: {}]   ;;  %s1482_s4 = inlined_call_operand.vmem [shape: f32[512,128], index: 4, kind: output, shape index: {}]  }
   0x1   :  { %v614_v0 = vld [vmem:[%s1478_s0] sm:$0xff]   ;;  %v869_v5 = vld [vmem:[%s1478_s0 + $0x8] sm:$0xff]   ;;  %v870_v12 = vld [vmem:[%s1478_s0 + $0x10] sm:$0xff]  }
   0x2   :  { %v962_v1 = vld [vmem:[%s1479_s1] ss:$0 sm:$0xff]  ;;  %v615_v2 = vunpack.c.l.bf16 %v614_v0  ;;  %v616_v4 = vunpack.c.h.bf16 %v614_v0  ;;  %v900_v6 = vld [vmem:[%s1481_s3 + $0x8] sm:$0xff]   ;;  %v619_v10 = vunpack.c.l.bf16 %v869_v5  ;;  %v901_v13 = vld [vmem:[%s1481_s3 + $0x10] sm:$0xff]   ;;  %v620_v16 = vunpack.c.h.bf16 %v869_v5 }
   0x3   :  { %v742_v3 = vld [vmem:[%s1481_s3] sm:$0xff]   ;;  %v747_v11 = vunpack.c.l.bf16 %v900_v6  ;;  %v748_v17 = vunpack.c.h.bf16 %v900_v6  ;;  %v871_v18 = vld [vmem:[%s1478_s0 + $0x18] sm:$0xff]   ;;  %v623_v20 = vunpack.c.l.bf16 %v870_v12  ;;  %v751_v21 = vunpack.c.l.bf16 %v901_v13  ;;  %v873_v54 = vld [vmem:[%s1478_s0 + $0x28] sm:$0xff]  }
   0x4   :  { %v976_v7 = vld [vmem:[%s1480_s2] ss:$0 sm:$0xff]  ;;  %v743_v8 = vunpack.c.l.bf16 %v742_v3  ;;  %v744_v9 = vunpack.c.h.bf16 %v742_v3  ;;  %v152_v14 = vmul.f32 %v615_v2, %v962_v1  ;;  %v153_v15 = vmul.f32 %v616_v4, %v962_v1  ;;  %v902_v23 = vld [vmem:[%s1481_s3 + $0x18] sm:$0xff]   ;;  %v904_v55 = vld [vmem:[%s1481_s3 + $0x28] sm:$0xff]  }
   0x5   :  { %v154_v19 = vmul.f32 %v619_v10, %v962_v1  ;;  %v624_v22 = vunpack.c.h.bf16 %v870_v12  ;;  %v155_v26 = vmul.f32 %v620_v16, %v962_v1  ;;  %v752_v27 = vunpack.c.h.bf16 %v901_v13  ;;  %v872_v40 = vld [vmem:[%s1478_s0 + $0x20] sm:$0xff]   ;;  %v874_v0 = vld [vmem:[%s1478_s0 + $0x30] sm:$0xff]   ;;  %v875_v16 = vld [vmem:[%s1478_s0 + $0x38] sm:$0xff]  }
   0x6   :  { %v223_v24 = vadd.f32 %v976_v7, %v152_v14  ;;  %v224_v25 = vadd.f32 %v976_v7, %v153_v15  ;;  %v156_v29 = vmul.f32 %v623_v20, %v962_v1  ;;  %v627_v31 = vunpack.c.l.bf16 %v871_v18  ;;  %v903_v45 = vld [vmem:[%s1481_s3 + $0x20] sm:$0xff]   ;;  %v905_v2 = vld [vmem:[%s1481_s3 + $0x30] sm:$0xff]  }
   0x7   :  { %v225_v28 = vadd.f32 %v976_v7, %v154_v19  ;;  %v157_v30 = vmul.f32 %v624_v22, %v962_v1  ;;  %v226_v34 = vadd.f32 %v976_v7, %v155_v26  ;;  %v755_v35 = vunpack.c.l.bf16 %v902_v23 }
   0x8   :  { %v415_v32 = vadd.f32 %v743_v8, %v223_v24  ;;  %v416_v33 = vadd.f32 %v744_v9, %v224_v25  ;;  %v227_v37 = vadd.f32 %v976_v7, %v156_v29  ;;  %v158_v39 = vmul.f32 %v627_v31, %v962_v1 }
   0x9   :  { %v417_v36 = vadd.f32 %v747_v11, %v225_v28  ;;  %v228_v38 = vadd.f32 %v976_v7, %v157_v30  ;;  %v418_v43 = vadd.f32 %v748_v17, %v226_v34  ;;  %v628_v44 = vunpack.c.h.bf16 %v871_v18  ;;  %v876_v34 = vld [vmem:[%s1478_s0 + $0x40] sm:$0xff]  }
   0xa   :  { %v479_v41 = vmax.f32 %v415_v32, 0.0  ;;  %v480_v42 = vmax.f32 %v416_v33, 0.0  ;;  %v419_v47 = vadd.f32 %v751_v21, %v227_v37  ;;  %v229_v49 = vadd.f32 %v976_v7, %v158_v39  ;;  %v906_v21 = vld [vmem:[%s1481_s3 + $0x38] sm:$0xff]   ;;  %v907_v39 = vld [vmem:[%s1481_s3 + $0x40] sm:$0xff]  }
   0xb   :  { %v481_v46 = vmax.f32 %v417_v36, 0.0  ;;  %v420_v48 = vadd.f32 %v752_v27, %v228_v38  ;;  %v482_v50 = vmax.f32 %v418_v43, 0.0  ;;  %v159_v51 = vmul.f32 %v628_v44, %v962_v1 }
   0xc   :  { %543 = vst [vmem:[%s1482_s4] sm:$0xff] %v479_v41  ;;  %544 = vst [vmem:[%s1482_s4 + $0x8] sm:$0xff] %v480_v42  ;;  %v756_v52 = vunpack.c.h.bf16 %v902_v23  ;;  %v631_v53 = vunpack.c.l.bf16 %v872_v40  ;;  %v483_v56 = vmax.f32 %v419_v47, 0.0  ;;  %v421_v58 = vadd.f32 %v755_v35, %v229_v49  ;;  %v908_v49 = vld [vmem:[%s1481_s3 + $0x48] sm:$0xff]  }
   0xd   :  { %545 = vst [vmem:[%s1482_s4 + $0x10] sm:$0xff] %v481_v46  ;;  %v484_v57 = vmax.f32 %v420_v48, 0.0  ;;  %v759_v59 = vunpack.c.l.bf16 %v903_v45  ;;  %546 = vst [vmem:[%s1482_s4 + $0x18] sm:$0xff] %v482_v50  ;;  %v230_v60 = vadd.f32 %v976_v7, %v159_v51  ;;  %v632_v62 = vunpack.c.h.bf16 %v872_v40  ;;  %v877_v48 = vld [vmem:[%s1478_s0 + $0x48] sm:$0xff]  }
   0xe   :  { %v160_v61 = vmul.f32 %v631_v53, %v962_v1  ;;  %v760_v63 = vunpack.c.h.bf16 %v903_v45  ;;  %547 = vst [vmem:[%s1482_s4 + $0x20] sm:$0xff] %v483_v56  ;;  %v485_v3 = vmax.f32 %v421_v58, 0.0  ;;  %v635_v4 = vunpack.c.l.bf16 %v873_v54  ;;  %v878_v58 = vld [vmem:[%s1478_s0 + $0x50] sm:$0xff]  }
   0xf   :  { %548 = vst [vmem:[%s1482_s4 + $0x28] sm:$0xff] %v484_v57  ;;  %v763_v5 = vunpack.c.l.bf16 %v904_v55  ;;  %v636_v6 = vunpack.c.h.bf16 %v873_v54  ;;  %v422_v8 = vadd.f32 %v756_v52, %v230_v60  ;;  %v161_v10 = vmul.f32 %v632_v62, %v962_v1 }
  0x10   :  { %v231_v9 = vadd.f32 %v976_v7, %v160_v61  ;;  %v764_v11 = vunpack.c.h.bf16 %v904_v55  ;;  %549 = vst [vmem:[%s1482_s4 + $0x30] sm:$0xff] %v485_v3  ;;  %v162_v12 = vmul.f32 %v635_v4, %v962_v1  ;;  %v639_v14 = vunpack.c.l.bf16 %v874_v0 }
  0x11   :  { %v163_v13 = vmul.f32 %v636_v6, %v962_v1  ;;  %v767_v15 = vunpack.c.l.bf16 %v905_v2  ;;  %v486_v17 = vmax.f32 %v422_v8, 0.0  ;;  %v232_v19 = vadd.f32 %v976_v7, %v161_v10  ;;  %v879_v10 = vld [vmem:[%s1478_s0 + $0x58] sm:$0xff]  }
  0x12   :  { %v423_v18 = vadd.f32 %v759_v59, %v231_v9  ;;  %v640_v20 = vunpack.c.h.bf16 %v874_v0  ;;  %v233_v22 = vadd.f32 %v976_v7, %v162_v12  ;;  %v164_v24 = vmul.f32 %v639_v14, %v962_v1 }
  0x13   :  { %v234_v23 = vadd.f32 %v976_v7, %v163_v13  ;;  %v768_v25 = vunpack.c.h.bf16 %v905_v2  ;;  %550 = vst [vmem:[%s1482_s4 + $0x38] sm:$0xff] %v486_v17  ;;  %v424_v27 = vadd.f32 %v760_v63, %v232_v19  ;;  %v643_v29 = vunpack.c.l.bf16 %v875_v16  ;;  %v909_v63 = vld [vmem:[%s1481_s3 + $0x50] sm:$0xff]   ;;  %v910_v19 = vld [vmem:[%s1481_s3 + $0x58] sm:$0xff]  }
  0x14   :  { %v487_v26 = vmax.f32 %v423_v18, 0.0  ;;  %v165_v28 = vmul.f32 %v640_v20, %v962_v1  ;;  %v425_v30 = vadd.f32 %v763_v5, %v233_v22  ;;  %v235_v32 = vadd.f32 %v976_v7, %v164_v24 }
  0x15   :  { %v426_v31 = vadd.f32 %v764_v11, %v234_v23  ;;  %v771_v33 = vunpack.c.l.bf16 %v906_v21  ;;  %v488_v35 = vmax.f32 %v424_v27, 0.0  ;;  %v166_v37 = vmul.f32 %v643_v29, %v962_v1 }
  0x16   :  { %551 = vst [vmem:[%s1482_s4 + $0x40] sm:$0xff] %v487_v26  ;;  %v236_v36 = vadd.f32 %v976_v7, %v165_v28  ;;  %v644_v38 = vunpack.c.h.bf16 %v875_v16  ;;  %v489_v40 = vmax.f32 %v425_v30, 0.0  ;;  %v427_v42 = vadd.f32 %v767_v15, %v235_v32  ;;  %v880_v28 = vld [vmem:[%s1478_s0 + $0x60] sm:$0xff]  }
  0x17   :  { %v490_v41 = vmax.f32 %v426_v31, 0.0  ;;  %v772_v43 = vunpack.c.h.bf16 %v906_v21  ;;  %552 = vst [vmem:[%s1482_s4 + $0x48] sm:$0xff] %v488_v35  ;;  %v237_v45 = vadd.f32 %v976_v7, %v166_v37  ;;  %v647_v47 = vunpack.c.l.bf16 %v876_v34 }
  0x18   :  { %v428_v44 = vadd.f32 %v768_v25, %v236_v36  ;;  %v167_v46 = vmul.f32 %v644_v38, %v962_v1  ;;  %553 = vst [vmem:[%s1482_s4 + $0x50] sm:$0xff] %v489_v40  ;;  %v491_v50 = vmax.f32 %v427_v42, 0.0  ;;  %v775_v51 = vunpack.c.l.bf16 %v907_v39  ;;  %v881_v42 = vld [vmem:[%s1478_s0 + $0x68] sm:$0xff]  }
  0x19   :  { %554 = vst [vmem:[%s1482_s4 + $0x58] sm:$0xff] %v490_v41  ;;  %v648_v52 = vunpack.c.h.bf16 %v876_v34  ;;  %v776_v53 = vunpack.c.h.bf16 %v907_v39  ;;  %v429_v55 = vadd.f32 %v771_v33, %v237_v45  ;;  %v168_v57 = vmul.f32 %v647_v47, %v962_v1  ;;  %v911_v33 = vld [vmem:[%s1481_s3 + $0x60] sm:$0xff]  }
  0x1a   :  { %v492_v54 = vmax.f32 %v428_v44, 0.0  ;;  %v238_v56 = vadd.f32 %v976_v7, %v167_v46  ;;  %555 = vst [vmem:[%s1482_s4 + $0x60] sm:$0xff] %v491_v50  ;;  %v651_v60 = vunpack.c.l.bf16 %v877_v48  ;;  %v779_v61 = vunpack.c.l.bf16 %v908_v49 }
  0x1b   :  { %v169_v59 = vmul.f32 %v648_v52, %v962_v1  ;;  %v652_v62 = vunpack.c.h.bf16 %v877_v48  ;;  %v493_v0 = vmax.f32 %v429_v55, 0.0  ;;  %v239_v3 = vadd.f32 %v976_v7, %v168_v57  ;;  %v882_v52 = vld [vmem:[%s1478_s0 + $0x70] sm:$0xff]  }
  0x1c   :  { %556 = vst [vmem:[%s1482_s4 + $0x68] sm:$0xff] %v492_v54  ;;  %v430_v2 = vadd.f32 %v772_v43, %v238_v56  ;;  %v780_v4 = vunpack.c.h.bf16 %v908_v49  ;;  %v170_v6 = vmul.f32 %v651_v60, %v962_v1  ;;  %v655_v9 = vunpack.c.l.bf16 %v878_v58  ;;  %v912_v43 = vld [vmem:[%s1481_s3 + $0x68] sm:$0xff]   ;;  %v913_v57 = vld [vmem:[%s1481_s3 + $0x70] sm:$0xff]  }
  0x1d   :  { %v240_v5 = vadd.f32 %v976_v7, %v169_v59  ;;  %v171_v8 = vmul.f32 %v652_v62, %v962_v1  ;;  %557 = vst [vmem:[%s1482_s4 + $0x70] sm:$0xff] %v493_v0  ;;  %v431_v12 = vadd.f32 %v775_v51, %v239_v3  ;;  %v783_v13 = vunpack.c.l.bf16 %v909_v63  ;;  %v883_v3 = vld [vmem:[%s1478_s0 + $0x78] sm:$0xff]  }
  0x1e   :  { %v494_v11 = vmax.f32 %v430_v2, 0.0  ;;  %v656_v14 = vunpack.c.h.bf16 %v878_v58  ;;  %v241_v16 = vadd.f32 %v976_v7, %v170_v6  ;;  %v172_v18 = vmul.f32 %v655_v9, %v962_v1 }
  0x1f   :  { %v432_v15 = vadd.f32 %v776_v53, %v240_v5  ;;  %v242_v17 = vadd.f32 %v976_v7, %v171_v8  ;;  %v495_v20 = vmax.f32 %v431_v12, 0.0  ;;  %v784_v22 = vunpack.c.h.bf16 %v909_v63 }
  0x20   :  { %558 = vst [vmem:[%s1482_s4 + $0x78] sm:$0xff] %v494_v11  ;;  %v173_v21 = vmul.f32 %v656_v14, %v962_v1  ;;  %v659_v23 = vunpack.c.l.bf16 %v879_v10  ;;  %v433_v25 = vadd.f32 %v779_v61, %v241_v16  ;;  %v243_v27 = vadd.f32 %v976_v7, %v172_v18 }
  0x21   :  { %v496_v24 = vmax.f32 %v432_v15, 0.0  ;;  %v434_v26 = vadd.f32 %v780_v4, %v242_v17  ;;  %559 = vst [vmem:[%s1482_s4 + $0x80] sm:$0xff] %v495_v20  ;;  %v787_v31 = vunpack.c.l.bf16 %v910_v19  ;;  %v660_v32 = vunpack.c.h.bf16 %v879_v10 }
  0x22   :  { %v244_v29 = vadd.f32 %v976_v7, %v173_v21  ;;  %v174_v30 = vmul.f32 %v659_v23, %v962_v1  ;;  %v497_v34 = vmax.f32 %v433_v25, 0.0  ;;  %v435_v36 = vadd.f32 %v783_v13, %v243_v27  ;;  %v914_v13 = vld [vmem:[%s1481_s3 + $0x78] sm:$0xff]   ;;  %v915_v27 = vld [vmem:[%s1481_s3 + $0x80] sm:$0xff]  }
  0x23   :  { %560 = vst [vmem:[%s1482_s4 + $0x88] sm:$0xff] %v496_v24  ;;  %v498_v35 = vmax.f32 %v434_v26, 0.0  ;;  %v788_v37 = vunpack.c.h.bf16 %v910_v19  ;;  %v175_v40 = vmul.f32 %v660_v32, %v962_v1  ;;  %v663_v41 = vunpack.c.l.bf16 %v880_v28 }
  0x24   :  { %v436_v38 = vadd.f32 %v784_v22, %v244_v29  ;;  %v245_v39 = vadd.f32 %v976_v7, %v174_v30  ;;  %561 = vst [vmem:[%s1482_s4 + $0x90] sm:$0xff] %v497_v34  ;;  %v499_v44 = vmax.f32 %v435_v36, 0.0  ;;  %v791_v45 = vunpack.c.l.bf16 %v911_v33  ;;  %v884_v22 = vld [vmem:[%s1478_s0 + $0x80] sm:$0xff]   ;;  %v885_v36 = vld [vmem:[%s1478_s0 + $0x88] sm:$0xff]  }
  0x25   :  { %562 = vst [vmem:[%s1482_s4 + $0x98] sm:$0xff] %v498_v35  ;;  %v664_v46 = vunpack.c.h.bf16 %v880_v28  ;;  %v792_v47 = vunpack.c.h.bf16 %v911_v33  ;;  %v246_v50 = vadd.f32 %v976_v7, %v175_v40  ;;  %v176_v51 = vmul.f32 %v663_v41, %v962_v1 }
  0x26   :  { %v500_v48 = vmax.f32 %v436_v38, 0.0  ;;  %v437_v49 = vadd.f32 %v787_v31, %v245_v39  ;;  %563 = vst [vmem:[%s1482_s4 + $0xa0] sm:$0xff] %v499_v44  ;;  %v667_v54 = vunpack.c.l.bf16 %v881_v42  ;;  %v795_v55 = vunpack.c.l.bf16 %v912_v43 }
  0x27   :  { %v177_v53 = vmul.f32 %v664_v46, %v962_v1  ;;  %v668_v56 = vunpack.c.h.bf16 %v881_v42  ;;  %v438_v59 = vadd.f32 %v788_v37, %v246_v50  ;;  %v247_v60 = vadd.f32 %v976_v7, %v176_v51  ;;  %v916_v37 = vld [vmem:[%s1481_s3 + $0x88] sm:$0xff]   ;;  %v886_v46 = vld [vmem:[%s1478_s0 + $0x90] sm:$0xff]  }
  0x28   :  { %564 = vst [vmem:[%s1482_s4 + $0xa8] sm:$0xff] %v500_v48  ;;  %v501_v58 = vmax.f32 %v437_v49, 0.0  ;;  %v796_v61 = vunpack.c.h.bf16 %v912_v43  ;;  %v178_v63 = vmul.f32 %v667_v54, %v962_v1  ;;  %v671_v2 = vunpack.c.l.bf16 %v882_v52  ;;  %v917_v51 = vld [vmem:[%s1481_s3 + $0x90] sm:$0xff]  }
  0x29   :  { %v248_v62 = vadd.f32 %v976_v7, %v177_v53  ;;  %v179_v0 = vmul.f32 %v668_v56, %v962_v1  ;;  %v502_v4 = vmax.f32 %v438_v59, 0.0  ;;  %v439_v5 = vadd.f32 %v791_v45, %v247_v60  ;;  %v887_v60 = vld [vmem:[%s1478_s0 + $0x98] sm:$0xff]  }
  0x2a   :  { %565 = vst [vmem:[%s1482_s4 + $0xb0] sm:$0xff] %v501_v58  ;;  %v799_v6 = vunpack.c.l.bf16 %v913_v57  ;;  %v672_v8 = vunpack.c.h.bf16 %v882_v52  ;;  %v249_v10 = vadd.f32 %v976_v7, %v178_v63  ;;  %v180_v12 = vmul.f32 %v671_v2, %v962_v1 }
  0x2b   :  { %v440_v9 = vadd.f32 %v792_v47, %v248_v62  ;;  %v250_v11 = vadd.f32 %v976_v7, %v179_v0  ;;  %566 = vst [vmem:[%s1482_s4 + $0xb8] sm:$0xff] %v502_v4  ;;  %v503_v14 = vmax.f32 %v439_v5, 0.0  ;;  %v800_v16 = vunpack.c.h.bf16 %v913_v57 }
  0x2c   :  { %v181_v15 = vmul.f32 %v672_v8, %v962_v1  ;;  %v675_v17 = vunpack.c.l.bf16 %v883_v3  ;;  %v441_v19 = vadd.f32 %v795_v55, %v249_v10  ;;  %v251_v21 = vadd.f32 %v976_v7, %v180_v12 }
  0x2d   :  { %v504_v18 = vmax.f32 %v440_v9, 0.0  ;;  %v442_v20 = vadd.f32 %v796_v61, %v250_v11  ;;  %567 = vst [vmem:[%s1482_s4 + $0xc0] sm:$0xff] %v503_v14  ;;  %v803_v25 = vunpack.c.l.bf16 %v914_v13  ;;  %v676_v26 = vunpack.c.h.bf16 %v883_v3 }
  0x2e   :  { %v252_v23 = vadd.f32 %v976_v7, %v181_v15  ;;  %v182_v24 = vmul.f32 %v675_v17, %v962_v1  ;;  %v505_v28 = vmax.f32 %v441_v19, 0.0  ;;  %v443_v30 = vadd.f32 %v799_v6, %v251_v21  ;;  %v918_v6 = vld [vmem:[%s1481_s3 + $0x98] sm:$0xff]   ;;  %v919_v21 = vld [vmem:[%s1481_s3 + $0xa0] sm:$0xff]  }
  0x2f   :  { %568 = vst [vmem:[%s1482_s4 + $0xc8] sm:$0xff] %v504_v18  ;;  %v506_v29 = vmax.f32 %v442_v20, 0.0  ;;  %v804_v31 = vunpack.c.h.bf16 %v914_v13  ;;  %v183_v34 = vmul.f32 %v676_v26, %v962_v1  ;;  %v679_v35 = vunpack.c.l.bf16 %v884_v22 }
  0x30   :  { %v444_v32 = vadd.f32 %v800_v16, %v252_v23  ;;  %v253_v33 = vadd.f32 %v976_v7, %v182_v24  ;;  %569 = vst [vmem:[%s1482_s4 + $0xd0] sm:$0xff] %v505_v28  ;;  %v507_v38 = vmax.f32 %v443_v30, 0.0  ;;  %v807_v39 = vunpack.c.l.bf16 %v915_v27  ;;  %v888_v16 = vld [vmem:[%s1478_s0 + $0xa0] sm:$0xff]   ;;  %v889_v30 = vld [vmem:[%s1478_s0 + $0xa8] sm:$0xff]  }
  0x31   :  { %570 = vst [vmem:[%s1482_s4 + $0xd8] sm:$0xff] %v506_v29  ;;  %v680_v40 = vunpack.c.h.bf16 %v884_v22  ;;  %v808_v41 = vunpack.c.h.bf16 %v915_v27  ;;  %v254_v44 = vadd.f32 %v976_v7, %v183_v34  ;;  %v184_v45 = vmul.f32 %v679_v35, %v962_v1 }
  0x32   :  { %v508_v42 = vmax.f32 %v444_v32, 0.0  ;;  %v445_v43 = vadd.f32 %v803_v25, %v253_v33  ;;  %571 = vst [vmem:[%s1482_s4 + $0xe0] sm:$0xff] %v507_v38  ;;  %v683_v48 = vunpack.c.l.bf16 %v885_v36  ;;  %v811_v49 = vunpack.c.l.bf16 %v916_v37 }
  0x33   :  { %v185_v47 = vmul.f32 %v680_v40, %v962_v1  ;;  %v684_v50 = vunpack.c.h.bf16 %v885_v36  ;;  %v446_v53 = vadd.f32 %v804_v31, %v254_v44  ;;  %v255_v54 = vadd.f32 %v976_v7, %v184_v45  ;;  %v920_v31 = vld [vmem:[%s1481_s3 + $0xa8] sm:$0xff]   ;;  %v890_v40 = vld [vmem:[%s1478_s0 + $0xb0] sm:$0xff]  }
  0x34   :  { %572 = vst [vmem:[%s1482_s4 + $0xe8] sm:$0xff] %v508_v42  ;;  %v509_v52 = vmax.f32 %v445_v43, 0.0  ;;  %v812_v55 = vunpack.c.h.bf16 %v916_v37  ;;  %v186_v57 = vmul.f32 %v683_v48, %v962_v1  ;;  %v687_v59 = vunpack.c.l.bf16 %v886_v46  ;;  %v921_v45 = vld [vmem:[%s1481_s3 + $0xb0] sm:$0xff]  }
  0x35   :  { %v256_v56 = vadd.f32 %v976_v7, %v185_v47  ;;  %v187_v58 = vmul.f32 %v684_v50, %v962_v1  ;;  %v510_v61 = vmax.f32 %v446_v53, 0.0  ;;  %v447_v62 = vadd.f32 %v807_v39, %v255_v54  ;;  %v891_v54 = vld [vmem:[%s1478_s0 + $0xb8] sm:$0xff]  }
  0x36   :  { %573 = vst [vmem:[%s1482_s4 + $0xf0] sm:$0xff] %v509_v52  ;;  %v815_v63 = vunpack.c.l.bf16 %v917_v51  ;;  %v688_v0 = vunpack.c.h.bf16 %v886_v46  ;;  %v257_v3 = vadd.f32 %v976_v7, %v186_v57  ;;  %v188_v5 = vmul.f32 %v687_v59, %v962_v1 }
  0x37   :  { %v448_v2 = vadd.f32 %v808_v41, %v256_v56  ;;  %v258_v4 = vadd.f32 %v976_v7, %v187_v58  ;;  %574 = vst [vmem:[%s1482_s4 + $0xf8] sm:$0xff] %v510_v61  ;;  %v511_v8 = vmax.f32 %v447_v62, 0.0  ;;  %v816_v10 = vunpack.c.h.bf16 %v917_v51 }
  0x38   :  { %v189_v9 = vmul.f32 %v688_v0, %v962_v1  ;;  %v691_v11 = vunpack.c.l.bf16 %v887_v60  ;;  %v449_v13 = vadd.f32 %v811_v49, %v257_v3  ;;  %v259_v15 = vadd.f32 %v976_v7, %v188_v5 }
  0x39   :  { %v512_v12 = vmax.f32 %v448_v2, 0.0  ;;  %v450_v14 = vadd.f32 %v812_v55, %v258_v4  ;;  %575 = vst [vmem:[%s1482_s4 + $0x100] sm:$0xff] %v511_v8  ;;  %v819_v19 = vunpack.c.l.bf16 %v918_v6  ;;  %v692_v20 = vunpack.c.h.bf16 %v887_v60 }
  0x3a   :  { %v260_v17 = vadd.f32 %v976_v7, %v189_v9  ;;  %v190_v18 = vmul.f32 %v691_v11, %v962_v1  ;;  %v513_v22 = vmax.f32 %v449_v13, 0.0  ;;  %v451_v24 = vadd.f32 %v815_v63, %v259_v15  ;;  %v922_v63 = vld [vmem:[%s1481_s3 + $0xb8] sm:$0xff]   ;;  %v923_v15 = vld [vmem:[%s1481_s3 + $0xc0] sm:$0xff]  }
  0x3b   :  { %576 = vst [vmem:[%s1482_s4 + $0x108] sm:$0xff] %v512_v12  ;;  %v514_v23 = vmax.f32 %v450_v14, 0.0  ;;  %v820_v25 = vunpack.c.h.bf16 %v918_v6  ;;  %v191_v28 = vmul.f32 %v692_v20, %v962_v1  ;;  %v695_v29 = vunpack.c.l.bf16 %v888_v16 }
  0x3c   :  { %v452_v26 = vadd.f32 %v816_v10, %v260_v17  ;;  %v261_v27 = vadd.f32 %v976_v7, %v190_v18  ;;  %577 = vst [vmem:[%s1482_s4 + $0x110] sm:$0xff] %v513_v22  ;;  %v515_v32 = vmax.f32 %v451_v24, 0.0  ;;  %v823_v33 = vunpack.c.l.bf16 %v919_v21  ;;  %v892_v10 = vld [vmem:[%s1478_s0 + $0xc0] sm:$0xff]   ;;  %v893_v24 = vld [vmem:[%s1478_s0 + $0xc8] sm:$0xff]  }
  0x3d   :  { %578 = vst [vmem:[%s1482_s4 + $0x118] sm:$0xff] %v514_v23  ;;  %v696_v34 = vunpack.c.h.bf16 %v888_v16  ;;  %v824_v35 = vunpack.c.h.bf16 %v919_v21  ;;  %v262_v38 = vadd.f32 %v976_v7, %v191_v28  ;;  %v192_v39 = vmul.f32 %v695_v29, %v962_v1 }
  0x3e   :  { %v516_v36 = vmax.f32 %v452_v26, 0.0  ;;  %v453_v37 = vadd.f32 %v819_v19, %v261_v27  ;;  %579 = vst [vmem:[%s1482_s4 + $0x120] sm:$0xff] %v515_v32  ;;  %v699_v42 = vunpack.c.l.bf16 %v889_v30  ;;  %v827_v43 = vunpack.c.l.bf16 %v920_v31 }
  0x3f   :  { %v193_v41 = vmul.f32 %v696_v34, %v962_v1  ;;  %v700_v44 = vunpack.c.h.bf16 %v889_v30  ;;  %v454_v47 = vadd.f32 %v820_v25, %v262_v38  ;;  %v263_v48 = vadd.f32 %v976_v7, %v192_v39  ;;  %v924_v25 = vld [vmem:[%s1481_s3 + $0xc8] sm:$0xff]   ;;  %v894_v34 = vld [vmem:[%s1478_s0 + $0xd0] sm:$0xff]  }
  0x40   :  { %580 = vst [vmem:[%s1482_s4 + $0x128] sm:$0xff] %v516_v36  ;;  %v517_v46 = vmax.f32 %v453_v37, 0.0  ;;  %v828_v49 = vunpack.c.h.bf16 %v920_v31  ;;  %v194_v51 = vmul.f32 %v699_v42, %v962_v1  ;;  %v703_v53 = vunpack.c.l.bf16 %v890_v40  ;;  %v925_v39 = vld [vmem:[%s1481_s3 + $0xd0] sm:$0xff]  }
  0x41   :  { %v264_v50 = vadd.f32 %v976_v7, %v193_v41  ;;  %v195_v52 = vmul.f32 %v700_v44, %v962_v1  ;;  %v518_v55 = vmax.f32 %v454_v47, 0.0  ;;  %v455_v56 = vadd.f32 %v823_v33, %v263_v48  ;;  %v895_v48 = vld [vmem:[%s1478_s0 + $0xd8] sm:$0xff]  }
  0x42   :  { %581 = vst [vmem:[%s1482_s4 + $0x130] sm:$0xff] %v517_v46  ;;  %v831_v57 = vunpack.c.l.bf16 %v921_v45  ;;  %v704_v58 = vunpack.c.h.bf16 %v890_v40  ;;  %v265_v60 = vadd.f32 %v976_v7, %v194_v51  ;;  %v196_v62 = vmul.f32 %v703_v53, %v962_v1 }
  0x43   :  { %v456_v59 = vadd.f32 %v824_v35, %v264_v50  ;;  %v266_v61 = vadd.f32 %v976_v7, %v195_v52  ;;  %582 = vst [vmem:[%s1482_s4 + $0x138] sm:$0xff] %v518_v55  ;;  %v519_v0 = vmax.f32 %v455_v56, 0.0  ;;  %v832_v3 = vunpack.c.h.bf16 %v921_v45 }
  0x44   :  { %v197_v2 = vmul.f32 %v704_v58, %v962_v1  ;;  %v707_v4 = vunpack.c.l.bf16 %v891_v54  ;;  %v457_v6 = vadd.f32 %v827_v43, %v265_v60  ;;  %v267_v9 = vadd.f32 %v976_v7, %v196_v62 }
  0x45   :  { %v520_v5 = vmax.f32 %v456_v59, 0.0  ;;  %v458_v8 = vadd.f32 %v828_v49, %v266_v61  ;;  %583 = vst [vmem:[%s1482_s4 + $0x140] sm:$0xff] %v519_v0  ;;  %v835_v13 = vunpack.c.l.bf16 %v922_v63  ;;  %v708_v14 = vunpack.c.h.bf16 %v891_v54 }
  0x46   :  { %v268_v11 = vadd.f32 %v976_v7, %v197_v2  ;;  %v198_v12 = vmul.f32 %v707_v4, %v962_v1  ;;  %v521_v16 = vmax.f32 %v457_v6, 0.0  ;;  %v459_v18 = vadd.f32 %v831_v57, %v267_v9  ;;  %v926_v57 = vld [vmem:[%s1481_s3 + $0xd8] sm:$0xff]   ;;  %v927_v9 = vld [vmem:[%s1481_s3 + $0xe0] sm:$0xff]  }
  0x47   :  { %584 = vst [vmem:[%s1482_s4 + $0x148] sm:$0xff] %v520_v5  ;;  %v522_v17 = vmax.f32 %v458_v8, 0.0  ;;  %v836_v19 = vunpack.c.h.bf16 %v922_v63  ;;  %v199_v22 = vmul.f32 %v708_v14, %v962_v1  ;;  %v711_v23 = vunpack.c.l.bf16 %v892_v10 }
  0x48   :  { %v460_v20 = vadd.f32 %v832_v3, %v268_v11  ;;  %v269_v21 = vadd.f32 %v976_v7, %v198_v12  ;;  %585 = vst [vmem:[%s1482_s4 + $0x150] sm:$0xff] %v521_v16  ;;  %v523_v26 = vmax.f32 %v459_v18, 0.0  ;;  %v839_v27 = vunpack.c.l.bf16 %v923_v15  ;;  %v896_v3 = vld [vmem:[%s1478_s0 + $0xe0] sm:$0xff]   ;;  %v897_v18 = vld [vmem:[%s1478_s0 + $0xe8] sm:$0xff]  }
  0x49   :  { %586 = vst [vmem:[%s1482_s4 + $0x158] sm:$0xff] %v522_v17  ;;  %v712_v28 = vunpack.c.h.bf16 %v892_v10  ;;  %v840_v29 = vunpack.c.h.bf16 %v923_v15  ;;  %v270_v32 = vadd.f32 %v976_v7, %v199_v22  ;;  %v200_v33 = vmul.f32 %v711_v23, %v962_v1 }
  0x4a   :  { %v524_v30 = vmax.f32 %v460_v20, 0.0  ;;  %v461_v31 = vadd.f32 %v835_v13, %v269_v21  ;;  %587 = vst [vmem:[%s1482_s4 + $0x160] sm:$0xff] %v523_v26  ;;  %v715_v36 = vunpack.c.l.bf16 %v893_v24  ;;  %v843_v37 = vunpack.c.l.bf16 %v924_v25 }
  0x4b   :  { %v201_v35 = vmul.f32 %v712_v28, %v962_v1  ;;  %v716_v38 = vunpack.c.h.bf16 %v893_v24  ;;  %v462_v41 = vadd.f32 %v836_v19, %v270_v32  ;;  %v271_v42 = vadd.f32 %v976_v7, %v200_v33  ;;  %v928_v19 = vld [vmem:[%s1481_s3 + $0xe8] sm:$0xff]   ;;  %v898_v28 = vld [vmem:[%s1478_s0 + $0xf0] sm:$0xff]  }
  0x4c   :  { %588 = vst [vmem:[%s1482_s4 + $0x168] sm:$0xff] %v524_v30  ;;  %v525_v40 = vmax.f32 %v461_v31, 0.0  ;;  %v844_v43 = vunpack.c.h.bf16 %v924_v25  ;;  %v202_v45 = vmul.f32 %v715_v36, %v962_v1  ;;  %v719_v47 = vunpack.c.l.bf16 %v894_v34  ;;  %v929_v33 = vld [vmem:[%s1481_s3 + $0xf0] sm:$0xff]  }
  0x4d   :  { %v272_v44 = vadd.f32 %v976_v7, %v201_v35  ;;  %v203_v46 = vmul.f32 %v716_v38, %v962_v1  ;;  %v526_v49 = vmax.f32 %v462_v41, 0.0  ;;  %v463_v50 = vadd.f32 %v839_v27, %v271_v42  ;;  %v899_v42 = vld [vmem:[%s1478_s0 + $0xf8] sm:$0xff]  }
  0x4e   :  { %589 = vst [vmem:[%s1482_s4 + $0x170] sm:$0xff] %v525_v40  ;;  %v847_v51 = vunpack.c.l.bf16 %v925_v39  ;;  %v720_v52 = vunpack.c.h.bf16 %v894_v34  ;;  %v273_v54 = vadd.f32 %v976_v7, %v202_v45  ;;  %v204_v56 = vmul.f32 %v719_v47, %v962_v1 }
  0x4f   :  { %v464_v53 = vadd.f32 %v840_v29, %v272_v44  ;;  %v274_v55 = vadd.f32 %v976_v7, %v203_v46  ;;  %590 = vst [vmem:[%s1482_s4 + $0x178] sm:$0xff] %v526_v49  ;;  %v527_v58 = vmax.f32 %v463_v50, 0.0  ;;  %v848_v60 = vunpack.c.h.bf16 %v925_v39 }
  0x50   :  { %v205_v59 = vmul.f32 %v720_v52, %v962_v1  ;;  %v723_v61 = vunpack.c.l.bf16 %v895_v48  ;;  %v465_v63 = vadd.f32 %v843_v37, %v273_v54  ;;  %v275_v2 = vadd.f32 %v976_v7, %v204_v56 }
  0x51   :  { %v528_v62 = vmax.f32 %v464_v53, 0.0  ;;  %v466_v0 = vadd.f32 %v844_v43, %v274_v55  ;;  %591 = vst [vmem:[%s1482_s4 + $0x180] sm:$0xff] %v527_v58  ;;  %v851_v6 = vunpack.c.l.bf16 %v926_v57  ;;  %v724_v8 = vunpack.c.h.bf16 %v895_v48 }
  0x52   :  { %v276_v4 = vadd.f32 %v976_v7, %v205_v59  ;;  %v206_v5 = vmul.f32 %v723_v61, %v962_v1  ;;  %v529_v10 = vmax.f32 %v465_v63, 0.0  ;;  %v467_v12 = vadd.f32 %v847_v51, %v275_v2  ;;  %v930_v51 = vld [vmem:[%s1481_s3 + $0xf8] sm:$0xff]  }
  0x53   :  { %592 = vst [vmem:[%s1482_s4 + $0x188] sm:$0xff] %v528_v62  ;;  %v530_v11 = vmax.f32 %v466_v0, 0.0  ;;  %v852_v13 = vunpack.c.h.bf16 %v926_v57  ;;  %v207_v16 = vmul.f32 %v724_v8, %v962_v1  ;;  %v727_v17 = vunpack.c.l.bf16 %v896_v3 }
  0x54   :  { %v468_v14 = vadd.f32 %v848_v60, %v276_v4  ;;  %v277_v15 = vadd.f32 %v976_v7, %v206_v5  ;;  %593 = vst [vmem:[%s1482_s4 + $0x190] sm:$0xff] %v529_v10  ;;  %v531_v20 = vmax.f32 %v467_v12, 0.0  ;;  %v855_v21 = vunpack.c.l.bf16 %v927_v9 }
  0x55   :  { %594 = vst [vmem:[%s1482_s4 + $0x198] sm:$0xff] %v530_v11  ;;  %v728_v22 = vunpack.c.h.bf16 %v896_v3  ;;  %v856_v23 = vunpack.c.h.bf16 %v927_v9  ;;  %v278_v26 = vadd.f32 %v976_v7, %v207_v16  ;;  %v208_v27 = vmul.f32 %v727_v17, %v962_v1 }
  0x56   :  { %v532_v24 = vmax.f32 %v468_v14, 0.0  ;;  %v469_v25 = vadd.f32 %v851_v6, %v277_v15  ;;  %595 = vst [vmem:[%s1482_s4 + $0x1a0] sm:$0xff] %v531_v20  ;;  %v731_v30 = vunpack.c.l.bf16 %v897_v18  ;;  %v859_v31 = vunpack.c.l.bf16 %v928_v19 }
  0x57   :  { %v209_v29 = vmul.f32 %v728_v22, %v962_v1  ;;  %v732_v32 = vunpack.c.h.bf16 %v897_v18  ;;  %v470_v35 = vadd.f32 %v852_v13, %v278_v26  ;;  %v279_v36 = vadd.f32 %v976_v7, %v208_v27 }
  0x58   :  { %596 = vst [vmem:[%s1482_s4 + $0x1a8] sm:$0xff] %v532_v24  ;;  %v533_v34 = vmax.f32 %v469_v25, 0.0  ;;  %v860_v37 = vunpack.c.h.bf16 %v928_v19  ;;  %v210_v39 = vmul.f32 %v731_v30, %v962_v1  ;;  %v735_v41 = vunpack.c.l.bf16 %v898_v28 }
  0x59   :  { %v280_v38 = vadd.f32 %v976_v7, %v209_v29  ;;  %v211_v40 = vmul.f32 %v732_v32, %v962_v1  ;;  %v534_v43 = vmax.f32 %v470_v35, 0.0  ;;  %v471_v44 = vadd.f32 %v855_v21, %v279_v36 }
  0x5a   :  { %597 = vst [vmem:[%s1482_s4 + $0x1b0] sm:$0xff] %v533_v34  ;;  %v863_v45 = vunpack.c.l.bf16 %v929_v33  ;;  %v736_v46 = vunpack.c.h.bf16 %v898_v28  ;;  %v281_v48 = vadd.f32 %v976_v7, %v210_v39  ;;  %v212_v50 = vmul.f32 %v735_v41, %v962_v1 }
  0x5b   :  { %v472_v47 = vadd.f32 %v856_v23, %v280_v38  ;;  %v282_v49 = vadd.f32 %v976_v7, %v211_v40  ;;  %598 = vst [vmem:[%s1482_s4 + $0x1b8] sm:$0xff] %v534_v43  ;;  %v535_v52 = vmax.f32 %v471_v44, 0.0  ;;  %v864_v54 = vunpack.c.h.bf16 %v929_v33 }
  0x5c   :  { %v213_v53 = vmul.f32 %v736_v46, %v962_v1  ;;  %v739_v55 = vunpack.c.l.bf16 %v899_v42  ;;  %v473_v57 = vadd.f32 %v859_v31, %v281_v48  ;;  %v283_v59 = vadd.f32 %v976_v7, %v212_v50 }
  0x5d   :  { %v536_v56 = vmax.f32 %v472_v47, 0.0  ;;  %v474_v58 = vadd.f32 %v860_v37, %v282_v49  ;;  %599 = vst [vmem:[%s1482_s4 + $0x1c0] sm:$0xff] %v535_v52  ;;  %v867_v62 = vunpack.c.l.bf16 %v930_v51  ;;  %v740_v63 = vunpack.c.h.bf16 %v899_v42 }
  0x5e   :  { %v284_v60 = vadd.f32 %v976_v7, %v213_v53  ;;  %v214_v61 = vmul.f32 %v739_v55, %v962_v1  ;;  %v537_v0 = vmax.f32 %v473_v57, 0.0  ;;  %v475_v3 = vadd.f32 %v863_v45, %v283_v59 }
  0x5f   :  { %600 = vst [vmem:[%s1482_s4 + $0x1c8] sm:$0xff] %v536_v56  ;;  %v538_v2 = vmax.f32 %v474_v58, 0.0  ;;  %v215_v6 = vmul.f32 %v740_v63, %v962_v1  ;;  %v868_v8 = vunpack.c.h.bf16 %v930_v51 }
  0x60   :  { %v476_v4 = vadd.f32 %v864_v54, %v284_v60  ;;  %v285_v5 = vadd.f32 %v976_v7, %v214_v61  ;;  %601 = vst [vmem:[%s1482_s4 + $0x1d0] sm:$0xff] %v537_v0  ;;  %v539_v9 = vmax.f32 %v475_v3, 0.0 }
  0x61   :  { %602 = vst [vmem:[%s1482_s4 + $0x1d8] sm:$0xff] %v538_v2  ;;  %v286_v12 = vadd.f32 %v976_v7, %v215_v6 }
  0x62   :  { %v540_v10 = vmax.f32 %v476_v4, 0.0  ;;  %v477_v11 = vadd.f32 %v867_v62, %v285_v5  ;;  %603 = vst [vmem:[%s1482_s4 + $0x1e0] sm:$0xff] %v539_v9 }
  0x63   :  { %v478_v13 = vadd.f32 %v868_v8, %v286_v12 }
  0x64   :  { %604 = vst [vmem:[%s1482_s4 + $0x1e8] sm:$0xff] %v540_v10  ;;  %v541_v1 = vmax.f32 %v477_v11, 0.0 }
  0x65   :  { %v542_v14 = vmax.f32 %v478_v13, 0.0 }
  0x66   :  { %605 = vst [vmem:[%s1482_s4 + $0x1f0] sm:$0xff] %v541_v1 }
  0x67   :  { %606 = vst [vmem:[%s1482_s4 + $0x1f8] sm:$0xff] %v542_v14 }

// kernel: bottleneck_forward.5
= control target key start
LH: loop header
LB: loop body
LE: loop exit
PB: predicated region body
PF: predicated region fallthrough
CT: control target
= control target key end

     0   :  { %v11780_v0 = vmov 0   ;;  %vm1916_vm0 = vsmask.f32 3328  ;;  %vm1917_vm1 = vsmask.f32 7440  ;;  %vm1303_vm3 = vcmask 1043456   ;;  %s14740_s1 = inlined_call_operand.vmem [shape: bf16[1152,128], index: 1, kind: input, shape index: {}]   ;;  %s14741_s0 = inlined_call_operand.vmem [shape: bf16[2,16,16,128], index: 0, kind: input, shape index: {}]   ;;  %s14742_s2 = inlined_call_operand.vmem [shape: f32[1,128], index: 2, kind: input, shape index: {}]   ;;  %s14743_s3 = inlined_call_operand.vmem [shape: f32[1,128], index: 3, kind: input, shape index: {}]   ;;  %s14744_s4 = inlined_call_operand.vmem [shape: bf16[512,128], index: 4, kind: output, shape index: {0}]   ;;  %s14745_s5 = inlined_call_operand.vmem [shape: f32[1,128], index: 5, kind: output, shape index: {1}]   ;;  %s14746_s6 = inlined_call_operand.vmem [shape: f32[1,128], index: 6, kind: output, shape index: {2}]  }
   0x1   :  { %8067 = vmatprep.subr.bf16.mxu1 %v11780_v0  ;;  %359 = vst [vmem:[#allocation2] sm:$0xf] %v11780_v0  ;;  %360 = vst [vmem:[#allocation2 + $0x4] sm:$0xf] %v11780_v0  ;;  %8356 = vmatprep.subr.bf16.mxu0 %v11780_v0  ;;  %v11595_v1 = vld [vmem:[%s14740_s1] sm:$0xff]   ;;  %v11597_v3 = vld [vmem:[%s14740_s1 + $0x8] sm:$0xff]  }
   0x2   :  { %361 = vst [vmem:[#allocation2 + $0x8] sm:$0x1] %v11780_v0  ;;  %362 = vst [vmem:[#allocation2 + $0xc] sm:$0xf] %v11780_v0  ;;  %v11933_v2 = vld [vmem:[%s14740_s1 + $0x80] sm:$0xff]   ;;  %8068 = vmatpush1.bf16.msra.mxu1 %v11595_v1  ;;  %v11943_v4 = vld [vmem:[%s14740_s1 + $0x88] sm:$0xff]  }
   0x3   :  { %363 = vst [vmem:[#allocation2 + $0x10] sm:$0xf] %v11780_v0  ;;  %364 = vst [vmem:[#allocation2 + $0x14] sm:$0x1] %v11780_v0  ;;  %8357 = vmatpush1.bf16.msra.mxu0 %v11933_v2  ;;  %8069 = vmatprep.subr.bf16.mxu1 %v11780_v0  ;;  %v11599_v5 = vld [vmem:[%s14740_s1 + $0x10] sm:$0xff]   ;;  %v11601_v7 = vld [vmem:[%s14740_s1 + $0x18] sm:$0xff]  }
   0x4   :  { %365 = vst [vmem:[#allocation2 + $0x18] sm:$0xf] %v11780_v0  ;;  %366 = vst [vmem:[#allocation2 + $0x1c] sm:$0xf] %v11780_v0  ;;  %8358 = vmatprep.subr.bf16.mxu0 %v11780_v0  ;;  %v11954_v6 = vld [vmem:[%s14740_s1 + $0x90] sm:$0xff]   ;;  %v11965_v8 = vld [vmem:[%s14740_s1 + $0x98] sm:$0xff]  }
   0x5   :  { %367 = vst [vmem:[#allocation2 + $0x20] sm:$0x1] %v11780_v0  ;;  %368 = vst [vmem:[#allocation2 + $0x24] sm:$0xf] %v11780_v0  ;;  %v11603_v9 = vld [vmem:[%s14740_s1 + $0x20] sm:$0xff]   ;;  %v11605_v11 = vld [vmem:[%s14740_s1 + $0x28] sm:$0xff]  }
   0x6   :  { %369 = vst [vmem:[#allocation2 + $0x28] sm:$0xf] %v11780_v0  ;;  %370 = vst [vmem:[#allocation2 + $0x2c] sm:$0x1] %v11780_v0  ;;  %8070 = vmatpush1.bf16.msra.mxu1 %v11597_v3  ;;  %v11976_v10 = vld [vmem:[%s14740_s1 + $0xa0] sm:$0xff]   ;;  %v11987_v12 = vld [vmem:[%s14740_s1 + $0xa8] sm:$0xff]  }
   0x7   :  { %371 = vst [vmem:[#allocation2 + $0x30] sm:$0xf] %v11780_v0  ;;  %372 = vst [vmem:[#allocation2 + $0x34] sm:$0xf] %v11780_v0  ;;  %8359 = vmatpush1.bf16.msra.mxu0 %v11943_v4  ;;  %8071 = vmatprep.subr.bf16.mxu1 %v11780_v0  ;;  %v11607_v13 = vld [vmem:[%s14740_s1 + $0x30] sm:$0xff]   ;;  %v11609_v15 = vld [vmem:[%s14740_s1 + $0x38] sm:$0xff]  }
   0x8   :  { %373 = vst [vmem:[#allocation2 + $0x38] sm:$0x1] %v11780_v0  ;;  %374 = vst [vmem:[#allocation2 + $0x3c] sm:$0xf] %v11780_v0  ;;  %8360 = vmatprep.subr.bf16.mxu0 %v11780_v0  ;;  %v11998_v14 = vld [vmem:[%s14740_s1 + $0xb0] sm:$0xff]   ;;  %v12009_v16 = vld [vmem:[%s14740_s1 + $0xb8] sm:$0xff]  }
   0x9   :  { %375 = vst [vmem:[#allocation2 + $0x40] sm:$0xf] %v11780_v0  ;;  %376 = vst [vmem:[#allocation2 + $0x44] sm:$0x1] %v11780_v0  ;;  %v11611_v17 = vld [vmem:[%s14740_s1 + $0x40] sm:$0xff]   ;;  %v11613_v26 = vld [vmem:[%s14740_s1 + $0x48] sm:$0xff]  }
   0xa   :  { %377 = vst [vmem:[#allocation2 + $0x48] sm:$0xf] %v11780_v0  ;;  %378 = vst [vmem:[#allocation2 + $0x4c] sm:$0xf] %v11780_v0  ;;  %8072 = vmatpush1.bf16.msra.mxu1 %v11599_v5  ;;  %v12020_v18 = vld [vmem:[%s14740_s1 + $0xc0] sm:$0xff]   ;;  %v11614_v27 = vld [vmem:[%s14740_s1 + $0xc8] sm:$0xff]  }
   0xb   :  { %379 = vst [vmem:[#allocation2 + $0x50] sm:$0x1] %v11780_v0  ;;  %380 = vst [vmem:[#allocation2 + $0x54] sm:$0xf] %v11780_v0  ;;  %8361 = vmatpush1.bf16.msra.mxu0 %v11954_v6  ;;  %8073 = vmatprep.subr.bf16.mxu1 %v11780_v0  ;;  %v1820_v19 = vld [vmem:[#allocation2] sm:$0xf] }
   0xc   :  { %381 = vst [vmem:[#allocation2 + $0x58] sm:$0xf] %v11780_v0  ;;  %382 = vst [vmem:[#allocation2 + $0x5c] sm:$0x1] %v11780_v0  ;;  %8362 = vmatprep.subr.bf16.mxu0 %v11780_v0  ;;  %v1821_v20 = vld [vmem:[#allocation2 + $0x4] sm:$0xf] }
   0xd   :  { %383 = vst [vmem:[#allocation2 + $0x60] sm:$0xf] %v11780_v0  ;;  %384 = vst [vmem:[#allocation2 + $0x64] sm:$0xf] %v11780_v0  ;;  %v1822_v21 = vld [vmem:[#allocation2 + $0x8] sm:$0x1] }
   0xe   :  { %385 = vst [vmem:[#allocation2 + $0x68] sm:$0x1] %v11780_v0  ;;  %386 = vst [vmem:[#allocation2 + $0x6c] sm:$0xf] %v11780_v0  ;;  %8074 = vmatpush1.bf16.msra.mxu1 %v11601_v7  ;;  %v1920_v22 = vshrl.u32 %v1820_v19, 16  ;;  %v1923_v23 = vshll.u32 %v1820_v19, 16 }
   0xf   :  { %387 = vst [vmem:[#allocation2 + $0x70] sm:$0xf] %v11780_v0  ;;  %388 = vst [vmem:[#allocation2 + $0x74] sm:$0x1] %v11780_v0  ;;  %8363 = vmatpush1.bf16.msra.mxu0 %v11965_v8  ;;  %8075 = vmatprep.subr.bf16.mxu1 %v11780_v0  ;;  %v1929_v24 = vshll.u32 %v1821_v20, 16  ;;  %v1933_v25 = vshrl.u32 %v1821_v20, 16 }
  0x10   :  { %389 = vst [vmem:[#allocation2 + $0x78] sm:$0xf] %v11780_v0  ;;  %390 = vst [vmem:[#allocation2 + $0x7c] sm:$0xf] %v11780_v0  ;;  %8364 = vmatprep.subr.bf16.mxu0 %v11780_v0  ;;  %v1939_v28 = vshll.u32 %v1822_v21, 16  ;;  %v10772_v29 = vld [vmem:[%s14741_s0] sm:$0xff]  }
  0x11   :  { %391 = vst [vmem:[#allocation2 + $0x80] sm:$0x1] %v11780_v0  ;;  %392 = vst [vmem:[#allocation2 + $0x84] sm:$0xf] %v11780_v0  ;;  %v1922_v30 = vrot.slane %v1920_v22, 4  ;;  %v1925_v31 = vrot.slane %v1923_v23, 5  ;;  %v10773_v36 = vunpack.c.l.bf16 %v10772_v29  ;;  %v10774_v37 = vunpack.c.h.bf16 %v10772_v29 }
  0x12   :  { %393 = vst [vmem:[#allocation2 + $0x88] sm:$0xf] %v11780_v0  ;;  %394 = vst [vmem:[#allocation2 + $0x8c] sm:$0x1] %v11780_v0  ;;  %8076 = vmatpush1.bf16.msra.mxu1 %v11603_v9  ;;  %v1931_v32 = vrot.slane %v1929_v24, 5  ;;  %v1935_v33 = vrot.slane %v1933_v25, 4 }
  0x13   :  { %395 = vst [vmem:[#allocation2 + $0x90] sm:$0xf] %v11780_v0  ;;  %396 = vst [vmem:[#allocation2 + $0x94] sm:$0xf] %v11780_v0  ;;  %8365 = vmatpush1.bf16.msra.mxu0 %v11976_v10  ;;  %8077 = vmatprep.subr.bf16.mxu1 %v11780_v0  ;;  %v12037_v34 = vld [vmem:[%s14742_s2] ss:$0 sm:$0xff]  ;;  %v1926_v39 = vor.u32 %v1925_v31, %v1922_v30 }
  0x14   :  { %397 = vst [vmem:[#allocation2 + $0x98] sm:$0x1] %v11780_v0  ;;  %398 = vst [vmem:[#allocation2 + $0x9c] sm:$0xf] %v11780_v0  ;;  %8366 = vmatprep.subr.bf16.mxu0 %v11780_v0  ;;  %v12043_v35 = vld [vmem:[%s14743_s3] ss:$0 sm:$0xff]  ;;  %v1936_v40 = vor.u32 %v1935_v33, %v1931_v32  ;;  %v157_v44 = vmul.f32 %v10773_v36, %v12037_v34  ;;  %v158_v45 = vmul.f32 %v10774_v37, %v12037_v34 }
  0x15   :  { %399 = vst [vmem:[#allocation2 + $0xa0] sm:$0xf] %v11780_v0  ;;  %400 = vst [vmem:[#allocation2 + $0xa4] sm:$0x1] %v11780_v0  ;;  %v11615_v38 = vld [vmem:[%s14740_s1 + $0x50] sm:$0xff]   ;;  %v1941_v41 = vrot.slane %v1939_v28, 5 }
  0x16   :  { %401 = vst [vmem:[#allocation2 + $0xa8] sm:$0xf] %v11780_v0  ;;  %402 = vst [vmem:[#allocation2 + $0xac] sm:$0xf] %v11780_v0  ;;  %8078 = vmatpush1.bf16.msra.mxu1 %v11605_v11  ;;  %v2847_v42 = vld [vmem:[#allocation2] sm:$0xe]  ;;  %v227_v52 = vadd.f32 %v12043_v35, %v157_v44  ;;  %v228_v53 = vadd.f32 %v12043_v35, %v158_v45 }
  0x17   :  { %403 = vst [vmem:[#allocation2 + $0xb0] sm:$0x1] %v11780_v0  ;;  %404 = vst [vmem:[#allocation2 + $0xb4] sm:$0xf] %v11780_v0  ;;  %8367 = vmatpush1.bf16.msra.mxu0 %v11987_v12  ;;  %8079 = vmatprep.subr.bf16.mxu1 %v11780_v0  ;;  %v2848_v46 = vld [vmem:[#allocation2 + $0x4] sm:$0xf] }
  0x18   :  { %405 = vst [vmem:[#allocation2 + $0xb8] sm:$0xf] %v11780_v0  ;;  %406 = vst [vmem:[#allocation2 + $0xbc] sm:$0x1] %v11780_v0  ;;  %8368 = vmatprep.subr.bf16.mxu0 %v11780_v0  ;;  %v2849_v47 = vld [vmem:[#allocation2 + $0x8] sm:$0x1] }
  0x19   :  { %407 = vst [vmem:[#allocation2 + $0xc0] sm:$0xf] %v11780_v0  ;;  %408 = vst [vmem:[#allocation2 + $0xc4] sm:$0xf] %v11780_v0  ;;  %vm3039_vm4 = vcmask 1042432   ;;  %vm3040_vm5 = vcmask 1046532  }
  0x1a   :  { %409 = vst [vmem:[#allocation2 + $0xc8] sm:$0x1] %v11780_v0  ;;  %410 = vst [vmem:[#allocation2 + $0xcc] sm:$0xf] %v11780_v0  ;;  %8080 = vmatpush1.bf16.msra.mxu1 %v11607_v13  ;;  %v12060_v48 = vld [vmem:[%s14740_s1 + $0xd0] sm:$0xff]   ;;  %v1927_v49 = vrot.slane %v1926_v39, 4 }
  0x1b   :  { %411 = vst [vmem:[#allocation2 + $0xd0] sm:$0xf] %v11780_v0  ;;  %412 = vst [vmem:[#allocation2 + $0xd4] sm:$0x1] %v11780_v0  ;;  %8369 = vmatpush1.bf16.msra.mxu0 %v11998_v14  ;;  %8081 = vmatprep.subr.bf16.mxu1 %v11780_v0  ;;  %v1937_v50 = vrot.slane %v1936_v40, 4  ;;  %v3044_v51 = vrot.slane %v2848_v46, 5 }
  0x1c   :  { %413 = vst [vmem:[#allocation2 + $0xd8] sm:$0xf] %v11780_v0  ;;  %414 = vst [vmem:[#allocation2 + $0xdc] sm:$0xf] %v11780_v0  ;;  %8370 = vmatprep.subr.bf16.mxu0 %v11780_v0  ;;  %vm1310_vm6 = vcmask 1040384   ;;  %v10187_v54 = vrot.slane %v2847_v42, 9 }
  0x1d   :  { %415 = vst [vmem:[#allocation2 + $0xe0] sm:$0x1] %v11780_v0  ;;  %416 = vst [vmem:[#allocation2 + $0xe4] sm:$0xf] %v11780_v0  ;;  %v11617_v55 = vld [vmem:[%s14740_s1 + $0x58] sm:$0xff]   ;;  %v3046_v58 = vrot.slane %v3044_v51, 4 }
  0x1e   :  { %417 = vst [vmem:[#allocation2 + $0xe8] sm:$0xf] %v11780_v0  ;;  %418 = vst [vmem:[#allocation2 + $0xec] sm:$0x1] %v11780_v0  ;;  %8082 = vmatpush1.bf16.msra.mxu1 %v11609_v15  ;;  %v3047_v59 = vrot.slane %v2849_v47, 5  ;;  %v11618_v60 = vld [vmem:[%s14740_s1 + $0xd8] sm:$0xff]  }
  0x1f   :  { %419 = vst [vmem:[#allocation2 + $0xf0] sm:$0xf] %v11780_v0  ;;  %420 = vst [vmem:[#allocation2 + $0xf4] sm:$0xf] %v11780_v0  ;;  %8371 = vmatpush1.bf16.msra.mxu0 %v12009_v16  ;;  %8083 = vmatprep.subr.bf16.mxu1 %v11780_v0  ;;  %v291_v62 = vmax.f32 %v227_v52, 0.0  ;;  %v292_v63 = vmax.f32 %v228_v53, 0.0 }
  0x20   :  { %421 = vst [vmem:[#allocation2 + $0xf8] sm:$0x1] %v11780_v0  ;;  %422 = vst [vmem:[#allocation2 + $0xfc] sm:$0xf] %v11780_v0  ;;  %8372 = vmatprep.subr.bf16.mxu0 %v11780_v0  ;;  %vm659_vm7 = vsmask.f32 256 }
  0x21   :  { %423 = vst [vmem:[#allocation2 + $0x100] sm:$0xf] %v11780_v0  ;;  %424 = vst [vmem:[#allocation2 + $0x104] sm:$0x1] %v11780_v0  ;;  %v11059_v3 = vld [vmem:[%s14741_s0 + $0x8] sm:$0xff]   ;;  %v11619_v9 = vld [vmem:[%s14740_s1 + $0x60] sm:$0xff]   ;;  %v10643_v11 = vpack.c.bf16 %v291_v62, %v291_v62  ;;  %v10644_v13 = vpack.c.bf16 %v292_v63, %v292_v63 }
  0x22   :  { %425 = vst [vmem:[#allocation2 + $0x108] sm:$0xf] %v11780_v0  ;;  %426 = vst [vmem:[#allocation2 + $0x10c] sm:$0xf] %v11780_v0  ;;  %8084 = vmatpush1.bf16.msra.mxu1 %v11611_v17  ;;  %v10777_v5 = vunpack.c.l.bf16 %v11059_v3  ;;  %v10778_v7 = vunpack.c.h.bf16 %v11059_v3  ;;  %vm660_vm9 = vsmask.f32 4368 }
  0x23   :  { %427 = vst [vmem:[#allocation2 + $0x110] sm:$0x1] %v11780_v0  ;;  %428 = vst [vmem:[#allocation2 + $0x114] sm:$0xf] %v11780_v0  ;;  %8373 = vmatpush1.bf16.msra.mxu0 %v12020_v18  ;;  %8085 = vmatprep.subr.bf16.mxu1 %v11780_v0  ;;  %vm1304_vm10 = vsmask.f32 7938 }
  0x24   :  { %429 = vst [vmem:[#allocation2 + $0x118] sm:$0xf] %v11780_v0  ;;  %430 = vst [vmem:[#allocation2 + $0x11c] sm:$0x1] %v11780_v0  ;;  %8374 = vmatprep.subr.bf16.mxu0 %v11780_v0  ;;  %v11620_v15 = vld [vmem:[%s14740_s1 + $0xe0] sm:$0xff]   ;;  %v159_v20 = vmul.f32 %v10777_v5, %v12037_v34  ;;  %v160_v21 = vmul.f32 %v10778_v7, %v12037_v34  ;;  %v11060_v22 = vld [vmem:[%s14741_s0 + $0x10] sm:$0xff]  }
  0x25   :  { %431 = vst [vmem:[#allocation2 + $0x120] sm:$0xf] %v11780_v0  ;;  %432 = vst [vmem:[#allocation2 + $0x124] sm:$0xf] %v11780_v0  ;;  %v663_v23 = vshrl.u32 %v10643_v11, 16  ;;  %v666_v24 = vshll.u32 %v10643_v11, 16  ;;  %v10781_v30 = vunpack.c.l.bf16 %v11060_v22  ;;  %v10782_v31 = vunpack.c.h.bf16 %v11060_v22 }
  0x26   :  { %433 = vst [vmem:[#allocation2 + $0x128] sm:$0x1] %v11780_v0  ;;  %434 = vst [vmem:[#allocation2 + $0x12c] sm:$0xf] %v11780_v0  ;;  %8086 = vmatpush1.bf16.msra.mxu1 %v11613_v26  ;;  %v671_v25 = vshrl.u32 %v10644_v13, 16  ;;  %v674_v26 = vshll.u32 %v10644_v13, 16  ;;  %v229_v28 = vadd.f32 %v12043_v35, %v159_v20  ;;  %v230_v29 = vadd.f32 %v12043_v35, %v160_v21 }
  0x27   :  { %435 = vst [vmem:[#allocation2 + $0x130] sm:$0xf] %v11780_v0  ;;  %436 = vst [vmem:[#allocation2 + $0x134] sm:$0x1] %v11780_v0  ;;  %8375 = vmatpush1.bf16.msra.mxu0 %v11614_v27  ;;  %8087 = vmatprep.subr.bf16.mxu1 %v11780_v0  ;;  %v665_v33 = vrot.slane %v663_v23, 7  ;;  %v11061_v39 = vld [vmem:[%s14741_s0 + $0x18] sm:$0xff]   ;;  %v161_v45 = vmul.f32 %v10781_v30, %v12037_v34  ;;  %v162_v46 = vmul.f32 %v10782_v31, %v12037_v34 }
  0x28   :  { %437 = vst [vmem:[#allocation2 + $0x138] sm:$0xf] %v11780_v0  ;;  %438 = vst [vmem:[#allocation2 + $0x13c] sm:$0xf] %v11780_v0  ;;  %8376 = vmatprep.subr.bf16.mxu0 %v11780_v0  ;;  %v673_v36 = vrot.slane %v671_v25, 7  ;;  %v293_v42 = vmax.f32 %v229_v28, 0.0 }
  0x29   :  { %439 = vst [vmem:[#allocation2 + $0x140] sm:$0x1] %v11780_v0  ;;  %440 = vst [vmem:[#allocation2 + $0x144] sm:$0xf] %v11780_v0  ;;  %v1306_v37 = vld [vmem:[#allocation2 + $0xc] sm:$0xf] }
  0x2a   :  { %441 = vst [vmem:[#allocation2 + $0x148] sm:$0xf] %v11780_v0  ;;  %442 = vst [vmem:[#allocation2 + $0x14c] sm:$0x1] %v11780_v0  ;;  %8088 = vmatpush1.bf16.msra.mxu1 %v11615_v38  ;;  %v294_v44 = vmax.f32 %v230_v29, 0.0  ;;  %v11621_v47 = vld [vmem:[%s14740_s1 + $0x68] sm:$0xff]  }
  0x2b   :  { %443 = vst [vmem:[#allocation2 + $0x150] sm:$0xf] %v11780_v0  ;;  %444 = vst [vmem:[#allocation2 + $0x154] sm:$0xf] %v11780_v0  ;;  %8377 = vmatpush1.bf16.msra.mxu0 %v12060_v48  ;;  %8089 = vmatprep.subr.bf16.mxu1 %v11780_v0  ;;  %v678_v52 = vrot.slane %v673_v36, 4  ;;  %v11622_v53 = vld [vmem:[%s14740_s1 + $0xe8] sm:$0xff]  }
  0x2c   :  { %445 = vst [vmem:[#allocation2 + $0x158] sm:$0x1] %v11780_v0  ;;  %446 = vst [vmem:[#allocation2 + $0x15c] sm:$0xf] %v11780_v0  ;;  %8378 = vmatprep.subr.bf16.mxu0 %v11780_v0  ;;  %v11062_v62 = vld [vmem:[%s14741_s0 + $0x20] sm:$0xff]   ;;  %v11624_v21 = vld [vmem:[%s14740_s1 + $0xf0] sm:$0xff]  }
  0x2d   :  { %447 = vst [vmem:[#allocation2 + $0x160] sm:$0xf] %v11780_v0  ;;  %448 = vst [vmem:[#allocation2 + $0x164] sm:$0x1] %v11780_v0  ;;  %v10790_v25 = vunpack.c.h.bf16 %v11062_v62  ;;  %v1315_v28 = vld [vmem:[#allocation2 + $0x18] sm:$0xf] }
  0x2e   :  { %449 = vst [vmem:[#allocation2 + $0x168] sm:$0xf] %v11780_v0  ;;  %450 = vst [vmem:[#allocation2 + $0x16c] sm:$0xf] %v11780_v0  ;;  %8090 = vmatpush1.bf16.msra.mxu1 %v11617_v55  ;;  %v10646_v55 = vpack.c.bf16 %v294_v44, %v294_v44  ;;  %v1319_v29 = vld [vmem:[#allocation2 + $0x20] sm:$0x1] }
  0x2f   :  { %451 = vst [vmem:[#allocation2 + $0x170] sm:$0x1] %v11780_v0  ;;  %452 = vst [vmem:[#allocation2 + $0x174] sm:$0xf] %v11780_v0  ;;  %8379 = vmatpush1.bf16.msra.mxu0 %v11618_v60  ;;  %8091 = vmatprep.subr.bf16.mxu1 %v11780_v0 }
  0x30   :  { %453 = vst [vmem:[#allocation2 + $0x178] sm:$0xf] %v11780_v0  ;;  %454 = vst [vmem:[#allocation2 + $0x17c] sm:$0x1] %v11780_v0  ;;  %8380 = vmatprep.subr.bf16.mxu0 %v11780_v0  ;;  %v688_v5 = vshrl.u32 %v10646_v55, 16  ;;  %v691_v7 = vshll.u32 %v10646_v55, 16 }
  0x31   :  { %455 = vst [vmem:[#allocation2 + $0x180] sm:$0xf] %v11780_v0  ;;  %456 = vst [vmem:[#allocation2 + $0x184] sm:$0xf] %v11780_v0 }
  0x32   :  { %457 = vst [vmem:[#allocation2 + $0x188] sm:$0x1] %v11780_v0  ;;  %458 = vst [vmem:[#allocation2 + $0x18c] sm:$0xf] %v11780_v0  ;;  %8092 = vmatpush1.bf16.msra.mxu1 %v11619_v9  ;;  %v11623_v9 = vld [vmem:[%s14740_s1 + $0x70] sm:$0xff]   ;;  %v690_v23 = vrot.slane %v688_v5, 7 }
  0x33   :  { %459 = vst [vmem:[#allocation2 + $0x190] sm:$0xf] %v11780_v0  ;;  %460 = vst [vmem:[#allocation2 + $0x194] sm:$0x1] %v11780_v0  ;;  %8381 = vmatpush1.bf16.msra.mxu0 %v11620_v15  ;;  %8093 = vmatprep.subr.bf16.mxu1 %v11780_v0  ;;  %v10786_v15 = vunpack.c.h.bf16 %v11061_v39 }
  0x34   :  { %461 = vst [vmem:[#allocation2 + $0x198] sm:$0xf] %v11780_v0  ;;  %462 = vst [vmem:[#allocation2 + $0x19c] sm:$0xf] %v11780_v0  ;;  %8382 = vmatprep.subr.bf16.mxu0 %v11780_v0  ;;  %v695_v44 = vrot.slane %v690_v23, 4 }
  0x35   :  { %463 = vst [vmem:[#allocation2 + $0x1a0] sm:$0x1] %v11780_v0  ;;  %464 = vst [vmem:[#allocation2 + $0x1a4] sm:$0xf] %v11780_v0 }
  0x36   :  { %465 = vst [vmem:[#allocation2 + $0x1a8] sm:$0xf] %v11780_v0  ;;  %466 = vst [vmem:[#allocation2 + $0x1ac] sm:$0x1] %v11780_v0  ;;  %8094 = vmatpush1.bf16.msra.mxu1 %v11621_v47 }
  0x37   :  { %vm12050_vm2 = vmor %vm1916_vm0, %vm1917_vm1  ;;  %8383 = vmatpush1.bf16.msra.mxu0 %v11622_v53  ;;  %8095 = vmatprep.subr.bf16.mxu1 %v11780_v0 }
  0x38   :  { %v1932_v56 = vsel %vm12050_vm2, %v1927_v49, %v1931_v32  ;;  %v1942_v57 = vsel %vm12050_vm2, %v1937_v50, %v1941_v41  ;;  %vm12077_vm8 = vmor %vm3039_vm4, %vm3040_vm5  ;;  %v1312_v41 = vld [vmem:[#allocation2 + $0x14] sm:$0x1]  ;;  %v668_v49 = vor.u32 %v666_v24, %v665_v33  ;;  %v669_v50 = vrot.slane %v665_v33, 4  ;;  %8384 = vmatprep.subr.bf16.mxu0 %v11780_v0 }
  0x39   :  { %v10155_v61 = vcombine.low %v1932_v56, %v1942_v57  ;;  %v12095_v17 = vsel %vm12077_vm8, %v10187_v54, %v3044_v51  ;;  %v12099_v19 = vsel %vm12077_vm8, %v3046_v58, %v3047_v59  ;;  %vm12109_vm11 = vmand %vm1310_vm6, %vm659_vm7  ;;  %v676_v51 = vor.u32 %v674_v26, %v673_v36  ;;  %v11625_v26 = vld [vmem:[%s14740_s1 + $0x78] sm:$0xff]  }
  0x3a   :  { %vm12118_vm12 = vmor %vm659_vm7, %vm660_vm9  ;;  %v10219_v38 = vcombine.low %v12095_v17, %v12099_v19  ;;  %v10645_v54 = vpack.c.bf16 %v293_v42, %v293_v42  ;;  %v231_v56 = vadd.f32 %v12043_v35, %v161_v45  ;;  %v10785_v57 = vunpack.c.l.bf16 %v11061_v39  ;;  %v12176_v45 = vld [vmem:[%s14741_s0 + $0x28] sm:$0xff]   ;;  %8096 = vmatpush1.bf16.msra.mxu1 %v11623_v9 }
  0x3b   :  { %8099 = vmatprep.mubr.bf16.mxu1 %v10155_v61  ;;  %vm12129_vm13 = vmand %vm1303_vm3, %vm1304_vm10  ;;  %v677_v58 = vsel %vm12118_vm12, %v669_v50, %v676_v51  ;;  %v1313_v60 = vsel %vm12109_vm11, %v678_v52, %v1312_v41  ;;  %v232_v61 = vadd.f32 %v12043_v35, %v162_v46  ;;  %v10789_v24 = vunpack.c.l.bf16 %v11062_v62  ;;  %8385 = vmatpush1.bf16.msra.mxu0 %v11624_v21  ;;  %v11628_v51 = vld [vmem:[#allocation2] sm:$0xff]  }
  0x3c   :  { %v1307_v59 = vsel %vm12129_vm13, %v668_v49, %v1306_v37  ;;  %1309 = vst [vmem:[#allocation2 + $0x10] sm:$0xf] %v677_v58  ;;  %1314 = vst [vmem:[#allocation2 + $0x14] sm:$0x1] %v1313_v60  ;;  %v680_v63 = vshrl.u32 %v10645_v54, 16  ;;  %v683_v3 = vshll.u32 %v10645_v54, 16  ;;  %v163_v20 = vmul.f32 %v10785_v57, %v12037_v34  ;;  %8097 = vmatprep.subr.bf16.mxu1 %v11780_v0 }
  0x3d   :  { %1308 = vst [vmem:[#allocation2 + $0xc] sm:$0xf] %v1307_v59  ;;  %v295_v11 = vmax.f32 %v231_v56, 0.0  ;;  %v296_v13 = vmax.f32 %v232_v61, 0.0  ;;  %v164_v33 = vmul.f32 %v10786_v15, %v12037_v34  ;;  %v11626_v37 = vld [vmem:[%s14740_s1 + $0xf8] sm:$0xff]   ;;  %v693_v42 = vor.u32 %v691_v7, %v690_v23  ;;  %v12190_v56 = vld [vmem:[%s14741_s0 + $0x30] sm:$0xff]   ;;  %8386 = vmatprep.subr.bf16.mxu0 %v11780_v0 }
  0x3e   :  { %v682_v22 = vrot.slane %v680_v63, 7  ;;  %v233_v36 = vadd.f32 %v12043_v35, %v163_v20  ;;  %v1320_v54 = vsel %vm12109_vm11, %v695_v44, %v1319_v29  ;;  %v165_v60 = vmul.f32 %v10789_v24, %v12037_v34  ;;  %8098 = vmatpush1.bf16.msra.mxu1 %v11625_v26  ;;  %v11629_v23 = vld [vmem:[%s14740_s1 + $0x100] sm:$0xff]  }
  0x3f   :  { %v10647_v30 = vpack.c.bf16 %v295_v11, %v295_v11  ;;  %v12166_v31 = vpack.c.bf16 %v296_v13, %v296_v13  ;;  %1321 = vst [vmem:[#allocation2 + $0x20] sm:$0x1] %v1320_v54  ;;  %v12196_v59 = vadd.f32 %v12043_v35, %v164_v33  ;;  %v166_v61 = vmul.f32 %v10790_v25, %v12037_v34 }
  0x40   :  { %v685_v39 = vor.u32 %v683_v3, %v682_v22  ;;  %v686_v41 = vrot.slane %v682_v22, 4  ;;  %v297_v55 = vmax.f32 %v233_v36, 0.0  ;;  %v10793_v7 = vunpack.c.l.bf16 %v12176_v45  ;;  %v1322_v22 = vld [vmem:[#allocation2 + $0x24] sm:$0xf]  ;;  %8387 = vmatpush1.bf16.msra.mxu0 %v11626_v37  ;;  %11241 = vmatprep.subr.bf16.mxu1 %v11780_v0 }
  0x41   :  { %v697_v46 = vshrl.u32 %v10647_v30, 16  ;;  %v700_v47 = vshll.u32 %v10647_v30, 16  ;;  %v705_v49 = vshrl.u32 %v12166_v31, 16  ;;  %v708_v50 = vshll.u32 %v12166_v31, 16  ;;  %8645 = vmatprep.subr.bf16.mxu0 %v11780_v0  ;;  %8100 = vmatmul.mubr.bf16.vlgmr.msra.gmra.mrb[0].mxu1 %v11628_v51 }
  0x42   :  { %v694_v52 = vsel %vm12118_vm12, %v686_v41, %v693_v42  ;;  %v1316_v53 = vsel %vm12129_vm13, %v685_v39, %v1315_v28  ;;  %v12200_v5 = vpack.c.bf16 %v297_v55, %v297_v55  ;;  %v10794_v9 = vunpack.c.h.bf16 %v12176_v45  ;;  %11257 = vmatpush1.bf16.msra.mxu1 %v11933_v2 }
  0x43   :  { %1317 = vst [vmem:[#allocation2 + $0x18] sm:$0xf] %v1316_v53  ;;  %1318 = vst [vmem:[#allocation2 + $0x1c] sm:$0xf] %v694_v52  ;;  %v12193_v58 = vrot.slane %v697_v46, 7  ;;  %v10797_v11 = vunpack.c.l.bf16 %v12190_v56  ;;  %v12211_v29 = vadd.f32 %v12043_v35, %v165_v60  ;;  %v12214_v26 = vadd.f32 %v12043_v35, %v166_v61  ;;  %11242 = vmatprep.subr.bf16.mxu1 %v11780_v0 }
  0x44   :  { %v11627_v57 = vld [vmem:[#allocation2 + $0xc] sm:$0xff]   ;;  %v1825_v3 = vld [vmem:[#allocation2 + $0x14] sm:$0x1]  ;;  %v707_v51 = vrot.slane %v705_v49, 7  ;;  %v12231_v2 = vmul.f32 %v10793_v7, %v12037_v34 }
  0x45   :  { %v1823_v62 = vld [vmem:[#allocation2 + $0xc] sm:$0xf]  ;;  %v1824_v63 = vld [vmem:[#allocation2 + $0x10] sm:$0xf]  ;;  %8388 = vmatprep.mubr.bf16.mxu0 %v11627_v57  ;;  %v1963_v24 = vshll.u32 %v1825_v3, 16  ;;  %v702_v28 = vor.u32 %v700_v47, %v12193_v58  ;;  %v703_v46 = vrot.slane %v12193_v58, 4 }
  0x46   :  { %v1944_v13 = vshrl.u32 %v1823_v62, 16  ;;  %v1947_v15 = vshll.u32 %v1823_v62, 16  ;;  %v1953_v20 = vshll.u32 %v1824_v63, 16  ;;  %v1957_v21 = vshrl.u32 %v1824_v63, 16  ;;  %v2850_v25 = vld [vmem:[#allocation2 + $0xc] sm:$0xe]  ;;  %8389 = vmatmul.mubr.bf16.vlgmr.msra.gmra.mrb[0].mxu0 %v10219_v38  ;;  %11258 = vmatpush1.bf16.msra.mxu1 %v11943_v4 }
  0x47   :  { %v2851_v39 = vld [vmem:[#allocation2 + $0x10] sm:$0xf]  ;;  %v1965_v41 = vrot.slane %v1963_v24, 5  ;;  %v2852_v42 = vld [vmem:[#allocation2 + $0x14] sm:$0x1]  ;;  %v10188_v44 = vrot.slane %v2850_v25, 9  ;;  %8646 = vmatpush1.bf16.msra.mxu0 %v11629_v23  ;;  %v1323_v17 = vsel %vm12129_vm13, %v702_v28, %v1322_v22  ;;  %v710_v61 = vor.u32 %v708_v50, %v707_v51  ;;  %11243 = vmatprep.subr.bf16.mxu1 %v11780_v0 }
  0x48   :  { %v1946_v30 = vrot.slane %v1944_v13, 4  ;;  %v1949_v33 = vrot.slane %v1947_v15, 5  ;;  %v1955_v36 = vrot.slane %v1953_v20, 5  ;;  %v1959_v37 = vrot.slane %v1957_v21, 4  ;;  %v11630_v47 = vld [vmem:[%s14740_s1 + $0x108] sm:$0xff]   ;;  %8647 = vmatprep.subr.bf16.mxu0 %v11780_v0  ;;  %v11633_v24 = vld [vmem:[%s14740_s1 + $0x110] sm:$0xff]  }
  0x49   :  { %v3051_v45 = vrot.slane %v2851_v39, 5  ;;  %v3054_v54 = vrot.slane %v2852_v42, 5  ;;  %1324 = vst [vmem:[#allocation2 + $0x24] sm:$0xf] %v1323_v17  ;;  %v12237_v62 = vmul.f32 %v10794_v9, %v12037_v34  ;;  %v1828_v3 = vld [vmem:[#allocation2 + $0x20] sm:$0x1]  ;;  %v711_v39 = vsel %vm12118_vm12, %v703_v46, %v710_v61 }
  0x4a   :  { %v1950_v52 = vor.u32 %v1949_v33, %v1946_v30  ;;  %v1960_v53 = vor.u32 %v1959_v37, %v1955_v36  ;;  %v11631_v55 = vld [vmem:[#allocation2 + $0x18] sm:$0xff]   ;;  %v1326_v20 = vld [vmem:[#allocation2 + $0x2c] sm:$0x1]  ;;  %v1987_v37 = vshll.u32 %v1828_v3, 16  ;;  %v712_v4 = vrot.slane %v707_v51, 4  ;;  %11259 = vmatpush1.bf16.msra.mxu1 %v11954_v6 }
  0x4b   :  { %v3052_v57 = vsel %vm12077_vm8, %v10188_v44, %v3051_v45  ;;  %v3053_v58 = vrot.slane %v3051_v45, 4  ;;  %v1826_v60 = vld [vmem:[#allocation2 + $0x18] sm:$0xf]  ;;  %v1827_v49 = vld [vmem:[#allocation2 + $0x1c] sm:$0xf]  ;;  %8396 = vmatprep.mubr.bf16.mxu0 %v11631_v55  ;;  %v11632_v50 = vld [vmem:[#allocation2 + $0xc] sm:$0xff]   ;;  %8648 = vmatpush1.bf16.msra.mxu0 %v11630_v47 }
  0x4c   :  { %v1951_v19 = vrot.slane %v1950_v52, 4  ;;  %v1961_v38 = vrot.slane %v1960_v53, 4  ;;  %v1968_v7 = vshrl.u32 %v1826_v60, 16  ;;  %v1971_v13 = vshll.u32 %v1826_v60, 16  ;;  %v2853_v33 = vld [vmem:[#allocation2 + $0x18] sm:$0xe]  ;;  %8649 = vmatprep.subr.bf16.mxu0 %v11780_v0  ;;  %11244 = vmatprep.subr.bf16.mxu1 %v11780_v0 }
  0x4d   :  { %v3055_v63 = vsel %vm12077_vm8, %v3053_v58, %v3054_v54  ;;  %v1977_v15 = vshll.u32 %v1827_v49, 16  ;;  %v1981_v23 = vshrl.u32 %v1827_v49, 16  ;;  %v11634_v42 = vld [vmem:[%s14740_s1 + $0x118] sm:$0xff]   ;;  %1325 = vst [vmem:[#allocation2 + $0x28] sm:$0xf] %v711_v39  ;;  %v10189_v47 = vrot.slane %v2853_v33, 9 }
  0x4e   :  { %v1956_v21 = vsel %vm12050_vm2, %v1951_v19, %v1955_v36  ;;  %v1966_v31 = vsel %vm12050_vm2, %v1961_v38, %v1965_v41  ;;  %v10220_v22 = vcombine.low %v3052_v57, %v3055_v63  ;;  %v1970_v25 = vrot.slane %v1968_v7, 4  ;;  %v2854_v41 = vld [vmem:[#allocation2 + $0x1c] sm:$0xf]  ;;  %v2855_v45 = vld [vmem:[#allocation2 + $0x20] sm:$0x1]  ;;  %11260 = vmatpush1.bf16.msra.mxu1 %v11965_v8 }
  0x4f   :  { %v10156_v9 = vcombine.low %v1956_v21, %v1966_v31  ;;  %v1973_v28 = vrot.slane %v1971_v13, 5  ;;  %v1979_v30 = vrot.slane %v1977_v15, 5  ;;  %v1983_v36 = vrot.slane %v1981_v23, 4  ;;  %8650 = vmatpush1.bf16.msra.mxu0 %v11633_v24  ;;  %11245 = vmatprep.subr.bf16.mxu1 %v11780_v0 }
  0x50   :  { %v3058_v52 = vrot.slane %v2854_v41, 5  ;;  %v298_v53 = vmax.f32 %v12196_v59, 0.0  ;;  %8397 = vmatmul.mubr.bf16.gmra.mrb[4].mxu0 %v10220_v22  ;;  %v1989_v55 = vrot.slane %v1987_v37, 5  ;;  %v3061_v57 = vrot.slane %v2855_v45, 5  ;;  %v1829_v19 = vld [vmem:[#allocation2 + $0x24] sm:$0xf]  ;;  %8651 = vmatprep.subr.bf16.mxu0 %v11780_v0 }
  0x51   :  { %8107 = vmatprep.mubr.bf16.mxu1 %v10156_v9  ;;  %v1974_v44 = vor.u32 %v1973_v28, %v1970_v25  ;;  %v1984_v54 = vor.u32 %v1983_v36, %v1979_v30  ;;  %v1327_v46 = vsel %vm12109_vm11, %v712_v4, %v1326_v20  ;;  %v1992_v60 = vshrl.u32 %v1829_v19, 16  ;;  %v2856_v15 = vld [vmem:[#allocation2 + $0x24] sm:$0xe]  ;;  %v11636_v20 = vld [vmem:[#allocation2 + $0x18] sm:$0xff]   ;;  %v1329_v22 = vld [vmem:[#allocation2 + $0x30] sm:$0xf] }
  0x52   :  { %8108 = vmatmul.mubr.bf16.gmra.mrb[4].mxu1 %v11632_v50  ;;  %v3059_v58 = vsel %vm12077_vm8, %v10189_v47, %v3058_v52  ;;  %v3060_v17 = vrot.slane %v3058_v52, 4  ;;  %1328 = vst [vmem:[#allocation2 + $0x2c] sm:$0x1] %v1327_v46  ;;  %v10650_v38 = vpack.c.bf16 %v298_v53, %v298_v53  ;;  %v1995_v49 = vshll.u32 %v1829_v19, 16  ;;  %v11637_v9 = vld [vmem:[%s14740_s1 + $0x120] sm:$0xff]  }
  0x53   :  { %v1975_v51 = vrot.slane %v1974_v44, 4  ;;  %v1985_v59 = vrot.slane %v1984_v54, 4  ;;  %v714_v61 = vshrl.u32 %v12200_v5, 16  ;;  %v717_v7 = vshll.u32 %v12200_v5, 16  ;;  %8652 = vmatpush1.bf16.msra.mxu0 %v11634_v42  ;;  %v1333_v5 = vld [vmem:[#allocation2 + $0x38] sm:$0x1]  ;;  %11261 = vmatpush1.bf16.msra.mxu1 %v11976_v10 }
  0x54   :  { %v3062_v3 = vsel %vm12077_vm8, %v3060_v17, %v3061_v57  ;;  %v722_v13 = vshrl.u32 %v10650_v38, 16  ;;  %v1994_v31 = vrot.slane %v1992_v60, 4  ;;  %v1997_v50 = vrot.slane %v1995_v49, 5  ;;  %8653 = vmatprep.subr.bf16.mxu0 %v11780_v0  ;;  %v1830_v33 = vld [vmem:[#allocation2 + $0x28] sm:$0xf]  ;;  %11246 = vmatprep.subr.bf16.mxu1 %v11780_v0 }
  0x55   :  { %v1980_v63 = vsel %vm12050_vm2, %v1975_v51, %v1979_v30  ;;  %v1990_v6 = vsel %vm12050_vm2, %v1985_v59, %v1989_v55  ;;  %v10221_v21 = vcombine.low %v3059_v58, %v3062_v3  ;;  %v716_v24 = vrot.slane %v714_v61, 7  ;;  %v11635_v30 = vld [vmem:[#allocation2 + $0x24] sm:$0xff]  }
  0x56   :  { %v10157_v23 = vcombine.low %v1980_v63, %v1990_v6  ;;  %v724_v25 = vrot.slane %v722_v13, 7  ;;  %v725_v28 = vshll.u32 %v10650_v38, 16  ;;  %v1998_v36 = vor.u32 %v1997_v50, %v1994_v31  ;;  %8404 = vmatprep.mubr.bf16.mxu0 %v11635_v30  ;;  %v2857_v54 = vld [vmem:[#allocation2 + $0x28] sm:$0xf]  ;;  %v11641_v6 = vld [vmem:[%s14740_s1 + $0x130] sm:$0xff]  }
  0x57   :  { %v10190_v37 = vrot.slane %v2856_v15, 9  ;;  %v237_v39 = vadd.f32 %v12043_v35, %v12231_v2  ;;  %v12281_v4 = vadd.f32 %v12043_v35, %v12237_v62  ;;  %v2001_v41 = vshll.u32 %v1830_v33, 16  ;;  %v11638_v62 = vld [vmem:[%s14740_s1 + $0x128] sm:$0xff]   ;;  %8654 = vmatpush1.bf16.msra.mxu0 %v11637_v9  ;;  %11262 = vmatpush1.bf16.msra.mxu1 %v11987_v12  ;;  %v12319_v9 = vld [vmem:[%s14741_s0 + $0x38] sm:$0xff]  }
  0x58   :  { %8115 = vmatprep.mubr.bf16.mxu1 %v10157_v23  ;;  %v2005_v42 = vshrl.u32 %v1830_v33, 16  ;;  %v719_v44 = vor.u32 %v717_v7, %v716_v24  ;;  %v720_v8 = vrot.slane %v716_v24, 4  ;;  %v1999_v47 = vrot.slane %v1998_v36, 4  ;;  %8405 = vmatmul.mubr.bf16.gmra.mrb[8].mxu0 %v10221_v21  ;;  %v1336_v36 = vld [vmem:[#allocation2 + $0x3c] sm:$0xf] }
  0x59   :  { %v1831_v45 = vld [vmem:[#allocation2 + $0x2c] sm:$0x1]  ;;  %v727_v52 = vor.u32 %v725_v28, %v724_v25  ;;  %v729_v53 = vrot.slane %v724_v25, 4  ;;  %v10798_v2 = vunpack.c.h.bf16 %v12190_v56  ;;  %v2003_v55 = vrot.slane %v2001_v41, 5  ;;  %8655 = vmatprep.subr.bf16.mxu0 %v11780_v0  ;;  %v12324_v56 = vld [vmem:[%s14741_s0 + $0x40] sm:$0xff]   ;;  %11247 = vmatprep.subr.bf16.mxu1 %v11780_v0 }
  0x5a   :  { %8116 = vmatmul.mubr.bf16.gmra.mrb[8].mxu1 %v11636_v20  ;;  %v2007_v57 = vrot.slane %v2005_v42, 4  ;;  %v2011_v46 = vshll.u32 %v1831_v45, 16  ;;  %v1330_v51 = vsel %vm12129_vm13, %v719_v44, %v1329_v22  ;;  %v2858_v58 = vld [vmem:[#allocation2 + $0x2c] sm:$0x1]  ;;  %v3065_v19 = vrot.slane %v2857_v54, 5 }
  0x5b   :  { %v728_v17 = vsel %vm12118_vm12, %v720_v8, %v727_v52  ;;  %1331 = vst [vmem:[#allocation2 + $0x30] sm:$0xf] %v1330_v51  ;;  %v3068_v38 = vrot.slane %v2858_v58, 5  ;;  %v1334_v59 = vsel %vm12109_vm11, %v729_v53, %v1333_v5  ;;  %v2004_v60 = vsel %vm12050_vm2, %v1999_v47, %v2003_v55  ;;  %8656 = vmatpush1.bf16.msra.mxu0 %v11638_v62  ;;  %v11642_v5 = vld [vmem:[%s14740_s1 + $0x138] sm:$0xff]  }
  0x5c   :  { %v2008_v49 = vor.u32 %v2007_v57, %v2003_v55  ;;  %v2013_v61 = vrot.slane %v2011_v46, 5  ;;  %1332 = vst [vmem:[#allocation2 + $0x34] sm:$0xf] %v728_v17  ;;  %1335 = vst [vmem:[#allocation2 + $0x38] sm:$0x1] %v1334_v59  ;;  %v299_v10 = vmax.f32 %v12211_v29, 0.0  ;;  %v3066_v63 = vsel %vm12077_vm8, %v10190_v37, %v3065_v19  ;;  %8657 = vmatprep.subr.bf16.mxu0 %v11780_v0 }
  0x5d   :  { %v3067_v3 = vrot.slane %v3065_v19, 4  ;;  %v300_v7 = vmax.f32 %v12214_v26, 0.0  ;;  %v301_v13 = vmax.f32 %v237_v39, 0.0  ;;  %v302_v21 = vmax.f32 %v12281_v4, 0.0  ;;  %v11640_v29 = vld [vmem:[#allocation2 + $0x24] sm:$0xff]   ;;  %11263 = vmatpush1.bf16.msra.mxu1 %v11998_v14 }
  0x5e   :  { %v2009_v15 = vrot.slane %v2008_v49, 4  ;;  %v10651_v20 = vpack.c.bf16 %v299_v10, %v299_v10  ;;  %v169_v31 = vmul.f32 %v10797_v11, %v12037_v34  ;;  %v170_v23 = vmul.f32 %v10798_v2, %v12037_v34  ;;  %v1340_v14 = vld [vmem:[#allocation2 + $0x44] sm:$0x1]  ;;  %11248 = vmatprep.subr.bf16.mxu1 %v11780_v0 }
  0x5f   :  { %v3069_v26 = vsel %vm12077_vm8, %v3067_v3, %v3068_v38  ;;  %v10652_v50 = vpack.c.bf16 %v300_v7, %v300_v7  ;;  %v12313_v22 = vpack.c.bf16 %v301_v13, %v301_v13  ;;  %v12333_v37 = vpack.c.bf16 %v302_v21, %v302_v21  ;;  %8658 = vmatpush1.bf16.msra.mxu0 %v11641_v6 }
  0x60   :  { %v2014_v12 = vsel %vm12050_vm2, %v2009_v15, %v2013_v61  ;;  %v10222_v11 = vcombine.low %v3066_v63, %v3069_v26  ;;  %v731_v24 = vshrl.u32 %v10651_v20, 16  ;;  %v734_v25 = vshll.u32 %v10651_v20, 16  ;;  %8659 = vmatprep.subr.bf16.mxu0 %v11780_v0  ;;  %v11645_v61 = vld [vmem:[%s14740_s1 + $0x140] sm:$0xff]  }
  0x61   :  { %v10158_v28 = vcombine.low %v2004_v60, %v2014_v12  ;;  %v739_v30 = vshrl.u32 %v10652_v50, 16  ;;  %v742_v33 = vshll.u32 %v10652_v50, 16  ;;  %v748_v41 = vshrl.u32 %v12313_v22, 16  ;;  %11264 = vmatpush1.bf16.msra.mxu1 %v12009_v16 }
  0x62   :  { %v1832_v39 = vld [vmem:[#allocation2 + $0x30] sm:$0xf]  ;;  %v733_v4 = vrot.slane %v731_v24, 7  ;;  %v12337_v42 = vadd.f32 %v12043_v35, %v169_v31  ;;  %v12340_v44 = vadd.f32 %v12043_v35, %v170_v23  ;;  %v10801_v52 = vunpack.c.l.bf16 %v12319_v9  ;;  %11249 = vmatprep.subr.bf16.mxu1 %v11780_v0 }
  0x63   :  { %8123 = vmatprep.mubr.bf16.mxu1 %v10158_v28  ;;  %v11639_v8 = vld [vmem:[#allocation2 + $0x30] sm:$0xff]   ;;  %v2016_v47 = vshrl.u32 %v1832_v39, 16  ;;  %v10802_v53 = vunpack.c.h.bf16 %v12319_v9  ;;  %v10805_v54 = vunpack.c.l.bf16 %v12324_v56  ;;  %v1834_v2 = vld [vmem:[#allocation2 + $0x38] sm:$0x1]  ;;  %v2019_v62 = vshll.u32 %v1832_v39, 16  ;;  %8660 = vmatpush1.bf16.msra.mxu0 %v11642_v5  ;;  %v11646_v28 = vld [vmem:[%s14740_s1 + $0x148] sm:$0xff]  }
  0x64   :  { %v1833_v45 = vld [vmem:[#allocation2 + $0x34] sm:$0xf]  ;;  %8124 = vmatmul.mubr.bf16.gmra.mrb[12].mxu1 %v11640_v29  ;;  %v736_v46 = vor.u32 %v734_v25, %v733_v4  ;;  %8412 = vmatprep.mubr.bf16.mxu0 %v11639_v8  ;;  %v2035_v58 = vshll.u32 %v1834_v2, 16  ;;  %v737_v17 = vrot.slane %v733_v4, 4  ;;  %v741_v19 = vrot.slane %v739_v30, 7 }
  0x65   :  { %v2025_v55 = vshll.u32 %v1833_v45, 16  ;;  %v2029_v57 = vshrl.u32 %v1833_v45, 16  ;;  %v2018_v51 = vrot.slane %v2016_v47, 4  ;;  %8413 = vmatmul.mubr.bf16.gmra.mrb[12].mxu0 %v10222_v11  ;;  %v2021_v38 = vrot.slane %v2019_v62, 5  ;;  %v2859_v7 = vld [vmem:[#allocation2 + $0x30] sm:$0xe]  ;;  %8661 = vmatprep.subr.bf16.mxu0 %v11780_v0 }
  0x66   :  { %v1337_v49 = vsel %vm12129_vm13, %v736_v46, %v1336_v36  ;;  %v2037_v10 = vrot.slane %v2035_v58, 5  ;;  %v744_v63 = vor.u32 %v742_v33, %v741_v19  ;;  %v746_v3 = vrot.slane %v741_v19, 4  ;;  %v2860_v13 = vld [vmem:[#allocation2 + $0x34] sm:$0xf]  ;;  %v2861_v21 = vld [vmem:[#allocation2 + $0x38] sm:$0x1]  ;;  %11265 = vmatpush1.bf16.msra.mxu1 %v12020_v18 }
  0x67   :  { %v2027_v59 = vrot.slane %v2025_v55, 5  ;;  %v2031_v60 = vrot.slane %v2029_v57, 4  ;;  %1338 = vst [vmem:[#allocation2 + $0x3c] sm:$0xf] %v1337_v49  ;;  %v171_v15 = vmul.f32 %v10801_v52, %v12037_v34  ;;  %v2022_v6 = vor.u32 %v2021_v38, %v2018_v51  ;;  %8662 = vmatpush1.bf16.msra.mxu0 %v11645_v61  ;;  %11250 = vmatprep.subr.bf16.mxu1 %v11780_v0  ;;  %v11644_v4 = vld [vmem:[#allocation2 + $0x30] sm:$0xff]  }
  0x68   :  { %v10191_v31 = vrot.slane %v2859_v7, 9  ;;  %v3072_v29 = vrot.slane %v2860_v13, 5  ;;  %v745_v16 = vsel %vm12118_vm12, %v737_v17, %v744_v63  ;;  %v3075_v26 = vrot.slane %v2861_v21, 5  ;;  %8663 = vmatprep.subr.bf16.mxu0 %v11780_v0  ;;  %v1343_v52 = vld [vmem:[#allocation2 + $0x48] sm:$0xf] }
  0x69   :  { %v2032_v20 = vor.u32 %v2031_v60, %v2027_v59  ;;  %v1341_v50 = vsel %vm12109_vm11, %v746_v3, %v1340_v14  ;;  %v750_v23 = vrot.slane %v748_v41, 7  ;;  %v2023_v12 = vrot.slane %v2022_v6, 4  ;;  %1339 = vst [vmem:[#allocation2 + $0x40] sm:$0xf] %v745_v16  ;;  %v1347_v2 = vld [vmem:[#allocation2 + $0x50] sm:$0x1] }
  0x6a   :  { %v12363_v24 = vsel %vm12077_vm8, %v10191_v31, %v3072_v29  ;;  %v3074_v25 = vrot.slane %v3072_v29, 4  ;;  %1342 = vst [vmem:[#allocation2 + $0x44] sm:$0x1] %v1341_v50  ;;  %v751_v5 = vshll.u32 %v12313_v22, 16  ;;  %v756_v33 = vshrl.u32 %v12333_v37, 16 }
  0x6b   :  { %v2033_v11 = vrot.slane %v2032_v20, 4  ;;  %v754_v30 = vrot.slane %v750_v23, 4  ;;  %v759_v36 = vshll.u32 %v12333_v37, 16  ;;  %v2028_v39 = vsel %vm12050_vm2, %v2023_v12, %v2027_v59  ;;  %8664 = vmatpush1.bf16.msra.mxu0 %v11646_v28  ;;  %v12409_v3 = vld [vmem:[%s14743_s3] ss:$0 sm:$0xff]  ;;  %v11650_v20 = vld [vmem:[%s14740_s1 + $0x158] sm:$0xff]  }
  0x6c   :  { %v3076_v41 = vsel %vm12077_vm8, %v3074_v25, %v3075_v26  ;;  %v303_v22 = vmax.f32 %v12337_v42, 0.0  ;;  %v753_v37 = vor.u32 %v751_v5, %v750_v23  ;;  %v758_v47 = vrot.slane %v756_v33, 7  ;;  %v11763_v42 = vld [vmem:[%s14740_s1 + $0xc8] sm:$0xff]   ;;  %8665 = vmatprep.subr.bf16.mxu0 %v11780_v0  ;;  %v12426_v26 = vld [vmem:[%s14742_s2] ss:$0 sm:$0xff] }
  0x6d   :  { %v2038_v18 = vsel %vm12050_vm2, %v2033_v11, %v2037_v10  ;;  %v10223_v45 = vcombine.low %v12363_v24, %v3076_v41  ;;  %v172_v57 = vmul.f32 %v10802_v53, %v12037_v34  ;;  %v12388_v46 = vadd.f32 %v12043_v35, %v171_v15  ;;  %11266 = vmatpush1.bf16.msra.mxu1 %v11763_v42  ;;  %v11649_v34 = vld [vmem:[%s14740_s1 + $0x150] sm:$0xff]  }
  0x6e   :  { %v10159_v8 = vcombine.low %v2028_v39, %v2038_v18  ;;  %v1835_v62 = vld [vmem:[#allocation2 + $0x3c] sm:$0xf]  ;;  %v12382_v55 = vpack.c.bf16 %v303_v22, %v303_v22  ;;  %v10806_v14 = vunpack.c.h.bf16 %v12324_v56  ;;  %v761_v17 = vor.u32 %v759_v36, %v758_v47  ;;  %11251 = vmatprep.subr.bf16.mxu1 %v11780_v0  ;;  %v1350_v18 = vld [vmem:[#allocation2 + $0x54] sm:$0xf] }
  0x6f   :  { %v2040_v51 = vshrl.u32 %v1835_v62, 16  ;;  %v2043_v58 = vshll.u32 %v1835_v62, 16  ;;  %v763_v19 = vrot.slane %v758_v47, 4  ;;  %v2862_v38 = vld [vmem:[#allocation2 + $0x3c] sm:$0xe]  ;;  %v1344_v35 = vsel %vm12129_vm13, %v753_v37, %v1343_v52  ;;  %8666 = vmatpush1.bf16.msra.mxu0 %v11649_v34 }
  0x70   :  { %8131 = vmatprep.mubr.bf16.mxu1 %v10159_v8  ;;  %v10192_v9 = vrot.slane %v2862_v38, 9  ;;  %v304_v53 = vmax.f32 %v12340_v44, 0.0  ;;  %v765_v59 = vshrl.u32 %v12382_v55, 16  ;;  %v11643_v60 = vld [vmem:[#allocation2 + $0x3c] sm:$0xff]   ;;  %v762_v10 = vsel %vm12118_vm12, %v754_v30, %v761_v17  ;;  %1345 = vst [vmem:[#allocation2 + $0x48] sm:$0xf] %v1344_v35  ;;  %8667 = vmatprep.subr.bf16.mxu0 %v11780_v0 }
  0x71   :  { %8132 = vmatmul.mubr.bf16.gmra.mrb[16].mxu1 %v11644_v4  ;;  %v1836_v49 = vld [vmem:[#allocation2 + $0x40] sm:$0xf]  ;;  %v2042_v61 = vrot.slane %v2040_v51, 4  ;;  %v1348_v63 = vsel %vm12109_vm11, %v763_v19, %v1347_v2  ;;  %v12412_v7 = vadd.f32 %v12409_v3, %v172_v57  ;;  %v1837_v44 = vld [vmem:[#allocation2 + $0x44] sm:$0x1]  ;;  %v2045_v13 = vrot.slane %v2043_v58, 5  ;;  %8420 = vmatprep.mubr.bf16.mxu0 %v11643_v60 }
  0x72   :  { %v2049_v15 = vshll.u32 %v1836_v49, 16  ;;  %v2053_v6 = vshrl.u32 %v1836_v49, 16  ;;  %1346 = vst [vmem:[#allocation2 + $0x4c] sm:$0xf] %v762_v10  ;;  %1349 = vst [vmem:[#allocation2 + $0x50] sm:$0x1] %v1348_v63  ;;  %v12418_v21 = vpack.c.bf16 %v304_v53, %v304_v53  ;;  %11267 = vmatpush1.bf16.msra.mxu1 %v12060_v48  ;;  %v12431_v50 = vmul.f32 %v12426_v26, %v10805_v54 }
  0x73   :  { %v2059_v31 = vshll.u32 %v1837_v44, 16  ;;  %v2863_v29 = vld [vmem:[#allocation2 + $0x40] sm:$0xf]  ;;  %v12421_v16 = vrot.slane %v765_v59, 7  ;;  %v12434_v23 = vmul.f32 %v12426_v26, %v10806_v14  ;;  %8421 = vmatmul.mubr.bf16.gmra.mrb[16].mxu0 %v10223_v45  ;;  %v2046_v48 = vor.u32 %v2045_v13, %v2042_v61  ;;  %v2864_v24 = vld [vmem:[#allocation2 + $0x44] sm:$0x1]  ;;  %11252 = vmatprep.subr.bf16.mxu1 %v11780_v0 }
  0x74   :  { %v2051_v12 = vrot.slane %v2049_v15, 5  ;;  %v2055_v11 = vrot.slane %v2053_v6, 4  ;;  %v3079_v25 = vrot.slane %v2863_v29, 5  ;;  %v3082_v5 = vrot.slane %v2864_v24, 5  ;;  %v11766_v4 = vld [vmem:[%s14740_s1 + $0xd8] sm:$0xff]   ;;  %8668 = vmatpush1.bf16.msra.mxu0 %v11650_v20  ;;  %v11653_v45 = vld [vmem:[%s14740_s1 + $0x160] sm:$0xff]  }
  0x75   :  { %v2061_v28 = vrot.slane %v2059_v31, 5  ;;  %v768_v30 = vshll.u32 %v12382_v55, 16  ;;  %v771_v56 = vrot.slane %v12421_v16, 4  ;;  %v2047_v54 = vrot.slane %v2046_v48, 4  ;;  %8669 = vmatprep.subr.bf16.mxu0 %v11780_v0  ;;  %v11648_v19 = vld [vmem:[#allocation2 + $0x3c] sm:$0xff]   ;;  %v11654_v63 = vld [vmem:[%s14740_s1 + $0x168] sm:$0xff]  }
  0x76   :  { %v2056_v33 = vor.u32 %v2055_v11, %v2051_v12  ;;  %v3080_v36 = vsel %vm12077_vm8, %v10192_v9, %v3079_v25  ;;  %v3081_v39 = vrot.slane %v3079_v25, 4  ;;  %11268 = vmatpush1.bf16.msra.mxu1 %v11766_v4  ;;  %v773_v22 = vshrl.u32 %v12418_v21, 16  ;;  %v1354_v53 = vld [vmem:[#allocation2 + $0x5c] sm:$0x1]  ;;  %v11767_v59 = vld [vmem:[%s14740_s1 + $0xe0] sm:$0xff]   ;;  %v12477_v6 = vld [vmem:[%s14741_s0 + $0x48] sm:$0xff]  }
  0x77   :  { %v770_v41 = vor.u32 %v768_v30, %v12421_v16  ;;  %v776_v8 = vshll.u32 %v12418_v21, 16  ;;  %v305_v37 = vmax.f32 %v12388_v46, 0.0  ;;  %11253 = vmatprep.subr.bf16.mxu1 %v11780_v0  ;;  %v2052_v47 = vsel %vm12050_vm2, %v2047_v54, %v2051_v12  ;;  %v1838_v62 = vld [vmem:[#allocation2 + $0x48] sm:$0xf] }
  0x78   :  { %v2057_v52 = vrot.slane %v2056_v33, 4  ;;  %v3083_v2 = vsel %vm12077_vm8, %v3081_v39, %v3082_v5  ;;  %v306_v55 = vmax.f32 %v12412_v7, 0.0  ;;  %v2064_v51 = vshrl.u32 %v1838_v62, 16  ;;  %8670 = vmatpush1.bf16.msra.mxu0 %v11653_v45  ;;  %v2865_v29 = vld [vmem:[#allocation2 + $0x48] sm:$0xe] }
  0x79   :  { %v11647_v57 = vld [vmem:[#allocation2 + $0x48] sm:$0xff]   ;;  %v10224_v14 = vcombine.low %v3080_v36, %v3083_v2  ;;  %v1351_v46 = vsel %vm12129_vm13, %v770_v41, %v1350_v18  ;;  %v12461_v58 = vpack.c.bf16 %v305_v37, %v305_v37  ;;  %v1840_v38 = vld [vmem:[#allocation2 + $0x50] sm:$0x1]  ;;  %v2067_v34 = vshll.u32 %v1838_v62, 16  ;;  %8671 = vmatprep.subr.bf16.mxu0 %v11780_v0  ;;  %v1357_v41 = vld [vmem:[#allocation2 + $0x60] sm:$0xf] }
  0x7a   :  { %v1839_v42 = vld [vmem:[#allocation2 + $0x4c] sm:$0xf]  ;;  %v2062_v17 = vsel %vm12050_vm2, %v2057_v52, %v2061_v28  ;;  %1352 = vst [vmem:[#allocation2 + $0x54] sm:$0xf] %v1351_v46  ;;  %11269 = vmatpush1.bf16.msra.mxu1 %v11767_v59  ;;  %8428 = vmatprep.mubr.bf16.mxu0 %v11647_v57  ;;  %v2066_v49 = vrot.slane %v2064_v51, 4  ;;  %v2083_v61 = vshll.u32 %v1840_v38, 16  ;;  %v12472_v15 = vpack.c.bf16 %v306_v55, %v306_v55 }
  0x7b   :  { %v2073_v35 = vshll.u32 %v1839_v42, 16  ;;  %v2077_v9 = vshrl.u32 %v1839_v42, 16  ;;  %v10160_v60 = vcombine.low %v2052_v47, %v2062_v17  ;;  %v775_v10 = vrot.slane %v773_v22, 7  ;;  %8429 = vmatmul.mubr.bf16.gmra.mrb[20].mxu0 %v10224_v14  ;;  %v2866_v48 = vld [vmem:[#allocation2 + $0x4c] sm:$0xf]  ;;  %11254 = vmatprep.subr.bf16.mxu1 %v11780_v0  ;;  %v11657_v36 = vld [vmem:[%s14740_s1 + $0x170] sm:$0xff]  }
  0x7c   :  { %v2069_v7 = vrot.slane %v2067_v34, 5  ;;  %v2085_v20 = vrot.slane %v2083_v61, 5  ;;  %v12481_v12 = vadd.f32 %v12409_v3, %v12431_v50  ;;  %v2867_v25 = vld [vmem:[#allocation2 + $0x50] sm:$0x1]  ;;  %v10193_v28 = vrot.slane %v2865_v29, 9  ;;  %8672 = vmatpush1.bf16.msra.mxu0 %v11654_v63  ;;  %v11768_v39 = vld [vmem:[%s14740_s1 + $0xe8] sm:$0xff]  }
  0x7d   :  { %v2075_v44 = vrot.slane %v2073_v35, 5  ;;  %v2079_v13 = vrot.slane %v2077_v9, 4  ;;  %8139 = vmatprep.mubr.bf16.mxu1 %v10160_v60  ;;  %v778_v21 = vor.u32 %v776_v8, %v775_v10  ;;  %v780_v31 = vrot.slane %v775_v10, 4  ;;  %8673 = vmatprep.subr.bf16.mxu0 %v11780_v0  ;;  %v12502_v22 = vld [vmem:[#allocation2 + $0xc] sm:$0xe]  ;;  %v11769_v35 = vld [vmem:[%s14740_s1 + $0xf0] sm:$0xff]  }
  0x7e   :  { %8140 = vmatmul.mubr.bf16.gmra.mrb[20].mxu1 %v11648_v19  ;;  %v2070_v11 = vor.u32 %v2069_v7, %v2066_v49  ;;  %v3086_v5 = vrot.slane %v2866_v48, 5  ;;  %v3089_v54 = vrot.slane %v2867_v25, 5  ;;  %v782_v50 = vshrl.u32 %v12461_v58, 16  ;;  %v12508_v47 = vld [vmem:[#allocation2 + $0x10] sm:$0xf]  ;;  %v11652_v57 = vld [vmem:[#allocation2 + $0x48] sm:$0xff]  }
  0x7f   :  { %v2080_v24 = vor.u32 %v2079_v13, %v2075_v44  ;;  %v779_v30 = vsel %vm12118_vm12, %v771_v56, %v778_v21  ;;  %v1355_v33 = vsel %vm12109_vm11, %v780_v31, %v1354_v53  ;;  %11270 = vmatpush1.bf16.msra.mxu1 %v11768_v39  ;;  %v785_v37 = vshll.u32 %v12461_v58, 16  ;;  %v11658_v19 = vld [vmem:[%s14740_s1 + $0x178] sm:$0xff]   ;;  %v12528_v38 = vld [vmem:[#allocation2 + $0x14] sm:$0x1]  ;;  %v12530_v34 = vld [vmem:[#allocation2 + $0xc] sm:$0xf] }
  0x80   :  { %v2071_v16 = vrot.slane %v2070_v11, 4  ;;  %1353 = vst [vmem:[#allocation2 + $0x58] sm:$0xf] %v779_v30  ;;  %v12499_v56 = vsel %vm12077_vm8, %v10193_v28, %v3086_v5  ;;  %v3088_v4 = vrot.slane %v3086_v5, 4  ;;  %1356 = vst [vmem:[#allocation2 + $0x5c] sm:$0x1] %v1355_v33  ;;  %11255 = vmatprep.subr.bf16.mxu1 %v11780_v0  ;;  %v12512_v52 = vadd.f32 %v12409_v3, %v12434_v23 }
  0x81   :  { %v2081_v18 = vrot.slane %v2080_v24, 4  ;;  %v1841_v8 = vld [vmem:[#allocation2 + $0x54] sm:$0xf]  ;;  %v12505_v45 = vrot.slane %v782_v50, 7  ;;  %v10809_v2 = vunpack.c.l.bf16 %v12477_v6  ;;  %8674 = vmatpush1.bf16.msra.mxu0 %v11657_v36  ;;  %v790_v59 = vshrl.u32 %v12472_v15, 16  ;;  %v11770_v25 = vld [vmem:[%s14740_s1 + $0xf8] sm:$0xff]  }
  0x82   :  { %v2076_v62 = vsel %vm12050_vm2, %v2071_v16, %v2075_v44  ;;  %v3090_v14 = vsel %vm12077_vm8, %v3088_v4, %v3089_v54  ;;  %v2088_v42 = vshrl.u32 %v1841_v8, 16  ;;  %v12521_v51 = vld [vmem:[#allocation2 + $0x54] sm:$0xe]  ;;  %v2091_v23 = vshll.u32 %v1841_v8, 16  ;;  %8675 = vmatprep.subr.bf16.mxu0 %v11780_v0  ;;  %v1361_v44 = vld [vmem:[#allocation2 + $0x68] sm:$0x1] }
  0x83   :  { %v2086_v55 = vsel %vm12050_vm2, %v2081_v18, %v2085_v20  ;;  %v10225_v58 = vcombine.low %v12499_v56, %v3090_v14  ;;  %v787_v17 = vor.u32 %v785_v37, %v12505_v45  ;;  %11271 = vmatpush1.bf16.msra.mxu1 %v11769_v35  ;;  %v788_v53 = vrot.slane %v12505_v45, 4  ;;  %v12564_v8 = vld [vmem:[%s14741_s0 + $0x50] sm:$0xff]  }
  0x84   :  { %v10161_v46 = vcombine.low %v2076_v62, %v2086_v55  ;;  %v2090_v9 = vrot.slane %v2088_v42, 4  ;;  %v793_v60 = vshll.u32 %v12472_v15, 16  ;;  %11256 = vmatprep.subr.bf16.mxu1 %v11780_v0  ;;  %v2093_v49 = vrot.slane %v2091_v23, 5  ;;  %v3715_v42 = vld [vmem:[#allocation2 + $0x10] sm:$0xf] }
  0x85   :  { %v1358_v61 = vsel %vm12129_vm13, %v787_v17, %v1357_v41  ;;  %v10194_v10 = vrot.slane %v12521_v51, 9  ;;  %v10315_v63 = vrot.slane %v12502_v22, 9  ;;  %v792_v7 = vrot.slane %v790_v59, 7  ;;  %8676 = vmatpush1.bf16.msra.mxu0 %v11658_v19 }
  0x86   :  { %8147 = vmatprep.mubr.bf16.mxu1 %v10161_v46  ;;  %1359 = vst [vmem:[#allocation2 + $0x60] sm:$0xf] %v1358_v61  ;;  %v4932_v13 = vrot.slane %v12508_v47, 5  ;;  %v4935_v15 = vrot.slane %v12528_v38, 5  ;;  %v3811_v20 = vshrl.u32 %v12530_v34, 16  ;;  %v2094_v29 = vor.u32 %v2093_v49, %v2090_v9  ;;  %8934 = vmatprep.subr.bf16.mxu0 %v11780_v0 }
  0x87   :  { %8148 = vmatmul.mubr.bf16.gmra.mrb[24].mxu1 %v11652_v57  ;;  %v11651_v21 = vld [vmem:[#allocation2 + $0x54] sm:$0xff]   ;;  %v3814_v48 = vshll.u32 %v12530_v34, 16  ;;  %v10810_v11 = vunpack.c.h.bf16 %v12477_v6  ;;  %v175_v24 = vmul.f32 %v12426_v26, %v10809_v2  ;;  %v1843_v28 = vld [vmem:[#allocation2 + $0x5c] sm:$0x1]  ;;  %v795_v54 = vor.u32 %v793_v60, %v792_v7 }
  0x88   :  { %v1842_v31 = vld [vmem:[#allocation2 + $0x58] sm:$0xf]  ;;  %11272 = vmatpush1.bf16.msra.mxu1 %v11770_v25  ;;  %v797_v33 = vrot.slane %v792_v7, 4  ;;  %8436 = vmatprep.mubr.bf16.mxu0 %v11651_v21  ;;  %v2095_v50 = vrot.slane %v2094_v29, 4  ;;  %v2107_v36 = vshll.u32 %v1843_v28, 16  ;;  %v12556_v6 = vsel %vm12077_vm8, %v10315_v63, %v4932_v13 }
  0x89   :  { %v2097_v5 = vshll.u32 %v1842_v31, 16  ;;  %v2101_v30 = vshrl.u32 %v1842_v31, 16  ;;  %v2869_v39 = vld [vmem:[#allocation2 + $0x58] sm:$0xf]  ;;  %v176_v16 = vmul.f32 %v12426_v26, %v10810_v11  ;;  %8437 = vmatmul.mubr.bf16.gmra.mrb[24].mxu0 %v10225_v58  ;;  %v796_v4 = vsel %vm12118_vm12, %v788_v53, %v795_v54  ;;  %v2870_v41 = vld [vmem:[#allocation2 + $0x5c] sm:$0x1] }
  0x8a   :  { %v3093_v22 = vrot.slane %v2869_v39, 5  ;;  %v2109_v45 = vrot.slane %v2107_v36, 5  ;;  %1360 = vst [vmem:[#allocation2 + $0x64] sm:$0xf] %v796_v4  ;;  %v3096_v37 = vrot.slane %v2870_v41, 5  ;;  %v1362_v47 = vsel %vm12109_vm11, %v797_v33, %v1361_v44 }
  0x8b   :  { %v2099_v18 = vrot.slane %v2097_v5, 5  ;;  %v2103_v56 = vrot.slane %v2101_v30, 4  ;;  %v4934_v2 = vrot.slane %v4932_v13, 4  ;;  %1363 = vst [vmem:[#allocation2 + $0x68] sm:$0x1] %v1362_v47  ;;  %v12575_v58 = vadd.f32 %v12409_v3, %v175_v24  ;;  %v12589_v13 = vld [vmem:[%s14741_s0 + $0x58] sm:$0xff]  }
  0x8c   :  { %v3094_v57 = vsel %vm12077_vm8, %v10194_v10, %v3093_v22  ;;  %v3095_v14 = vrot.slane %v3093_v22, 4  ;;  %v12578_v23 = vadd.f32 %v12409_v3, %v176_v16  ;;  %v10813_v17 = vunpack.c.l.bf16 %v12564_v8  ;;  %v3716_v9 = vld [vmem:[#allocation2 + $0x14] sm:$0x1]  ;;  %v4741_v25 = vld [vmem:[#allocation2 + $0x18] sm:$0xe] }
  0x8d   :  { %v2100_v62 = vsel %vm12050_vm2, %v2095_v50, %v2099_v18  ;;  %v2104_v55 = vor.u32 %v2103_v56, %v2099_v18  ;;  %v1844_v51 = vld [vmem:[#allocation2 + $0x60] sm:$0xf]  ;;  %v4936_v46 = vsel %vm12077_vm8, %v4934_v2, %v4935_v15  ;;  %v3813_v60 = vrot.slane %v3811_v20, 4  ;;  %v11656_v10 = vld [vmem:[#allocation2 + $0x54] sm:$0xff]   ;;  %v4742_v50 = vld [vmem:[#allocation2 + $0x1c] sm:$0xf] }
  0x8e   :  { %v3097_v38 = vsel %vm12077_vm8, %v3095_v14, %v3096_v37  ;;  %v2112_v34 = vshrl.u32 %v1844_v51, 16  ;;  %v2115_v35 = vshll.u32 %v1844_v51, 16  ;;  %v10347_v59 = vcombine.low %v12556_v6, %v4936_v46  ;;  %v4743_v4 = vld [vmem:[#allocation2 + $0x20] sm:$0x1] }
  0x8f   :  { %v2105_v19 = vrot.slane %v2104_v55, 4  ;;  %v10226_v53 = vcombine.low %v3094_v57, %v3097_v38  ;;  %v3816_v49 = vrot.slane %v3814_v48, 5  ;;  %v3820_v44 = vshll.u32 %v3715_v42, 16  ;;  %v3717_v57 = vld [vmem:[#allocation2 + $0x18] sm:$0xf] }
  0x90   :  { %v2114_v63 = vrot.slane %v2112_v34, 4  ;;  %v2117_v7 = vrot.slane %v2115_v35, 5  ;;  %v3824_v31 = vshrl.u32 %v3715_v42, 16  ;;  %v3830_v29 = vshll.u32 %v3716_v9, 16 }
  0x91   :  { %v2110_v61 = vsel %vm12050_vm2, %v2105_v19, %v2109_v45  ;;  %v3817_v21 = vor.u32 %v3816_v49, %v3813_v60  ;;  %v11655_v11 = vld [vmem:[#allocation2 + $0x60] sm:$0xff]   ;;  %v3822_v48 = vrot.slane %v3820_v44, 5  ;;  %v10814_v28 = vunpack.c.h.bf16 %v12564_v8  ;;  %v3723_v8 = vld [vmem:[#allocation2 + $0x30] sm:$0xf] }
  0x92   :  { %v10162_v15 = vcombine.low %v2100_v62, %v2110_v61  ;;  %v1845_v24 = vld [vmem:[#allocation2 + $0x64] sm:$0xf]  ;;  %v2118_v20 = vor.u32 %v2117_v7, %v2114_v63  ;;  %v12593_v5 = vmul.f32 %v12426_v26, %v10813_v17  ;;  %v1846_v30 = vld [vmem:[#allocation2 + $0x68] sm:$0x1]  ;;  %v10817_v36 = vunpack.c.l.bf16 %v12589_v13  ;;  %8444 = vmatprep.mubr.bf16.mxu0 %v11655_v11 }
  0x93   :  { %v2121_v54 = vshll.u32 %v1845_v24, 16  ;;  %v2125_v33 = vshrl.u32 %v1845_v24, 16  ;;  %v10818_v39 = vunpack.c.h.bf16 %v12589_v13  ;;  %v2131_v16 = vshll.u32 %v1846_v30, 16  ;;  %8445 = vmatmul.mubr.bf16.gmra.mrb[28].mxu0 %v10226_v53  ;;  %v11659_v7 = vld [vmem:[#allocation2 + $0x60] sm:$0xff]  }
  0x94   :  { %8155 = vmatprep.mubr.bf16.mxu1 %v10162_v15  ;;  %v2119_v6 = vrot.slane %v2118_v20, 4  ;;  %v3818_v18 = vrot.slane %v3817_v21, 4  ;;  %v3826_v56 = vrot.slane %v3824_v31, 4  ;;  %v3832_v45 = vrot.slane %v3830_v29, 5  ;;  %8677 = vmatprep.mubr.bf16.mxu0 %v10347_v59  ;;  %v1364_v21 = vld [vmem:[#allocation2 + $0x6c] sm:$0xf] }
  0x95   :  { %8156 = vmatmul.mubr.bf16.gmra.mrb[28].mxu1 %v11656_v10  ;;  %v2123_v41 = vrot.slane %v2121_v54, 5  ;;  %v2127_v22 = vrot.slane %v2125_v33, 4  ;;  %v307_v37 = vmax.f32 %v12481_v12, 0.0  ;;  %v2133_v47 = vrot.slane %v2131_v16, 5  ;;  %v3718_v10 = vld [vmem:[#allocation2 + $0x1c] sm:$0xf] }
  0x96   :  { %v3823_v2 = vsel %vm12050_vm2, %v3818_v18, %v3822_v48  ;;  %v3827_v62 = vor.u32 %v3826_v56, %v3822_v48  ;;  %v308_v55 = vmax.f32 %v12512_v52, 0.0  ;;  %v10316_v46 = vrot.slane %v4741_v25, 9  ;;  %v11660_v52 = vld [vmem:[%s14740_s1 + $0x180] sm:$0xff]   ;;  %v1368_v54 = vld [vmem:[#allocation2 + $0x74] sm:$0x1] }
  0x97   :  { %v2124_v14 = vsel %vm12050_vm2, %v2119_v6, %v2123_v41  ;;  %v2128_v42 = vor.u32 %v2127_v22, %v2123_v41  ;;  %v10659_v51 = vpack.c.bf16 %v307_v37, %v307_v37  ;;  %v4939_v38 = vrot.slane %v4742_v50, 5  ;;  %v3719_v24 = vld [vmem:[#allocation2 + $0x20] sm:$0x1]  ;;  %v11663_v6 = vld [vmem:[%s14740_s1 + $0x188] sm:$0xff]   ;;  %v4744_v41 = vld [vmem:[#allocation2 + $0x24] sm:$0xe] }
  0x98   :  { %v3828_v17 = vrot.slane %v3827_v62, 4  ;;  %v10660_v19 = vpack.c.bf16 %v308_v55, %v308_v55  ;;  %v4942_v34 = vrot.slane %v4743_v4, 5  ;;  %v3835_v53 = vshrl.u32 %v3717_v57, 16  ;;  %v4745_v22 = vld [vmem:[#allocation2 + $0x28] sm:$0xf] }
  0x99   :  { %v2129_v12 = vrot.slane %v2128_v42, 4  ;;  %v799_v35 = vshrl.u32 %v10659_v51, 16  ;;  %v802_v9 = vshll.u32 %v10659_v51, 16  ;;  %v4940_v61 = vsel %vm12077_vm8, %v10316_v46, %v4939_v38  ;;  %v4746_v62 = vld [vmem:[#allocation2 + $0x2c] sm:$0x1] }
  0x9a   :  { %v3833_v59 = vsel %vm12050_vm2, %v3828_v17, %v3832_v45  ;;  %v807_v60 = vshrl.u32 %v10660_v19, 16  ;;  %v810_v49 = vshll.u32 %v10660_v19, 16  ;;  %v4941_v31 = vrot.slane %v4939_v38, 4  ;;  %v3720_v51 = vld [vmem:[#allocation2 + $0x24] sm:$0xf] }
  0x9b   :  { %v2134_v63 = vsel %vm12050_vm2, %v2129_v12, %v2133_v47  ;;  %v10283_v44 = vcombine.low %v3823_v2, %v3833_v59  ;;  %v801_v15 = vrot.slane %v799_v35, 7  ;;  %v3837_v20 = vrot.slane %v3835_v53, 4  ;;  %v11666_v53 = vld [vmem:[%s14740_s1 + $0x190] sm:$0xff]   ;;  %v12698_v13 = vld [vmem:[%s14743_s3] ss:$0 sm:$0xff] }
  0x9c   :  { %v10163_v29 = vcombine.low %v2124_v14, %v2134_v63  ;;  %v809_v11 = vrot.slane %v807_v60, 7  ;;  %v3838_v48 = vshll.u32 %v3717_v57, 16  ;;  %v4943_v33 = vsel %vm12077_vm8, %v4941_v31, %v4942_v34 }
  0x9d   :  { %8678 = vmatmul.mubr.bf16.vlgmr.msra.gmra.mrb[0].mxu0 %v10283_v44  ;;  %v804_v25 = vor.u32 %v802_v9, %v801_v15  ;;  %v805_v30 = vrot.slane %v801_v15, 4  ;;  %v3844_v50 = vshll.u32 %v3718_v10, 16  ;;  %v10348_v56 = vcombine.low %v4940_v61, %v4943_v33  ;;  %v1375_v33 = vld [vmem:[#allocation2 + $0x80] sm:$0x1] }
  0x9e   :  { %8163 = vmatprep.mubr.bf16.mxu1 %v10163_v29  ;;  %8935 = vmatpush1.bf16.msra.mxu0 %v11660_v52  ;;  %v812_v16 = vor.u32 %v810_v49, %v809_v11  ;;  %v814_v18 = vrot.slane %v809_v11, 4  ;;  %v3840_v4 = vrot.slane %v3838_v48, 5  ;;  %v3848_v47 = vshrl.u32 %v3718_v10, 16  ;;  %v1371_v29 = vld [vmem:[#allocation2 + $0x78] sm:$0xf] }
  0x9f   :  { %8164 = vmatmul.mubr.bf16.gmra.mrb[32].mxu1 %v11659_v7  ;;  %v1365_v45 = vsel %vm12129_vm13, %v804_v25, %v1364_v21  ;;  %v3846_v37 = vrot.slane %v3844_v50, 5  ;;  %v3854_v2 = vshll.u32 %v3719_v24, 16  ;;  %8936 = vmatprep.subr.bf16.mxu0 %v11780_v0  ;;  %v309_v42 = vmax.f32 %v12575_v58, 0.0  ;;  %v3721_v58 = vld [vmem:[#allocation2 + $0x28] sm:$0xf]  ;;  %v11669_v48 = vld [vmem:[%s14740_s1 + $0x198] sm:$0xff]  }
  0xa0   :  { %v813_v55 = vsel %vm12118_vm12, %v805_v30, %v812_v16  ;;  %1366 = vst [vmem:[#allocation2 + $0x6c] sm:$0xf] %v1365_v45  ;;  %v1369_v57 = vsel %vm12109_vm11, %v814_v18, %v1368_v54  ;;  %8685 = vmatprep.mubr.bf16.mxu0 %v10348_v56  ;;  %v3841_v14 = vor.u32 %v3840_v4, %v3837_v20  ;;  %v3850_v46 = vrot.slane %v3848_v47, 4 }
  0xa1   :  { %1367 = vst [vmem:[#allocation2 + $0x70] sm:$0xf] %v813_v55  ;;  %1370 = vst [vmem:[#allocation2 + $0x74] sm:$0x1] %v1369_v57  ;;  %v3856_v17 = vrot.slane %v3854_v2, 5  ;;  %v310_v19 = vmax.f32 %v12578_v23, 0.0  ;;  %v10661_v12 = vpack.c.bf16 %v309_v42, %v309_v42 }
  0xa2   :  { %v10317_v38 = vrot.slane %v4744_v41, 9  ;;  %v3842_v34 = vrot.slane %v3841_v14, 4  ;;  %v4946_v35 = vrot.slane %v4745_v22, 5  ;;  %v4949_v9 = vrot.slane %v4746_v62, 5  ;;  %8937 = vmatpush1.bf16.msra.mxu0 %v11663_v6 }
  0xa3   :  { %v3851_v59 = vor.u32 %v3850_v46, %v3846_v37  ;;  %v10662_v52 = vpack.c.bf16 %v310_v19, %v310_v19  ;;  %v3859_v60 = vshrl.u32 %v3720_v51, 16  ;;  %v3862_v49 = vshll.u32 %v3720_v51, 16  ;;  %8938 = vmatprep.subr.bf16.mxu0 %v11780_v0  ;;  %v3722_v19 = vld [vmem:[#allocation2 + $0x2c] sm:$0x1] }
  0xa4   :  { %v3847_v23 = vsel %vm12050_vm2, %v3842_v34, %v3846_v37  ;;  %v816_v61 = vshrl.u32 %v10661_v12, 16  ;;  %v819_v10 = vshll.u32 %v10661_v12, 16  ;;  %v4947_v63 = vsel %vm12077_vm8, %v10317_v38, %v4946_v35  ;;  %v11672_v38 = vld [vmem:[%s14740_s1 + $0x1a0] sm:$0xff]  }
  0xa5   :  { %v3852_v7 = vrot.slane %v3851_v59, 4  ;;  %v824_v44 = vshrl.u32 %v10662_v52, 16  ;;  %v827_v15 = vshll.u32 %v10662_v52, 16  ;;  %v4948_v21 = vrot.slane %v4946_v35, 4 }
  0xa6   :  { %v818_v31 = vrot.slane %v816_v61, 7  ;;  %v3861_v11 = vrot.slane %v3859_v60, 4  ;;  %v3864_v24 = vrot.slane %v3862_v49, 5  ;;  %v3868_v20 = vshll.u32 %v3721_v58, 16  ;;  %8939 = vmatpush1.bf16.msra.mxu0 %v11666_v53  ;;  %v4747_v53 = vld [vmem:[#allocation2 + $0x30] sm:$0xe] }
  0xa7   :  { %v1847_v25 = vld [vmem:[#allocation2 + $0x6c] sm:$0xf]  ;;  %v3857_v30 = vsel %vm12050_vm2, %v3852_v7, %v3856_v17  ;;  %v826_v54 = vrot.slane %v824_v44, 7  ;;  %v4950_v50 = vsel %vm12077_vm8, %v4948_v21, %v4949_v9  ;;  %v3872_v6 = vshrl.u32 %v3721_v58, 16  ;;  %8940 = vmatprep.subr.bf16.mxu0 %v11780_v0  ;;  %v4748_v49 = vld [vmem:[#allocation2 + $0x34] sm:$0xf] }
  0xa8   :  { %v1848_v16 = vld [vmem:[#allocation2 + $0x70] sm:$0xf]  ;;  %v1849_v18 = vld [vmem:[#allocation2 + $0x74] sm:$0x1]  ;;  %v2136_v56 = vshrl.u32 %v1847_v25, 16  ;;  %v2139_v4 = vshll.u32 %v1847_v25, 16  ;;  %v10284_v41 = vcombine.low %v3847_v23, %v3857_v30  ;;  %v821_v22 = vor.u32 %v819_v10, %v818_v31 }
  0xa9   :  { %v2145_v45 = vshll.u32 %v1848_v16, 16  ;;  %v2149_v37 = vshrl.u32 %v1848_v16, 16  ;;  %v2155_v47 = vshll.u32 %v1849_v18, 16  ;;  %v829_v2 = vor.u32 %v827_v15, %v826_v54  ;;  %v4749_v21 = vld [vmem:[#allocation2 + $0x38] sm:$0x1] }
  0xaa   :  { %v2138_v62 = vrot.slane %v2136_v56, 4  ;;  %v2141_v55 = vrot.slane %v2139_v4, 5  ;;  %8686 = vmatmul.mubr.bf16.gmra.mrb[4].mxu0 %v10284_v41  ;;  %v822_v57 = vrot.slane %v818_v31, 4  ;;  %v831_v14 = vrot.slane %v826_v54, 4 }
  0xab   :  { %v2147_v42 = vrot.slane %v2145_v45, 5  ;;  %v2151_v51 = vrot.slane %v2149_v37, 4  ;;  %v2157_v46 = vrot.slane %v2155_v47, 5  ;;  %v1372_v17 = vsel %vm12129_vm13, %v821_v22, %v1371_v29  ;;  %8941 = vmatpush1.bf16.msra.mxu0 %v11669_v48 }
  0xac   :  { %v2142_v34 = vor.u32 %v2141_v55, %v2138_v62  ;;  %v830_v12 = vsel %vm12118_vm12, %v822_v57, %v829_v2  ;;  %1373 = vst [vmem:[#allocation2 + $0x78] sm:$0xf] %v1372_v17  ;;  %v1376_v35 = vsel %vm12109_vm11, %v831_v14, %v1375_v33  ;;  %v10349_v9 = vcombine.low %v4947_v63, %v4950_v50 }
  0xad   :  { %8942 = vmatprep.subr.bf16.mxu0 %v11780_v0  ;;  %v2152_v59 = vor.u32 %v2151_v51, %v2147_v42  ;;  %1374 = vst [vmem:[#allocation2 + $0x7c] sm:$0xf] %v830_v12  ;;  %1377 = vst [vmem:[#allocation2 + $0x80] sm:$0x1] %v1376_v35  ;;  %v3865_v52 = vor.u32 %v3864_v24, %v3861_v11  ;;  %v3870_v58 = vrot.slane %v3868_v20, 5  ;;  %v3874_v60 = vrot.slane %v3872_v6, 4 }
  0xae   :  { %v2143_v23 = vrot.slane %v2142_v34, 4  ;;  %8693 = vmatprep.mubr.bf16.mxu0 %v10349_v9  ;;  %v3878_v61 = vshll.u32 %v3722_v19, 16  ;;  %v178_v10 = vmul.f32 %v12426_v26, %v10814_v28  ;;  %v247_v63 = vadd.f32 %v12409_v3, %v12593_v5  ;;  %v11661_v11 = vld [vmem:[#allocation2 + $0x6c] sm:$0xff]   ;;  %v3724_v9 = vld [vmem:[#allocation2 + $0x34] sm:$0xf] }
  0xaf   :  { %v2153_v7 = vrot.slane %v2152_v59, 4  ;;  %v3866_v44 = vrot.slane %v3865_v52, 4  ;;  %v3875_v15 = vor.u32 %v3874_v60, %v3870_v58  ;;  %v10318_v31 = vrot.slane %v4747_v53, 9  ;;  %8943 = vmatpush1.bf16.msra.mxu0 %v11672_v38  ;;  %v1382_v60 = vld [vmem:[#allocation2 + $0x8c] sm:$0x1] }
  0xb0   :  { %v2148_v29 = vsel %vm12050_vm2, %v2143_v23, %v2147_v42  ;;  %v3880_v24 = vrot.slane %v3878_v61, 5  ;;  %v248_v20 = vadd.f32 %v12409_v3, %v178_v10  ;;  %v311_v48 = vmax.f32 %v247_v63, 0.0  ;;  %8944 = vmatprep.subr.bf16.mxu0 %v11780_v0  ;;  %v3725_v10 = vld [vmem:[#allocation2 + $0x38] sm:$0x1] }
  0xb1   :  { %v2158_v28 = vsel %vm12050_vm2, %v2153_v7, %v2157_v46  ;;  %v3871_v5 = vsel %vm12050_vm2, %v3866_v44, %v3870_v58  ;;  %v3876_v25 = vrot.slane %v3875_v15, 4  ;;  %v4953_v30 = vrot.slane %v4748_v49, 5  ;;  %v1378_v58 = vld [vmem:[#allocation2 + $0x84] sm:$0xf] }
  0xb2   :  { %v10164_v54 = vcombine.low %v2148_v29, %v2158_v28  ;;  %v312_v33 = vmax.f32 %v248_v20, 0.0  ;;  %v10663_v50 = vpack.c.bf16 %v311_v48, %v311_v48  ;;  %v4956_v6 = vrot.slane %v4749_v21, 5  ;;  %v4750_v29 = vld [vmem:[#allocation2 + $0x3c] sm:$0xe]  ;;  %v4751_v28 = vld [vmem:[#allocation2 + $0x40] sm:$0xf] }
  0xb3   :  { %v1850_v16 = vld [vmem:[#allocation2 + $0x78] sm:$0xf]  ;;  %v3881_v18 = vsel %vm12050_vm2, %v3876_v25, %v3880_v24  ;;  %v4954_v56 = vsel %vm12077_vm8, %v10318_v31, %v4953_v30  ;;  %v4955_v4 = vrot.slane %v4953_v30, 4  ;;  %v3883_v41 = vshrl.u32 %v3723_v8, 16 }
  0xb4   :  { %8171 = vmatprep.mubr.bf16.mxu1 %v10164_v54  ;;  %v1851_v22 = vld [vmem:[#allocation2 + $0x7c] sm:$0xf]  ;;  %v1852_v45 = vld [vmem:[#allocation2 + $0x80] sm:$0x1]  ;;  %v2160_v37 = vshrl.u32 %v1850_v16, 16  ;;  %v2163_v47 = vshll.u32 %v1850_v16, 16  ;;  %v10285_v2 = vcombine.low %v3871_v5, %v3881_v18  ;;  %v10664_v62 = vpack.c.bf16 %v312_v33, %v312_v33 }
  0xb5   :  { %8172 = vmatmul.mubr.bf16.gmra.mrb[36].mxu1 %v11661_v11  ;;  %v2169_v55 = vshll.u32 %v1851_v22, 16  ;;  %v2173_v57 = vshrl.u32 %v1851_v22, 16  ;;  %v2179_v14 = vshll.u32 %v1852_v45, 16  ;;  %v4957_v42 = vsel %vm12077_vm8, %v4955_v4, %v4956_v6 }
  0xb6   :  { %v2162_v51 = vrot.slane %v2160_v37, 4  ;;  %v2165_v46 = vrot.slane %v2163_v47, 5  ;;  %8694 = vmatmul.mubr.bf16.gmra.mrb[8].mxu0 %v10285_v2  ;;  %v833_v17 = vshrl.u32 %v10663_v50, 16  ;;  %v836_v19 = vshll.u32 %v10663_v50, 16  ;;  %v11662_v50 = vld [vmem:[#allocation2 + $0x78] sm:$0xff]   ;;  %v11675_v37 = vld [vmem:[%s14740_s1 + $0x1a8] sm:$0xff]  }
  0xb7   :  { %v2171_v38 = vrot.slane %v2169_v55, 5  ;;  %v2175_v34 = vrot.slane %v2173_v57, 4  ;;  %v2181_v12 = vrot.slane %v2179_v14, 5  ;;  %v841_v35 = vshrl.u32 %v10664_v62, 16  ;;  %8945 = vmatpush1.bf16.msra.mxu0 %v11675_v37 }
  0xb8   :  { %v2166_v53 = vor.u32 %v2165_v46, %v2162_v51  ;;  %v835_v59 = vrot.slane %v833_v17, 7  ;;  %v844_v52 = vshll.u32 %v10664_v62, 16  ;;  %v10350_v49 = vcombine.low %v4954_v56, %v4957_v42  ;;  %v12681_v56 = vld [vmem:[#allocation2 + $0x3c] sm:$0xf]  ;;  %v3727_v46 = vld [vmem:[#allocation2 + $0x40] sm:$0xf]  ;;  %8946 = vmatprep.subr.bf16.mxu0 %v11780_v0 }
  0xb9   :  { %v2176_v23 = vor.u32 %v2175_v34, %v2171_v38  ;;  %v843_v61 = vrot.slane %v841_v35, 7  ;;  %v3885_v63 = vrot.slane %v3883_v41, 4  ;;  %v3886_v7 = vshll.u32 %v3723_v8, 16  ;;  %v4752_v8 = vld [vmem:[#allocation2 + $0x44] sm:$0x1] }
  0xba   :  { %v2167_v44 = vrot.slane %v2166_v53, 4  ;;  %v838_v15 = vor.u32 %v836_v19, %v835_v59  ;;  %v839_v21 = vrot.slane %v835_v59, 4  ;;  %8701 = vmatprep.mubr.bf16.mxu0 %v10350_v49  ;;  %v3892_v31 = vshll.u32 %v3724_v9, 16  ;;  %v12711_v59 = vld [vmem:[%s14741_s0 + $0x60] sm:$0xff]  }
  0xbb   :  { %v2177_v11 = vrot.slane %v2176_v23, 4  ;;  %v846_v24 = vor.u32 %v844_v52, %v843_v61  ;;  %v848_v20 = vrot.slane %v843_v61, 4  ;;  %v3888_v48 = vrot.slane %v3886_v7, 5 }
  0xbc   :  { %v2172_v5 = vsel %vm12050_vm2, %v2167_v44, %v2171_v38  ;;  %v1379_v25 = vsel %vm12129_vm13, %v838_v15, %v1378_v58  ;;  %v3894_v30 = vrot.slane %v3892_v31, 5  ;;  %v3896_v54 = vshrl.u32 %v3724_v9, 16 }
  0xbd   :  { %v2182_v33 = vsel %vm12050_vm2, %v2177_v11, %v2181_v12  ;;  %v847_v6 = vsel %vm12118_vm12, %v839_v21, %v846_v24  ;;  %1380 = vst [vmem:[#allocation2 + $0x84] sm:$0xf] %v1379_v25  ;;  %v1383_v16 = vsel %vm12109_vm11, %v848_v20, %v1382_v60  ;;  %v3889_v18 = vor.u32 %v3888_v48, %v3885_v63 }
  0xbe   :  { %v10165_v4 = vcombine.low %v2172_v5, %v2182_v33  ;;  %1381 = vst [vmem:[#allocation2 + $0x88] sm:$0xf] %v847_v6  ;;  %1384 = vst [vmem:[#allocation2 + $0x8c] sm:$0x1] %v1383_v16  ;;  %v3898_v41 = vrot.slane %v3896_v54, 4  ;;  %v3902_v22 = vshll.u32 %v3725_v10, 16  ;;  %v179_v45 = vmul.f32 %v12426_v26, %v10817_v36 }
  0xbf   :  { %v3890_v47 = vrot.slane %v3889_v18, 4  ;;  %v180_v2 = vmul.f32 %v12426_v26, %v10818_v39  ;;  %v10319_v62 = vrot.slane %v4750_v29, 9  ;;  %v4960_v55 = vrot.slane %v4751_v28, 5  ;;  %v1389_v16 = vld [vmem:[#allocation2 + $0x98] sm:$0x1] }
  0xc0   :  { %8179 = vmatprep.mubr.bf16.mxu1 %v10165_v4  ;;  %v3899_v57 = vor.u32 %v3898_v41, %v3894_v30  ;;  %v3904_v14 = vrot.slane %v3902_v22, 5  ;;  %v249_v42 = vadd.f32 %v12409_v3, %v179_v45  ;;  %v4963_v51 = vrot.slane %v4752_v8, 5  ;;  %v1385_v8 = vld [vmem:[#allocation2 + $0x90] sm:$0xf]  ;;  %v3728_v41 = vld [vmem:[#allocation2 + $0x44] sm:$0x1] }
  0xc1   :  { %8180 = vmatmul.mubr.bf16.gmra.mrb[40].mxu1 %v11662_v50  ;;  %v3895_v36 = vsel %vm12050_vm2, %v3890_v47, %v3894_v30  ;;  %v250_v26 = vadd.f32 %v12698_v13, %v180_v2  ;;  %v4961_v39 = vsel %vm12077_vm8, %v10319_v62, %v4960_v55  ;;  %v4962_v17 = vrot.slane %v4960_v55, 4  ;;  %v4753_v55 = vld [vmem:[#allocation2 + $0x48] sm:$0xe] }
  0xc2   :  { %v3900_v3 = vrot.slane %v3899_v57, 4  ;;  %v313_v19 = vmax.f32 %v249_v42, 0.0  ;;  %v3907_v38 = vshrl.u32 %v12681_v56, 16  ;;  %v3910_v34 = vshll.u32 %v12681_v56, 16  ;;  %v4754_v57 = vld [vmem:[#allocation2 + $0x4c] sm:$0xf] }
  0xc3   :  { %v314_v12 = vmax.f32 %v250_v26, 0.0  ;;  %v4964_v35 = vsel %vm12077_vm8, %v4962_v17, %v4963_v51  ;;  %v3916_v9 = vshll.u32 %v3727_v46, 16  ;;  %v3920_v53 = vshrl.u32 %v3727_v46, 16  ;;  %v3729_v26 = vld [vmem:[#allocation2 + $0x48] sm:$0xf] }
  0xc4   :  { %v1853_v52 = vld [vmem:[#allocation2 + $0x84] sm:$0xf]  ;;  %v3905_v58 = vsel %vm12050_vm2, %v3900_v3, %v3904_v14  ;;  %v10665_v60 = vpack.c.bf16 %v313_v19, %v313_v19  ;;  %v10351_v49 = vcombine.low %v4961_v39, %v4964_v35  ;;  %v3909_v23 = vrot.slane %v3907_v38, 4 }
  0xc5   :  { %v1854_v61 = vld [vmem:[#allocation2 + $0x88] sm:$0xf]  ;;  %v1855_v10 = vld [vmem:[#allocation2 + $0x8c] sm:$0x1]  ;;  %v2184_v63 = vshrl.u32 %v1853_v52, 16  ;;  %v2187_v7 = vshll.u32 %v1853_v52, 16  ;;  %v10286_v44 = vcombine.low %v3895_v36, %v3905_v58  ;;  %v10666_v15 = vpack.c.bf16 %v314_v12, %v314_v12 }
  0xc6   :  { %v2193_v21 = vshll.u32 %v1854_v61, 16  ;;  %v2197_v31 = vshrl.u32 %v1854_v61, 16  ;;  %v2203_v29 = vshll.u32 %v1855_v10, 16  ;;  %v10821_v11 = vunpack.c.l.bf16 %v12711_v59  ;;  %v4755_v36 = vld [vmem:[#allocation2 + $0x50] sm:$0x1] }
  0xc7   :  { %v2186_v24 = vrot.slane %v2184_v63, 4  ;;  %v2189_v20 = vrot.slane %v2187_v7, 5  ;;  %8702 = vmatmul.mubr.bf16.gmra.mrb[12].mxu0 %v10286_v44  ;;  %v850_v48 = vshrl.u32 %v10665_v60, 16  ;;  %v853_v28 = vshll.u32 %v10665_v60, 16  ;;  %v12734_v61 = vld [vmem:[%s14742_s2] ss:$0 sm:$0xff] }
  0xc8   :  { %v2195_v5 = vrot.slane %v2193_v21, 5  ;;  %v2199_v25 = vrot.slane %v2197_v31, 4  ;;  %v2205_v30 = vrot.slane %v2203_v29, 5  ;;  %v858_v54 = vshrl.u32 %v10666_v15, 16  ;;  %8709 = vmatprep.mubr.bf16.mxu0 %v10351_v49 }
  0xc9   :  { %v2190_v33 = vor.u32 %v2189_v20, %v2186_v24  ;;  %v852_v50 = vrot.slane %v850_v48, 7  ;;  %v861_v6 = vshll.u32 %v10666_v15, 16  ;;  %v3912_v18 = vrot.slane %v3910_v34, 5  ;;  %v11664_v34 = vld [vmem:[#allocation2 + $0x84] sm:$0xff]  }
  0xca   :  { %v2200_v56 = vor.u32 %v2199_v25, %v2195_v5  ;;  %v860_v4 = vrot.slane %v858_v54, 7  ;;  %v3918_v22 = vrot.slane %v3916_v9, 5  ;;  %v3922_v45 = vrot.slane %v3920_v53, 4  ;;  %v12726_v53 = vld [vmem:[#allocation2 + $0x4c] sm:$0xf] }
  0xcb   :  { %v2191_v37 = vrot.slane %v2190_v33, 4  ;;  %v855_v47 = vor.u32 %v853_v28, %v852_v50  ;;  %v856_v2 = vrot.slane %v852_v50, 4  ;;  %v3913_v62 = vor.u32 %v3912_v18, %v3909_v23  ;;  %v3731_v23 = vld [vmem:[#allocation2 + $0x50] sm:$0x1] }
  0xcc   :  { %v2201_v14 = vrot.slane %v2200_v56, 4  ;;  %v863_v42 = vor.u32 %v861_v6, %v860_v4  ;;  %v865_v51 = vrot.slane %v860_v4, 4  ;;  %v3923_v46 = vor.u32 %v3922_v45, %v3918_v22 }
  0xcd   :  { %v2196_v39 = vsel %vm12050_vm2, %v2191_v37, %v2195_v5  ;;  %v1386_v17 = vsel %vm12129_vm13, %v855_v47, %v1385_v8  ;;  %v3914_v3 = vrot.slane %v3913_v62, 4  ;;  %v3926_v19 = vshll.u32 %v3728_v41, 16 }
  0xce   :  { %v2206_v38 = vsel %vm12050_vm2, %v2201_v14, %v2205_v30  ;;  %v864_v12 = vsel %vm12118_vm12, %v856_v2, %v863_v42  ;;  %1387 = vst [vmem:[#allocation2 + $0x90] sm:$0xf] %v1386_v17  ;;  %v1390_v35 = vsel %vm12109_vm11, %v865_v51, %v1389_v16  ;;  %v3924_v9 = vrot.slane %v3923_v46, 4  ;;  %v12748_v30 = vld [vmem:[%s14741_s0 + $0x68] sm:$0xff]  }
  0xcf   :  { %v10166_v52 = vcombine.low %v2196_v39, %v2206_v38  ;;  %1388 = vst [vmem:[#allocation2 + $0x94] sm:$0xf] %v864_v12  ;;  %1391 = vst [vmem:[#allocation2 + $0x98] sm:$0x1] %v1390_v35  ;;  %v3919_v58 = vsel %vm12050_vm2, %v3914_v3, %v3918_v22  ;;  %v3928_v60 = vrot.slane %v3926_v19, 5  ;;  %v10822_v49 = vunpack.c.h.bf16 %v12711_v59 }
  0xd0   :  { %v181_v10 = vmul.f32 %v12734_v61, %v10821_v11  ;;  %v10320_v63 = vrot.slane %v4753_v55, 9  ;;  %v4967_v7 = vrot.slane %v4754_v57, 5  ;;  %v4970_v44 = vrot.slane %v4755_v36, 5  ;;  %v1392_v12 = vld [vmem:[#allocation2 + $0x9c] sm:$0xf] }
  0xd1   :  { %8187 = vmatprep.mubr.bf16.mxu1 %v10166_v52  ;;  %v3929_v15 = vsel %vm12050_vm2, %v3924_v9, %v3928_v60  ;;  %v182_v21 = vmul.f32 %v12734_v61, %v10822_v49  ;;  %v3931_v31 = vshrl.u32 %v3729_v26, 16  ;;  %v3934_v29 = vshll.u32 %v3729_v26, 16  ;;  %v1396_v52 = vld [vmem:[#allocation2 + $0xa4] sm:$0x1] }
  0xd2   :  { %8188 = vmatmul.mubr.bf16.gmra.mrb[44].mxu1 %v11664_v34  ;;  %v10287_v59 = vcombine.low %v3919_v58, %v3929_v15  ;;  %v251_v24 = vadd.f32 %v12698_v13, %v181_v10  ;;  %v4968_v20 = vsel %vm12077_vm8, %v10320_v63, %v4967_v7  ;;  %v4969_v48 = vrot.slane %v4967_v7, 4  ;;  %v4756_v7 = vld [vmem:[#allocation2 + $0x54] sm:$0xe] }
  0xd3   :  { %v252_v11 = vadd.f32 %v12698_v13, %v182_v21  ;;  %v3933_v28 = vrot.slane %v3931_v31, 4  ;;  %v3936_v5 = vrot.slane %v3934_v29, 5  ;;  %v3940_v25 = vshll.u32 %v12726_v53, 16 }
  0xd4   :  { %8710 = vmatmul.mubr.bf16.gmra.mrb[16].mxu0 %v10287_v59  ;;  %v315_v54 = vmax.f32 %v251_v24, 0.0  ;;  %v4971_v8 = vsel %vm12077_vm8, %v4969_v48, %v4970_v44  ;;  %v3944_v33 = vshrl.u32 %v12726_v53, 16  ;;  %v3950_v50 = vshll.u32 %v3731_v23, 16  ;;  %v4757_v44 = vld [vmem:[#allocation2 + $0x58] sm:$0xf] }
  0xd5   :  { %v1856_v6 = vld [vmem:[#allocation2 + $0x90] sm:$0xf]  ;;  %v316_v16 = vmax.f32 %v252_v11, 0.0  ;;  %v10352_v18 = vcombine.low %v4968_v20, %v4971_v8  ;;  %v3937_v56 = vor.u32 %v3936_v5, %v3933_v28  ;;  %v12753_v4 = vrot.slane %v3940_v25, 5  ;;  %v4758_v59 = vld [vmem:[#allocation2 + $0x5c] sm:$0x1] }
  0xd6   :  { %v1857_v41 = vld [vmem:[#allocation2 + $0x94] sm:$0xf]  ;;  %v1858_v22 = vld [vmem:[#allocation2 + $0x98] sm:$0x1]  ;;  %v2208_v45 = vshrl.u32 %v1856_v6, 16  ;;  %v2211_v37 = vshll.u32 %v1856_v6, 16  ;;  %v10667_v47 = vpack.c.bf16 %v315_v54, %v315_v54  ;;  %v10825_v2 = vunpack.c.l.bf16 %v12748_v30 }
  0xd7   :  { %v2217_v62 = vshll.u32 %v1857_v41, 16  ;;  %v2221_v55 = vshrl.u32 %v1857_v41, 16  ;;  %v2227_v57 = vshll.u32 %v1858_v22, 16  ;;  %v10668_v14 = vpack.c.bf16 %v316_v16, %v316_v16  ;;  %8717 = vmatprep.mubr.bf16.mxu0 %v10352_v18  ;;  %v3732_v24 = vld [vmem:[#allocation2 + $0x54] sm:$0xf] }
  0xd8   :  { %v2210_v42 = vrot.slane %v2208_v45, 4  ;;  %v2213_v51 = vrot.slane %v2211_v37, 5  ;;  %v867_v46 = vshrl.u32 %v10667_v47, 16  ;;  %v870_v36 = vshll.u32 %v10667_v47, 16  ;;  %v12766_v5 = vld [vmem:[#allocation2 + $0x58] sm:$0xf] }
  0xd9   :  { %v2219_v26 = vrot.slane %v2217_v62, 5  ;;  %v2223_v39 = vrot.slane %v2221_v55, 4  ;;  %v2229_v17 = vrot.slane %v2227_v57, 5  ;;  %v875_v3 = vshrl.u32 %v10668_v14, 16  ;;  %v11678_v25 = vld [vmem:[%s14740_s1 + $0x1b0] sm:$0xff]  }
  0xda   :  { %v2214_v19 = vor.u32 %v2213_v51, %v2210_v42  ;;  %v869_v38 = vrot.slane %v867_v46, 7  ;;  %v878_v34 = vshll.u32 %v10668_v14, 16  ;;  %v3938_v35 = vrot.slane %v3937_v56, 4  ;;  %v11665_v8 = vld [vmem:[#allocation2 + $0x90] sm:$0xff]   ;;  %8947 = vmatpush1.bf16.msra.mxu0 %v11678_v25 }
  0xdb   :  { %v2224_v9 = vor.u32 %v2223_v39, %v2219_v26  ;;  %v877_v53 = vrot.slane %v875_v3, 7  ;;  %v3946_v58 = vrot.slane %v3944_v33, 4  ;;  %v3952_v60 = vrot.slane %v3950_v50, 5  ;;  %v12784_v47 = vld [vmem:[%s14741_s0 + $0x70] sm:$0xff]   ;;  %8948 = vmatprep.subr.bf16.mxu0 %v11780_v0 }
  0xdc   :  { %v2215_v49 = vrot.slane %v2214_v19, 4  ;;  %v872_v23 = vor.u32 %v870_v36, %v869_v38  ;;  %v873_v10 = vrot.slane %v869_v38, 4  ;;  %v3943_v63 = vsel %vm12050_vm2, %v3938_v35, %v12753_v4 }
  0xdd   :  { %v2225_v15 = vrot.slane %v2224_v9, 4  ;;  %v880_v21 = vor.u32 %v878_v34, %v877_v53  ;;  %v882_v31 = vrot.slane %v877_v53, 4  ;;  %v3947_v29 = vor.u32 %v3946_v58, %v12753_v4  ;;  %v3734_v4 = vld [vmem:[#allocation2 + $0x5c] sm:$0x1] }
  0xde   :  { %v2220_v20 = vsel %vm12050_vm2, %v2215_v49, %v2219_v26  ;;  %v1393_v48 = vsel %vm12129_vm13, %v872_v23, %v1392_v12  ;;  %v10826_v11 = vunpack.c.h.bf16 %v12748_v30  ;;  %v183_v28 = vmul.f32 %v12734_v61, %v10825_v2 }
  0xdf   :  { %v2230_v54 = vsel %vm12050_vm2, %v2225_v15, %v2229_v17  ;;  %v881_v33 = vsel %vm12118_vm12, %v873_v10, %v880_v21  ;;  %1394 = vst [vmem:[#allocation2 + $0x9c] sm:$0xf] %v1393_v48  ;;  %v1397_v50 = vsel %vm12109_vm11, %v882_v31, %v1396_v52  ;;  %v3948_v30 = vrot.slane %v3947_v29, 4 }
  0xe0   :  { %v10167_v6 = vcombine.low %v2220_v20, %v2230_v54  ;;  %1395 = vst [vmem:[#allocation2 + $0xa0] sm:$0xf] %v881_v33  ;;  %1398 = vst [vmem:[#allocation2 + $0xa4] sm:$0x1] %v1397_v50  ;;  %v184_v16 = vmul.f32 %v12734_v61, %v10826_v11  ;;  %v253_v18 = vadd.f32 %v12698_v13, %v183_v28  ;;  %v10321_v56 = vrot.slane %v4756_v7, 9 }
  0xe1   :  { %v3953_v41 = vsel %vm12050_vm2, %v3948_v30, %v3952_v60  ;;  %v4974_v22 = vrot.slane %v4757_v44, 5  ;;  %v4977_v45 = vrot.slane %v4758_v59, 5  ;;  %v3955_v37 = vshrl.u32 %v3732_v24, 16  ;;  %v1403_v50 = vld [vmem:[#allocation2 + $0xb0] sm:$0x1] }
  0xe2   :  { %8195 = vmatprep.mubr.bf16.mxu1 %v10167_v6  ;;  %v10288_v2 = vcombine.low %v3943_v63, %v3953_v41  ;;  %v254_v62 = vadd.f32 %v12698_v13, %v184_v16  ;;  %v317_v55 = vmax.f32 %v253_v18, 0.0  ;;  %v3958_v57 = vshll.u32 %v3732_v24, 16 }
  0xe3   :  { %8196 = vmatmul.mubr.bf16.gmra.mrb[48].mxu1 %v11665_v8  ;;  %v4975_v14 = vsel %vm12077_vm8, %v10321_v56, %v4974_v22  ;;  %v4976_v42 = vrot.slane %v4974_v22, 4  ;;  %v3957_v51 = vrot.slane %v3955_v37, 4  ;;  %v3964_v46 = vshll.u32 %v12766_v5, 16  ;;  %v4759_v56 = vld [vmem:[#allocation2 + $0x60] sm:$0xe] }
  0xe4   :  { %8718 = vmatmul.mubr.bf16.gmra.mrb[20].mxu0 %v10288_v2  ;;  %v318_v36 = vmax.f32 %v254_v62, 0.0  ;;  %v10669_v26 = vpack.c.bf16 %v317_v55, %v317_v55  ;;  %v3960_v39 = vrot.slane %v3958_v57, 5  ;;  %v3968_v17 = vshrl.u32 %v12766_v5, 16  ;;  %v1399_v5 = vld [vmem:[#allocation2 + $0xa8] sm:$0xf] }
  0xe5   :  { %v4978_v3 = vsel %vm12077_vm8, %v4976_v42, %v4977_v45  ;;  %v12794_v19 = vrot.slane %v3964_v46, 5  ;;  %v3974_v38 = vshll.u32 %v3734_v4, 16  ;;  %v10829_v34 = vunpack.c.l.bf16 %v12784_v47  ;;  %v4760_v37 = vld [vmem:[#allocation2 + $0x64] sm:$0xf]  ;;  %v3735_v42 = vld [vmem:[#allocation2 + $0x60] sm:$0xf] }
  0xe6   :  { %v1859_v12 = vld [vmem:[#allocation2 + $0x9c] sm:$0xf]  ;;  %v10670_v35 = vpack.c.bf16 %v318_v36, %v318_v36  ;;  %v884_v9 = vshrl.u32 %v10669_v26, 16  ;;  %v887_v53 = vshll.u32 %v10669_v26, 16  ;;  %v10353_v52 = vcombine.low %v4975_v14, %v4978_v3 }
  0xe7   :  { %v1860_v58 = vld [vmem:[#allocation2 + $0xa0] sm:$0xf]  ;;  %v1861_v60 = vld [vmem:[#allocation2 + $0xa4] sm:$0x1]  ;;  %v2232_v49 = vshrl.u32 %v1859_v12, 16  ;;  %v2235_v23 = vshll.u32 %v1859_v12, 16  ;;  %v3961_v10 = vor.u32 %v3960_v39, %v3957_v51  ;;  %v10830_v63 = vunpack.c.h.bf16 %v12784_v47 }
  0xe8   :  { %v2241_v7 = vshll.u32 %v1860_v58, 16  ;;  %v2245_v44 = vshrl.u32 %v1860_v58, 16  ;;  %v2251_v15 = vshll.u32 %v1861_v60, 16  ;;  %8725 = vmatprep.mubr.bf16.mxu0 %v10353_v52  ;;  %v185_v21 = vmul.f32 %v12734_v61, %v10829_v34  ;;  %v4761_v47 = vld [vmem:[#allocation2 + $0x68] sm:$0x1]  ;;  %v11667_v62 = vld [vmem:[#allocation2 + $0x9c] sm:$0xff]  }
  0xe9   :  { %v2234_v31 = vrot.slane %v2232_v49, 4  ;;  %v2237_v29 = vrot.slane %v2235_v23, 5  ;;  %v886_v59 = vrot.slane %v884_v9, 7  ;;  %v892_v24 = vshrl.u32 %v10670_v35, 16  ;;  %v12813_v39 = vld [vmem:[#allocation2 + $0x64] sm:$0xf] }
  0xea   :  { %v2243_v20 = vrot.slane %v2241_v7, 5  ;;  %v2247_v48 = vrot.slane %v2245_v44, 4  ;;  %v2253_v11 = vrot.slane %v2251_v15, 5  ;;  %v895_v28 = vshll.u32 %v10670_v35, 16  ;;  %v12823_v49 = vld [vmem:[%s14741_s0 + $0x80] sm:$0xff]  }
  0xeb   :  { %v2238_v25 = vor.u32 %v2237_v29, %v2234_v31  ;;  %v889_v54 = vor.u32 %v887_v53, %v886_v59  ;;  %v890_v8 = vrot.slane %v886_v59, 4  ;;  %v894_v33 = vrot.slane %v892_v24, 7 }
  0xec   :  { %v2248_v30 = vor.u32 %v2247_v48, %v2243_v20  ;;  %v3962_v6 = vrot.slane %v3961_v10, 4  ;;  %v3970_v16 = vrot.slane %v3968_v17, 4  ;;  %v3976_v18 = vrot.slane %v3974_v38, 5 }
  0xed   :  { %v2239_v4 = vrot.slane %v2238_v25, 4  ;;  %v897_v41 = vor.u32 %v895_v28, %v894_v33  ;;  %v899_v22 = vrot.slane %v894_v33, 4  ;;  %v1400_v45 = vsel %vm12129_vm13, %v889_v54, %v1399_v5 }
  0xee   :  { %v2249_v2 = vrot.slane %v2248_v30, 4  ;;  %1401 = vst [vmem:[#allocation2 + $0xa8] sm:$0xf] %v1400_v45  ;;  %v3967_v55 = vsel %vm12050_vm2, %v3962_v6, %v12794_v19  ;;  %v3971_v57 = vor.u32 %v3970_v16, %v12794_v19  ;;  %v186_v14 = vmul.f32 %v12734_v61, %v10830_v63 }
  0xef   :  { %v2244_v51 = vsel %vm12050_vm2, %v2239_v4, %v2243_v20  ;;  %v898_v46 = vsel %vm12118_vm12, %v890_v8, %v897_v41  ;;  %v1404_v36 = vsel %vm12109_vm11, %v899_v22, %v1403_v50  ;;  %v255_v26 = vadd.f32 %v12698_v13, %v185_v21 }
  0xf0   :  { %v2254_v17 = vsel %vm12050_vm2, %v2249_v2, %v2253_v11  ;;  %1402 = vst [vmem:[#allocation2 + $0xac] sm:$0xf] %v898_v46  ;;  %1405 = vst [vmem:[#allocation2 + $0xb0] sm:$0x1] %v1404_v36  ;;  %v3972_v3 = vrot.slane %v3971_v57, 4  ;;  %v256_v19 = vadd.f32 %v12698_v13, %v186_v14  ;;  %v10322_v38 = vrot.slane %v4759_v56, 9 }
  0xf1   :  { %v10168_v34 = vcombine.low %v2244_v51, %v2254_v17  ;;  %v319_v12 = vmax.f32 %v255_v26, 0.0  ;;  %v4981_v35 = vrot.slane %v4760_v37, 5  ;;  %v4984_v9 = vrot.slane %v4761_v47, 5  ;;  %v1406_v37 = vld [vmem:[#allocation2 + $0xb4] sm:$0xf] }
  0xf2   :  { %v3977_v53 = vsel %vm12050_vm2, %v3972_v3, %v3976_v18  ;;  %v320_v52 = vmax.f32 %v256_v19, 0.0  ;;  %v3979_v58 = vshrl.u32 %v3735_v42, 16  ;;  %v3982_v60 = vshll.u32 %v3735_v42, 16  ;;  %v3737_v57 = vld [vmem:[#allocation2 + $0x68] sm:$0x1] }
  0xf3   :  { %8203 = vmatprep.mubr.bf16.mxu1 %v10168_v34  ;;  %v10289_v23 = vcombine.low %v3967_v55, %v3977_v53  ;;  %v10671_v10 = vpack.c.bf16 %v319_v12, %v319_v12  ;;  %v4982_v63 = vsel %vm12077_vm8, %v10322_v38, %v4981_v35  ;;  %v4983_v7 = vrot.slane %v4981_v35, 4  ;;  %v1410_v26 = vld [vmem:[#allocation2 + $0xbc] sm:$0x1]  ;;  %v1868_v17 = vld [vmem:[#allocation2 + $0xd8] sm:$0xf] }
  0xf4   :  { %8204 = vmatmul.mubr.bf16.gmra.mrb[52].mxu1 %v11667_v62  ;;  %v10672_v44 = vpack.c.bf16 %v320_v52, %v320_v52  ;;  %v3981_v15 = vrot.slane %v3979_v58, 4  ;;  %v3984_v21 = vrot.slane %v3982_v60, 5  ;;  %v3988_v31 = vshll.u32 %v12813_v39, 16  ;;  %v1869_v12 = vld [vmem:[#allocation2 + $0xdc] sm:$0xf] }
  0xf5   :  { %v1862_v29 = vld [vmem:[#allocation2 + $0xa8] sm:$0xf]  ;;  %8726 = vmatmul.mubr.bf16.gmra.mrb[24].mxu0 %v10289_v23  ;;  %v901_v59 = vshrl.u32 %v10671_v10, 16  ;;  %v904_v24 = vshll.u32 %v10671_v10, 16  ;;  %v4985_v20 = vsel %vm12077_vm8, %v4983_v7, %v4984_v9  ;;  %v10837_v48 = vunpack.c.l.bf16 %v12823_v49  ;;  %v1870_v35 = vld [vmem:[#allocation2 + $0xe0] sm:$0x1] }
  0xf6   :  { %v2256_v11 = vshrl.u32 %v1862_v29, 16  ;;  %v2259_v28 = vshll.u32 %v1862_v29, 16  ;;  %v909_v5 = vshrl.u32 %v10672_v44, 16  ;;  %v912_v25 = vshll.u32 %v10672_v44, 16  ;;  %v4762_v60 = vld [vmem:[#allocation2 + $0x6c] sm:$0xe] }
  0xf7   :  { %v1863_v54 = vld [vmem:[#allocation2 + $0xac] sm:$0xf]  ;;  %v1864_v8 = vld [vmem:[#allocation2 + $0xb0] sm:$0x1]  ;;  %v10354_v33 = vcombine.low %v4982_v63, %v4985_v20  ;;  %v3985_v50 = vor.u32 %v3984_v21, %v3981_v15  ;;  %v10838_v30 = vunpack.c.h.bf16 %v12823_v49  ;;  %v12833_v6 = vmul.f32 %v12734_v61, %v10837_v48  ;;  %v11681_v10 = vld [vmem:[%s14740_s1 + $0x1b8] sm:$0xff]  }
  0xf8   :  { %v2258_v16 = vrot.slane %v2256_v11, 4  ;;  %v2261_v18 = vrot.slane %v2259_v28, 5  ;;  %v2265_v56 = vshll.u32 %v1863_v54, 16  ;;  %v2269_v4 = vshrl.u32 %v1863_v54, 16  ;;  %v4763_v23 = vld [vmem:[#allocation2 + $0x70] sm:$0xf]  ;;  %8949 = vmatpush1.bf16.msra.mxu0 %v11681_v10 }
  0xf9   :  { %v2275_v41 = vshll.u32 %v1864_v8, 16  ;;  %v903_v22 = vrot.slane %v901_v59, 7  ;;  %v911_v45 = vrot.slane %v909_v5, 7  ;;  %8733 = vmatprep.mubr.bf16.mxu0 %v10354_v33  ;;  %v12835_v47 = vrot.slane %v3985_v50, 4  ;;  %v4764_v21 = vld [vmem:[#allocation2 + $0x74] sm:$0x1]  ;;  %8950 = vmatprep.subr.bf16.mxu0 %v11780_v0 }
  0xfa   :  { %v2262_v2 = vor.u32 %v2261_v18, %v2258_v16  ;;  %v2267_v62 = vrot.slane %v2265_v56, 5  ;;  %v2271_v55 = vrot.slane %v2269_v4, 4  ;;  %v12837_v14 = vrot.slane %v3988_v31, 5  ;;  %v11668_v48 = vld [vmem:[#allocation2 + $0xa8] sm:$0xff]  }
  0xfb   :  { %v2277_v42 = vrot.slane %v2275_v41, 5  ;;  %v906_v51 = vor.u32 %v904_v24, %v903_v22  ;;  %v907_v46 = vrot.slane %v903_v22, 4  ;;  %v914_v36 = vor.u32 %v912_v25, %v911_v45  ;;  %v3738_v24 = vld [vmem:[#allocation2 + $0x6c] sm:$0xf] }
  0xfc   :  { %v2263_v3 = vrot.slane %v2262_v2, 4  ;;  %v2272_v19 = vor.u32 %v2271_v55, %v2267_v62  ;;  %v916_v38 = vrot.slane %v911_v45, 4  ;;  %v3991_v34 = vsel %vm12050_vm2, %v12835_v47, %v12837_v14  ;;  %v12862_v50 = vld [vmem:[%s14741_s0 + $0x88] sm:$0xff]  }
  0xfd   :  { %v915_v9 = vsel %vm12118_vm12, %v907_v46, %v914_v36  ;;  %v1407_v53 = vsel %vm12129_vm13, %v906_v51, %v1406_v37  ;;  %v3992_v52 = vshrl.u32 %v12813_v39, 16  ;;  %v3998_v58 = vshll.u32 %v3737_v57, 16 }
  0xfe   :  { %v2268_v63 = vsel %vm12050_vm2, %v2263_v3, %v2267_v62  ;;  %v2273_v7 = vrot.slane %v2272_v19, 4  ;;  %1408 = vst [vmem:[#allocation2 + $0xb4] sm:$0xf] %v1407_v53  ;;  %1409 = vst [vmem:[#allocation2 + $0xb8] sm:$0xf] %v915_v9  ;;  %v1411_v44 = vsel %vm12109_vm11, %v916_v38, %v1410_v26  ;;  %v2304_v15 = vshrl.u32 %v1868_v17, 16 }
  0xff   :  { %1412 = vst [vmem:[#allocation2 + $0xbc] sm:$0x1] %v1411_v44  ;;  %v3994_v39 = vrot.slane %v3992_v52, 4  ;;  %v4000_v31 = vrot.slane %v3998_v58, 5  ;;  %v2307_v29 = vshll.u32 %v1868_v17, 16  ;;  %v2313_v59 = vshll.u32 %v1869_v12, 16 }
 0x100   :  { %v2278_v20 = vsel %vm12050_vm2, %v2273_v7, %v2277_v42  ;;  %v2306_v11 = vrot.slane %v2304_v15, 4  ;;  %v2317_v28 = vshrl.u32 %v1869_v12, 16  ;;  %v2323_v5 = vshll.u32 %v1870_v35, 16  ;;  %v3740_v7 = vld [vmem:[#allocation2 + $0x74] sm:$0x1] }
 0x101   :  { %v10169_v25 = vcombine.low %v2268_v63, %v2278_v20  ;;  %v3995_v54 = vor.u32 %v3994_v39, %v12837_v14  ;;  %v2309_v8 = vrot.slane %v2307_v29, 5  ;;  %v2315_v33 = vrot.slane %v2313_v59, 5  ;;  %v4766_v20 = vld [vmem:[#allocation2 + $0x7c] sm:$0xf] }
 0x102   :  { %v2319_v16 = vrot.slane %v2317_v28, 4  ;;  %v2325_v18 = vrot.slane %v2323_v5, 5  ;;  %v10323_v56 = vrot.slane %v4762_v60, 9  ;;  %v4988_v4 = vrot.slane %v4763_v23, 5  ;;  %v3739_v23 = vld [vmem:[#allocation2 + $0x70] sm:$0xf] }
 0x103   :  { %8211 = vmatprep.mubr.bf16.mxu1 %v10169_v25  ;;  %v3996_v41 = vrot.slane %v3995_v54, 4  ;;  %v2310_v22 = vor.u32 %v2309_v8, %v2306_v11  ;;  %v4991_v45 = vrot.slane %v4764_v21, 5  ;;  %v4003_v37 = vshrl.u32 %v3738_v24, 16  ;;  %v4767_v25 = vld [vmem:[#allocation2 + $0x80] sm:$0x1] }
 0x104   :  { %8212 = vmatmul.mubr.bf16.gmra.mrb[56].mxu1 %v11668_v48  ;;  %v2320_v47 = vor.u32 %v2319_v16, %v2315_v33  ;;  %v4989_v2 = vsel %vm12077_vm8, %v10323_v56, %v4988_v4  ;;  %v4990_v62 = vrot.slane %v4988_v4, 4  ;;  %v4006_v55 = vshll.u32 %v3738_v24, 16  ;;  %v4765_v24 = vld [vmem:[#allocation2 + $0x78] sm:$0xe] }
 0x105   :  { %v1865_v57 = vld [vmem:[#allocation2 + $0xb4] sm:$0xf]  ;;  %v1866_v14 = vld [vmem:[#allocation2 + $0xb8] sm:$0xf]  ;;  %v4001_v42 = vsel %vm12050_vm2, %v3996_v41, %v4000_v31  ;;  %v190_v51 = vmul.f32 %v12734_v61, %v10838_v30  ;;  %v259_v46 = vadd.f32 %v12698_v13, %v12833_v6  ;;  %v10841_v36 = vunpack.c.l.bf16 %v12862_v50 }
 0x106   :  { %v1867_v26 = vld [vmem:[#allocation2 + $0xbc] sm:$0x1]  ;;  %v2280_v17 = vshrl.u32 %v1865_v57, 16  ;;  %v2283_v3 = vshll.u32 %v1865_v57, 16  ;;  %v2289_v19 = vshll.u32 %v1866_v14, 16  ;;  %v2293_v38 = vshrl.u32 %v1866_v14, 16 }
 0x107   :  { %v2299_v12 = vshll.u32 %v1867_v26, 16  ;;  %v10290_v35 = vcombine.low %v3991_v34, %v4001_v42  ;;  %v2311_v9 = vrot.slane %v2310_v22, 4  ;;  %v2321_v53 = vrot.slane %v2320_v47, 4  ;;  %v11670_v54 = vld [vmem:[#allocation2 + $0xb4] sm:$0xff]  }
 0x108   :  { %v2282_v52 = vrot.slane %v2280_v17, 4  ;;  %v2285_v58 = vrot.slane %v2283_v3, 5  ;;  %v2291_v60 = vrot.slane %v2289_v19, 5  ;;  %v2295_v49 = vrot.slane %v2293_v38, 4  ;;  %v1420_v38 = vld [vmem:[#allocation2 + $0xe4] sm:$0xf] }
 0x109   :  { %v2301_v30 = vrot.slane %v2299_v12, 5  ;;  %8734 = vmatmul.mubr.bf16.gmra.mrb[28].mxu0 %v10290_v35  ;;  %v2316_v6 = vsel %vm12050_vm2, %v2311_v9, %v2315_v33  ;;  %v2326_v10 = vsel %vm12050_vm2, %v2321_v53, %v2325_v18  ;;  %v4992_v63 = vsel %vm12077_vm8, %v4990_v62, %v4991_v45  ;;  %v3741_v45 = vld [vmem:[#allocation2 + $0x78] sm:$0xf]  ;;  %v3743_v9 = vld [vmem:[#allocation2 + $0x80] sm:$0x1] }
 0x10a   :  { %v2286_v34 = vor.u32 %v2285_v58, %v2282_v52  ;;  %v2296_v44 = vor.u32 %v2295_v49, %v2291_v60  ;;  %v10171_v15 = vcombine.low %v2316_v6, %v2326_v10  ;;  %v10355_v21 = vcombine.low %v4989_v2, %v4992_v63  ;;  %v1424_v58 = vld [vmem:[#allocation2 + $0xec] sm:$0x1]  ;;  %v4768_v63 = vld [vmem:[#allocation2 + $0x84] sm:$0xe] }
 0x10b   :  { %v4005_v39 = vrot.slane %v4003_v37, 4  ;;  %v4008_v31 = vrot.slane %v4006_v55, 5  ;;  %v4012_v29 = vshll.u32 %v3739_v23, 16  ;;  %v4016_v59 = vshrl.u32 %v3739_v23, 16 }
 0x10c   :  { %v2287_v48 = vrot.slane %v2286_v34, 4  ;;  %v2297_v11 = vrot.slane %v2296_v44, 4  ;;  %8741 = vmatprep.mubr.bf16.mxu0 %v10355_v21  ;;  %v4022_v28 = vshll.u32 %v3740_v7, 16  ;;  %v260_v5 = vadd.f32 %v12698_v13, %v190_v51  ;;  %v3742_v13 = vld [vmem:[#allocation2 + $0x7c] sm:$0xf] }
 0x10d   :  { %v4009_v8 = vor.u32 %v4008_v31, %v4005_v39  ;;  %v4014_v33 = vrot.slane %v4012_v29, 5  ;;  %v4018_v16 = vrot.slane %v4016_v59, 4  ;;  %v323_v18 = vmax.f32 %v259_v46, 0.0  ;;  %v4769_v39 = vld [vmem:[#allocation2 + $0x88] sm:$0xf]  ;;  %v11671_v31 = vld [vmem:[#allocation2 + $0xd8] sm:$0xff]  }
 0x10e   :  { %v2292_v56 = vsel %vm12050_vm2, %v2287_v48, %v2291_v60  ;;  %v2302_v4 = vsel %vm12050_vm2, %v2297_v11, %v2301_v30  ;;  %v4024_v41 = vrot.slane %v4022_v28, 5  ;;  %v324_v22 = vmax.f32 %v260_v5, 0.0 }
 0x10f   :  { %v10170_v37 = vcombine.low %v2292_v56, %v2302_v4  ;;  %v4010_v47 = vrot.slane %v4009_v8, 4  ;;  %v4019_v2 = vor.u32 %v4018_v16, %v4014_v33  ;;  %v10675_v62 = vpack.c.bf16 %v323_v18, %v323_v18 }
 0x110   :  { %v10676_v55 = vpack.c.bf16 %v324_v22, %v324_v22  ;;  %v10324_v57 = vrot.slane %v4765_v24, 9  ;;  %v4995_v14 = vrot.slane %v4766_v20, 5  ;;  %v4998_v42 = vrot.slane %v4767_v25, 5  ;;  %v3744_v25 = vld [vmem:[#allocation2 + $0x84] sm:$0xf] }
 0x111   :  { %8219 = vmatprep.mubr.bf16.mxu1 %v10170_v37  ;;  %v4015_v51 = vsel %vm12050_vm2, %v4010_v47, %v4014_v33  ;;  %v4020_v46 = vrot.slane %v4019_v2, 4  ;;  %v935_v26 = vshrl.u32 %v10675_v62, 16  ;;  %v938_v17 = vshll.u32 %v10675_v62, 16  ;;  %v3745_v22 = vld [vmem:[#allocation2 + $0x88] sm:$0xf] }
 0x112   :  { %8220 = vmatmul.mubr.bf16.gmra.mrb[60].mxu1 %v11670_v54  ;;  %v943_v3 = vshrl.u32 %v10676_v55, 16  ;;  %v946_v19 = vshll.u32 %v10676_v55, 16  ;;  %v4996_v12 = vsel %vm12077_vm8, %v10324_v57, %v4995_v14  ;;  %v4997_v35 = vrot.slane %v4995_v14, 4  ;;  %v12907_v37 = vld [vmem:[%s14743_s3] ss:$0 sm:$0xff] }
 0x113   :  { %8227 = vmatprep.mubr.bf16.mxu1 %v10171_v15  ;;  %v4025_v53 = vsel %vm12050_vm2, %v4020_v46, %v4024_v41  ;;  %v937_v52 = vrot.slane %v935_v26, 7  ;;  %v4027_v60 = vshrl.u32 %v3741_v45, 16  ;;  %v4030_v49 = vshll.u32 %v3741_v45, 16  ;;  %v4770_v15 = vld [vmem:[#allocation2 + $0x8c] sm:$0x1] }
 0x114   :  { %v10291_v23 = vcombine.low %v4015_v51, %v4025_v53  ;;  %v945_v30 = vrot.slane %v943_v3, 7  ;;  %v4999_v6 = vsel %vm12077_vm8, %v4997_v35, %v4998_v42  ;;  %v4036_v10 = vshll.u32 %v3742_v13, 16  ;;  %v12918_v3 = vld [vmem:[%s14741_s0 + $0x90] sm:$0xff]  }
 0x115   :  { %v940_v7 = vor.u32 %v938_v17, %v937_v52  ;;  %v941_v34 = vrot.slane %v937_v52, 4  ;;  %v10356_v44 = vcombine.low %v4996_v12, %v4999_v6  ;;  %v4029_v21 = vrot.slane %v4027_v60, 4 }
 0x116   :  { %8742 = vmatmul.mubr.bf16.gmra.mrb[32].mxu0 %v10291_v23  ;;  %v948_v29 = vor.u32 %v946_v19, %v945_v30  ;;  %v950_v59 = vrot.slane %v945_v30, 4  ;;  %v4032_v24 = vrot.slane %v4030_v49, 5  ;;  %v4038_v20 = vrot.slane %v4036_v10, 5  ;;  %v11684_v19 = vld [vmem:[%s14740_s1 + $0x1c0] sm:$0xff]  }
 0x117   :  { %v1421_v48 = vsel %vm12129_vm13, %v940_v7, %v1420_v38  ;;  %8749 = vmatprep.mubr.bf16.mxu0 %v10356_v44  ;;  %v4040_v11 = vshrl.u32 %v3742_v13, 16  ;;  %v4046_v28 = vshll.u32 %v3743_v9, 16  ;;  %v10842_v5 = vunpack.c.h.bf16 %v12862_v50  ;;  %8951 = vmatpush1.bf16.msra.mxu0 %v11684_v19 }
 0x118   :  { %v949_v54 = vsel %vm12118_vm12, %v941_v34, %v948_v29  ;;  %1422 = vst [vmem:[#allocation2 + $0xe4] sm:$0xf] %v1421_v48  ;;  %v1425_v8 = vsel %vm12109_vm11, %v950_v59, %v1424_v58  ;;  %v4033_v33 = vor.u32 %v4032_v24, %v4029_v21  ;;  %v191_v16 = vmul.f32 %v12734_v61, %v10841_v36 }
 0x119   :  { %1423 = vst [vmem:[#allocation2 + $0xe8] sm:$0xf] %v949_v54  ;;  %1426 = vst [vmem:[#allocation2 + $0xec] sm:$0x1] %v1425_v8  ;;  %v4042_v18 = vrot.slane %v4040_v11, 4  ;;  %v4048_v56 = vrot.slane %v4046_v28, 5  ;;  %v192_v4 = vmul.f32 %v12734_v61, %v10842_v5  ;;  %v10845_v7 = vunpack.c.l.bf16 %v12918_v3  ;;  %8952 = vmatprep.subr.bf16.mxu0 %v11780_v0 }
 0x11a   :  { %v10325_v41 = vrot.slane %v4768_v63, 9  ;;  %8228 = vmatmul.mubr.bf16.gmra.mrb[64].mxu1 %v11671_v31  ;;  %v4034_v45 = vrot.slane %v4033_v33, 4  ;;  %v261_v47 = vadd.f32 %v12907_v37, %v191_v16  ;;  %v5002_v50 = vrot.slane %v4769_v39, 5  ;;  %v1427_v28 = vld [vmem:[#allocation2 + $0xf0] sm:$0xf] }
 0x11b   :  { %v5005_v2 = vrot.slane %v4770_v15, 5  ;;  %v4043_v36 = vor.u32 %v4042_v18, %v4038_v20  ;;  %v262_v62 = vadd.f32 %v12907_v37, %v192_v4  ;;  %v4051_v13 = vshrl.u32 %v3744_v25, 16  ;;  %v3746_v5 = vld [vmem:[#allocation2 + $0x8c] sm:$0x1]  ;;  %v1431_v33 = vld [vmem:[#allocation2 + $0xf8] sm:$0x1] }
 0x11c   :  { %v4054_v55 = vshll.u32 %v3744_v25, 16  ;;  %v4039_v61 = vsel %vm12050_vm2, %v4034_v45, %v4038_v20  ;;  %v325_v57 = vmax.f32 %v261_v47, 0.0  ;;  %v5003_v14 = vsel %vm12077_vm8, %v10325_v41, %v5002_v50 }
 0x11d   :  { %v5004_v42 = vrot.slane %v5002_v50, 4  ;;  %v4044_v51 = vrot.slane %v4043_v36, 4  ;;  %v326_v46 = vmax.f32 %v262_v62, 0.0  ;;  %v4053_v26 = vrot.slane %v4051_v13, 4  ;;  %v4772_v36 = vld [vmem:[#allocation2 + $0x94] sm:$0xf] }
 0x11e   :  { %v4056_v17 = vrot.slane %v4054_v55, 5  ;;  %v10677_v38 = vpack.c.bf16 %v325_v57, %v325_v57  ;;  %v4060_v35 = vshll.u32 %v3745_v22, 16  ;;  %v4064_v9 = vshrl.u32 %v3745_v22, 16  ;;  %v4771_v22 = vld [vmem:[#allocation2 + $0x90] sm:$0xe] }
 0x11f   :  { %v5006_v12 = vsel %vm12077_vm8, %v5004_v42, %v5005_v2  ;;  %v1871_v53 = vld [vmem:[#allocation2 + $0xe4] sm:$0xf]  ;;  %v4049_v52 = vsel %vm12050_vm2, %v4044_v51, %v4048_v56  ;;  %v10678_v58 = vpack.c.bf16 %v326_v46, %v326_v46  ;;  %v10846_v39 = vunpack.c.h.bf16 %v12918_v3  ;;  %v4773_v62 = vld [vmem:[#allocation2 + $0x98] sm:$0x1]  ;;  %v12932_v42 = vld [vmem:[#allocation2 + $0x94] sm:$0xf] }
 0x120   :  { %v10357_v60 = vcombine.low %v5003_v14, %v5006_v12  ;;  %v4057_v49 = vor.u32 %v4056_v17, %v4053_v26  ;;  %v1872_v23 = vld [vmem:[#allocation2 + $0xe8] sm:$0xf]  ;;  %v1873_v30 = vld [vmem:[#allocation2 + $0xec] sm:$0x1]  ;;  %v2328_v6 = vshrl.u32 %v1871_v53, 16  ;;  %v2331_v10 = vshll.u32 %v1871_v53, 16 }
 0x121   :  { %v10292_v63 = vcombine.low %v4039_v61, %v4049_v52  ;;  %v2337_v34 = vshll.u32 %v1872_v23, 16  ;;  %v2341_v44 = vshrl.u32 %v1872_v23, 16  ;;  %v2347_v21 = vshll.u32 %v1873_v30, 16  ;;  %v3747_v14 = vld [vmem:[#allocation2 + $0x90] sm:$0xf]  ;;  %v11673_v46 = vld [vmem:[#allocation2 + $0xe4] sm:$0xff]  }
 0x122   :  { %v2330_v15 = vrot.slane %v2328_v6, 4  ;;  %v2333_v31 = vrot.slane %v2331_v10, 5  ;;  %v952_v29 = vshrl.u32 %v10677_v38, 16  ;;  %v955_v59 = vshll.u32 %v10677_v38, 16 }
 0x123   :  { %8750 = vmatmul.mubr.bf16.gmra.mrb[36].mxu0 %v10292_v63  ;;  %v2339_v24 = vrot.slane %v2337_v34, 5  ;;  %v2343_v20 = vrot.slane %v2341_v44, 4  ;;  %v2349_v48 = vrot.slane %v2347_v21, 5  ;;  %v960_v11 = vshrl.u32 %v10678_v58, 16  ;;  %v3749_v34 = vld [vmem:[#allocation2 + $0x98] sm:$0x1] }
 0x124   :  { %8757 = vmatprep.mubr.bf16.mxu0 %v10357_v60  ;;  %v2334_v25 = vor.u32 %v2333_v31, %v2330_v15  ;;  %v954_v54 = vrot.slane %v952_v29, 7  ;;  %v963_v8 = vshll.u32 %v10678_v58, 16  ;;  %v4058_v16 = vrot.slane %v4057_v49, 4  ;;  %v11077_v29 = vld [vmem:[%s14741_s0 + $0x98] sm:$0xff]  }
 0x125   :  { %v2344_v18 = vor.u32 %v2343_v20, %v2339_v24  ;;  %v962_v56 = vrot.slane %v960_v11, 7  ;;  %v4062_v4 = vrot.slane %v4060_v35, 5  ;;  %v4066_v41 = vrot.slane %v4064_v9, 4  ;;  %v12947_v35 = vld [vmem:[%s14742_s2] ss:$0 sm:$0xff] }
 0x126   :  { %v2335_v45 = vrot.slane %v2334_v25, 4  ;;  %v957_v47 = vor.u32 %v955_v59, %v954_v54  ;;  %v958_v50 = vrot.slane %v954_v54, 4  ;;  %v4070_v2 = vshll.u32 %v3746_v5, 16  ;;  %v12966_v11 = vld [vmem:[%s14741_s0 + $0xa0] sm:$0xff]  }
 0x127   :  { %v2345_v13 = vrot.slane %v2344_v18, 4  ;;  %v965_v55 = vor.u32 %v963_v8, %v962_v56  ;;  %v967_v61 = vrot.slane %v962_v56, 4  ;;  %v4063_v57 = vsel %vm12050_vm2, %v4058_v16, %v4062_v4 }
 0x128   :  { %v2340_v51 = vsel %vm12050_vm2, %v2335_v45, %v2339_v24  ;;  %v1428_v26 = vsel %vm12129_vm13, %v957_v47, %v1427_v28  ;;  %v4067_v17 = vor.u32 %v4066_v41, %v4062_v4  ;;  %v4072_v3 = vrot.slane %v4070_v2, 5 }
 0x129   :  { %v2350_v19 = vsel %vm12050_vm2, %v2345_v13, %v2349_v48  ;;  %v966_v38 = vsel %vm12118_vm12, %v958_v50, %v965_v55  ;;  %1429 = vst [vmem:[#allocation2 + $0xf0] sm:$0xf] %v1428_v26  ;;  %v1432_v12 = vsel %vm12109_vm11, %v967_v61, %v1431_v33  ;;  %v193_v9 = vmul.f32 %v12947_v35, %v10845_v7 }
 0x12a   :  { %v10172_v53 = vcombine.low %v2340_v51, %v2350_v19  ;;  %1430 = vst [vmem:[#allocation2 + $0xf4] sm:$0xf] %v966_v38  ;;  %1433 = vst [vmem:[#allocation2 + $0xf8] sm:$0x1] %v1432_v12  ;;  %v4068_v52 = vrot.slane %v4067_v17, 4  ;;  %v194_v58 = vmul.f32 %v12947_v35, %v10846_v39  ;;  %v10326_v60 = vrot.slane %v4771_v22, 9 }
 0x12b   :  { %v263_v49 = vadd.f32 %v12907_v37, %v193_v9  ;;  %v5009_v23 = vrot.slane %v4772_v36, 5  ;;  %v5012_v30 = vrot.slane %v4773_v62, 5  ;;  %v4075_v6 = vshrl.u32 %v3747_v14, 16  ;;  %v1434_v17 = vld [vmem:[#allocation2 + $0xfc] sm:$0xf] }
 0x12c   :  { %8235 = vmatprep.mubr.bf16.mxu1 %v10172_v53  ;;  %v4073_v10 = vsel %vm12050_vm2, %v4068_v52, %v4072_v3  ;;  %v264_v63 = vadd.f32 %v12907_v37, %v194_v58  ;;  %v4078_v7 = vshll.u32 %v3747_v14, 16  ;;  %v4084_v44 = vshll.u32 %v12932_v42, 16  ;;  %v1438_v12 = vld [vmem:[#allocation2 + $0x104] sm:$0x1] }
 0x12d   :  { %8236 = vmatmul.mubr.bf16.gmra.mrb[68].mxu1 %v11673_v46  ;;  %v10293_v21 = vcombine.low %v4063_v57, %v4073_v10  ;;  %v327_v15 = vmax.f32 %v263_v49, 0.0  ;;  %v5010_v39 = vsel %vm12077_vm8, %v10326_v60, %v5009_v23  ;;  %v5011_v31 = vrot.slane %v5009_v23, 4  ;;  %v4774_v49 = vld [vmem:[#allocation2 + $0x9c] sm:$0xe] }
 0x12e   :  { %v328_v59 = vmax.f32 %v264_v63, 0.0  ;;  %v4077_v24 = vrot.slane %v4075_v6, 4  ;;  %v4080_v20 = vrot.slane %v4078_v7, 5  ;;  %v12961_v48 = vrot.slane %v4084_v44, 5  ;;  %v4775_v63 = vld [vmem:[#allocation2 + $0xa0] sm:$0xf] }
 0x12f   :  { %8758 = vmatmul.mubr.bf16.gmra.mrb[40].mxu0 %v10293_v21  ;;  %v10679_v28 = vpack.c.bf16 %v327_v15, %v327_v15  ;;  %v5013_v5 = vsel %vm12077_vm8, %v5011_v31, %v5012_v30  ;;  %v4088_v25 = vshrl.u32 %v12932_v42, 16  ;;  %v4094_v54 = vshll.u32 %v3749_v34, 16  ;;  %v4776_v34 = vld [vmem:[#allocation2 + $0xa4] sm:$0x1] }
 0x130   :  { %v1874_v8 = vld [vmem:[#allocation2 + $0xf0] sm:$0xf]  ;;  %v10680_v33 = vpack.c.bf16 %v328_v59, %v328_v59  ;;  %v10358_v16 = vcombine.low %v5010_v39, %v5013_v5  ;;  %v4081_v18 = vor.u32 %v4080_v20, %v4077_v24  ;;  %v10849_v56 = vunpack.c.l.bf16 %v11077_v29  ;;  %v3750_v39 = vld [vmem:[#allocation2 + $0x9c] sm:$0xf] }
 0x131   :  { %v1875_v4 = vld [vmem:[#allocation2 + $0xf4] sm:$0xf]  ;;  %v1876_v41 = vld [vmem:[#allocation2 + $0xf8] sm:$0x1]  ;;  %v2352_v22 = vshrl.u32 %v1874_v8, 16  ;;  %v2355_v45 = vshll.u32 %v1874_v8, 16  ;;  %v10850_v47 = vunpack.c.h.bf16 %v11077_v29  ;;  %v10853_v50 = vunpack.c.l.bf16 %v12966_v11 }
 0x132   :  { %v2361_v2 = vshll.u32 %v1875_v4, 16  ;;  %v2365_v36 = vshrl.u32 %v1875_v4, 16  ;;  %v2371_v62 = vshll.u32 %v1876_v41, 16  ;;  %8765 = vmatprep.mubr.bf16.mxu0 %v10358_v16  ;;  %v195_v13 = vmul.f32 %v12947_v35, %v10849_v56 }
 0x133   :  { %v2354_v55 = vrot.slane %v2352_v22, 4  ;;  %v2357_v61 = vrot.slane %v2355_v45, 5  ;;  %v969_v57 = vshrl.u32 %v10679_v28, 16  ;;  %v972_v14 = vshll.u32 %v10679_v28, 16  ;;  %v11674_v28 = vld [vmem:[#allocation2 + $0xf0] sm:$0xff]  }
 0x134   :  { %v2363_v42 = vrot.slane %v2361_v2, 5  ;;  %v2367_v51 = vrot.slane %v2365_v36, 4  ;;  %v2373_v46 = vrot.slane %v2371_v62, 5  ;;  %v977_v26 = vshrl.u32 %v10680_v33, 16  ;;  %v3752_v36 = vld [vmem:[#allocation2 + $0xa4] sm:$0x1] }
 0x135   :  { %v2358_v3 = vor.u32 %v2357_v61, %v2354_v55  ;;  %v971_v19 = vrot.slane %v969_v57, 7  ;;  %v980_v38 = vshll.u32 %v10680_v33, 16  ;;  %v4082_v9 = vrot.slane %v4081_v18, 4  ;;  %v3751_v18 = vld [vmem:[#allocation2 + $0xa0] sm:$0xf] }
 0x136   :  { %v2368_v53 = vor.u32 %v2367_v51, %v2363_v42  ;;  %v979_v52 = vrot.slane %v977_v26, 7  ;;  %v4090_v58 = vrot.slane %v4088_v25, 4  ;;  %v4096_v60 = vrot.slane %v4094_v54, 5 }
 0x137   :  { %v2359_v23 = vrot.slane %v2358_v3, 4  ;;  %v974_v30 = vor.u32 %v972_v14, %v971_v19  ;;  %v975_v6 = vrot.slane %v971_v19, 4  ;;  %v4087_v10 = vsel %vm12050_vm2, %v4082_v9, %v12961_v48 }
 0x138   :  { %v2369_v7 = vrot.slane %v2368_v53, 4  ;;  %v982_v44 = vor.u32 %v980_v38, %v979_v52  ;;  %v984_v21 = vrot.slane %v979_v52, 4  ;;  %v4091_v15 = vor.u32 %v4090_v58, %v12961_v48  ;;  %v1441_v53 = vld [vmem:[#allocation2 + $0x108] sm:$0xf] }
 0x139   :  { %v2364_v31 = vsel %vm12050_vm2, %v2359_v23, %v2363_v42  ;;  %v1435_v29 = vsel %vm12129_vm13, %v974_v30, %v1434_v17  ;;  %v196_v59 = vmul.f32 %v12947_v35, %v10850_v47  ;;  %v265_v24 = vadd.f32 %v12907_v37, %v195_v13 }
 0x13a   :  { %v2374_v20 = vsel %vm12050_vm2, %v2369_v7, %v2373_v46  ;;  %v983_v5 = vsel %vm12118_vm12, %v975_v6, %v982_v44  ;;  %1436 = vst [vmem:[#allocation2 + $0xfc] sm:$0xf] %v1435_v29  ;;  %v1439_v48 = vsel %vm12109_vm11, %v984_v21, %v1438_v12  ;;  %v4092_v25 = vrot.slane %v4091_v15, 4 }
 0x13b   :  { %v10173_v54 = vcombine.low %v2364_v31, %v2374_v20  ;;  %1437 = vst [vmem:[#allocation2 + $0x100] sm:$0xf] %v983_v5  ;;  %1440 = vst [vmem:[#allocation2 + $0x104] sm:$0x1] %v1439_v48  ;;  %v266_v8 = vadd.f32 %v12907_v37, %v196_v59  ;;  %v329_v33 = vmax.f32 %v265_v24, 0.0  ;;  %v10327_v16 = vrot.slane %v4774_v49, 9 }
 0x13c   :  { %v4097_v56 = vsel %vm12050_vm2, %v4092_v25, %v4096_v60  ;;  %v5016_v4 = vrot.slane %v4775_v63, 5  ;;  %v5019_v41 = vrot.slane %v4776_v34, 5  ;;  %v4099_v22 = vshrl.u32 %v3750_v39, 16  ;;  %v4777_v25 = vld [vmem:[#allocation2 + $0xa8] sm:$0xe] }
 0x13d   :  { %8243 = vmatprep.mubr.bf16.mxu1 %v10173_v54  ;;  %v10294_v45 = vcombine.low %v4087_v10, %v4097_v56  ;;  %v330_v47 = vmax.f32 %v266_v8, 0.0  ;;  %v10681_v2 = vpack.c.bf16 %v329_v33, %v329_v33  ;;  %v4102_v62 = vshll.u32 %v3750_v39, 16  ;;  %v4779_v56 = vld [vmem:[#allocation2 + $0xb0] sm:$0x1] }
 0x13e   :  { %8244 = vmatmul.mubr.bf16.gmra.mrb[72].mxu1 %v11674_v28  ;;  %v5017_v13 = vsel %vm12077_vm8, %v10327_v16, %v5016_v4  ;;  %v5018_v55 = vrot.slane %v5016_v4, 4  ;;  %v4101_v61 = vrot.slane %v4099_v22, 4  ;;  %v4108_v57 = vshll.u32 %v3751_v18, 16  ;;  %v1445_v28 = vld [vmem:[#allocation2 + $0x110] sm:$0x1] }
 0x13f   :  { %8766 = vmatmul.mubr.bf16.gmra.mrb[44].mxu0 %v10294_v45  ;;  %v10682_v14 = vpack.c.bf16 %v330_v47, %v330_v47  ;;  %v986_v42 = vshrl.u32 %v10681_v2, 16  ;;  %v989_v51 = vshll.u32 %v10681_v2, 16  ;;  %v4104_v46 = vrot.slane %v4102_v62, 5  ;;  %v13010_v47 = vld [vmem:[#allocation2 + $0xa8] sm:$0xf]  ;;  %v13012_v2 = vpop.f32.mrb[0].mxu1 }
 0x140   :  { %v5020_v26 = vsel %vm12077_vm8, %v5018_v55, %v5019_v41  ;;  %v12996_v17 = vrot.slane %v4108_v57, 5  ;;  %v4112_v3 = vshrl.u32 %v3751_v18, 16  ;;  %v4118_v19 = vshll.u32 %v3752_v36, 16  ;;  %v4778_v18 = vld [vmem:[#allocation2 + $0xac] sm:$0xf] }
 0x141   :  { %v1877_v38 = vld [vmem:[#allocation2 + $0xfc] sm:$0xf]  ;;  %v988_v12 = vrot.slane %v986_v42, 7  ;;  %v994_v9 = vshrl.u32 %v10682_v14, 16  ;;  %v10359_v52 = vcombine.low %v5017_v13, %v5020_v26  ;;  %v4105_v58 = vor.u32 %v4104_v46, %v4101_v61  ;;  %v11687_v36 = vld [vmem:[%s14740_s1 + $0x1c8] sm:$0xff]  }
 0x142   :  { %v1878_v60 = vld [vmem:[#allocation2 + $0x100] sm:$0xf]  ;;  %v1879_v49 = vld [vmem:[#allocation2 + $0x104] sm:$0x1]  ;;  %v2376_v23 = vshrl.u32 %v1877_v38, 16  ;;  %v2379_v30 = vshll.u32 %v1877_v38, 16  ;;  %v10854_v6 = vunpack.c.h.bf16 %v12966_v11  ;;  %v197_v10 = vmul.f32 %v12947_v35, %v10853_v50  ;;  %8953 = vmatpush1.bf16.msra.mxu0 %v11687_v36 }
 0x143   :  { %v2385_v63 = vshll.u32 %v1878_v60, 16  ;;  %v2389_v34 = vshrl.u32 %v1878_v60, 16  ;;  %v2395_v7 = vshll.u32 %v1879_v49, 16  ;;  %v991_v44 = vor.u32 %v989_v51, %v988_v12  ;;  %8773 = vmatprep.mubr.bf16.mxu0 %v10359_v52  ;;  %v13021_v57 = vld [vmem:[#allocation2 + $0xac] sm:$0xf]  ;;  %8954 = vmatprep.subr.bf16.mxu0 %v11780_v0 }
 0x144   :  { %v2378_v21 = vrot.slane %v2376_v23, 4  ;;  %v2381_v15 = vrot.slane %v2379_v30, 5  ;;  %v992_v39 = vrot.slane %v988_v12, 4  ;;  %v996_v31 = vrot.slane %v994_v9, 7 }
 0x145   :  { %v2387_v29 = vrot.slane %v2385_v63, 5  ;;  %v2391_v59 = vrot.slane %v2389_v34, 4  ;;  %v2397_v24 = vrot.slane %v2395_v7, 5  ;;  %v997_v20 = vshll.u32 %v10682_v14, 16  ;;  %v8103_v14 = vpop.f32.mrb[1].mxu1 }
 0x146   :  { %v2382_v5 = vor.u32 %v2381_v15, %v2378_v21  ;;  %v1001_v48 = vrot.slane %v996_v31, 4  ;;  %v1442_v11 = vsel %vm12129_vm13, %v991_v44, %v1441_v53  ;;  %v4106_v50 = vrot.slane %v4105_v58, 4  ;;  %v13043_v15 = vld [vmem:[%s14741_s0 + $0xa8] sm:$0xff]   ;;  %v1452_v14 = vld [vmem:[#allocation2 + $0x11c] sm:$0x1] }
 0x147   :  { %v2392_v54 = vor.u32 %v2391_v59, %v2387_v29  ;;  %v999_v8 = vor.u32 %v997_v20, %v996_v31  ;;  %1443 = vst [vmem:[#allocation2 + $0x108] sm:$0xf] %v1442_v11  ;;  %v4114_v33 = vrot.slane %v4112_v3, 4  ;;  %v4120_v16 = vrot.slane %v4118_v19, 5  ;;  %v13026_v3 = vpop.f32.mrb[2].mxu1 }
 0x148   :  { %v2383_v4 = vrot.slane %v2382_v5, 4  ;;  %v1446_v41 = vsel %vm12109_vm11, %v1001_v48, %v1445_v28  ;;  %v4111_v22 = vsel %vm12050_vm2, %v4106_v50, %v12996_v17  ;;  %v198_v45 = vmul.f32 %v12947_v35, %v10854_v6  ;;  %v8106_v53 = vpop.f32.mrb[3].mxu1 }
 0x149   :  { %v2393_v62 = vrot.slane %v2392_v54, 4  ;;  %v1000_v13 = vsel %vm12118_vm12, %v992_v39, %v999_v8  ;;  %1447 = vst [vmem:[#allocation2 + $0x110] sm:$0x1] %v1446_v41  ;;  %v4115_v55 = vor.u32 %v4114_v33, %v12996_v17  ;;  %v267_v61 = vadd.f32 %v12907_v37, %v197_v10  ;;  %v11676_v17 = vld [vmem:[#allocation2 + $0xfc] sm:$0xff]   ;;  %v1448_v8 = vld [vmem:[#allocation2 + $0x114] sm:$0xf] }
 0x14a   :  { %v2388_v42 = vsel %vm12050_vm2, %v2383_v4, %v2387_v29  ;;  %1444 = vst [vmem:[#allocation2 + $0x10c] sm:$0xf] %v1000_v13  ;;  %v268_v51 = vadd.f32 %v12907_v37, %v198_v45  ;;  %v10328_v46 = vrot.slane %v4777_v25, 9  ;;  %v5023_v26 = vrot.slane %v4778_v18, 5  ;;  %v3755_v45 = vld [vmem:[#allocation2 + $0xb0] sm:$0x1] }
 0x14b   :  { %v2398_v19 = vsel %vm12050_vm2, %v2393_v62, %v2397_v24  ;;  %v4116_v38 = vrot.slane %v4115_v55, 4  ;;  %v331_v12 = vmax.f32 %v267_v61, 0.0  ;;  %v5026_v9 = vrot.slane %v4779_v56, 5 }
 0x14c   :  { %v10174_v52 = vcombine.low %v2388_v42, %v2398_v19  ;;  %v332_v58 = vmax.f32 %v268_v51, 0.0  ;;  %v5024_v60 = vsel %vm12077_vm8, %v10328_v46, %v5023_v26  ;;  %v5025_v49 = vrot.slane %v5023_v26, 4  ;;  %v4780_v19 = vld [vmem:[#allocation2 + $0xb4] sm:$0xe] }
 0x14d   :  { %v4121_v23 = vsel %vm12050_vm2, %v4116_v38, %v4120_v16  ;;  %v10683_v30 = vpack.c.bf16 %v331_v12, %v331_v12  ;;  %v4123_v6 = vshrl.u32 %v13010_v47, 16  ;;  %v4126_v10 = vshll.u32 %v13010_v47, 16 }
 0x14e   :  { %8251 = vmatprep.mubr.bf16.mxu1 %v10174_v52  ;;  %v1880_v63 = vld [vmem:[#allocation2 + $0x108] sm:$0xf]  ;;  %v10295_v34 = vcombine.low %v4111_v22, %v4121_v23  ;;  %v10684_v7 = vpack.c.bf16 %v332_v58, %v332_v58  ;;  %v5027_v44 = vsel %vm12077_vm8, %v5025_v49, %v5026_v9  ;;  %v4132_v21 = vshll.u32 %v13021_v57, 16  ;;  %v4782_v52 = vld [vmem:[#allocation2 + $0xbc] sm:$0x1]  ;;  %v13051_v58 = vpop.f32.mrb[4].mxu1 }
 0x14f   :  { %8252 = vmatmul.mubr.bf16.gmra.mrb[76].mxu1 %v11676_v17  ;;  %v2400_v39 = vshrl.u32 %v1880_v63, 16  ;;  %v2403_v31 = vshll.u32 %v1880_v63, 16  ;;  %v1003_v29 = vshrl.u32 %v10683_v30, 16  ;;  %v1006_v59 = vshll.u32 %v10683_v30, 16  ;;  %v4781_v17 = vld [vmem:[#allocation2 + $0xb8] sm:$0xf] }
 0x150   :  { %v1882_v24 = vld [vmem:[#allocation2 + $0x110] sm:$0x1]  ;;  %8774 = vmatmul.mubr.bf16.gmra.mrb[48].mxu0 %v10295_v34  ;;  %v1011_v20 = vshrl.u32 %v10684_v7, 16  ;;  %v1014_v28 = vshll.u32 %v10684_v7, 16  ;;  %v10360_v5 = vcombine.low %v5024_v60, %v5027_v44  ;;  %v4125_v48 = vrot.slane %v4123_v6, 4 }
 0x151   :  { %v1881_v11 = vld [vmem:[#allocation2 + $0x10c] sm:$0xf]  ;;  %v2402_v50 = vrot.slane %v2400_v39, 4  ;;  %v2405_v25 = vrot.slane %v2403_v31, 5  ;;  %v2419_v54 = vshll.u32 %v1882_v24, 16  ;;  %v10857_v33 = vunpack.c.l.bf16 %v13043_v15 }
 0x152   :  { %v2409_v16 = vshll.u32 %v1881_v11, 16  ;;  %v2413_v18 = vshrl.u32 %v1881_v11, 16  ;;  %v1005_v56 = vrot.slane %v1003_v29, 7  ;;  %v1013_v4 = vrot.slane %v1011_v20, 7  ;;  %8781 = vmatprep.mubr.bf16.mxu0 %v10360_v5  ;;  %v13059_v6 = vld [vmem:[#allocation2 + $0xb4] sm:$0xf] }
 0x153   :  { %v2406_v41 = vor.u32 %v2405_v25, %v2402_v50  ;;  %v2421_v22 = vrot.slane %v2419_v54, 5  ;;  %v4128_v47 = vrot.slane %v4126_v10, 5  ;;  %v13046_v36 = vrot.slane %v4132_v21, 5  ;;  %v8111_v10 = vpop.f32.mrb[5].mxu1  ;;  %v11677_v20 = vld [vmem:[#allocation2 + $0x108] sm:$0xff]  }
 0x154   :  { %v2411_v62 = vrot.slane %v2409_v16, 5  ;;  %v2415_v13 = vrot.slane %v2413_v18, 4  ;;  %v1008_v55 = vor.u32 %v1006_v59, %v1005_v56  ;;  %v1009_v61 = vrot.slane %v1005_v56, 4  ;;  %v13062_v44 = vpop.f32.mrb[6].mxu1 }
 0x155   :  { %v2407_v42 = vrot.slane %v2406_v41, 4  ;;  %v1016_v51 = vor.u32 %v1014_v28, %v1013_v4  ;;  %v1018_v46 = vrot.slane %v1013_v4, 4  ;;  %v4129_v26 = vor.u32 %v4128_v47, %v4125_v48  ;;  %v8114_v59 = vpop.f32.mrb[7].mxu1  ;;  %v3757_v48 = vld [vmem:[#allocation2 + $0xb8] sm:$0xf] }
 0x156   :  { %v2416_v38 = vor.u32 %v2415_v13, %v2411_v62  ;;  %v1449_v12 = vsel %vm12129_vm13, %v1008_v55, %v1448_v8  ;;  %v4136_v9 = vshrl.u32 %v13021_v57, 16  ;;  %v4142_v53 = vshll.u32 %v3755_v45, 16 }
 0x157   :  { %v2412_v60 = vsel %vm12050_vm2, %v2407_v42, %v2411_v62  ;;  %v1017_v49 = vsel %vm12118_vm12, %v1009_v61, %v1016_v51  ;;  %1450 = vst [vmem:[#allocation2 + $0x114] sm:$0xf] %v1449_v12  ;;  %v1453_v23 = vsel %vm12109_vm11, %v1018_v46, %v1452_v14  ;;  %v4130_v30 = vrot.slane %v4129_v26, 4 }
 0x158   :  { %v2417_v63 = vrot.slane %v2416_v38, 4  ;;  %1451 = vst [vmem:[#allocation2 + $0x118] sm:$0xf] %v1017_v49  ;;  %1454 = vst [vmem:[#allocation2 + $0x11c] sm:$0x1] %v1453_v23  ;;  %v4138_v57 = vrot.slane %v4136_v9, 4  ;;  %v10858_v7 = vunpack.c.h.bf16 %v13043_v15  ;;  %v199_v39 = vmul.f32 %v12947_v35, %v10857_v33 }
 0x159   :  { %v4144_v34 = vrot.slane %v4142_v53, 5  ;;  %v4135_v21 = vsel %vm12050_vm2, %v4130_v30, %v13046_v36  ;;  %v10329_v31 = vrot.slane %v4780_v19, 9  ;;  %v5030_v29 = vrot.slane %v4781_v17, 5 }
 0x15a   :  { %v2422_v24 = vsel %vm12050_vm2, %v2417_v63, %v2421_v22  ;;  %v4139_v28 = vor.u32 %v4138_v57, %v13046_v36  ;;  %v200_v5 = vmul.f32 %v12947_v35, %v10858_v7  ;;  %v5033_v15 = vrot.slane %v4782_v52, 5  ;;  %v1455_v57 = vld [vmem:[#allocation2 + $0x120] sm:$0xf]  ;;  %v13082_v7 = vpop.f32.mrb[8].mxu1 }
 0x15b   :  { %v10175_v11 = vcombine.low %v2412_v60, %v2422_v24  ;;  %v269_v50 = vadd.f32 %v12907_v37, %v199_v39  ;;  %v5031_v25 = vsel %vm12077_vm8, %v10329_v31, %v5030_v29  ;;  %v5032_v54 = vrot.slane %v5030_v29, 4  ;;  %v3758_v31 = vld [vmem:[#allocation2 + $0xbc] sm:$0x1]  ;;  %v8119_v24 = vpop.f32.mrb[9].mxu1 }
 0x15c   :  { %v4140_v8 = vrot.slane %v4139_v28, 4  ;;  %v270_v33 = vadd.f32 %v12907_v37, %v200_v5  ;;  %v4147_v16 = vshrl.u32 %v13059_v6, 16  ;;  %v4150_v18 = vshll.u32 %v13059_v6, 16 }
 0x15d   :  { %8259 = vmatprep.mubr.bf16.mxu1 %v10175_v11  ;;  %v333_v56 = vmax.f32 %v269_v50, 0.0  ;;  %v5034_v4 = vsel %vm12077_vm8, %v5032_v54, %v5033_v15  ;;  %v4156_v41 = vshll.u32 %v3757_v48, 16  ;;  %v4160_v22 = vshrl.u32 %v3757_v48, 16  ;;  %v1459_v15 = vld [vmem:[#allocation2 + $0x128] sm:$0x1]  ;;  %v11080_v11 = vld [vmem:[%s14741_s0 + $0xb0] sm:$0xff]  }
 0x15e   :  { %8260 = vmatmul.mubr.bf16.gmra.mrb[80].mxu1 %v11677_v20  ;;  %v1883_v45 = vld [vmem:[#allocation2 + $0x114] sm:$0xf]  ;;  %v4145_v47 = vsel %vm12050_vm2, %v4140_v8, %v4144_v34  ;;  %v334_v36 = vmax.f32 %v270_v33, 0.0  ;;  %v10361_v62 = vcombine.low %v5031_v25, %v5034_v4  ;;  %v4149_v13 = vrot.slane %v4147_v16, 4  ;;  %v11073_v50 = vld [vmem:[%s14741_s0 + $0x78] sm:$0xff]  }
 0x15f   :  { %v1884_v55 = vld [vmem:[#allocation2 + $0x118] sm:$0xf]  ;;  %v1885_v61 = vld [vmem:[#allocation2 + $0x11c] sm:$0x1]  ;;  %v2424_v14 = vshrl.u32 %v1883_v45, 16  ;;  %v2427_v42 = vshll.u32 %v1883_v45, 16  ;;  %v10296_v51 = vcombine.low %v4135_v21, %v4145_v47  ;;  %v10685_v46 = vpack.c.bf16 %v333_v56, %v333_v56 }
 0x160   :  { %v2433_v26 = vshll.u32 %v1884_v55, 16  ;;  %v2437_v19 = vshrl.u32 %v1884_v55, 16  ;;  %v2443_v17 = vshll.u32 %v1885_v61, 16  ;;  %v10686_v38 = vpack.c.bf16 %v334_v36, %v334_v36  ;;  %v4786_v16 = vld [vmem:[#allocation2 + $0xe4] sm:$0xe]  ;;  %v13093_v56 = vpop.f32.mrb[10].mxu1 }
 0x161   :  { %v2426_v12 = vrot.slane %v2424_v14, 4  ;;  %v2429_v9 = vrot.slane %v2427_v42, 5  ;;  %8782 = vmatmul.mubr.bf16.gmra.mrb[52].mxu0 %v10296_v51  ;;  %v1020_v53 = vshrl.u32 %v10685_v46, 16  ;;  %v1023_v52 = vshll.u32 %v10685_v46, 16  ;;  %v11081_v47 = vld [vmem:[%s14741_s0 + $0xb8] sm:$0xff]   ;;  %v8122_v36 = vpop.f32.mrb[11].mxu1 }
 0x162   :  { %v2435_v60 = vrot.slane %v2433_v26, 5  ;;  %v2439_v49 = vrot.slane %v2437_v19, 4  ;;  %v2445_v23 = vrot.slane %v2443_v17, 5  ;;  %v1028_v30 = vshrl.u32 %v10686_v38, 16  ;;  %8789 = vmatprep.mubr.bf16.mxu0 %v10361_v62 }
 0x163   :  { %v2430_v6 = vor.u32 %v2429_v9, %v2426_v12  ;;  %v1022_v10 = vrot.slane %v1020_v53, 7  ;;  %v1031_v63 = vshll.u32 %v10686_v38, 16  ;;  %v4152_v34 = vrot.slane %v4150_v18, 5  ;;  %v11690_v18 = vld [vmem:[%s14740_s1 + $0x1d0] sm:$0xff]   ;;  %v13111_v9 = vld [vmem:[#allocation2 + $0xe8] sm:$0xf] }
 0x164   :  { %v2440_v21 = vor.u32 %v2439_v49, %v2435_v60  ;;  %v1030_v39 = vrot.slane %v1028_v30, 7  ;;  %v4158_v29 = vrot.slane %v4156_v41, 5  ;;  %v4162_v59 = vrot.slane %v4160_v22, 4  ;;  %8955 = vmatpush1.bf16.msra.mxu0 %v11690_v18  ;;  %v13116_v49 = vld [vmem:[#allocation2 + $0xec] sm:$0x1] }
 0x165   :  { %v2431_v20 = vrot.slane %v2430_v6, 4  ;;  %v1025_v28 = vor.u32 %v1023_v52, %v1022_v10  ;;  %v1026_v5 = vrot.slane %v1022_v10, 4  ;;  %v4153_v48 = vor.u32 %v4152_v34, %v4149_v13  ;;  %v11679_v13 = vld [vmem:[#allocation2 + $0x114] sm:$0xff]   ;;  %8956 = vmatprep.subr.bf16.mxu0 %v11780_v0 }
 0x166   :  { %v2441_v25 = vrot.slane %v2440_v21, 4  ;;  %v1033_v54 = vor.u32 %v1031_v63, %v1030_v39  ;;  %v1035_v8 = vrot.slane %v1030_v39, 4  ;;  %v4163_v33 = vor.u32 %v4162_v59, %v4158_v29 }
 0x167   :  { %v2436_v4 = vsel %vm12050_vm2, %v2431_v20, %v2435_v60  ;;  %v1456_v41 = vsel %vm12129_vm13, %v1025_v28, %v1455_v57  ;;  %v4154_v22 = vrot.slane %v4153_v48, 4  ;;  %v4166_v45 = vshll.u32 %v3758_v31, 16  ;;  %v13128_v31 = vld [vmem:[%s14741_s0 + $0xc0] sm:$0xff]  }
 0x168   :  { %v2446_v62 = vsel %vm12050_vm2, %v2441_v25, %v2445_v23  ;;  %v1034_v55 = vsel %vm12118_vm12, %v1026_v5, %v1033_v54  ;;  %1457 = vst [vmem:[#allocation2 + $0x120] sm:$0xf] %v1456_v41  ;;  %v1460_v61 = vsel %vm12109_vm11, %v1035_v8, %v1459_v15  ;;  %v4164_v14 = vrot.slane %v4163_v33, 4 }
 0x169   :  { %v10176_v42 = vcombine.low %v2436_v4, %v2446_v62  ;;  %1458 = vst [vmem:[#allocation2 + $0x124] sm:$0xf] %v1034_v55  ;;  %1461 = vst [vmem:[#allocation2 + $0x128] sm:$0x1] %v1460_v61  ;;  %v4159_v51 = vsel %vm12050_vm2, %v4154_v22, %v4158_v29  ;;  %v4168_v46 = vrot.slane %v4166_v45, 5  ;;  %v10861_v26 = vunpack.c.l.bf16 %v11080_v11 }
 0x16a   :  { %v10862_v19 = vunpack.c.h.bf16 %v11080_v11  ;;  %v10833_v17 = vunpack.c.l.bf16 %v11073_v50  ;;  %v10834_v38 = vunpack.c.h.bf16 %v11073_v50  ;;  %v10865_v12 = vunpack.c.l.bf16 %v11081_v47 }
 0x16b   :  { %8267 = vmatprep.mubr.bf16.mxu1 %v10176_v42  ;;  %v4169_v53 = vsel %vm12050_vm2, %v4164_v14, %v4168_v46  ;;  %v201_v52 = vmul.f32 %v12947_v35, %v10861_v26  ;;  %v10866_v60 = vunpack.c.h.bf16 %v11081_v47  ;;  %v10331_v23 = vrot.slane %v4786_v16, 9 }
 0x16c   :  { %8268 = vmatmul.mubr.bf16.gmra.mrb[84].mxu1 %v11679_v13  ;;  %v10297_v30 = vcombine.low %v4159_v51, %v4169_v53  ;;  %v202_v6 = vmul.f32 %v12947_v35, %v10862_v19  ;;  %v187_v10 = vmul.f32 %v12947_v35, %v10833_v17  ;;  %v188_v63 = vmul.f32 %v12947_v35, %v10834_v38 }
 0x16d   :  { %v271_v57 = vadd.f32 %v12907_v37, %v201_v52  ;;  %v203_v34 = vmul.f32 %v12947_v35, %v10865_v12  ;;  %v204_v21 = vmul.f32 %v12947_v35, %v10866_v60  ;;  %v5044_v39 = vrot.slane %v13111_v9, 5  ;;  %v1462_v52 = vld [vmem:[#allocation2 + $0x12c] sm:$0xf] }
 0x16e   :  { %8790 = vmatmul.mubr.bf16.gmra.mrb[56].mxu0 %v10297_v30  ;;  %v272_v29 = vadd.f32 %v12907_v37, %v202_v6  ;;  %v257_v59 = vadd.f32 %v12907_v37, %v187_v10  ;;  %v258_v24 = vadd.f32 %v12907_v37, %v188_v63  ;;  %v5047_v20 = vrot.slane %v13116_v49, 5  ;;  %v1466_v63 = vld [vmem:[#allocation2 + $0x134] sm:$0x1] }
 0x16f   :  { %v1886_v28 = vld [vmem:[#allocation2 + $0x120] sm:$0xf]  ;;  %v335_v5 = vmax.f32 %v271_v57, 0.0  ;;  %v13135_v35 = vadd.f32 %v12907_v37, %v203_v34  ;;  %v13138_v15 = vadd.f32 %v12907_v37, %v204_v21  ;;  %v13144_v48 = vsel %vm12077_vm8, %v10331_v23, %v5044_v39  ;;  %v13149_v23 = vpop.f32.mrb[12].mxu1 }
 0x170   :  { %v1887_v11 = vld [vmem:[#allocation2 + $0x124] sm:$0xf]  ;;  %v1888_v50 = vld [vmem:[#allocation2 + $0x128] sm:$0x1]  ;;  %v2448_v25 = vshrl.u32 %v1886_v28, 16  ;;  %v2451_v54 = vshll.u32 %v1886_v28, 16  ;;  %v10869_v8 = vunpack.c.l.bf16 %v13128_v31  ;;  %v10870_v33 = vunpack.c.h.bf16 %v13128_v31 }
 0x171   :  { %v2457_v16 = vshll.u32 %v1887_v11, 16  ;;  %v2461_v18 = vshrl.u32 %v1887_v11, 16  ;;  %v2467_v4 = vshll.u32 %v1888_v50, 16  ;;  %v10687_v41 = vpack.c.bf16 %v335_v5, %v335_v5  ;;  %v8127_v34 = vpop.f32.mrb[13].mxu1 }
 0x172   :  { %v2450_v37 = vrot.slane %v2448_v25, 4  ;;  %v2453_v22 = vrot.slane %v2451_v54, 5  ;;  %v336_v45 = vmax.f32 %v272_v29, 0.0  ;;  %v321_v47 = vmax.f32 %v257_v59, 0.0  ;;  %v13153_v28 = vpop.f32.mrb[14].mxu1 }
 0x173   :  { %v2459_v36 = vrot.slane %v2457_v16, 5  ;;  %v2463_v62 = vrot.slane %v2461_v18, 4  ;;  %v2469_v13 = vrot.slane %v2467_v4, 5  ;;  %v1037_v55 = vshrl.u32 %v10687_v41, 16  ;;  %v8130_v54 = vpop.f32.mrb[15].mxu1 }
 0x174   :  { %v2454_v61 = vor.u32 %v2453_v22, %v2450_v37  ;;  %v10688_v14 = vpack.c.bf16 %v336_v45, %v336_v45  ;;  %v1040_v42 = vshll.u32 %v10687_v41, 16  ;;  %v322_v51 = vmax.f32 %v258_v24, 0.0  ;;  %v1413_v37 = vld [vmem:[#allocation2 + $0xc0] sm:$0xf] }
 0x175   :  { %v2464_v46 = vor.u32 %v2463_v62, %v2459_v36  ;;  %v1039_v26 = vrot.slane %v1037_v55, 7  ;;  %v10673_v19 = vpack.c.bf16 %v321_v47, %v321_v47  ;;  %v337_v17 = vmax.f32 %v13135_v35, 0.0  ;;  %v11680_v35 = vld [vmem:[#allocation2 + $0x120] sm:$0xff]   ;;  %v1417_v47 = vld [vmem:[#allocation2 + $0xc8] sm:$0x1] }
 0x176   :  { %v2455_v38 = vrot.slane %v2454_v61, 4  ;;  %v1045_v12 = vshrl.u32 %v10688_v14, 16  ;;  %v1048_v53 = vshll.u32 %v10688_v14, 16  ;;  %v10674_v60 = vpack.c.bf16 %v322_v51, %v322_v51  ;;  %v1473_v54 = vld [vmem:[#allocation2 + $0x140] sm:$0x1] }
 0x177   :  { %v2465_v30 = vrot.slane %v2464_v46, 4  ;;  %v1042_v6 = vor.u32 %v1040_v42, %v1039_v26  ;;  %v1043_v10 = vrot.slane %v1039_v26, 4  ;;  %v918_v57 = vshrl.u32 %v10673_v19, 16 }
 0x178   :  { %v2460_v21 = vsel %vm12050_vm2, %v2455_v38, %v2459_v36  ;;  %v1047_v29 = vrot.slane %v1045_v12, 7  ;;  %v921_v59 = vshll.u32 %v10673_v19, 16  ;;  %v926_v24 = vshrl.u32 %v10674_v60, 16  ;;  %v3763_v19 = vld [vmem:[#allocation2 + $0xe8] sm:$0xf] }
 0x179   :  { %v2470_v5 = vsel %vm12050_vm2, %v2465_v30, %v2469_v13  ;;  %v1463_v11 = vsel %vm12129_vm13, %v1042_v6, %v1462_v52  ;;  %v920_v50 = vrot.slane %v918_v57, 7  ;;  %v929_v25 = vshll.u32 %v10674_v60, 16  ;;  %v3762_v13 = vld [vmem:[#allocation2 + $0xe4] sm:$0xf] }
 0x17a   :  { %v10177_v16 = vcombine.low %v2460_v21, %v2470_v5  ;;  %v1050_v18 = vor.u32 %v1048_v53, %v1047_v29  ;;  %v1052_v4 = vrot.slane %v1047_v29, 4  ;;  %1464 = vst [vmem:[#allocation2 + $0x12c] sm:$0xf] %v1463_v11  ;;  %v928_v41 = vrot.slane %v926_v24, 7 }
 0x17b   :  { %v923_v22 = vor.u32 %v921_v59, %v920_v50  ;;  %v924_v45 = vrot.slane %v920_v50, 4  ;;  %v338_v36 = vmax.f32 %v13138_v15, 0.0  ;;  %v10689_v62 = vpack.c.bf16 %v337_v17, %v337_v17 }
 0x17c   :  { %8275 = vmatprep.mubr.bf16.mxu1 %v10177_v16  ;;  %v1051_v55 = vsel %vm12118_vm12, %v1043_v10, %v1050_v18  ;;  %v1467_v61 = vsel %vm12109_vm11, %v1052_v4, %v1466_v63  ;;  %v931_v14 = vor.u32 %v929_v25, %v928_v41  ;;  %v933_v42 = vrot.slane %v928_v41, 4  ;;  %v1469_v10 = vld [vmem:[#allocation2 + $0x138] sm:$0xf]  ;;  %v13186_v18 = vpop.f32.mrb[16].mxu1 }
 0x17d   :  { %8276 = vmatmul.mubr.bf16.gmra.mrb[88].mxu1 %v11680_v35  ;;  %1465 = vst [vmem:[#allocation2 + $0x130] sm:$0xf] %v1051_v55  ;;  %1468 = vst [vmem:[#allocation2 + $0x134] sm:$0x1] %v1467_v61  ;;  %v1414_v51 = vsel %vm12129_vm13, %v923_v22, %v1413_v37  ;;  %v10690_v46 = vpack.c.bf16 %v338_v36, %v338_v36  ;;  %v1054_v26 = vshrl.u32 %v10689_v62, 16  ;;  %v1057_v15 = vshll.u32 %v10689_v62, 16 }
 0x17e   :  { %v932_v17 = vsel %vm12118_vm12, %v924_v45, %v931_v14  ;;  %1415 = vst [vmem:[#allocation2 + $0xc0] sm:$0xf] %v1414_v51  ;;  %v1418_v38 = vsel %vm12109_vm11, %v933_v42, %v1417_v47  ;;  %v5046_v12 = vrot.slane %v5044_v39, 4  ;;  %v4195_v53 = vshrl.u32 %v3762_v13, 16  ;;  %v11693_v4 = vld [vmem:[%s14740_s1 + $0x1d8] sm:$0xff]  }
 0x17f   :  { %1416 = vst [vmem:[#allocation2 + $0xc4] sm:$0xf] %v932_v17  ;;  %1419 = vst [vmem:[#allocation2 + $0xc8] sm:$0x1] %v1418_v38  ;;  %v1056_v52 = vrot.slane %v1054_v26, 7  ;;  %v1062_v60 = vshrl.u32 %v10690_v46, 16  ;;  %8957 = vmatpush1.bf16.msra.mxu0 %v11693_v4 }
 0x180   :  { %v1065_v30 = vshll.u32 %v10690_v46, 16  ;;  %v4198_v6 = vshll.u32 %v3762_v13, 16  ;;  %v13176_v63 = vsel %vm12077_vm8, %v5046_v12, %v5047_v20  ;;  %v4197_v57 = vrot.slane %v4195_v53, 4  ;;  %v13194_v36 = vld [vmem:[%s14742_s2] ss:$0 sm:$0xff]  ;;  %8958 = vmatprep.subr.bf16.mxu0 %v11780_v0 }
 0x181   :  { %v4204_v34 = vshll.u32 %v3763_v19, 16  ;;  %v4208_v21 = vshrl.u32 %v3763_v19, 16  ;;  %v1889_v29 = vld [vmem:[#allocation2 + $0x12c] sm:$0xf]  ;;  %v1059_v9 = vor.u32 %v1057_v15, %v1056_v52  ;;  %v1060_v39 = vrot.slane %v1056_v52, 4 }
 0x182   :  { %v1064_v59 = vrot.slane %v1062_v60, 7  ;;  %v10363_v24 = vcombine.low %v13144_v48, %v13176_v63  ;;  %v2472_v5 = vshrl.u32 %v1889_v29, 16  ;;  %v2475_v35 = vshll.u32 %v1889_v29, 16 }
 0x183   :  { %v4200_v11 = vrot.slane %v4198_v6, 5  ;;  %v13180_v50 = vrot.slane %v4204_v34, 5  ;;  %v1470_v20 = vsel %vm12129_vm13, %v1059_v9, %v1469_v10  ;;  %v13184_v16 = vrot.slane %v4208_v21, 4 }
 0x184   :  { %v1067_v49 = vor.u32 %v1065_v30, %v1064_v59  ;;  %v1069_v25 = vrot.slane %v1064_v59, 4  ;;  %v1890_v41 = vld [vmem:[#allocation2 + $0x130] sm:$0xf]  ;;  %v1891_v37 = vld [vmem:[#allocation2 + $0x134] sm:$0x1]  ;;  %v2474_v22 = vrot.slane %v2472_v5, 4  ;;  %v13199_v62 = vmul.f32 %v13194_v36, %v10869_v8 }
 0x185   :  { %v2477_v45 = vrot.slane %v2475_v35, 5  ;;  %1471 = vst [vmem:[#allocation2 + $0x138] sm:$0xf] %v1470_v20  ;;  %v4201_v47 = vor.u32 %v4200_v11, %v4197_v57  ;;  %v2481_v13 = vshll.u32 %v1890_v41, 16  ;;  %v2485_v55 = vshrl.u32 %v1890_v41, 16 }
 0x186   :  { %v2491_v61 = vshll.u32 %v1891_v37, 16  ;;  %v4783_v14 = vld [vmem:[#allocation2 + $0xc0] sm:$0xe]  ;;  %v1068_v42 = vsel %vm12118_vm12, %v1060_v39, %v1067_v49  ;;  %v4784_v46 = vld [vmem:[#allocation2 + $0xc4] sm:$0xf]  ;;  %v1474_v19 = vsel %vm12109_vm11, %v1069_v25, %v1473_v54  ;;  %v4211_v57 = vor.u32 %v13184_v16, %v13180_v50  ;;  %v8135_v49 = vpop.f32.mrb[17].mxu1 }
 0x187   :  { %v2478_v51 = vor.u32 %v2477_v45, %v2474_v22  ;;  %v4785_v26 = vld [vmem:[#allocation2 + $0xc8] sm:$0x1]  ;;  %v10330_v15 = vrot.slane %v4783_v14, 9  ;;  %1472 = vst [vmem:[#allocation2 + $0x13c] sm:$0xf] %v1068_v42  ;;  %v13205_v17 = vrot.slane %v4201_v47, 4 }
 0x188   :  { %v2483_v8 = vrot.slane %v2481_v13, 5  ;;  %v2487_v38 = vrot.slane %v2485_v55, 4  ;;  %v2493_v12 = vrot.slane %v2491_v61, 5  ;;  %v5037_v53 = vrot.slane %v4784_v46, 5  ;;  %1475 = vst [vmem:[#allocation2 + $0x140] sm:$0x1] %v1474_v19 }
 0x189   :  { %v2479_v52 = vrot.slane %v2478_v51, 4  ;;  %v5040_v60 = vrot.slane %v4785_v26, 5  ;;  %v3759_v30 = vld [vmem:[#allocation2 + $0xc0] sm:$0xf]  ;;  %v3760_v6 = vld [vmem:[#allocation2 + $0xc4] sm:$0xf]  ;;  %v4207_v10 = vsel %vm12050_vm2, %v13205_v17, %v13180_v50 }
 0x18a   :  { %v2488_v34 = vor.u32 %v2487_v38, %v2483_v8  ;;  %v5038_v21 = vsel %vm12077_vm8, %v10330_v15, %v5037_v53  ;;  %v5039_v29 = vrot.slane %v5037_v53, 4  ;;  %v3761_v9 = vld [vmem:[#allocation2 + $0xc8] sm:$0x1]  ;;  %v4171_v39 = vshrl.u32 %v3759_v30, 16  ;;  %v13220_v41 = vpop.f32.mrb[18].mxu1  ;;  %v11682_v14 = vld [vmem:[#allocation2 + $0x12c] sm:$0xff]  }
 0x18b   :  { %v2484_v59 = vsel %vm12050_vm2, %v2479_v52, %v2483_v8  ;;  %v4174_v5 = vshll.u32 %v3759_v30, 16  ;;  %v4180_v35 = vshll.u32 %v3760_v6, 16  ;;  %v4184_v11 = vshrl.u32 %v3760_v6, 16  ;;  %v3764_v13 = vld [vmem:[#allocation2 + $0xec] sm:$0x1]  ;;  %v8138_v55 = vpop.f32.mrb[19].mxu1 }
 0x18c   :  { %v2489_v25 = vrot.slane %v2488_v34, 4  ;;  %v5041_v20 = vsel %vm12077_vm8, %v5039_v29, %v5040_v60  ;;  %v4173_v54 = vrot.slane %v4171_v39, 4  ;;  %v4190_v16 = vshll.u32 %v3761_v9, 16  ;;  %v1892_v4 = vld [vmem:[#allocation2 + $0x138] sm:$0xf] }
 0x18d   :  { %v10362_v37 = vcombine.low %v5038_v21, %v5041_v20  ;;  %v4176_v22 = vrot.slane %v4174_v5, 5  ;;  %v4182_v45 = vrot.slane %v4180_v35, 5  ;;  %v4186_v47 = vrot.slane %v4184_v11, 4  ;;  %v4789_v9 = vld [vmem:[#allocation2 + $0xf0] sm:$0xe] }
 0x18e   :  { %v2494_v61 = vsel %vm12050_vm2, %v2489_v25, %v2493_v12  ;;  %v4192_v42 = vrot.slane %v4190_v16, 5  ;;  %v1893_v51 = vld [vmem:[#allocation2 + $0x13c] sm:$0xf]  ;;  %v2496_v46 = vshrl.u32 %v1892_v4, 16  ;;  %v2499_v26 = vshll.u32 %v1892_v4, 16 }
 0x18f   :  { %v10178_v15 = vcombine.low %v2484_v59, %v2494_v61  ;;  %8797 = vmatprep.mubr.bf16.mxu0 %v10362_v37  ;;  %v4177_v19 = vor.u32 %v4176_v22, %v4173_v54  ;;  %v4187_v8 = vor.u32 %v4186_v47, %v4182_v45  ;;  %v1894_v38 = vld [vmem:[#allocation2 + $0x140] sm:$0x1]  ;;  %v2505_v53 = vshll.u32 %v1893_v51, 16  ;;  %v4790_v11 = vld [vmem:[#allocation2 + $0xf4] sm:$0xf] }
 0x190   :  { %v2498_v52 = vrot.slane %v2496_v46, 4  ;;  %v2501_v60 = vrot.slane %v2499_v26, 5  ;;  %v2509_v30 = vshrl.u32 %v1893_v51, 16  ;;  %v2515_v6 = vshll.u32 %v1894_v38, 16  ;;  %v4791_v16 = vld [vmem:[#allocation2 + $0xf8] sm:$0x1] }
 0x191   :  { %8283 = vmatprep.mubr.bf16.mxu1 %v10178_v15  ;;  %v4178_v34 = vrot.slane %v4177_v19, 4  ;;  %v4188_v21 = vrot.slane %v4187_v8, 4  ;;  %v2507_v29 = vrot.slane %v2505_v53, 5  ;;  %v4212_v12 = vrot.slane %v4211_v57, 4  ;;  %v13234_v57 = vld [vmem:[%s14743_s3] ss:$0 sm:$0xff] }
 0x192   :  { %8284 = vmatmul.mubr.bf16.gmra.mrb[92].mxu1 %v11682_v14  ;;  %v2502_v39 = vor.u32 %v2501_v60, %v2498_v52  ;;  %v2511_v5 = vrot.slane %v2509_v30, 4  ;;  %v2517_v35 = vrot.slane %v2515_v6, 5  ;;  %v4214_v59 = vshll.u32 %v3764_v13, 16  ;;  %v3765_v61 = vld [vmem:[#allocation2 + $0xf0] sm:$0xf]  ;;  %v11683_v15 = vld [vmem:[#allocation2 + $0x138] sm:$0xff]  }
 0x193   :  { %v4183_v49 = vsel %vm12050_vm2, %v4178_v34, %v4182_v45  ;;  %v4193_v25 = vsel %vm12050_vm2, %v4188_v21, %v4192_v42  ;;  %v206_v20 = vmul.f32 %v13194_v36, %v10870_v33  ;;  %v275_v54 = vadd.f32 %v13234_v57, %v13199_v62  ;;  %v13239_v33 = vpop.f32.mrb[20].mxu1  ;;  %v3766_v46 = vld [vmem:[#allocation2 + $0xf4] sm:$0xf]  ;;  %v3767_v52 = vld [vmem:[#allocation2 + $0xf8] sm:$0x1] }
 0x194   :  { %v10298_v4 = vcombine.low %v4183_v49, %v4193_v25  ;;  %v2503_v37 = vrot.slane %v2502_v39, 4  ;;  %v2512_v22 = vor.u32 %v2511_v5, %v2507_v29  ;;  %v4216_v45 = vrot.slane %v4214_v59, 5  ;;  %v8143_v26 = vpop.f32.mrb[21].mxu1  ;;  %v1476_v17 = vld [vmem:[#allocation2 + $0x144] sm:$0xf]  ;;  %v11083_v5 = vld [vmem:[%s14741_s0 + $0xc8] sm:$0xff]  }
 0x195   :  { %v276_v47 = vadd.f32 %v13234_v57, %v206_v20  ;;  %v339_v13 = vmax.f32 %v275_v54, 0.0  ;;  %v10332_v55 = vrot.slane %v4789_v9, 9  ;;  %v5051_v31 = vrot.slane %v4790_v11, 5  ;;  %v13255_v60 = vpop.f32.mrb[22].mxu1  ;;  %v4792_v25 = vld [vmem:[#allocation2 + $0xfc] sm:$0xe] }
 0x196   :  { %8798 = vmatmul.mubr.bf16.gmra.mrb[60].mxu0 %v10298_v4  ;;  %v2508_v14 = vsel %vm12050_vm2, %v2503_v37, %v2507_v29  ;;  %v2513_v42 = vrot.slane %v2512_v22, 4  ;;  %v4217_v62 = vsel %vm12050_vm2, %v4212_v12, %v4216_v45  ;;  %v5054_v51 = vrot.slane %v4791_v16, 5  ;;  %v8146_v6 = vpop.f32.mrb[23].mxu1  ;;  %v1480_v20 = vld [vmem:[#allocation2 + $0x14c] sm:$0x1] }
 0x197   :  { %8805 = vmatprep.mubr.bf16.mxu0 %v10363_v24  ;;  %v10299_v19 = vcombine.low %v4207_v10, %v4217_v62  ;;  %v340_v8 = vmax.f32 %v276_v47, 0.0  ;;  %v10691_v38 = vpack.c.bf16 %v339_v13, %v339_v13  ;;  %v5052_v53 = vsel %vm12077_vm8, %v10332_v55, %v5051_v31  ;;  %v4793_v22 = vld [vmem:[#allocation2 + $0x100] sm:$0xf]  ;;  %v13267_v26 = vpop.f32.mrb[24].mxu1 }
 0x198   :  { %v2518_v30 = vsel %vm12050_vm2, %v2513_v42, %v2517_v35  ;;  %v5053_v48 = vrot.slane %v5051_v31, 4  ;;  %v4219_v63 = vshrl.u32 %v3765_v61, 16  ;;  %v4222_v24 = vshll.u32 %v3765_v61, 16  ;;  %v4794_v31 = vld [vmem:[#allocation2 + $0x104] sm:$0x1] }
 0x199   :  { %v10179_v34 = vcombine.low %v2508_v14, %v2518_v30  ;;  %v10692_v21 = vpack.c.bf16 %v340_v8, %v340_v8  ;;  %v1071_v29 = vshrl.u32 %v10691_v38, 16  ;;  %v1074_v50 = vshll.u32 %v10691_v38, 16  ;;  %v11696_v61 = vld [vmem:[%s14740_s1 + $0x200] sm:$0xff]   ;;  %v8151_v30 = vpop.f32.mrb[25].mxu1 }
 0x19a   :  { %v5055_v10 = vsel %vm12077_vm8, %v5053_v48, %v5054_v51  ;;  %v4221_v12 = vrot.slane %v4219_v63, 4  ;;  %v4224_v9 = vrot.slane %v4222_v24, 5  ;;  %v4228_v39 = vshll.u32 %v3766_v46, 16  ;;  %11161 = vmatprep.subr.bf16.mxu1 %v11696_v61 }
 0x19b   :  { %8291 = vmatprep.mubr.bf16.mxu1 %v10179_v34  ;;  %v1073_v35 = vrot.slane %v1071_v29, 7  ;;  %v1079_v59 = vshrl.u32 %v10692_v21, 16  ;;  %v1082_v11 = vshll.u32 %v10692_v21, 16  ;;  %v10364_v49 = vcombine.low %v5052_v53, %v5055_v10  ;;  %v13280_v34 = vpop.f32.mrb[26].mxu1 }
 0x19c   :  { %8292 = vmatmul.mubr.bf16.gmra.mrb[96].mxu1 %v11683_v15  ;;  %v4225_v54 = vor.u32 %v4224_v9, %v4221_v12  ;;  %v4230_v16 = vrot.slane %v4228_v39, 5  ;;  %v4232_v4 = vshrl.u32 %v3766_v46, 16  ;;  %v4238_v37 = vshll.u32 %v3767_v52, 16  ;;  %v11697_v46 = vld [vmem:[%s14740_s1 + $0x1e0] sm:$0xff]   ;;  %v3768_v52 = vld [vmem:[#allocation2 + $0xfc] sm:$0xf] }
 0x19d   :  { %v1076_v45 = vor.u32 %v1074_v50, %v1073_v35  ;;  %v1077_v47 = vrot.slane %v1073_v35, 4  ;;  %v1081_v13 = vrot.slane %v1079_v59, 7  ;;  %v10873_v55 = vunpack.c.l.bf16 %v11083_v5  ;;  %8959 = vmatpush1.bf16.msra.mxu0 %v11697_v46  ;;  %v8154_v10 = vpop.f32.mrb[27].mxu1 }
 0x19e   :  { %8806 = vmatmul.mubr.bf16.gmra.mrb[64].mxu0 %v10299_v19  ;;  %v4226_v14 = vrot.slane %v4225_v54, 4  ;;  %v4234_v42 = vrot.slane %v4232_v4, 4  ;;  %v4240_v62 = vrot.slane %v4238_v37, 5  ;;  %v10874_v51 = vunpack.c.h.bf16 %v11083_v5  ;;  %v13275_v19 = vld [vmem:[#allocation2 + $0x100] sm:$0xf]  ;;  %8960 = vmatprep.subr.bf16.mxu0 %v11780_v0  ;;  %v13297_v4 = vld [vmem:[%s14741_s0 + $0xd0] sm:$0xff]  }
 0x19f   :  { %v1084_v15 = vor.u32 %v1082_v11, %v1081_v13  ;;  %v1086_v8 = vrot.slane %v1081_v13, 4  ;;  %v1477_v38 = vsel %vm12129_vm13, %v1076_v45, %v1476_v17  ;;  %8813 = vmatprep.mubr.bf16.mxu0 %v10364_v49  ;;  %v207_v53 = vmul.f32 %v13194_v36, %v10873_v55  ;;  %v13301_v13 = vpop.f32.mrb[28].mxu1 }
 0x1a0   :  { %1478 = vst [vmem:[#allocation2 + $0x144] sm:$0xf] %v1477_v38  ;;  %v4231_v48 = vsel %vm12050_vm2, %v4226_v14, %v4230_v16  ;;  %v4235_v63 = vor.u32 %v4234_v42, %v4230_v16  ;;  %v208_v24 = vmul.f32 %v13194_v36, %v10874_v51  ;;  %v10333_v6 = vrot.slane %v4792_v25, 9  ;;  %v13309_v42 = vld [vmem:[%s14741_s0 + $0xd8] sm:$0xff]  }
 0x1a1   :  { %v1085_v21 = vsel %vm12118_vm12, %v1077_v47, %v1084_v15  ;;  %v1481_v29 = vsel %vm12109_vm11, %v1086_v8, %v1480_v20  ;;  %v277_v50 = vadd.f32 %v13234_v57, %v207_v53  ;;  %v5058_v17 = vrot.slane %v4793_v22, 5 }
 0x1a2   :  { %1479 = vst [vmem:[#allocation2 + $0x148] sm:$0xf] %v1085_v21  ;;  %1482 = vst [vmem:[#allocation2 + $0x14c] sm:$0x1] %v1481_v29  ;;  %v4236_v12 = vrot.slane %v4235_v63, 4  ;;  %v278_v9 = vadd.f32 %v13234_v57, %v208_v24  ;;  %v5061_v39 = vrot.slane %v4794_v31, 5  ;;  %v10877_v38 = vunpack.c.l.bf16 %v13297_v4 }
 0x1a3   :  { %v4243_v5 = vshrl.u32 %v3768_v52, 16  ;;  %v341_v35 = vmax.f32 %v277_v50, 0.0  ;;  %v5059_v59 = vsel %vm12077_vm8, %v10333_v6, %v5058_v17  ;;  %v5060_v11 = vrot.slane %v5058_v17, 4 }
 0x1a4   :  { %v4246_v49 = vshll.u32 %v3768_v52, 16  ;;  %v4241_v25 = vsel %vm12050_vm2, %v4236_v12, %v4240_v62  ;;  %v342_v20 = vmax.f32 %v278_v9, 0.0  ;;  %v4252_v16 = vshll.u32 %v13275_v19, 16  ;;  %v8159_v62 = vpop.f32.mrb[29].mxu1 }
 0x1a5   :  { %v4245_v54 = vrot.slane %v4243_v5, 4  ;;  %v10300_v37 = vcombine.low %v4231_v48, %v4241_v25  ;;  %v10693_v22 = vpack.c.bf16 %v341_v35, %v341_v35  ;;  %v5062_v45 = vsel %vm12077_vm8, %v5060_v11, %v5061_v39  ;;  %v13316_v9 = vpop.f32.mrb[30].mxu1 }
 0x1a6   :  { %v4248_v47 = vrot.slane %v4246_v49, 5  ;;  %v10694_v55 = vpack.c.bf16 %v342_v20, %v342_v20  ;;  %v10365_v31 = vcombine.low %v5059_v59, %v5062_v45  ;;  %v13303_v61 = vrot.slane %v4252_v16, 5  ;;  %v1483_v59 = vld [vmem:[#allocation2 + $0x150] sm:$0xf] }
 0x1a7   :  { %v4256_v14 = vshrl.u32 %v13275_v19, 16  ;;  %v1895_v51 = vld [vmem:[#allocation2 + $0x144] sm:$0xf]  ;;  %8814 = vmatmul.mubr.bf16.gmra.mrb[68].mxu0 %v10300_v37  ;;  %v1088_v46 = vshrl.u32 %v10693_v22, 16  ;;  %v1091_v15 = vshll.u32 %v10693_v22, 16  ;;  %v10878_v24 = vunpack.c.h.bf16 %v13297_v4  ;;  %v8162_v4 = vpop.f32.mrb[31].mxu1 }
 0x1a8   :  { %v4249_v8 = vor.u32 %v4248_v47, %v4245_v54  ;;  %v2520_v53 = vshrl.u32 %v1895_v51, 16  ;;  %v2523_v52 = vshll.u32 %v1895_v51, 16  ;;  %v1096_v30 = vshrl.u32 %v10694_v55, 16  ;;  %8821 = vmatprep.mubr.bf16.mxu0 %v10365_v31  ;;  %v3770_v54 = vld [vmem:[#allocation2 + $0x104] sm:$0x1] }
 0x1a9   :  { %v1099_v48 = vshll.u32 %v10694_v55, 16  ;;  %v1896_v63 = vld [vmem:[#allocation2 + $0x148] sm:$0xf]  ;;  %v1897_v19 = vld [vmem:[#allocation2 + $0x14c] sm:$0x1]  ;;  %v209_v6 = vmul.f32 %v13194_v36, %v10877_v38  ;;  %v10881_v21 = vunpack.c.l.bf16 %v13309_v42  ;;  %v10882_v29 = vunpack.c.h.bf16 %v13309_v42 }
 0x1aa   :  { %v2522_v50 = vrot.slane %v2520_v53, 4  ;;  %v2525_v17 = vrot.slane %v2523_v52, 5  ;;  %v2529_v10 = vshll.u32 %v1896_v63, 16  ;;  %v2533_v12 = vshrl.u32 %v1896_v63, 16  ;;  %v1487_v55 = vld [vmem:[#allocation2 + $0x158] sm:$0x1] }
 0x1ab   :  { %v2539_v39 = vshll.u32 %v1897_v19, 16  ;;  %v1090_v5 = vrot.slane %v1088_v46, 7  ;;  %v1098_v35 = vrot.slane %v1096_v30, 7  ;;  %v4250_v11 = vrot.slane %v4249_v8, 4  ;;  %v4795_v38 = vld [vmem:[#allocation2 + $0x108] sm:$0xe] }
 0x1ac   :  { %v2526_v49 = vor.u32 %v2525_v17, %v2522_v50  ;;  %v2531_v25 = vrot.slane %v2529_v10, 5  ;;  %v2535_v20 = vrot.slane %v2533_v12, 4  ;;  %v4258_v16 = vrot.slane %v4256_v14, 4  ;;  %v4796_v52 = vld [vmem:[#allocation2 + $0x10c] sm:$0xf]  ;;  %v11685_v12 = vld [vmem:[#allocation2 + $0x144] sm:$0xff]  }
 0x1ad   :  { %v2541_v37 = vrot.slane %v2539_v39, 5  ;;  %v1093_v22 = vor.u32 %v1091_v15, %v1090_v5  ;;  %v1094_v45 = vrot.slane %v1090_v5, 4  ;;  %v1101_v47 = vor.u32 %v1099_v48, %v1098_v35  ;;  %v4797_v30 = vld [vmem:[#allocation2 + $0x110] sm:$0x1]  ;;  %v11700_v48 = vld [vmem:[%s14740_s1 + $0x1e8] sm:$0xff]  }
 0x1ae   :  { %v2527_v31 = vrot.slane %v2526_v49, 4  ;;  %v2536_v62 = vor.u32 %v2535_v20, %v2531_v25  ;;  %v1103_v51 = vrot.slane %v1098_v35, 4  ;;  %v4255_v46 = vsel %vm12050_vm2, %v4250_v11, %v13303_v61  ;;  %v3771_v10 = vld [vmem:[#allocation2 + $0x108] sm:$0xf]  ;;  %8961 = vmatpush1.bf16.msra.mxu0 %v11700_v48  ;;  %v3773_v4 = vld [vmem:[#allocation2 + $0x110] sm:$0x1] }
 0x1af   :  { %v1102_v8 = vsel %vm12118_vm12, %v1094_v45, %v1101_v47  ;;  %v1484_v14 = vsel %vm12129_vm13, %v1093_v22, %v1483_v59  ;;  %v4259_v53 = vor.u32 %v4258_v16, %v13303_v61  ;;  %v4262_v15 = vshll.u32 %v3770_v54, 16  ;;  %v13334_v61 = vld [vmem:[#allocation2 + $0x10c] sm:$0xf]  ;;  %8962 = vmatprep.subr.bf16.mxu0 %v11780_v0 }
 0x1b0   :  { %v2532_v63 = vsel %vm12050_vm2, %v2527_v31, %v2531_v25  ;;  %v2537_v19 = vrot.slane %v2536_v62, 4  ;;  %1485 = vst [vmem:[#allocation2 + $0x150] sm:$0xf] %v1484_v14  ;;  %1486 = vst [vmem:[#allocation2 + $0x154] sm:$0xf] %v1102_v8  ;;  %v1488_v50 = vsel %vm12109_vm11, %v1103_v51, %v1487_v55  ;;  %v210_v17 = vmul.f32 %v13194_v36, %v10878_v24 }
 0x1b1   :  { %1489 = vst [vmem:[#allocation2 + $0x158] sm:$0x1] %v1488_v50  ;;  %v4260_v39 = vrot.slane %v4259_v53, 4  ;;  %v4264_v5 = vrot.slane %v4262_v15, 5  ;;  %v279_v35 = vadd.f32 %v13234_v57, %v209_v6  ;;  %v10334_v59 = vrot.slane %v4795_v38, 9 }
 0x1b2   :  { %v2542_v11 = vsel %vm12050_vm2, %v2537_v19, %v2541_v37  ;;  %v280_v49 = vadd.f32 %v13234_v57, %v210_v17  ;;  %v5065_v25 = vrot.slane %v4796_v52, 5  ;;  %v5068_v20 = vrot.slane %v4797_v30, 5  ;;  %v13348_v37 = vld [vmem:[%s14741_s0 + $0xe0] sm:$0xff]  }
 0x1b3   :  { %v10180_v24 = vcombine.low %v2532_v63, %v2542_v11  ;;  %v4265_v54 = vsel %vm12050_vm2, %v4260_v39, %v4264_v5  ;;  %v343_v16 = vmax.f32 %v279_v35, 0.0  ;;  %v4267_v22 = vshrl.u32 %v3771_v10, 16 }
 0x1b4   :  { %v10301_v45 = vcombine.low %v4255_v46, %v4265_v54  ;;  %v344_v6 = vmax.f32 %v280_v49, 0.0  ;;  %v5066_v47 = vsel %vm12077_vm8, %v10334_v59, %v5065_v25  ;;  %v5067_v55 = vrot.slane %v5065_v25, 4 }
 0x1b5   :  { %8299 = vmatprep.mubr.bf16.mxu1 %v10180_v24  ;;  %v10695_v31 = vpack.c.bf16 %v343_v16, %v343_v16  ;;  %v4269_v62 = vrot.slane %v4267_v22, 4  ;;  %v4270_v51 = vshll.u32 %v3771_v10, 16  ;;  %v4276_v38 = vshll.u32 %v13334_v61, 16 }
 0x1b6   :  { %8300 = vmatmul.mubr.bf16.gmra.mrb[100].mxu1 %v11685_v12  ;;  %8822 = vmatmul.mubr.bf16.gmra.mrb[72].mxu0 %v10301_v45  ;;  %v10696_v8 = vpack.c.bf16 %v344_v6, %v344_v6  ;;  %v5069_v46 = vsel %vm12077_vm8, %v5067_v55, %v5068_v20  ;;  %v4280_v14 = vshrl.u32 %v13334_v61, 16  ;;  %v4286_v53 = vshll.u32 %v3773_v4, 16  ;;  %v1490_v4 = vld [vmem:[#allocation2 + $0x15c] sm:$0xf] }
 0x1b7   :  { %v1898_v15 = vld [vmem:[#allocation2 + $0x150] sm:$0xf]  ;;  %v1899_v52 = vld [vmem:[#allocation2 + $0x154] sm:$0xf]  ;;  %v10366_v30 = vcombine.low %v5066_v47, %v5069_v46  ;;  %v211_v48 = vmul.f32 %v13194_v36, %v10881_v21  ;;  %v212_v63 = vmul.f32 %v13194_v36, %v10882_v29  ;;  %v10885_v19 = vunpack.c.l.bf16 %v13348_v37 }
 0x1b8   :  { %v1900_v50 = vld [vmem:[#allocation2 + $0x158] sm:$0x1]  ;;  %v2544_v17 = vshrl.u32 %v1898_v15, 16  ;;  %v2547_v10 = vshll.u32 %v1898_v15, 16  ;;  %v2553_v12 = vshll.u32 %v1899_v52, 16  ;;  %v2557_v39 = vshrl.u32 %v1899_v52, 16 }
 0x1b9   :  { %v2563_v61 = vshll.u32 %v1900_v50, 16  ;;  %v1105_v5 = vshrl.u32 %v10695_v31, 16  ;;  %v1108_v35 = vshll.u32 %v10695_v31, 16  ;;  %8829 = vmatprep.mubr.bf16.mxu0 %v10366_v30  ;;  %v281_v59 = vadd.f32 %v13234_v57, %v211_v48  ;;  %v1494_v31 = vld [vmem:[#allocation2 + $0x164] sm:$0x1]  ;;  %v11704_v15 = vld [vmem:[%s14740_s1 + $0x1f0] sm:$0xff]  }
 0x1ba   :  { %v2546_v11 = vrot.slane %v2544_v17, 4  ;;  %v2549_v49 = vrot.slane %v2547_v10, 5  ;;  %v2555_v21 = vrot.slane %v2553_v12, 5  ;;  %v2559_v25 = vrot.slane %v2557_v39, 4  ;;  %v4798_v17 = vld [vmem:[#allocation2 + $0x114] sm:$0xe]  ;;  %8963 = vmatpush1.bf16.msra.mxu0 %v11704_v15 }
 0x1bb   :  { %v2565_v42 = vrot.slane %v2563_v61, 5  ;;  %v1107_v20 = vrot.slane %v1105_v5, 7  ;;  %v1113_v29 = vshrl.u32 %v10696_v8, 16  ;;  %v1116_v24 = vshll.u32 %v10696_v8, 16  ;;  %v4799_v12 = vld [vmem:[#allocation2 + $0x118] sm:$0xf]  ;;  %8964 = vmatprep.subr.bf16.mxu0 %v11780_v0 }
 0x1bc   :  { %v2550_v54 = vor.u32 %v2549_v49, %v2546_v11  ;;  %v2560_v16 = vor.u32 %v2559_v25, %v2555_v21  ;;  %v4272_v22 = vrot.slane %v4270_v51, 5  ;;  %v4278_v45 = vrot.slane %v4276_v38, 5  ;;  %v4800_v39 = vld [vmem:[#allocation2 + $0x11c] sm:$0x1]  ;;  %v11686_v5 = vld [vmem:[#allocation2 + $0x150] sm:$0xff]  }
 0x1bd   :  { %v1110_v6 = vor.u32 %v1108_v35, %v1107_v20  ;;  %v1111_v47 = vrot.slane %v1107_v20, 4  ;;  %v1115_v55 = vrot.slane %v1113_v29, 7  ;;  %v4282_v46 = vrot.slane %v4280_v14, 4  ;;  %v3774_v35 = vld [vmem:[#allocation2 + $0x114] sm:$0xf] }
 0x1be   :  { %v2551_v52 = vrot.slane %v2550_v54, 4  ;;  %v2561_v30 = vrot.slane %v2560_v16, 4  ;;  %v4273_v48 = vor.u32 %v4272_v22, %v4269_v62  ;;  %v4288_v50 = vrot.slane %v4286_v53, 5  ;;  %v13372_v11 = vld [vmem:[#allocation2 + $0x118] sm:$0xf] }
 0x1bf   :  { %v1118_v8 = vor.u32 %v1116_v24, %v1115_v55  ;;  %v1120_v10 = vrot.slane %v1115_v55, 4  ;;  %v1491_v51 = vsel %vm12129_vm13, %v1110_v6, %v1490_v4  ;;  %v4283_v38 = vor.u32 %v4282_v46, %v4278_v45 }
 0x1c0   :  { %v2556_v14 = vsel %vm12050_vm2, %v2551_v52, %v2555_v21  ;;  %v2566_v61 = vsel %vm12050_vm2, %v2561_v30, %v2565_v42  ;;  %1492 = vst [vmem:[#allocation2 + $0x15c] sm:$0xf] %v1491_v51  ;;  %v4274_v62 = vrot.slane %v4273_v48, 4  ;;  %v282_v53 = vadd.f32 %v13234_v57, %v212_v63 }
 0x1c1   :  { %v10181_v49 = vcombine.low %v2556_v14, %v2566_v61  ;;  %v1119_v25 = vsel %vm12118_vm12, %v1111_v47, %v1118_v8  ;;  %v1495_v21 = vsel %vm12109_vm11, %v1120_v10, %v1494_v31  ;;  %v4284_v20 = vrot.slane %v4283_v38, 4 }
 0x1c2   :  { %1493 = vst [vmem:[#allocation2 + $0x160] sm:$0xf] %v1119_v25  ;;  %1496 = vst [vmem:[#allocation2 + $0x164] sm:$0x1] %v1495_v21  ;;  %v4279_v42 = vsel %vm12050_vm2, %v4274_v62, %v4278_v45  ;;  %v345_v29 = vmax.f32 %v281_v59, 0.0  ;;  %v346_v63 = vmax.f32 %v282_v53, 0.0  ;;  %v10886_v51 = vunpack.c.h.bf16 %v13348_v37 }
 0x1c3   :  { %v10335_v24 = vrot.slane %v4798_v17, 9  ;;  %8307 = vmatprep.mubr.bf16.mxu1 %v10181_v49  ;;  %v4289_v0 = vsel %vm12050_vm2, %v4284_v20, %v4288_v50  ;;  %v5072_v54 = vrot.slane %v4799_v12, 5  ;;  %v5075_v16 = vrot.slane %v4800_v39, 5  ;;  %v3776_v37 = vld [vmem:[#allocation2 + $0x11c] sm:$0x1] }
 0x1c4   :  { %v4291_v4 = vshrl.u32 %v3774_v35, 16  ;;  %8308 = vmatmul.mubr.bf16.gmra.mrb[104].mxu1 %v11686_v5  ;;  %v10302_v22 = vcombine.low %v4279_v42, %v4289_v0  ;;  %v10697_v6 = vpack.c.bf16 %v345_v29, %v345_v29  ;;  %v10698_v47 = vpack.c.bf16 %v346_v63, %v346_v63  ;;  %v1497_v29 = vld [vmem:[#allocation2 + $0x168] sm:$0xf] }
 0x1c5   :  { %v4294_v55 = vshll.u32 %v3774_v35, 16  ;;  %v5073_v31 = vsel %vm12077_vm8, %v10335_v24, %v5072_v54  ;;  %v5074_v46 = vrot.slane %v5072_v54, 4  ;;  %v4300_v59 = vshll.u32 %v13372_v11, 16 }
 0x1c6   :  { %v4293_v45 = vrot.slane %v4291_v4, 4  ;;  %8830 = vmatmul.mubr.bf16.gmra.mrb[76].mxu0 %v10302_v22  ;;  %v1122_v15 = vshrl.u32 %v10697_v6, 16  ;;  %v1125_v52 = vshll.u32 %v10697_v6, 16  ;;  %v1130_v30 = vshrl.u32 %v10698_v47, 16 }
 0x1c7   :  { %v1133_v48 = vshll.u32 %v10698_v47, 16  ;;  %v1901_v50 = vld [vmem:[#allocation2 + $0x15c] sm:$0xf]  ;;  %v5076_v17 = vsel %vm12077_vm8, %v5074_v46, %v5075_v16  ;;  %v4296_v8 = vrot.slane %v4294_v55, 5  ;;  %v13388_v10 = vrot.slane %v4300_v59, 5 }
 0x1c8   :  { %v2568_v38 = vshrl.u32 %v1901_v50, 16  ;;  %v2571_v12 = vshll.u32 %v1901_v50, 16  ;;  %v1124_v39 = vrot.slane %v1122_v15, 7  ;;  %v1132_v14 = vrot.slane %v1130_v30, 7  ;;  %v1501_v16 = vld [vmem:[#allocation2 + $0x170] sm:$0x1] }
 0x1c9   :  { %v1902_v61 = vld [vmem:[#allocation2 + $0x160] sm:$0xf]  ;;  %v1903_v5 = vld [vmem:[#allocation2 + $0x164] sm:$0x1]  ;;  %v10367_v62 = vcombine.low %v5073_v31, %v5076_v17  ;;  %v4297_v53 = vor.u32 %v4296_v8, %v4293_v45  ;;  %v213_v35 = vmul.f32 %v13194_v36, %v10885_v19  ;;  %v214_v49 = vmul.f32 %v13194_v36, %v10886_v51 }
 0x1ca   :  { %v2570_v25 = vrot.slane %v2568_v38, 4  ;;  %v2573_v21 = vrot.slane %v2571_v12, 5  ;;  %v2577_v20 = vshll.u32 %v1902_v61, 16  ;;  %v2581_v42 = vshrl.u32 %v1902_v61, 16  ;;  %v4801_v46 = vld [vmem:[#allocation2 + $0x120] sm:$0xe] }
 0x1cb   :  { %v2587_v63 = vshll.u32 %v1903_v5, 16  ;;  %v1127_v24 = vor.u32 %v1125_v52, %v1124_v39  ;;  %v1128_v0 = vrot.slane %v1124_v39, 4  ;;  %v1135_v54 = vor.u32 %v1133_v48, %v1132_v14  ;;  %8837 = vmatprep.mubr.bf16.mxu0 %v10367_v62  ;;  %v4802_v30 = vld [vmem:[#allocation2 + $0x124] sm:$0xf]  ;;  %v11708_v48 = vld [vmem:[%s14740_s1 + $0x1f8] sm:$0xff]   ;;  %v13420_v5 = vld [vmem:[%s14741_s0 + $0xe8] sm:$0xff]  }
 0x1cc   :  { %v2574_v4 = vor.u32 %v2573_v21, %v2570_v25  ;;  %v2579_v22 = vrot.slane %v2577_v20, 5  ;;  %v2583_v6 = vrot.slane %v2581_v42, 4  ;;  %v1137_v47 = vrot.slane %v1132_v14, 4  ;;  %v4803_v38 = vld [vmem:[#allocation2 + $0x128] sm:$0x1]  ;;  %8965 = vmatpush1.bf16.msra.mxu0 %v11708_v48  ;;  %v11688_v21 = vld [vmem:[#allocation2 + $0x15c] sm:$0xff]  }
 0x1cd   :  { %v2589_v55 = vrot.slane %v2587_v63, 5  ;;  %v1136_v36 = vsel %vm12118_vm12, %v1128_v0, %v1135_v54  ;;  %v1498_v19 = vsel %vm12129_vm13, %v1127_v24, %v1497_v29  ;;  %v13399_v31 = vrot.slane %v4297_v53, 4  ;;  %v13413_v12 = vld [vmem:[#allocation2 + $0x120] sm:$0xf]  ;;  %v13429_v63 = vld [vmem:[%s14741_s0 + $0xf0] sm:$0xff]  }
 0x1ce   :  { %v2575_v45 = vrot.slane %v2574_v4, 4  ;;  %v2584_v59 = vor.u32 %v2583_v6, %v2579_v22  ;;  %1499 = vst [vmem:[#allocation2 + $0x168] sm:$0xf] %v1498_v19  ;;  %1500 = vst [vmem:[#allocation2 + $0x16c] sm:$0xf] %v1136_v36  ;;  %v1502_v15 = vsel %vm12109_vm11, %v1137_v47, %v1501_v16  ;;  %v4304_v52 = vshrl.u32 %v13372_v11, 16 }
 0x1cf   :  { %1503 = vst [vmem:[#allocation2 + $0x170] sm:$0x1] %v1502_v15  ;;  %v4303_v50 = vsel %vm12050_vm2, %v13399_v31, %v13388_v10  ;;  %v4310_v17 = vshll.u32 %v3776_v37, 16  ;;  %v283_v8 = vadd.f32 %v13234_v57, %v213_v35  ;;  %v284_v51 = vadd.f32 %v13234_v57, %v214_v49 }
 0x1d0   :  { %v2580_v11 = vsel %vm12050_vm2, %v2575_v45, %v2579_v22  ;;  %v2585_v39 = vrot.slane %v2584_v59, 4  ;;  %v4306_v14 = vrot.slane %v4304_v52, 4  ;;  %v10336_v61 = vrot.slane %v4801_v46, 9 }
 0x1d1   :  { %v4312_v62 = vrot.slane %v4310_v17, 5  ;;  %v347_v53 = vmax.f32 %v283_v8, 0.0  ;;  %v348_v35 = vmax.f32 %v284_v51, 0.0  ;;  %v5079_v25 = vrot.slane %v4802_v30, 5 }
 0x1d2   :  { %v2590_v49 = vsel %vm12050_vm2, %v2585_v39, %v2589_v55  ;;  %v4307_v20 = vor.u32 %v4306_v14, %v13388_v10  ;;  %v5082_v42 = vrot.slane %v4803_v38, 5  ;;  %v4315_v29 = vshrl.u32 %v13413_v12, 16 }
 0x1d3   :  { %v10182_v24 = vcombine.low %v2580_v11, %v2590_v49  ;;  %v10699_v0 = vpack.c.bf16 %v347_v53, %v347_v53  ;;  %v10700_v54 = vpack.c.bf16 %v348_v35, %v348_v35  ;;  %v5080_v16 = vsel %vm12077_vm8, %v10336_v61, %v5079_v25  ;;  %v3778_v53 = vld [vmem:[#allocation2 + $0x124] sm:$0xf] }
 0x1d4   :  { %v4308_v4 = vrot.slane %v4307_v20, 4  ;;  %v5081_v22 = vrot.slane %v5079_v25, 4  ;;  %v13433_v6 = vrot.slane %v4315_v29, 4  ;;  %v4318_v10 = vshll.u32 %v13413_v12, 16 }
 0x1d5   :  { %8315 = vmatprep.mubr.bf16.mxu1 %v10182_v24  ;;  %v1904_v47 = vld [vmem:[#allocation2 + $0x168] sm:$0xf]  ;;  %v1905_v37 = vld [vmem:[#allocation2 + $0x16c] sm:$0xf]  ;;  %v10889_v55 = vunpack.c.l.bf16 %v13420_v5  ;;  %v10890_v36 = vunpack.c.h.bf16 %v13420_v5  ;;  %v10893_v19 = vunpack.c.l.bf16 %v13429_v63  ;;  %v10894_v31 = vunpack.c.h.bf16 %v13429_v63 }
 0x1d6   :  { %8316 = vmatmul.mubr.bf16.gmra.mrb[108].mxu1 %v11688_v21  ;;  %v1906_v46 = vld [vmem:[#allocation2 + $0x170] sm:$0x1]  ;;  %v2592_v45 = vshrl.u32 %v1904_v47, 16  ;;  %v2595_v59 = vshll.u32 %v1904_v47, 16  ;;  %v2601_v15 = vshll.u32 %v1905_v37, 16  ;;  %v2605_v52 = vshrl.u32 %v1905_v37, 16 }
 0x1d7   :  { %v2611_v30 = vshll.u32 %v1906_v46, 16  ;;  %v4313_v48 = vsel %vm12050_vm2, %v4308_v4, %v4312_v62  ;;  %v1139_v17 = vshrl.u32 %v10699_v0, 16  ;;  %v1142_v8 = vshll.u32 %v10699_v0, 16  ;;  %v1504_v21 = vld [vmem:[#allocation2 + $0x174] sm:$0xf] }
 0x1d8   :  { %v2594_v51 = vrot.slane %v2592_v45, 4  ;;  %v2597_v38 = vrot.slane %v2595_v59, 5  ;;  %v2603_v12 = vrot.slane %v2601_v15, 5  ;;  %v2607_v11 = vrot.slane %v2605_v52, 4  ;;  %v1508_v37 = vld [vmem:[#allocation2 + $0x17c] sm:$0x1] }
 0x1d9   :  { %v2613_v39 = vrot.slane %v2611_v30, 5  ;;  %v10303_v14 = vcombine.low %v4303_v50, %v4313_v48  ;;  %v1141_v61 = vrot.slane %v1139_v17, 7  ;;  %v1147_v5 = vshrl.u32 %v10700_v54, 16  ;;  %v4804_v30 = vld [vmem:[#allocation2 + $0x12c] sm:$0xe] }
 0x1da   :  { %v2598_v35 = vor.u32 %v2597_v38, %v2594_v51  ;;  %v2608_v25 = vor.u32 %v2607_v11, %v2603_v12  ;;  %v1150_v49 = vshll.u32 %v10700_v54, 16  ;;  %v5083_v20 = vsel %vm12077_vm8, %v5081_v22, %v5082_v42  ;;  %v3779_v54 = vld [vmem:[#allocation2 + $0x128] sm:$0x1]  ;;  %v4805_v17 = vld [vmem:[#allocation2 + $0x130] sm:$0xf] }
 0x1db   :  { %8838 = vmatmul.mubr.bf16.gmra.mrb[80].mxu0 %v10303_v14  ;;  %v1144_v62 = vor.u32 %v1142_v8, %v1141_v61  ;;  %v1145_v29 = vrot.slane %v1141_v61, 4  ;;  %v1149_v24 = vrot.slane %v1147_v5, 7  ;;  %v10368_v0 = vcombine.low %v5080_v16, %v5083_v20  ;;  %v11689_v22 = vld [vmem:[#allocation2 + $0x168] sm:$0xff]   ;;  %v4806_v8 = vld [vmem:[#allocation2 + $0x134] sm:$0x1] }
 0x1dc   :  { %v2599_v4 = vrot.slane %v2598_v35, 4  ;;  %v2609_v47 = vrot.slane %v2608_v25, 4  ;;  %v4320_v46 = vrot.slane %v4318_v10, 5  ;;  %v4324_v50 = vshll.u32 %v3778_v53, 16  ;;  %v3781_v20 = vld [vmem:[#allocation2 + $0x130] sm:$0xf] }
 0x1dd   :  { %v1152_v45 = vor.u32 %v1150_v49, %v1149_v24  ;;  %v1154_v59 = vrot.slane %v1149_v24, 4  ;;  %v1505_v15 = vsel %vm12129_vm13, %v1144_v62, %v1504_v21  ;;  %8845 = vmatprep.mubr.bf16.mxu0 %v10368_v0  ;;  %v4328_v52 = vshrl.u32 %v3778_v53, 16  ;;  %v3780_v53 = vld [vmem:[#allocation2 + $0x12c] sm:$0xf] }
 0x1de   :  { %v2604_v42 = vsel %vm12050_vm2, %v2599_v4, %v2603_v12  ;;  %v2614_v16 = vsel %vm12050_vm2, %v2609_v47, %v2613_v39  ;;  %1506 = vst [vmem:[#allocation2 + $0x174] sm:$0xf] %v1505_v15  ;;  %v4321_v10 = vor.u32 %v4320_v46, %v13433_v6  ;;  %v4326_v48 = vrot.slane %v4324_v50, 5  ;;  %v13458_v39 = vld [vmem:[%s14742_s2] ss:$0 sm:$0xff] }
 0x1df   :  { %v10183_v51 = vcombine.low %v2604_v42, %v2614_v16  ;;  %v1153_v38 = vsel %vm12118_vm12, %v1145_v29, %v1152_v45  ;;  %v1509_v11 = vsel %vm12109_vm11, %v1154_v59, %v1508_v37  ;;  %v4330_v14 = vrot.slane %v4328_v52, 4 }
 0x1e0   :  { %1507 = vst [vmem:[#allocation2 + $0x178] sm:$0xf] %v1153_v38  ;;  %1510 = vst [vmem:[#allocation2 + $0x17c] sm:$0x1] %v1509_v11  ;;  %v4322_v12 = vrot.slane %v4321_v10, 4  ;;  %v4334_v61 = vshll.u32 %v3779_v54, 16  ;;  %v215_v6 = vmul.f32 %v13458_v39, %v10889_v55  ;;  %v216_v5 = vmul.f32 %v13458_v39, %v10890_v36 }
 0x1e1   :  { %8323 = vmatprep.mubr.bf16.mxu1 %v10183_v51  ;;  %v4331_v35 = vor.u32 %v4330_v14, %v4326_v48  ;;  %v10337_v25 = vrot.slane %v4804_v30, 9  ;;  %v5086_v49 = vrot.slane %v4805_v17, 5  ;;  %v5089_v21 = vrot.slane %v4806_v8, 5 }
 0x1e2   :  { %8324 = vmatmul.mubr.bf16.gmra.mrb[112].mxu1 %v11689_v22  ;;  %v4327_v62 = vsel %vm12050_vm2, %v4322_v12, %v4326_v48  ;;  %v4336_v29 = vrot.slane %v4334_v61, 5  ;;  %v285_v24 = vadd.f32 %v13234_v57, %v215_v6  ;;  %v286_v0 = vadd.f32 %v13234_v57, %v216_v5 }
 0x1e3   :  { %v4332_v4 = vrot.slane %v4331_v35, 4  ;;  %v5087_v55 = vsel %vm12077_vm8, %v10337_v25, %v5086_v49  ;;  %v5088_v36 = vrot.slane %v5086_v49, 4  ;;  %v4339_v47 = vshrl.u32 %v3780_v53, 16 }
 0x1e4   :  { %v349_v37 = vmax.f32 %v285_v24, 0.0  ;;  %v350_v46 = vmax.f32 %v286_v0, 0.0  ;;  %v4342_v50 = vshll.u32 %v3780_v53, 16  ;;  %v4348_v45 = vshll.u32 %v3781_v20, 16  ;;  %v1515_v24 = vld [vmem:[#allocation2 + $0x188] sm:$0x1] }
 0x1e5   :  { %v1907_v59 = vld [vmem:[#allocation2 + $0x174] sm:$0xf]  ;;  %v4337_v15 = vsel %vm12050_vm2, %v4332_v4, %v4336_v29  ;;  %v5090_v54 = vsel %vm12077_vm8, %v5088_v36, %v5089_v21  ;;  %v4341_v52 = vrot.slane %v4339_v47, 4  ;;  %v4352_v30 = vshrl.u32 %v3781_v20, 16 }
 0x1e6   :  { %v2616_v57 = vshrl.u32 %v1907_v59, 16  ;;  %v2619_v42 = vshll.u32 %v1907_v59, 16  ;;  %v10304_v16 = vcombine.low %v4327_v62, %v4337_v15  ;;  %v10701_v22 = vpack.c.bf16 %v349_v37, %v349_v37  ;;  %v1511_v62 = vld [vmem:[#allocation2 + $0x180] sm:$0xf] }
 0x1e7   :  { %v1908_v10 = vld [vmem:[#allocation2 + $0x178] sm:$0xf]  ;;  %v1909_v48 = vld [vmem:[#allocation2 + $0x17c] sm:$0x1]  ;;  %v10702_v17 = vpack.c.bf16 %v350_v46, %v350_v46  ;;  %v10369_v8 = vcombine.low %v5087_v55, %v5090_v54  ;;  %v217_v51 = vmul.f32 %v13458_v39, %v10893_v19  ;;  %v218_v38 = vmul.f32 %v13458_v39, %v10894_v31  ;;  %v3782_v55 = vld [vmem:[#allocation2 + $0x134] sm:$0x1] }
 0x1e8   :  { %v2618_v11 = vrot.slane %v2616_v57, 4  ;;  %v2621_v14 = vrot.slane %v2619_v42, 5  ;;  %v2625_v12 = vshll.u32 %v1908_v10, 16  ;;  %v2629_v61 = vshrl.u32 %v1908_v10, 16  ;;  %8846 = vmatmul.mubr.bf16.gmra.mrb[84].mxu0 %v10304_v16 }
 0x1e9   :  { %v2635_v6 = vshll.u32 %v1909_v48, 16  ;;  %v1156_v5 = vshrl.u32 %v10701_v22, 16  ;;  %v1159_v53 = vshll.u32 %v10701_v22, 16  ;;  %v1164_v35 = vshrl.u32 %v10702_v17, 16  ;;  %8853 = vmatprep.mubr.bf16.mxu0 %v10369_v8  ;;  %v4807_v22 = vld [vmem:[#allocation2 + $0x138] sm:$0xe] }
 0x1ea   :  { %v2622_v25 = vor.u32 %v2621_v14, %v2618_v11  ;;  %v2627_v49 = vrot.slane %v2625_v12, 5  ;;  %v2631_v21 = vrot.slane %v2629_v61, 4  ;;  %v1167_v20 = vshll.u32 %v10702_v17, 16  ;;  %v4808_v48 = vld [vmem:[#allocation2 + $0x13c] sm:$0xf]  ;;  %v11691_v11 = vld [vmem:[#allocation2 + $0x174] sm:$0xff]  }
 0x1eb   :  { %v2637_v19 = vrot.slane %v2635_v6, 5  ;;  %v1158_v29 = vrot.slane %v1156_v5, 7  ;;  %v1166_v63 = vrot.slane %v1164_v35, 7  ;;  %v4344_v31 = vrot.slane %v4342_v50, 5  ;;  %v4809_v17 = vld [vmem:[#allocation2 + $0x140] sm:$0x1] }
 0x1ec   :  { %v2623_v0 = vrot.slane %v2622_v25, 4  ;;  %v2632_v4 = vor.u32 %v2631_v21, %v2627_v49  ;;  %v4350_v36 = vrot.slane %v4348_v45, 5  ;;  %v4354_v47 = vrot.slane %v4352_v30, 4  ;;  %v13491_v12 = vld [vmem:[%s14743_s3] ss:$0 sm:$0xff] }
 0x1ed   :  { %v1161_v37 = vor.u32 %v1159_v53, %v1158_v29  ;;  %v1162_v46 = vrot.slane %v1158_v29, 4  ;;  %v1169_v59 = vor.u32 %v1167_v20, %v1166_v63  ;;  %v1171_v15 = vrot.slane %v1166_v63, 4  ;;  %v3783_v6 = vld [vmem:[#allocation2 + $0x138] sm:$0xf]  ;;  %v3784_v63 = vld [vmem:[#allocation2 + $0x13c] sm:$0xf] }
 0x1ee   :  { %v2628_v54 = vsel %vm12050_vm2, %v2623_v0, %v2627_v49  ;;  %v2633_v57 = vrot.slane %v2632_v4, 4  ;;  %v4345_v42 = vor.u32 %v4344_v31, %v4341_v52  ;;  %v4355_v16 = vor.u32 %v4354_v47, %v4350_v36 }
 0x1ef   :  { %v1170_v10 = vsel %vm12118_vm12, %v1162_v46, %v1169_v59  ;;  %v1512_v50 = vsel %vm12129_vm13, %v1161_v37, %v1511_v62  ;;  %v1516_v45 = vsel %vm12109_vm11, %v1171_v15, %v1515_v24  ;;  %v4358_v30 = vshll.u32 %v3782_v55, 16 }
 0x1f0   :  { %v2638_v8 = vsel %vm12050_vm2, %v2633_v57, %v2637_v19  ;;  %1513 = vst [vmem:[#allocation2 + $0x180] sm:$0xf] %v1512_v50  ;;  %1514 = vst [vmem:[#allocation2 + $0x184] sm:$0xf] %v1170_v10  ;;  %v4346_v52 = vrot.slane %v4345_v42, 4  ;;  %v4356_v14 = vrot.slane %v4355_v16, 4  ;;  %v287_v61 = vadd.f32 %v13491_v12, %v217_v51 }
 0x1f1   :  { %1517 = vst [vmem:[#allocation2 + $0x188] sm:$0x1] %v1516_v45  ;;  %v10184_v5 = vcombine.low %v2628_v54, %v2638_v8  ;;  %v4360_v53 = vrot.slane %v4358_v30, 5  ;;  %v288_v35 = vadd.f32 %v13491_v12, %v218_v38  ;;  %v10338_v25 = vrot.slane %v4807_v22, 9 }
 0x1f2   :  { %v4351_v49 = vsel %vm12050_vm2, %v4346_v52, %v4350_v36  ;;  %v351_v21 = vmax.f32 %v287_v61, 0.0  ;;  %v5093_v20 = vrot.slane %v4808_v48, 5  ;;  %v5096_v62 = vrot.slane %v4809_v17, 5 }
 0x1f3   :  { %8331 = vmatprep.mubr.bf16.mxu1 %v10184_v5  ;;  %v4361_v19 = vsel %vm12050_vm2, %v4356_v14, %v4360_v53  ;;  %v352_v29 = vmax.f32 %v288_v35, 0.0  ;;  %v4363_v24 = vshrl.u32 %v3783_v6, 16  ;;  %v4366_v51 = vshll.u32 %v3783_v6, 16  ;;  %v1518_v5 = vld [vmem:[#allocation2 + $0x18c] sm:$0xf] }
 0x1f4   :  { %8332 = vmatmul.mubr.bf16.gmra.mrb[116].mxu1 %v11691_v11  ;;  %v10305_v31 = vcombine.low %v4351_v49, %v4361_v19  ;;  %v10703_v0 = vpack.c.bf16 %v351_v21, %v351_v21  ;;  %v5094_v38 = vsel %vm12077_vm8, %v10338_v25, %v5093_v20  ;;  %v5095_v4 = vrot.slane %v5093_v20, 4  ;;  %v3785_v21 = vld [vmem:[#allocation2 + $0x140] sm:$0x1] }
 0x1f5   :  { %v10704_v55 = vpack.c.bf16 %v352_v29, %v352_v29  ;;  %v4365_v36 = vrot.slane %v4363_v24, 4  ;;  %v4368_v47 = vrot.slane %v4366_v51, 5  ;;  %v4372_v15 = vshll.u32 %v3784_v63, 16  ;;  %v1522_v29 = vld [vmem:[#allocation2 + $0x194] sm:$0x1] }
 0x1f6   :  { %8854 = vmatmul.mubr.bf16.gmra.mrb[88].mxu0 %v10305_v31  ;;  %v1173_v37 = vshrl.u32 %v10703_v0, 16  ;;  %v1176_v46 = vshll.u32 %v10703_v0, 16  ;;  %v5097_v59 = vsel %vm12077_vm8, %v5095_v4, %v5096_v62  ;;  %v4376_v11 = vshrl.u32 %v3784_v63, 16  ;;  %v4810_v51 = vld [vmem:[#allocation2 + $0x144] sm:$0xe] }
 0x1f7   :  { %v1910_v54 = vld [vmem:[#allocation2 + $0x180] sm:$0xf]  ;;  %v1911_v57 = vld [vmem:[#allocation2 + $0x184] sm:$0xf]  ;;  %v10370_v16 = vcombine.low %v5094_v38, %v5097_v59  ;;  %v4369_v22 = vor.u32 %v4368_v47, %v4365_v36  ;;  %v1181_v8 = vshrl.u32 %v10704_v55, 16  ;;  %v1184_v19 = vshll.u32 %v10704_v55, 16 }
 0x1f8   :  { %v1912_v42 = vld [vmem:[#allocation2 + $0x188] sm:$0x1]  ;;  %v2640_v10 = vshrl.u32 %v1910_v54, 16  ;;  %v2643_v50 = vshll.u32 %v1910_v54, 16  ;;  %v2649_v45 = vshll.u32 %v1911_v57, 16  ;;  %v2653_v30 = vshrl.u32 %v1911_v57, 16 }
 0x1f9   :  { %v2659_v48 = vshll.u32 %v1912_v42, 16  ;;  %v1175_v17 = vrot.slane %v1173_v37, 7  ;;  %8861 = vmatprep.mubr.bf16.mxu0 %v10370_v16  ;;  %v1183_v49 = vrot.slane %v1181_v8, 7  ;;  %v4370_v24 = vrot.slane %v4369_v22, 4  ;;  %v4811_v4 = vld [vmem:[#allocation2 + $0x148] sm:$0xf] }
 0x1fa   :  { %v2642_v52 = vrot.slane %v2640_v10, 4  ;;  %v2645_v14 = vrot.slane %v2643_v50, 5  ;;  %v2651_v61 = vrot.slane %v2649_v45, 5  ;;  %v2655_v6 = vrot.slane %v2653_v30, 4  ;;  %v4812_v59 = vld [vmem:[#allocation2 + $0x14c] sm:$0x1] }
 0x1fb   :  { %v2661_v53 = vrot.slane %v2659_v48, 5  ;;  %v1178_v35 = vor.u32 %v1176_v46, %v1175_v17  ;;  %v1179_v25 = vrot.slane %v1175_v17, 4  ;;  %v1188_v31 = vrot.slane %v1183_v49, 4  ;;  %v3786_v16 = vld [vmem:[#allocation2 + $0x144] sm:$0xf] }
 0x1fc   :  { %v2646_v20 = vor.u32 %v2645_v14, %v2642_v52  ;;  %v2656_v62 = vor.u32 %v2655_v6, %v2651_v61  ;;  %v4374_v0 = vrot.slane %v4372_v15, 5  ;;  %v4378_v38 = vrot.slane %v4376_v11, 4  ;;  %v11692_v10 = vld [vmem:[#allocation2 + $0x180] sm:$0xff]   ;;  %v3787_v52 = vld [vmem:[#allocation2 + $0x148] sm:$0xf] }
 0x1fd   :  { %v1519_v63 = vsel %vm12129_vm13, %v1178_v35, %v1518_v5  ;;  %v1186_v37 = vor.u32 %v1184_v19, %v1183_v49  ;;  %v4382_v46 = vshll.u32 %v3785_v21, 16  ;;  %v1523_v54 = vsel %vm12109_vm11, %v1188_v31, %v1522_v29  ;;  %v2871_v11 = vld [vmem:[#allocation2 + $0x60] sm:$0xe]  ;;  %v2873_v49 = vld [vmem:[#allocation2 + $0x68] sm:$0x1] }
 0x1fe   :  { %v2647_v36 = vrot.slane %v2646_v20, 4  ;;  %v2657_v47 = vrot.slane %v2656_v62, 4  ;;  %1520 = vst [vmem:[#allocation2 + $0x18c] sm:$0xf] %v1519_v63  ;;  %v4375_v55 = vsel %vm12050_vm2, %v4370_v24, %v4374_v0  ;;  %v4379_v57 = vor.u32 %v4378_v38, %v4374_v0  ;;  %1524 = vst [vmem:[#allocation2 + $0x194] sm:$0x1] %v1523_v54 }
 0x1ff   :  { %v10339_v42 = vrot.slane %v4810_v51, 9  ;;  %v1187_v50 = vsel %vm12118_vm12, %v1179_v25, %v1186_v37  ;;  %v4384_v45 = vrot.slane %v4382_v46, 5  ;;  %v5100_v17 = vrot.slane %v4811_v4, 5  ;;  %v3788_v29 = vld [vmem:[#allocation2 + $0x14c] sm:$0x1] }
 0x200   :  { %v2652_v15 = vsel %vm12050_vm2, %v2647_v36, %v2651_v61  ;;  %v2662_v22 = vsel %vm12050_vm2, %v2657_v47, %v2661_v53  ;;  %1521 = vst [vmem:[#allocation2 + $0x190] sm:$0xf] %v1187_v50  ;;  %v4380_v48 = vrot.slane %v4379_v57, 4  ;;  %v5103_v8 = vrot.slane %v4812_v59, 5  ;;  %v2872_v53 = vld [vmem:[#allocation2 + $0x64] sm:$0xf] }
 0x201   :  { %v10185_v30 = vcombine.low %v2652_v15, %v2662_v22  ;;  %v4387_v14 = vshrl.u32 %v3786_v16, 16  ;;  %v5101_v6 = vsel %vm12077_vm8, %v10339_v42, %v5100_v17  ;;  %v5102_v5 = vrot.slane %v5100_v17, 4  ;;  %v4813_v4 = vld [vmem:[#allocation2 + $0x150] sm:$0xe]  ;;  %v4814_v54 = vld [vmem:[#allocation2 + $0x154] sm:$0xf] }
 0x202   :  { %v4385_v61 = vsel %vm12050_vm2, %v4380_v48, %v4384_v45  ;;  %v4390_v35 = vshll.u32 %v3786_v16, 16  ;;  %v10195_v21 = vrot.slane %v2871_v11, 9  ;;  %v4396_v51 = vshll.u32 %v3787_v52, 16 }
 0x203   :  { %8339 = vmatprep.mubr.bf16.mxu1 %v10185_v30  ;;  %v10306_v25 = vcombine.low %v4375_v55, %v4385_v61  ;;  %v4389_v20 = vrot.slane %v4387_v14, 4  ;;  %v5104_v19 = vsel %vm12077_vm8, %v5102_v5, %v5103_v8  ;;  %v3100_v38 = vrot.slane %v2872_v53, 5  ;;  %v4815_v55 = vld [vmem:[#allocation2 + $0x158] sm:$0x1]  ;;  %v2874_v53 = vld [vmem:[#allocation2 + $0x6c] sm:$0xe] }
 0x204   :  { %8340 = vmatmul.mubr.bf16.gmra.mrb[120].mxu1 %v11692_v10  ;;  %v4392_v24 = vrot.slane %v4390_v35, 5  ;;  %v10371_v0 = vcombine.low %v5101_v6, %v5104_v19  ;;  %v3103_v47 = vrot.slane %v2873_v49, 5  ;;  %v4398_v46 = vrot.slane %v4396_v51, 5 }
 0x205   :  { %v1913_v62 = vld [vmem:[#allocation2 + $0x18c] sm:$0xf]  ;;  %8862 = vmatmul.mubr.bf16.gmra.mrb[92].mxu0 %v10306_v25  ;;  %v1915_v36 = vld [vmem:[#allocation2 + $0x194] sm:$0x1]  ;;  %v4400_v59 = vshrl.u32 %v3787_v52, 16  ;;  %v13523_v22 = vsel %vm12077_vm8, %v10195_v21, %v3100_v38  ;;  %v3102_v17 = vrot.slane %v3100_v38, 4 }
 0x206   :  { %v2664_v31 = vshrl.u32 %v1913_v62, 16  ;;  %v2667_v63 = vshll.u32 %v1913_v62, 16  ;;  %v4393_v37 = vor.u32 %v4392_v24, %v4389_v20  ;;  %v2683_v15 = vshll.u32 %v1915_v36, 16  ;;  %8869 = vmatprep.mubr.bf16.mxu0 %v10371_v0  ;;  %v2875_v52 = vld [vmem:[#allocation2 + $0x70] sm:$0xf] }
 0x207   :  { %v1914_v57 = vld [vmem:[#allocation2 + $0x190] sm:$0xf]  ;;  %v4402_v30 = vrot.slane %v4400_v59, 4  ;;  %v4406_v8 = vshll.u32 %v3788_v29, 16  ;;  %v10340_v11 = vrot.slane %v4813_v4, 9  ;;  %v5107_v49 = vrot.slane %v4814_v54, 5 }
 0x208   :  { %v2666_v42 = vrot.slane %v2664_v31, 4  ;;  %v2669_v16 = vrot.slane %v2667_v63, 5  ;;  %v2673_v10 = vshll.u32 %v1914_v57, 16  ;;  %v2677_v50 = vshrl.u32 %v1914_v57, 16  ;;  %v2876_v21 = vld [vmem:[#allocation2 + $0x74] sm:$0x1] }
 0x209   :  { %v4394_v45 = vrot.slane %v4393_v37, 4  ;;  %v2685_v6 = vrot.slane %v2683_v15, 5  ;;  %v4403_v5 = vor.u32 %v4402_v30, %v4398_v46  ;;  %v4408_v25 = vrot.slane %v4406_v8, 5  ;;  %v3789_v31 = vld [vmem:[#allocation2 + $0x150] sm:$0xf]  ;;  %v13540_v54 = vld [vmem:[%s14741_s0 + $0xf8] sm:$0xff]  }
 0x20a   :  { %v2670_v48 = vor.u32 %v2669_v16, %v2666_v42  ;;  %v2675_v14 = vrot.slane %v2673_v10, 5  ;;  %v2679_v61 = vrot.slane %v2677_v50, 4  ;;  %v5110_v20 = vrot.slane %v4815_v55, 5  ;;  %v3790_v4 = vld [vmem:[#allocation2 + $0x154] sm:$0xf]  ;;  %v11694_v50 = vld [vmem:[#allocation2 + $0x18c] sm:$0xff]  }
 0x20b   :  { %v4399_v19 = vsel %vm12050_vm2, %v4394_v45, %v4398_v46  ;;  %v4404_v24 = vrot.slane %v4403_v5, 4  ;;  %v3107_v51 = vrot.slane %v2875_v52, 5  ;;  %v13529_v29 = vsel %vm12077_vm8, %v3102_v17, %v3103_v47  ;;  %v3791_v57 = vld [vmem:[#allocation2 + $0x158] sm:$0x1]  ;;  %v4816_v15 = vld [vmem:[#allocation2 + $0x15c] sm:$0xe] }
 0x20c   :  { %v2671_v35 = vrot.slane %v2670_v48, 4  ;;  %v2680_v62 = vor.u32 %v2679_v61, %v2675_v14  ;;  %v5108_v63 = vsel %vm12077_vm8, %v10340_v11, %v5107_v49  ;;  %v5109_v0 = vrot.slane %v5107_v49, 4  ;;  %v11695_v45 = vld [vmem:[#allocation2 + $0x6c] sm:$0xff]   ;;  %v4817_v8 = vld [vmem:[#allocation2 + $0x160] sm:$0xf] }
 0x20d   :  { %v10196_v38 = vrot.slane %v2874_v53, 9  ;;  %v4409_v46 = vsel %vm12050_vm2, %v4404_v24, %v4408_v25  ;;  %v3110_v59 = vrot.slane %v2876_v21, 5  ;;  %v4411_v42 = vshrl.u32 %v3789_v31, 16  ;;  %v13546_v11 = vld [vmem:[#allocation2 + $0x78] sm:$0xe] }
 0x20e   :  { %v2676_v36 = vsel %vm12050_vm2, %v2671_v35, %v2675_v14  ;;  %v2681_v37 = vrot.slane %v2680_v62, 4  ;;  %v10307_v47 = vcombine.low %v4399_v19, %v4409_v46  ;;  %v5111_v55 = vsel %vm12077_vm8, %v5109_v0, %v5110_v20  ;;  %v4818_v5 = vld [vmem:[#allocation2 + $0x164] sm:$0x1]  ;;  %v3793_v46 = vld [vmem:[#allocation2 + $0x160] sm:$0xf] }
 0x20f   :  { %v4414_v16 = vshll.u32 %v3789_v31, 16  ;;  %v10372_v30 = vcombine.low %v5108_v63, %v5111_v55  ;;  %v3109_v48 = vrot.slane %v3107_v51, 4  ;;  %v4420_v17 = vshll.u32 %v3790_v4, 16  ;;  %v13552_v31 = vld [vmem:[#allocation2 + $0x7c] sm:$0xf] }
 0x210   :  { %v2686_v10 = vsel %vm12050_vm2, %v2681_v37, %v2685_v6  ;;  %8870 = vmatmul.mubr.bf16.gmra.mrb[96].mxu0 %v10307_v47  ;;  %v4413_v14 = vrot.slane %v4411_v42, 4  ;;  %v4424_v25 = vshrl.u32 %v3790_v4, 16  ;;  %v4430_v49 = vshll.u32 %v3791_v57, 16  ;;  %v3792_v6 = vld [vmem:[#allocation2 + $0x15c] sm:$0xf] }
 0x211   :  { %v10186_v52 = vcombine.low %v2676_v36, %v2686_v10  ;;  %v4416_v61 = vrot.slane %v4414_v16, 5  ;;  %8877 = vmatprep.mubr.bf16.mxu0 %v10372_v30  ;;  %v4422_v35 = vrot.slane %v4420_v17, 5  ;;  %v10227_v21 = vcombine.low %v13523_v22, %v13529_v29  ;;  %v13562_v37 = vld [vmem:[#allocation2 + $0x80] sm:$0x1]  ;;  %v3794_v22 = vld [vmem:[#allocation2 + $0x164] sm:$0x1] }
 0x212   :  { %v10341_v19 = vrot.slane %v4816_v15, 9  ;;  %v5114_v24 = vrot.slane %v4817_v8, 5  ;;  %v13556_v63 = vsel %vm12077_vm8, %v10196_v38, %v3107_v51  ;;  %v13560_v0 = vsel %vm12077_vm8, %v3109_v48, %v3110_v59  ;;  %v4819_v42 = vld [vmem:[#allocation2 + $0x168] sm:$0xe]  ;;  %v4820_v16 = vld [vmem:[#allocation2 + $0x16c] sm:$0xf] }
 0x213   :  { %8347 = vmatprep.mubr.bf16.mxu1 %v10186_v52  ;;  %v4417_v62 = vor.u32 %v4416_v61, %v4413_v14  ;;  %v4426_v4 = vrot.slane %v4424_v25, 4  ;;  %v5117_v36 = vrot.slane %v4818_v5, 5  ;;  %v10197_v55 = vrot.slane %v13546_v11, 9  ;;  %v4821_v10 = vld [vmem:[#allocation2 + $0x170] sm:$0x1] }
 0x214   :  { %8348 = vmatmul.mubr.bf16.gmra.mrb[124].mxu1 %v11694_v50  ;;  %v5116_v47 = vrot.slane %v5114_v24, 4  ;;  %v4435_v57 = vshrl.u32 %v3792_v6, 16  ;;  %v4432_v38 = vrot.slane %v4430_v49, 5  ;;  %v3114_v15 = vrot.slane %v13552_v31, 5  ;;  %v11698_v50 = vld [vmem:[#allocation2 + $0x78] sm:$0xff]  }
 0x215   :  { %8452 = vmatprep.mubr.bf16.mxu1 %v11695_v45  ;;  %v4418_v29 = vrot.slane %v4417_v62, 4  ;;  %v4427_v51 = vor.u32 %v4426_v4, %v4422_v35  ;;  %v4438_v59 = vshll.u32 %v3792_v6, 16  ;;  %v10228_v30 = vcombine.low %v13556_v63, %v13560_v0  ;;  %v2880_v62 = vld [vmem:[#allocation2 + $0x84] sm:$0xe]  ;;  %v2881_v4 = vld [vmem:[#allocation2 + $0x88] sm:$0xf] }
 0x216   :  { %v5115_v45 = vsel %vm12077_vm8, %v10341_v19, %v5114_v24  ;;  %v4437_v48 = vrot.slane %v4435_v57, 4  ;;  %v4444_v17 = vshll.u32 %v3793_v46, 16  ;;  %v5118_v14 = vsel %vm12077_vm8, %v5116_v47, %v5117_v36  ;;  %v3795_v53 = vld [vmem:[#allocation2 + $0x168] sm:$0xf]  ;;  %v3798_v11 = vld [vmem:[#allocation2 + $0x174] sm:$0xf] }
 0x217   :  { %v4423_v8 = vsel %vm12050_vm2, %v4418_v29, %v4422_v35  ;;  %v4428_v52 = vrot.slane %v4427_v51, 4  ;;  %v4440_v61 = vrot.slane %v4438_v59, 5  ;;  %v3117_v5 = vrot.slane %v13562_v37, 5  ;;  %v11702_v35 = vld [vmem:[%s14740_s1 + $0x208] sm:$0xff]  }
 0x218   :  { %v4446_v25 = vrot.slane %v4444_v17, 5  ;;  %v4448_v49 = vshrl.u32 %v3793_v46, 16  ;;  %v4454_v6 = vshll.u32 %v3794_v22, 16  ;;  %v10342_v57 = vrot.slane %v4819_v42, 9  ;;  %v2882_v51 = vld [vmem:[#allocation2 + $0x8c] sm:$0x1] }
 0x219   :  { %v4433_v19 = vsel %vm12050_vm2, %v4428_v52, %v4432_v38  ;;  %v4441_v24 = vor.u32 %v4440_v61, %v4437_v48  ;;  %v5121_v20 = vrot.slane %v4820_v16, 5  ;;  %v10373_v29 = vcombine.low %v5115_v45, %v5118_v14  ;;  %v3796_v46 = vld [vmem:[#allocation2 + $0x16c] sm:$0xf]  ;;  %v11779_v42 = vld [vmem:[%s14740_s1 + $0x200] sm:$0xff]   ;;  %v3797_v17 = vld [vmem:[#allocation2 + $0x170] sm:$0x1] }
 0x21a   :  { %v10308_v36 = vcombine.low %v4423_v8, %v4433_v19  ;;  %v4450_v47 = vrot.slane %v4448_v49, 4  ;;  %v5124_v37 = vrot.slane %v4821_v10, 5  ;;  %v3116_v22 = vrot.slane %v3114_v15, 4  ;;  %v11707_v8 = vld [vmem:[%s14740_s1 + $0x210] sm:$0xff]  }
 0x21b   :  { %v4442_v59 = vrot.slane %v4441_v24, 4  ;;  %v4456_v38 = vrot.slane %v4454_v6, 5  ;;  %v5123_v48 = vrot.slane %v5121_v20, 4  ;;  %v13587_v45 = vsel %vm12077_vm8, %v10342_v57, %v5121_v20  ;;  %v13592_v6 = vld [vmem:[#allocation2 + $0x174] sm:$0xe] }
 0x21c   :  { %8453 = vmatmul.mubr.bf16.vlgmr.msra.gmra.mrb[32].mxu1 %v10227_v21  ;;  %v4451_v16 = vor.u32 %v4450_v47, %v4446_v25  ;;  %v3121_v10 = vrot.slane %v2881_v4, 5  ;;  %v4459_v21 = vshrl.u32 %v3795_v53, 16  ;;  %8878 = vmatmul.mubr.bf16.gmra.mrb[100].mxu0 %v10308_v36  ;;  %v10198_v52 = vrot.slane %v2880_v62, 9 }
 0x21d   :  { %11162 = vmatpush3.bf16.msra.mxu1 %v11779_v42  ;;  %8460 = vmatprep.mubr.bf16.mxu1 %v11698_v50  ;;  %v3124_v14 = vrot.slane %v2882_v51, 5  ;;  %v4462_v61 = vshll.u32 %v3795_v53, 16  ;;  %v4468_v49 = vshll.u32 %v3796_v46, 16  ;;  %v4823_v50 = vld [vmem:[#allocation2 + $0x178] sm:$0xf]  ;;  %v4447_v20 = vsel %vm12050_vm2, %v4442_v59, %v4446_v25  ;;  %v11699_v51 = vld [vmem:[#allocation2 + $0x84] sm:$0xff]  }
 0x21e   :  { %11163 = vmatprep.subr.bf16.mxu1 %v11702_v35  ;;  %8885 = vmatprep.mubr.bf16.mxu0 %v10373_v29  ;;  %v4452_v4 = vrot.slane %v4451_v16, 4  ;;  %v5125_v19 = vsel %vm12077_vm8, %v5123_v48, %v5124_v37  ;;  %v3123_v24 = vrot.slane %v3121_v10, 4  ;;  %v4461_v57 = vrot.slane %v4459_v21, 4  ;;  %v4824_v59 = vld [vmem:[#allocation2 + $0x17c] sm:$0x1] }
 0x21f   :  { %v4464_v47 = vrot.slane %v4462_v61, 5  ;;  %v4470_v36 = vrot.slane %v4468_v49, 5  ;;  %v4472_v62 = vshrl.u32 %v3796_v46, 16  ;;  %v13604_v53 = vsel %vm12077_vm8, %v10197_v55, %v3114_v15  ;;  %v11714_v55 = vld [vmem:[%s14740_s1 + $0x218] sm:$0xff]   ;;  %v2884_v61 = vld [vmem:[#allocation2 + $0x94] sm:$0xf] }
 0x220   :  { %v13608_v25 = vsel %vm12077_vm8, %v3116_v22, %v3117_v5  ;;  %v4457_v29 = vsel %vm12050_vm2, %v4452_v4, %v4456_v38  ;;  %v4478_v37 = vshll.u32 %v3797_v17, 16  ;;  %v10374_v48 = vcombine.low %v13587_v45, %v5125_v19  ;;  %v13625_v38 = vld [vmem:[#allocation2 + $0x90] sm:$0xe]  ;;  %v3800_v49 = vld [vmem:[#allocation2 + $0x17c] sm:$0x1] }
 0x221   :  { %11164 = vmatpush3.bf16.msra.mxu1 %v11702_v35  ;;  %v10309_v46 = vcombine.low %v4447_v20, %v4457_v29  ;;  %v4465_v31 = vor.u32 %v4464_v47, %v4461_v57  ;;  %v4474_v42 = vrot.slane %v4472_v62, 4  ;;  %v13618_v15 = vsel %vm12077_vm8, %v10198_v52, %v3121_v10  ;;  %v3799_v10 = vld [vmem:[#allocation2 + $0x178] sm:$0xf]  ;;  %v4825_v4 = vld [vmem:[#allocation2 + $0x180] sm:$0xe] }
 0x222   :  { %11165 = vmatprep.subr.bf16.mxu1 %v11707_v8  ;;  %v13622_v5 = vsel %vm12077_vm8, %v3123_v24, %v3124_v14  ;;  %v10343_v35 = vrot.slane %v13592_v6, 9  ;;  %v5128_v22 = vrot.slane %v4823_v50, 5  ;;  %v4480_v17 = vrot.slane %v4478_v37, 5  ;;  %v13641_v24 = vld [vmem:[#allocation2 + $0x98] sm:$0x1] }
 0x223   :  { %v4466_v16 = vrot.slane %v4465_v31, 4  ;;  %v4475_v45 = vor.u32 %v4474_v42, %v4470_v36  ;;  %v5131_v21 = vrot.slane %v4824_v59, 5  ;;  %v4483_v14 = vshrl.u32 %v3798_v11, 16  ;;  %v4826_v57 = vld [vmem:[#allocation2 + $0x184] sm:$0xf] }
 0x224   :  { %8461 = vmatmul.mubr.bf16.gmra.mrb[36].mxu1 %v10228_v30  ;;  %v5130_v52 = vrot.slane %v5128_v22, 4  ;;  %v4486_v20 = vshll.u32 %v3798_v11, 16  ;;  %v14757_v6 = vunpack.c.l.bf16 %v13540_v54  ;;  %v10229_v63 = vcombine.low %v13604_v53, %v13608_v25  ;;  %8886 = vmatmul.mubr.bf16.gmra.mrb[104].mxu0 %v10309_v46  ;;  %v11701_v25 = vld [vmem:[#allocation2 + $0x90] sm:$0xff]   ;;  %v2887_v46 = vld [vmem:[#allocation2 + $0xa0] sm:$0xf] }
 0x225   :  { %8468 = vmatprep.mubr.bf16.mxu1 %v11699_v51  ;;  %11166 = vmatpush3.bf16.msra.mxu1 %v11707_v8  ;;  %v10230_v0 = vcombine.low %v13618_v15, %v13622_v5  ;;  %v4471_v30 = vsel %vm12050_vm2, %v4466_v16, %v4470_v36  ;;  %v4476_v19 = vrot.slane %v4475_v45, 4  ;;  %v11721_v8 = vld [vmem:[%s14740_s1 + $0x220] sm:$0xff]   ;;  %v10199_v47 = vrot.slane %v13625_v38, 9  ;;  %v4827_v38 = vld [vmem:[#allocation2 + $0x188] sm:$0x1] }
 0x226   :  { %v13633_v50 = vmul.f32 %v13458_v39, %v14757_v6  ;;  %11167 = vmatprep.subr.bf16.mxu1 %v11714_v55  ;;  %8893 = vmatprep.mubr.bf16.mxu0 %v10374_v48  ;;  %v4485_v62 = vrot.slane %v4483_v14, 4  ;;  %v4488_v51 = vrot.slane %v4486_v20, 5  ;;  %v4492_v53 = vshll.u32 %v3799_v10, 16  ;;  %v2886_v16 = vld [vmem:[#allocation2 + $0x9c] sm:$0xe] }
 0x227   :  { %v4481_v29 = vsel %vm12050_vm2, %v4476_v19, %v4480_v17  ;;  %v5129_v36 = vsel %vm12077_vm8, %v10343_v35, %v5128_v22  ;;  %v5132_v37 = vsel %vm12077_vm8, %v5130_v52, %v5131_v21  ;;  %v4496_v59 = vshrl.u32 %v3799_v10, 16  ;;  %v2888_v17 = vld [vmem:[#allocation2 + $0xa4] sm:$0x1]  ;;  %v11728_v35 = vld [vmem:[%s14740_s1 + $0x228] sm:$0xff]   ;;  %v3801_v52 = vld [vmem:[#allocation2 + $0x180] sm:$0xf] }
 0x228   :  { %v10310_v31 = vcombine.low %v4471_v30, %v4481_v29  ;;  %v3128_v42 = vrot.slane %v2884_v61, 5  ;;  %v4489_v48 = vor.u32 %v4488_v51, %v4485_v62  ;;  %v4494_v11 = vrot.slane %v4492_v53, 5  ;;  %v3803_v29 = vld [vmem:[#allocation2 + $0x188] sm:$0x1]  ;;  %v3806_v15 = vld [vmem:[#allocation2 + $0x194] sm:$0x1] }
 0x229   :  { %11168 = vmatpush3.bf16.msra.mxu1 %v11714_v55  ;;  %v4498_v45 = vrot.slane %v4496_v59, 4  ;;  %v4502_v14 = vshll.u32 %v3800_v49, 16  ;;  %v10344_v20 = vrot.slane %v4825_v4, 9  ;;  %v5135_v6 = vrot.slane %v4826_v57, 5  ;;  %v3802_v49 = vld [vmem:[#allocation2 + $0x184] sm:$0xf] }
 0x22a   :  { %11169 = vmatprep.subr.bf16.mxu1 %v11721_v8  ;;  %v10375_v22 = vcombine.low %v5129_v36, %v5132_v37  ;;  %v3131_v21 = vrot.slane %v13641_v24, 5  ;;  %v4490_v10 = vrot.slane %v4489_v48, 4  ;;  %v3135_v61 = vrot.slane %v2887_v46, 5 }
 0x22b   :  { %v4499_v30 = vor.u32 %v4498_v45, %v4494_v11  ;;  %v4504_v19 = vrot.slane %v4502_v14, 5  ;;  %v5137_v55 = vrot.slane %v5135_v6, 4  ;;  %v5138_v62 = vrot.slane %v4827_v38, 5 }
 0x22c   :  { %8469 = vmatmul.mubr.bf16.gmra.mrb[40].mxu1 %v10229_v63  ;;  %v13659_v4 = vsel %vm12077_vm8, %v10199_v47, %v3128_v42  ;;  %v3130_v57 = vrot.slane %v3128_v42, 4  ;;  %v5136_v51 = vsel %vm12077_vm8, %v10344_v20, %v5135_v6  ;;  %v10200_v53 = vrot.slane %v2886_v16, 9  ;;  %8894 = vmatmul.mubr.bf16.gmra.mrb[108].mxu0 %v10310_v31  ;;  %v4829_v42 = vld [vmem:[#allocation2 + $0x190] sm:$0xf]  ;;  %v11703_v16 = vld [vmem:[#allocation2 + $0x9c] sm:$0xff]  }
 0x22d   :  { %8476 = vmatprep.mubr.bf16.mxu1 %v11701_v25  ;;  %11170 = vmatpush3.bf16.msra.mxu1 %v11721_v8  ;;  %v4495_v63 = vsel %vm12050_vm2, %v4490_v10, %v4494_v11  ;;  %v4500_v24 = vrot.slane %v4499_v30, 4  ;;  %v4507_v36 = vshrl.u32 %v3801_v52, 16  ;;  %v4510_v37 = vshll.u32 %v3801_v52, 16  ;;  %v4828_v11 = vld [vmem:[#allocation2 + $0x18c] sm:$0xe] }
 0x22e   :  { %11171 = vmatprep.subr.bf16.mxu1 %v11728_v35  ;;  %8901 = vmatprep.mubr.bf16.mxu0 %v10375_v22  ;;  %v3137_v25 = vrot.slane %v3135_v61, 4  ;;  %v3138_v59 = vrot.slane %v2888_v17, 5  ;;  %v4516_v47 = vshll.u32 %v3802_v49, 16  ;;  %v4520_v46 = vshrl.u32 %v3802_v49, 16  ;;  %v4830_v17 = vld [vmem:[#allocation2 + $0x194] sm:$0x1] }
 0x22f   :  { %v4505_v48 = vsel %vm12050_vm2, %v4500_v24, %v4504_v19  ;;  %v5139_v8 = vsel %vm12077_vm8, %v5137_v55, %v5138_v62  ;;  %v4509_v31 = vrot.slane %v4507_v36, 4  ;;  %v4512_v38 = vrot.slane %v4510_v37, 5  ;;  %v3804_v19 = vld [vmem:[#allocation2 + $0x18c] sm:$0xf]  ;;  %v11735_v55 = vld [vmem:[%s14740_s1 + $0x230] sm:$0xff]  }
 0x230   :  { %v3132_v45 = vsel %vm12077_vm8, %v3130_v57, %v3131_v21  ;;  %v4518_v14 = vrot.slane %v4516_v47, 5  ;;  %v4522_v20 = vrot.slane %v4520_v46, 4  ;;  %v4526_v6 = vshll.u32 %v3803_v29, 16 }
 0x231   :  { %11172 = vmatpush3.bf16.msra.mxu1 %v11728_v35  ;;  %v10311_v22 = vcombine.low %v4495_v63, %v4505_v48  ;;  %v13673_v10 = vsel %vm12077_vm8, %v10200_v53, %v3135_v61  ;;  %v4513_v52 = vor.u32 %v4512_v38, %v4509_v31  ;;  %v5142_v30 = vrot.slane %v4829_v42, 5  ;;  %v3805_v35 = vld [vmem:[#allocation2 + $0x190] sm:$0xf] }
 0x232   :  { %v10376_v62 = vcombine.low %v5136_v51, %v5139_v8  ;;  %v13680_v21 = vsel %vm12077_vm8, %v3137_v25, %v3138_v59  ;;  %v4523_v49 = vor.u32 %v4522_v20, %v4518_v14  ;;  %v4528_v57 = vrot.slane %v4526_v6, 5  ;;  %11173 = vmatprep.subr.bf16.mxu1 %v11735_v55  ;;  %v13705_v8 = vld [vmem:[#allocation2 + $0xb0] sm:$0x1]  ;;  %v5603_v6 = vld [vmem:[#allocation2 + $0x18] sm:$0xf] }
 0x233   :  { %v4514_v61 = vrot.slane %v4513_v52, 4  ;;  %v10345_v53 = vrot.slane %v4828_v11, 9  ;;  %v5144_v63 = vrot.slane %v5142_v30, 4  ;;  %v5145_v24 = vrot.slane %v4830_v17, 5  ;;  %v11705_v11 = vld [vmem:[#allocation2 + $0xa8] sm:$0xff]  }
 0x234   :  { %8477 = vmatmul.mubr.bf16.gmra.mrb[44].mxu1 %v10230_v0  ;;  %v4524_v29 = vrot.slane %v4523_v49, 4  ;;  %v4531_v36 = vshrl.u32 %v3804_v19, 16  ;;  %v14758_v51 = vunpack.c.h.bf16 %v13540_v54  ;;  %v289_v25 = vadd.f32 %v13491_v12, %v13633_v50  ;;  %8902 = vmatmul.mubr.bf16.gmra.mrb[112].mxu0 %v10311_v22  ;;  %v13697_v54 = vld [vmem:[#allocation2 + $0xa8] sm:$0xe]  ;;  %v13699_v50 = vld [vmem:[#allocation2 + $0xac] sm:$0xf] }
 0x235   :  { %8484 = vmatprep.mubr.bf16.mxu1 %v11703_v16  ;;  %11174 = vmatpush3.bf16.msra.mxu1 %v11735_v55  ;;  %v10231_v59 = vcombine.low %v13659_v4, %v3132_v45  ;;  %v4534_v5 = vshll.u32 %v3804_v19, 16  ;;  %v4540_v0 = vshll.u32 %v3805_v35, 16  ;;  %v10232_v47 = vcombine.low %v13673_v10, %v13680_v21 }
 0x236   :  { %v220_v37 = vmul.f32 %v13458_v39, %v14758_v51  ;;  %8909 = vmatprep.mubr.bf16.mxu0 %v10376_v62  ;;  %v4519_v46 = vsel %vm12050_vm2, %v4514_v61, %v4518_v14  ;;  %v4529_v39 = vsel %vm12050_vm2, %v4524_v29, %v4528_v57  ;;  %v4533_v42 = vrot.slane %v4531_v36, 4  ;;  %v13710_v57 = vld [vmem:[#allocation2 + $0xb8] sm:$0xf]  ;;  %v5604_v51 = vld [vmem:[#allocation2 + $0x1c] sm:$0xf] }
 0x237   :  { %v5143_v4 = vsel %vm12077_vm8, %v10345_v53, %v5142_v30  ;;  %v5146_v48 = vsel %vm12077_vm8, %v5144_v63, %v5145_v24  ;;  %v4536_v31 = vrot.slane %v4534_v5, 5  ;;  %v4542_v38 = vrot.slane %v4540_v0, 5 }
 0x238   :  { %v4544_v16 = vshrl.u32 %v3805_v35, 16  ;;  %v4550_v45 = vshll.u32 %v3806_v15, 16  ;;  %v290_v14 = vadd.f32 %v13491_v12, %v220_v37  ;;  %v353_v20 = vmax.f32 %v289_v25, 0.0 }
 0x239   :  { %v10312_v17 = vcombine.low %v4519_v46, %v4529_v39  ;;  %v10201_v22 = vrot.slane %v13697_v54, 9  ;;  %v3142_v52 = vrot.slane %v13699_v50, 5  ;;  %v4537_v30 = vor.u32 %v4536_v31, %v4533_v42  ;;  %v1525_v50 = vld [vmem:[#allocation2 + $0x198] sm:$0xf] }
 0x23a   :  { %v10377_v19 = vcombine.low %v5143_v4, %v5146_v48  ;;  %v4546_v55 = vrot.slane %v4544_v16, 4  ;;  %v354_v62 = vmax.f32 %v290_v14, 0.0  ;;  %v10705_v49 = vpack.c.bf16 %v353_v20, %v353_v20  ;;  %v2894_v14 = vld [vmem:[#allocation2 + $0xbc] sm:$0x1] }
 0x23b   :  { %v3145_v35 = vrot.slane %v13705_v8, 5  ;;  %v4538_v61 = vrot.slane %v4537_v30, 4  ;;  %v4552_v53 = vrot.slane %v4550_v45, 5  ;;  %v5700_v12 = vshrl.u32 %v5603_v6, 16  ;;  %v2892_v45 = vld [vmem:[#allocation2 + $0xb4] sm:$0xe] }
 0x23c   :  { %8485 = vmatmul.mubr.bf16.gmra.mrb[48].mxu1 %v10231_v59  ;;  %v4547_v63 = vor.u32 %v4546_v55, %v4542_v38  ;;  %v10706_v24 = vpack.c.bf16 %v354_v62, %v354_v62  ;;  %v1190_v29 = vshrl.u32 %v10705_v49, 16  ;;  %v1193_v36 = vshll.u32 %v10705_v49, 16  ;;  %8910 = vmatmul.mubr.bf16.gmra.mrb[116].mxu0 %v10312_v17  ;;  %v11706_v59 = vld [vmem:[#allocation2 + $0xb4] sm:$0xff]   ;;  %v5605_v49 = vld [vmem:[#allocation2 + $0x20] sm:$0x1] }
 0x23d   :  { %8492 = vmatprep.mubr.bf16.mxu1 %v11705_v11  ;;  %v3144_v37 = vrot.slane %v3142_v52, 4  ;;  %v4543_v25 = vsel %vm12050_vm2, %v4538_v61, %v4542_v38  ;;  %v3149_v15 = vrot.slane %v13710_v57, 5  ;;  %v5703_v5 = vshll.u32 %v5603_v6, 16  ;;  %8917 = vmatprep.mubr.bf16.mxu0 %v10377_v19  ;;  %v1529_v6 = vld [vmem:[#allocation2 + $0x1a0] sm:$0x1] }
 0x23e   :  { %v4548_v0 = vrot.slane %v4547_v63, 4  ;;  %v1192_v46 = vrot.slane %v1190_v29, 7  ;;  %v1198_v39 = vshrl.u32 %v10706_v24, 16  ;;  %v1201_v54 = vshll.u32 %v10706_v24, 16  ;;  %v5606_v63 = vld [vmem:[#allocation2 + $0x24] sm:$0xf] }
 0x23f   :  { %v5702_v42 = vrot.slane %v5700_v12, 4  ;;  %v5705_v4 = vrot.slane %v5703_v5, 5  ;;  %v5709_v48 = vshll.u32 %v5604_v51, 16  ;;  %v5713_v8 = vshrl.u32 %v5604_v51, 16  ;;  %v5607_v24 = vld [vmem:[#allocation2 + $0x28] sm:$0xf] }
 0x240   :  { %v4553_v31 = vsel %vm12050_vm2, %v4548_v0, %v4552_v53  ;;  %v1195_v11 = vor.u32 %v1193_v36, %v1192_v46  ;;  %v1196_v16 = vrot.slane %v1192_v46, 4  ;;  %v1200_v38 = vrot.slane %v1198_v39, 7  ;;  %v13734_v36 = vld [vmem:[#allocation2 + $0xe0] sm:$0x1] }
 0x241   :  { %v10313_v20 = vcombine.low %v4543_v25, %v4553_v31  ;;  %v13718_v17 = vrot.slane %v5709_v48, 5  ;;  %v5715_v30 = vrot.slane %v5713_v8, 4  ;;  %v3143_v57 = vsel %vm12077_vm8, %v10201_v22, %v3142_v52  ;;  %v2895_v52 = vld [vmem:[#allocation2 + $0xd8] sm:$0xe] }
 0x242   :  { %v1203_v19 = vor.u32 %v1201_v54, %v1200_v38  ;;  %v1205_v55 = vrot.slane %v1200_v38, 4  ;;  %v1526_v62 = vsel %vm12129_vm13, %v1195_v11, %v1525_v50  ;;  %v3146_v61 = vsel %vm12077_vm8, %v3144_v37, %v3145_v35  ;;  %v2896_v35 = vld [vmem:[#allocation2 + $0xdc] sm:$0xf] }
 0x243   :  { %1527 = vst [vmem:[#allocation2 + $0x198] sm:$0xf] %v1526_v62  ;;  %v10202_v53 = vrot.slane %v2892_v45, 9  ;;  %v3152_v12 = vrot.slane %v2894_v14, 5  ;;  %v3151_v10 = vrot.slane %v3149_v15, 4  ;;  %v5706_v21 = vor.u32 %v5705_v4, %v5702_v42 }
 0x244   :  { %8493 = vmatmul.mubr.bf16.gmra.mrb[52].mxu1 %v10232_v47  ;;  %v1204_v40 = vsel %vm12118_vm12, %v1196_v16, %v1203_v19  ;;  %v1530_v29 = vsel %vm12109_vm11, %v1205_v55, %v1529_v6  ;;  %8918 = vmatmul.mubr.bf16.gmra.mrb[120].mxu0 %v10313_v20  ;;  %v5716_v47 = vor.u32 %v5715_v30, %v13718_v17  ;;  %v5719_v22 = vshll.u32 %v5605_v49, 16  ;;  %v5608_v20 = vld [vmem:[#allocation2 + $0x2c] sm:$0x1] }
 0x245   :  { %8500 = vmatprep.mubr.bf16.mxu1 %v11706_v59  ;;  %1528 = vst [vmem:[#allocation2 + $0x19c] sm:$0xf] %v1204_v40  ;;  %1531 = vst [vmem:[#allocation2 + $0x1a0] sm:$0x1] %v1530_v29  ;;  %v5724_v51 = vshrl.u32 %v5606_v63, 16  ;;  %v5727_v37 = vshll.u32 %v5606_v63, 16  ;;  %v10233_v32 = vcombine.low %v3143_v57, %v3146_v61  ;;  %v3150_v27 = vsel %vm12077_vm8, %v10202_v53, %v3149_v15 }
 0x246   :  { %v5733_v25 = vshll.u32 %v5607_v24, 16  ;;  %v5737_v5 = vshrl.u32 %v5607_v24, 16  ;;  %v11709_v59 = vld [vmem:[#allocation2 + $0xc0] sm:$0xff]   ;;  %v3153_v0 = vsel %vm12077_vm8, %v3151_v10, %v3152_v12  ;;  %v13740_v46 = vrot.slane %v5706_v21, 4  ;;  %v11742_v15 = vld [vmem:[%s14740_s1 + $0x238] sm:$0xff]  }
 0x247   :  { %v10203_v39 = vrot.slane %v2895_v52, 9  ;;  %v3156_v54 = vrot.slane %v2896_v35, 5  ;;  %v13742_v50 = vrot.slane %v5716_v47, 4  ;;  %v13744_v42 = vrot.slane %v5719_v22, 5  ;;  %11175 = vmatprep.subr.bf16.mxu1 %v11742_v15  ;;  %v11710_v21 = vld [vmem:[#allocation2 + $0xe4] sm:$0xff]  }
 0x248   :  { %v3159_v4 = vrot.slane %v13734_v36, 5  ;;  %v5726_v48 = vrot.slane %v5724_v51, 4  ;;  %v5729_v11 = vrot.slane %v5727_v37, 5  ;;  %v13750_v16 = vrot.slane %v5733_v25, 5  ;;  %11176 = vmatpush3.bf16.msra.mxu1 %v11742_v15  ;;  %v5609_v22 = vld [vmem:[#allocation2 + $0x30] sm:$0xf] }
 0x249   :  { %v5739_v6 = vrot.slane %v5737_v5, 4  ;;  %v10234_v55 = vcombine.low %v3150_v27, %v3153_v0  ;;  %v5712_v49 = vsel %vm12050_vm2, %v13740_v46, %v13718_v17  ;;  %v13758_v57 = vsel %vm12077_vm8, %v10203_v39, %v3156_v54  ;;  %v2899_v51 = vld [vmem:[#allocation2 + $0xe8] sm:$0xf]  ;;  %v5610_v5 = vld [vmem:[#allocation2 + $0x34] sm:$0xf] }
 0x24a   :  { %v4831_v8 = vld [vmem:[#allocation2 + $0x198] sm:$0xe]  ;;  %v3158_v47 = vrot.slane %v3156_v54, 4  ;;  %v5743_v36 = vshll.u32 %v5608_v20, 16  ;;  %v5730_v27 = vor.u32 %v5729_v11, %v5726_v48  ;;  %v5748_v39 = vshrl.u32 %v5609_v22, 16 }
 0x24b   :  { %v3807_v31 = vld [vmem:[#allocation2 + $0x198] sm:$0xf]  ;;  %v10346_v38 = vrot.slane %v4831_v8, 9  ;;  %v5740_v46 = vor.u32 %v5739_v6, %v13750_v16  ;;  %v5757_v48 = vshll.u32 %v5610_v5, 16 }
 0x24c   :  { %8501 = vmatmul.mubr.bf16.gmra.mrb[56].mxu1 %v10233_v32  ;;  %v4555_v45 = vshrl.u32 %v3807_v31, 16  ;;  %v4558_v14 = vshll.u32 %v3807_v31, 16  ;;  %v4832_v30 = vld [vmem:[#allocation2 + $0x19c] sm:$0xf]  ;;  %v4833_v19 = vld [vmem:[#allocation2 + $0x1a0] sm:$0x1]  ;;  %v5722_v32 = vsel %vm12050_vm2, %v13742_v50, %v13744_v42  ;;  %v3160_v31 = vsel %vm12077_vm8, %v3158_v47, %v3159_v4 }
 0x24d   :  { %8508 = vmatprep.mubr.bf16.mxu1 %v11709_v59  ;;  %v3808_v62 = vld [vmem:[#allocation2 + $0x19c] sm:$0xf]  ;;  %v5149_v61 = vrot.slane %v4832_v30, 5  ;;  %v5152_v53 = vrot.slane %v4833_v19, 5  ;;  %v3809_v12 = vld [vmem:[#allocation2 + $0x1a0] sm:$0x1]  ;;  %v10235_v47 = vcombine.low %v13758_v57, %v3160_v31 }
 0x24e   :  { %v4557_v63 = vrot.slane %v4555_v45, 4  ;;  %v4560_v24 = vrot.slane %v4558_v14, 5  ;;  %v4564_v40 = vshll.u32 %v3808_v62, 16  ;;  %v4568_v29 = vshrl.u32 %v3808_v62, 16  ;;  %v2900_v14 = vld [vmem:[#allocation2 + $0xec] sm:$0x1] }
 0x24f   :  { %v4574_v10 = vshll.u32 %v3809_v12, 16  ;;  %v5150_v52 = vsel %vm12077_vm8, %v10346_v38, %v5149_v61  ;;  %v5151_v17 = vrot.slane %v5149_v61, 4  ;;  %v2898_v38 = vld [vmem:[#allocation2 + $0xe4] sm:$0xe]  ;;  %v5745_v45 = vrot.slane %v5743_v36, 5 }
 0x250   :  { %v4561_v35 = vor.u32 %v4560_v24, %v4557_v63  ;;  %v4566_v37 = vrot.slane %v4564_v40, 5  ;;  %v4570_v25 = vrot.slane %v4568_v29, 4  ;;  %v3163_v50 = vrot.slane %v2899_v51, 5  ;;  %v5611_v30 = vld [vmem:[#allocation2 + $0x38] sm:$0x1] }
 0x251   :  { %v5153_v59 = vsel %vm12077_vm8, %v5151_v17, %v5152_v53  ;;  %v4576_v8 = vrot.slane %v4574_v10, 5  ;;  %v5751_v42 = vshll.u32 %v5609_v22, 16  ;;  %v5731_v6 = vrot.slane %v5730_v27, 4  ;;  %v5612_v40 = vld [vmem:[#allocation2 + $0x3c] sm:$0xf]  ;;  %v11712_v22 = vld [vmem:[#allocation2 + $0xf0] sm:$0xff]  }
 0x252   :  { %v4562_v0 = vrot.slane %v4561_v35, 4  ;;  %v10378_v54 = vcombine.low %v5150_v52, %v5153_v59  ;;  %v4571_v15 = vor.u32 %v4570_v25, %v4566_v37  ;;  %v5761_v19 = vshrl.u32 %v5610_v5, 16  ;;  %v5613_v29 = vld [vmem:[#allocation2 + $0x40] sm:$0xf]  ;;  %v2901_v25 = vld [vmem:[#allocation2 + $0xf0] sm:$0xe] }
 0x253   :  { %v5741_v62 = vrot.slane %v5740_v46, 4  ;;  %v5750_v61 = vrot.slane %v5748_v39, 4  ;;  %v5753_v53 = vrot.slane %v5751_v42, 5  ;;  %v13773_v4 = vrot.slane %v5757_v48, 5  ;;  %v2903_v57 = vld [vmem:[#allocation2 + $0xf8] sm:$0x1] }
 0x254   :  { %8509 = vmatmul.mubr.bf16.gmra.mrb[60].mxu1 %v10234_v55  ;;  %8925 = vmatprep.mubr.bf16.mxu0 %v10378_v54  ;;  %v4567_v11 = vsel %vm12050_vm2, %v4562_v0, %v4566_v37  ;;  %v4572_v20 = vrot.slane %v4571_v15, 4  ;;  %v2902_v55 = vld [vmem:[#allocation2 + $0xf4] sm:$0xf]  ;;  %v10411_v63 = vcombine.low %v5712_v49, %v5722_v32  ;;  %v5763_v24 = vrot.slane %v5761_v19, 4  ;;  %v5614_v42 = vld [vmem:[#allocation2 + $0x44] sm:$0x1] }
 0x255   :  { %8516 = vmatprep.mubr.bf16.mxu1 %v11710_v21  ;;  %v10204_v21 = vrot.slane %v2898_v38, 9  ;;  %v5736_v52 = vsel %vm12050_vm2, %v5731_v6, %v13750_v16  ;;  %v3165_v17 = vrot.slane %v3163_v50, 4  ;;  %v3166_v35 = vrot.slane %v2900_v14, 5  ;;  %v11715_v19 = vld [vmem:[#allocation2 + $0xfc] sm:$0xff]  }
 0x256   :  { %v4577_v12 = vsel %vm12050_vm2, %v4572_v20, %v4576_v8  ;;  %v5767_v36 = vshll.u32 %v5611_v30, 16  ;;  %v5746_v51 = vsel %vm12050_vm2, %v5741_v62, %v5745_v45  ;;  %v5754_v49 = vor.u32 %v5753_v53, %v5750_v61  ;;  %v11711_v8 = vld [vmem:[#allocation2 + $0x18] sm:$0xff]   ;;  %v5615_v62 = vld [vmem:[#allocation2 + $0x48] sm:$0xf]  ;;  %v5616_v61 = vld [vmem:[#allocation2 + $0x4c] sm:$0xf] }
 0x257   :  { %v10314_v10 = vcombine.low %v4567_v11, %v4577_v12  ;;  %v5764_v37 = vor.u32 %v5763_v24, %v13773_v4  ;;  %v3170_v32 = vrot.slane %v2902_v55, 5  ;;  %v5772_v27 = vshrl.u32 %v5612_v40, 16 }
 0x258   :  { %v5775_v5 = vshll.u32 %v5612_v40, 16  ;;  %v5781_v59 = vshll.u32 %v5613_v29, 16  ;;  %v5785_v0 = vshrl.u32 %v5613_v29, 16  ;;  %v3164_v16 = vsel %vm12077_vm8, %v10204_v21, %v3163_v50  ;;  %v2905_v50 = vld [vmem:[#allocation2 + $0x100] sm:$0xf] }
 0x259   :  { %8926 = vmatmul.mubr.bf16.gmra.mrb[124].mxu0 %v10314_v10  ;;  %v10412_v46 = vcombine.low %v5736_v52, %v5746_v51  ;;  %v3167_v39 = vsel %vm12077_vm8, %v3165_v17, %v3166_v35  ;;  %v5769_v54 = vrot.slane %v5767_v36, 5  ;;  %v10205_v15 = vrot.slane %v2901_v25, 9  ;;  %v2904_v10 = vld [vmem:[#allocation2 + $0xfc] sm:$0xe]  ;;  %v2906_v21 = vld [vmem:[#allocation2 + $0x104] sm:$0x1] }
 0x25a   :  { %8966 = vmatprep.mubr.bf16.mxu0 %v10411_v63  ;;  %v5755_v31 = vrot.slane %v5754_v49, 4  ;;  %v5765_v38 = vrot.slane %v5764_v37, 4  ;;  %v3172_v45 = vrot.slane %v3170_v32, 4  ;;  %v3173_v14 = vrot.slane %v2903_v57, 5  ;;  %v11713_v35 = vld [vmem:[#allocation2 + $0x24] sm:$0xff]  }
 0x25b   :  { %v5774_v48 = vrot.slane %v5772_v27, 4  ;;  %v5777_v11 = vrot.slane %v5775_v5, 5  ;;  %v13788_v20 = vrot.slane %v5781_v59, 5  ;;  %v5787_v6 = vrot.slane %v5785_v0, 4  ;;  %v5618_v25 = vld [vmem:[#allocation2 + $0x54] sm:$0xf] }
 0x25c   :  { %8517 = vmatmul.mubr.bf16.gmra.mrb[64].mxu1 %v10235_v47  ;;  %v10236_v30 = vcombine.low %v3164_v16, %v3167_v39  ;;  %v5760_v53 = vsel %vm12050_vm2, %v5755_v31, %v13773_v4  ;;  %v3171_v55 = vsel %vm12077_vm8, %v10205_v15, %v3170_v32  ;;  %v3174_v12 = vsel %vm12077_vm8, %v3172_v45, %v3173_v14  ;;  %v5619_v59 = vld [vmem:[#allocation2 + $0x58] sm:$0xf]  ;;  %v5617_v0 = vld [vmem:[#allocation2 + $0x50] sm:$0x1]  ;;  %v11717_v15 = vld [vmem:[#allocation2 + $0x108] sm:$0xff]  }
 0x25d   :  { %8524 = vmatprep.mubr.bf16.mxu1 %v11712_v22  ;;  %v5791_v63 = vshll.u32 %v5614_v42, 16  ;;  %v5770_v24 = vsel %vm12050_vm2, %v5765_v38, %v5769_v54  ;;  %v5778_v40 = vor.u32 %v5777_v11, %v5774_v48  ;;  %v5788_v29 = vor.u32 %v5787_v6, %v13788_v20 }
 0x25e   :  { %v3177_v47 = vrot.slane %v2905_v50, 5  ;;  %v5796_v22 = vshrl.u32 %v5615_v62, 16  ;;  %v5799_v4 = vshll.u32 %v5615_v62, 16  ;;  %v5805_v52 = vshll.u32 %v5616_v61, 16  ;;  %v2907_v62 = vld [vmem:[#allocation2 + $0x108] sm:$0xe] }
 0x25f   :  { %v5809_v17 = vshrl.u32 %v5616_v61, 16  ;;  %v10413_v36 = vcombine.low %v5760_v53, %v5770_v24  ;;  %v10237_v51 = vcombine.low %v3171_v55, %v3174_v12  ;;  %v5793_v49 = vrot.slane %v5791_v63, 5  ;;  %v11716_v53 = vld [vmem:[#allocation2 + $0x30] sm:$0xff]  }
 0x260   :  { %v10206_v37 = vrot.slane %v2904_v10, 9  ;;  %v5779_v32 = vrot.slane %v5778_v40, 4  ;;  %v5789_v57 = vrot.slane %v5788_v29, 4  ;;  %v3179_v27 = vrot.slane %v3177_v47, 4  ;;  %v2909_v55 = vld [vmem:[#allocation2 + $0x110] sm:$0x1] }
 0x261   :  { %8967 = vmatmul.mubr.bf16.vlgmr.msra.gmra.mrb[0].mxu0 %v11711_v8  ;;  %v3180_v5 = vrot.slane %v2906_v21, 5  ;;  %v5798_v16 = vrot.slane %v5796_v22, 4  ;;  %v13800_v39 = vrot.slane %v5805_v52, 5  ;;  %v5811_v54 = vrot.slane %v5809_v17, 4  ;;  %v2908_v8 = vld [vmem:[#allocation2 + $0x10c] sm:$0xf] }
 0x262   :  { %8974 = vmatprep.mubr.bf16.mxu0 %v10412_v46  ;;  %v5801_v46 = vrot.slane %v5799_v4, 5  ;;  %v5820_v31 = vshrl.u32 %v5618_v25, 16  ;;  %v5823_v38 = vshll.u32 %v5618_v25, 16  ;;  %v5829_v45 = vshll.u32 %v5619_v59, 16  ;;  %v5622_v29 = vld [vmem:[#allocation2 + $0x64] sm:$0xf] }
 0x263   :  { %v5833_v14 = vshrl.u32 %v5619_v59, 16  ;;  %v5784_v42 = vsel %vm12050_vm2, %v5779_v32, %v13788_v20  ;;  %v3178_v48 = vsel %vm12077_vm8, %v10206_v37, %v3177_v47  ;;  %v3181_v11 = vsel %vm12077_vm8, %v3179_v27, %v3180_v5  ;;  %v5621_v20 = vld [vmem:[#allocation2 + $0x60] sm:$0xf]  ;;  %v5620_v4 = vld [vmem:[#allocation2 + $0x5c] sm:$0x1]  ;;  %v11719_v52 = vld [vmem:[#allocation2 + $0x114] sm:$0xff]  }
 0x264   :  { %8525 = vmatmul.mubr.bf16.gmra.mrb[68].mxu1 %v10236_v30  ;;  %v5815_v6 = vshll.u32 %v5617_v0, 16  ;;  %v5794_v30 = vsel %vm12050_vm2, %v5789_v57, %v5793_v49  ;;  %v5802_v50 = vor.u32 %v5801_v46, %v5798_v16  ;;  %v3184_v61 = vrot.slane %v2908_v8, 5  ;;  %v2911_v49 = vld [vmem:[#allocation2 + $0x118] sm:$0xf] }
 0x265   :  { %8532 = vmatprep.mubr.bf16.mxu1 %v11715_v19  ;;  %v5812_v19 = vor.u32 %v5811_v54, %v13800_v39  ;;  %v5822_v12 = vrot.slane %v5820_v31, 4  ;;  %v5825_v63 = vrot.slane %v5823_v38, 5  ;;  %v13812_v24 = vrot.slane %v5829_v45, 5  ;;  %v2912_v31 = vld [vmem:[#allocation2 + $0x11c] sm:$0x1] }
 0x266   :  { %v5835_v40 = vrot.slane %v5833_v14, 4  ;;  %v10414_v10 = vcombine.low %v5784_v42, %v5794_v30  ;;  %v10238_v47 = vcombine.low %v3178_v48, %v3181_v11  ;;  %v5817_v21 = vrot.slane %v5815_v6, 5  ;;  %v11718_v48 = vld [vmem:[#allocation2 + $0x3c] sm:$0xff]  }
 0x267   :  { %v10207_v22 = vrot.slane %v2907_v62, 9  ;;  %v5803_v17 = vrot.slane %v5802_v50, 4  ;;  %v5844_v37 = vshrl.u32 %v5621_v20, 16  ;;  %v5847_v25 = vshll.u32 %v5621_v20, 16  ;;  %v5625_v20 = vld [vmem:[#allocation2 + $0x70] sm:$0xf] }
 0x268   :  { %v5853_v32 = vshll.u32 %v5622_v29, 16  ;;  %v5857_v57 = vshrl.u32 %v5622_v29, 16  ;;  %v5826_v27 = vor.u32 %v5825_v63, %v5822_v12  ;;  %v5836_v5 = vor.u32 %v5835_v40, %v13812_v24  ;;  %v11722_v12 = vld [vmem:[#allocation2 + $0x120] sm:$0xff]  }
 0x269   :  { %8975 = vmatmul.mubr.bf16.gmra.mrb[4].mxu0 %v11713_v35  ;;  %v5813_v35 = vrot.slane %v5812_v19, 4  ;;  %v5839_v59 = vshll.u32 %v5620_v4, 16  ;;  %v3185_v0 = vsel %vm12077_vm8, %v10207_v22, %v3184_v61  ;;  %v5808_v16 = vsel %vm12050_vm2, %v5803_v17, %v13800_v39  ;;  %v5623_v39 = vld [vmem:[#allocation2 + $0x68] sm:$0x1]  ;;  %v5624_v19 = vld [vmem:[#allocation2 + $0x6c] sm:$0xf] }
 0x26a   :  { %8982 = vmatprep.mubr.bf16.mxu0 %v10413_v36  ;;  %v3186_v36 = vrot.slane %v3184_v61, 4  ;;  %v3191_v8 = vrot.slane %v2911_v49, 5  ;;  %v5846_v38 = vrot.slane %v5844_v37, 4  ;;  %v5849_v45 = vrot.slane %v5847_v25, 5  ;;  %v2915_v25 = vld [vmem:[#allocation2 + $0x128] sm:$0x1] }
 0x26b   :  { %v5818_v46 = vsel %vm12050_vm2, %v5813_v35, %v5817_v21  ;;  %v13824_v14 = vrot.slane %v5853_v32, 5  ;;  %v5859_v42 = vrot.slane %v5857_v57, 4  ;;  %v5827_v11 = vrot.slane %v5826_v27, 4  ;;  %v2914_v21 = vld [vmem:[#allocation2 + $0x124] sm:$0xf]  ;;  %v11720_v57 = vld [vmem:[#allocation2 + $0x48] sm:$0xff]  }
 0x26c   :  { %8533 = vmatmul.mubr.bf16.gmra.mrb[72].mxu1 %v10237_v51  ;;  %v3187_v51 = vrot.slane %v2909_v55, 5  ;;  %v5837_v6 = vrot.slane %v5836_v5, 4  ;;  %v5841_v30 = vrot.slane %v5839_v59, 5  ;;  %v10415_v50 = vcombine.low %v5808_v16, %v5818_v46  ;;  %v5626_v5 = vld [vmem:[#allocation2 + $0x74] sm:$0x1] }
 0x26d   :  { %8540 = vmatprep.mubr.bf16.mxu1 %v11717_v15  ;;  %v2910_v15 = vld [vmem:[#allocation2 + $0x114] sm:$0xe]  ;;  %v3194_v55 = vrot.slane %v2912_v31, 5  ;;  %v5850_v63 = vor.u32 %v5849_v45, %v5846_v38  ;;  %v5860_v40 = vor.u32 %v5859_v42, %v13824_v14  ;;  %v5863_v29 = vshll.u32 %v5623_v39, 16  ;;  %v5627_v59 = vld [vmem:[#allocation2 + $0x78] sm:$0xf] }
 0x26e   :  { %v3188_v54 = vsel %vm12077_vm8, %v3186_v36, %v3187_v51  ;;  %v10208_v61 = vrot.slane %v2910_v15, 9  ;;  %v5868_v22 = vshrl.u32 %v5624_v19, 16  ;;  %v5871_v4 = vshll.u32 %v5624_v19, 16  ;;  %v2913_v51 = vld [vmem:[#allocation2 + $0x120] sm:$0xe]  ;;  %v11724_v42 = vld [vmem:[#allocation2 + $0x12c] sm:$0xff]  }
 0x26f   :  { %v10239_v62 = vcombine.low %v3185_v0, %v3188_v54  ;;  %v5881_v17 = vshrl.u32 %v5625_v20, 16  ;;  %v5851_v49 = vrot.slane %v5850_v63, 4  ;;  %v5865_v37 = vrot.slane %v5863_v29, 5  ;;  %v5628_v15 = vld [vmem:[#allocation2 + $0x7c] sm:$0xf] }
 0x270   :  { %v3192_v35 = vsel %vm12077_vm8, %v10208_v61, %v3191_v8  ;;  %v3198_v32 = vrot.slane %v2914_v21, 5  ;;  %v5870_v0 = vrot.slane %v5868_v22, 4  ;;  %v5873_v16 = vrot.slane %v5871_v4, 5  ;;  %v2917_v45 = vld [vmem:[#allocation2 + $0x130] sm:$0xf] }
 0x271   :  { %8983 = vmatmul.mubr.bf16.gmra.mrb[8].mxu0 %v11716_v53  ;;  %v3193_v53 = vrot.slane %v3191_v8, 4  ;;  %v5883_v54 = vrot.slane %v5881_v17, 4  ;;  %v10209_v31 = vrot.slane %v2913_v51, 9  ;;  %v3201_v38 = vrot.slane %v2915_v25, 5  ;;  %v2916_v39 = vld [vmem:[#allocation2 + $0x12c] sm:$0xe] }
 0x272   :  { %8990 = vmatprep.mubr.bf16.mxu0 %v10414_v10  ;;  %v5832_v10 = vsel %vm12050_vm2, %v5827_v11, %v13812_v24  ;;  %v5861_v24 = vrot.slane %v5860_v40, 4  ;;  %v5895_v19 = vshll.u32 %v5627_v59, 16  ;;  %v5905_v61 = vshrl.u32 %v5628_v15, 16  ;;  %v11726_v25 = vld [vmem:[#allocation2 + $0x138] sm:$0xff]  }
 0x273   :  { %v3195_v36 = vsel %vm12077_vm8, %v3193_v53, %v3194_v55  ;;  %v5874_v53 = vor.u32 %v5873_v16, %v5870_v0 }
 0x274   :  { %8541 = vmatmul.mubr.bf16.gmra.mrb[76].mxu1 %v10238_v47  ;;  %v5842_v47 = vsel %vm12050_vm2, %v5837_v6, %v5841_v30  ;;  %v10240_v8 = vcombine.low %v3192_v35, %v3195_v36  ;;  %v5866_v11 = vsel %vm12050_vm2, %v5861_v24, %v5865_v37  ;;  %v3200_v6 = vrot.slane %v3198_v32, 4  ;;  %v2920_v37 = vld [vmem:[#allocation2 + $0x13c] sm:$0xf] }
 0x275   :  { %8548 = vmatprep.mubr.bf16.mxu1 %v11719_v52  ;;  %v5877_v52 = vshll.u32 %v5625_v20, 16  ;;  %v10416_v27 = vcombine.low %v5832_v10, %v5842_v47  ;;  %v5887_v30 = vshll.u32 %v5626_v5, 16  ;;  %v3205_v20 = vrot.slane %v2917_v45, 5  ;;  %v11723_v47 = vld [vmem:[#allocation2 + $0x54] sm:$0xff]  }
 0x276   :  { %v3202_v40 = vsel %vm12077_vm8, %v3200_v6, %v3201_v38  ;;  %v10210_v10 = vrot.slane %v2916_v39, 9  ;;  %v5897_v22 = vrot.slane %v5895_v19, 5  ;;  %v5875_v17 = vrot.slane %v5874_v53, 4  ;;  %v2921_v38 = vld [vmem:[#allocation2 + $0x140] sm:$0x1] }
 0x277   :  { %v13836_v46 = vrot.slane %v5877_v52, 5  ;;  %v5889_v29 = vrot.slane %v5887_v30, 5  ;;  %v5907_v52 = vrot.slane %v5905_v61, 4  ;;  %v3207_v36 = vrot.slane %v3205_v20, 4  ;;  %v11725_v6 = vld [vmem:[#allocation2 + $0x60] sm:$0xff]  }
 0x278   :  { %v3215_v53 = vrot.slane %v2921_v38, 5 }
 0x279   :  { %8991 = vmatmul.mubr.bf16.gmra.mrb[12].mxu0 %v11718_v48  ;;  %v5856_v48 = vsel %vm12050_vm2, %v5851_v49, %v13824_v14  ;;  %v5884_v55 = vor.u32 %v5883_v54, %v13836_v46  ;;  %v3199_v14 = vsel %vm12077_vm8, %v10209_v31, %v3198_v32  ;;  %v5629_v49 = vld [vmem:[#allocation2 + $0x80] sm:$0x1]  ;;  %v5630_v32 = vld [vmem:[#allocation2 + $0x84] sm:$0xf]  ;;  %v5880_v16 = vsel %vm12050_vm2, %v5875_v17, %v13836_v46 }
 0x27a   :  { %8998 = vmatprep.mubr.bf16.mxu0 %v10415_v50  ;;  %v5892_v50 = vshrl.u32 %v5627_v59, 16  ;;  %v10417_v63 = vcombine.low %v5856_v48, %v5866_v11  ;;  %v10241_v24 = vcombine.low %v3199_v14, %v3202_v40  ;;  %v5911_v0 = vshll.u32 %v5629_v49, 16 }
 0x27b   :  { %v5885_v35 = vrot.slane %v5884_v55, 4  ;;  %v3212_v31 = vrot.slane %v2920_v37, 5  ;;  %v5916_v45 = vshrl.u32 %v5630_v32, 16  ;;  %v5632_v55 = vld [vmem:[#allocation2 + $0x8c] sm:$0x1] }
 0x27c   :  { %8549 = vmatmul.mubr.bf16.gmra.mrb[80].mxu1 %v10239_v62  ;;  %v5901_v62 = vshll.u32 %v5628_v15, 16  ;;  %v5894_v21 = vrot.slane %v5892_v50, 4  ;;  %v5913_v50 = vrot.slane %v5911_v0, 5  ;;  %v5935_v17 = vshll.u32 %v5632_v55, 16 }
 0x27d   :  { %8556 = vmatprep.mubr.bf16.mxu1 %v11722_v12  ;;  %v2918_v12 = vld [vmem:[#allocation2 + $0x134] sm:$0x1]  ;;  %v5890_v54 = vsel %vm12050_vm2, %v5885_v35, %v5889_v29  ;;  %v3214_v61 = vrot.slane %v3212_v31, 4  ;;  %v5918_v14 = vrot.slane %v5916_v45, 4  ;;  %v5633_v29 = vld [vmem:[#allocation2 + $0x90] sm:$0xf] }
 0x27e   :  { %v13848_v4 = vrot.slane %v5901_v62, 5  ;;  %v3208_v51 = vrot.slane %v2918_v12, 5  ;;  %v5898_v5 = vor.u32 %v5897_v22, %v5894_v21  ;;  %v10418_v19 = vcombine.low %v5880_v16, %v5890_v54  ;;  %v5636_v54 = vld [vmem:[#allocation2 + $0x9c] sm:$0xf] }
 0x27f   :  { %v3216_v35 = vsel %vm12077_vm8, %v3214_v61, %v3215_v53  ;;  %v5940_v49 = vshrl.u32 %v5633_v29, 16  ;;  %v5937_v0 = vrot.slane %v5935_v17, 5 }
 0x280   :  { %v5908_v59 = vor.u32 %v5907_v52, %v13848_v4  ;;  %v3209_v15 = vsel %vm12077_vm8, %v3207_v36, %v3208_v51  ;;  %v5899_v30 = vrot.slane %v5898_v5, 4  ;;  %v2922_v36 = vld [vmem:[#allocation2 + $0x144] sm:$0xe] }
 0x281   :  { %8999 = vmatmul.mubr.bf16.gmra.mrb[16].mxu0 %v11720_v57  ;;  %v5631_v57 = vld [vmem:[#allocation2 + $0x88] sm:$0xf]  ;;  %v10212_v16 = vrot.slane %v2922_v36, 9  ;;  %v5942_v45 = vrot.slane %v5940_v49, 4 }
 0x282   :  { %9006 = vmatprep.mubr.bf16.mxu0 %v10416_v27  ;;  %v3206_v27 = vsel %vm12077_vm8, %v10210_v10, %v3205_v20  ;;  %v5925_v48 = vshll.u32 %v5631_v57, 16  ;;  %v5929_v11 = vshrl.u32 %v5631_v57, 16  ;;  %v5909_v39 = vrot.slane %v5908_v59, 4  ;;  %v2923_v20 = vld [vmem:[#allocation2 + $0x148] sm:$0xf] }
 0x283   :  { %v10242_v62 = vcombine.low %v3206_v27, %v3209_v15  ;;  %v11729_v10 = vld [vmem:[#allocation2 + $0x144] sm:$0xff]   ;;  %v5904_v21 = vsel %vm12050_vm2, %v5899_v30, %v13848_v4  ;;  %v3219_v51 = vrot.slane %v2923_v20, 5  ;;  %v2924_v4 = vld [vmem:[#allocation2 + $0x14c] sm:$0x1]  ;;  %v5637_v15 = vld [vmem:[#allocation2 + $0xa0] sm:$0xf] }
 0x284   :  { %8557 = vmatmul.mubr.bf16.gmra.mrb[84].mxu1 %v10240_v8  ;;  %v2919_v8 = vld [vmem:[#allocation2 + $0x138] sm:$0xe]  ;;  %v5931_v40 = vrot.slane %v5929_v11, 4  ;;  %v5914_v22 = vsel %vm12050_vm2, %v5909_v39, %v5913_v50  ;;  %v11727_v27 = vld [vmem:[#allocation2 + $0x6c] sm:$0xff]   ;;  %v3222_v38 = vrot.slane %v2924_v4, 5  ;;  %v5977_v61 = vshrl.u32 %v5637_v15, 16 }
 0x285   :  { %8564 = vmatprep.mubr.bf16.mxu1 %v11724_v42  ;;  %v5919_v42 = vshll.u32 %v5630_v32, 16  ;;  %v10211_v46 = vrot.slane %v2919_v8, 9  ;;  %v10419_v5 = vcombine.low %v5904_v21, %v5914_v22  ;;  %v11731_v8 = vld [vmem:[#allocation2 + $0x150] sm:$0xff]   ;;  %v3220_v53 = vsel %vm12077_vm8, %v10212_v16, %v3219_v51  ;;  %v5638_v22 = vld [vmem:[#allocation2 + $0xa4] sm:$0x1]  ;;  %v11733_v16 = vld [vmem:[#allocation2 + $0x15c] sm:$0xff]  }
 0x286   :  { %v2926_v50 = vld [vmem:[#allocation2 + $0x154] sm:$0xf]  ;;  %v5979_v36 = vrot.slane %v5977_v61, 4  ;;  %v11732_v61 = vld [vmem:[#allocation2 + $0x84] sm:$0xff]  }
 0x287   :  { %v5921_v12 = vrot.slane %v5919_v42, 5  ;;  %v3213_v52 = vsel %vm12077_vm8, %v10211_v46, %v3212_v31  ;;  %v3221_v31 = vrot.slane %v3219_v51, 4  ;;  %v5964_v46 = vshrl.u32 %v5636_v54, 16  ;;  %v11730_v51 = vld [vmem:[#allocation2 + $0x78] sm:$0xff]  }
 0x288   :  { %v10243_v59 = vcombine.low %v3213_v52, %v3216_v35  ;;  %v3226_v21 = vrot.slane %v2926_v50, 5 }
 0x289   :  { %9007 = vmatmul.mubr.bf16.gmra.mrb[20].mxu0 %v11723_v47  ;;  %v5634_v47 = vld [vmem:[#allocation2 + $0x94] sm:$0xf]  ;;  %v5922_v37 = vor.u32 %v5921_v12, %v5918_v14  ;;  %v3223_v55 = vsel %vm12077_vm8, %v3221_v31, %v3222_v38  ;;  %v5966_v52 = vrot.slane %v5964_v46, 4  ;;  %v2930_v38 = vld [vmem:[#allocation2 + $0x164] sm:$0x1] }
 0x28a   :  { %9014 = vmatprep.mubr.bf16.mxu0 %v10417_v63  ;;  %v13860_v63 = vrot.slane %v5925_v48, 5  ;;  %v5949_v32 = vshll.u32 %v5634_v47, 16  ;;  %v5953_v57 = vshrl.u32 %v5634_v47, 16  ;;  %v2927_v47 = vld [vmem:[#allocation2 + $0x158] sm:$0x1]  ;;  %v10244_v49 = vcombine.low %v3220_v53, %v3223_v55 }
 0x28b   :  { %v5923_v48 = vrot.slane %v5922_v37, 4  ;;  %v5639_v37 = vld [vmem:[#allocation2 + $0xa8] sm:$0xf] }
 0x28c   :  { %8565 = vmatmul.mubr.bf16.gmra.mrb[88].mxu1 %v10241_v24  ;;  %v5943_v24 = vshll.u32 %v5633_v29, 16  ;;  %v13872_v30 = vrot.slane %v5949_v32, 5  ;;  %v5955_v39 = vrot.slane %v5953_v57, 4  ;;  %v5640_v57 = vld [vmem:[#allocation2 + $0xac] sm:$0xf] }
 0x28d   :  { %8572 = vmatprep.mubr.bf16.mxu1 %v11726_v25  ;;  %v5932_v25 = vor.u32 %v5931_v40, %v13860_v63  ;;  %v5928_v12 = vsel %vm12050_vm2, %v5923_v48, %v13860_v63  ;;  %v5997_v48 = vshll.u32 %v5640_v57, 16 }
 0x28e   :  { %v5945_v42 = vrot.slane %v5943_v24, 5  ;;  %v5956_v29 = vor.u32 %v5955_v39, %v13872_v30  ;;  %v2929_v24 = vld [vmem:[#allocation2 + $0x160] sm:$0xf] }
 0x28f   :  { %v5933_v11 = vrot.slane %v5932_v25, 4  ;;  %v3233_v31 = vrot.slane %v2929_v24, 5 }
 0x290   :  { %v5946_v20 = vor.u32 %v5945_v42, %v5942_v45  ;;  %v5988_v45 = vshrl.u32 %v5639_v37, 16  ;;  %v5991_v42 = vshll.u32 %v5639_v37, 16 }
 0x291   :  { %9015 = vmatmul.mubr.bf16.gmra.mrb[24].mxu0 %v11725_v6  ;;  %v5635_v6 = vld [vmem:[#allocation2 + $0x98] sm:$0x1]  ;;  %v5938_v40 = vsel %vm12050_vm2, %v5933_v11, %v5937_v0  ;;  %v5983_v0 = vshll.u32 %v5638_v22, 16  ;;  %v6001_v11 = vshrl.u32 %v5640_v57, 16 }
 0x292   :  { %9022 = vmatprep.mubr.bf16.mxu0 %v10418_v19  ;;  %v5967_v19 = vshll.u32 %v5636_v54, 16  ;;  %v5959_v14 = vshll.u32 %v5635_v6, 16  ;;  %v10420_v63 = vcombine.low %v5928_v12, %v5938_v40  ;;  %v5947_v25 = vrot.slane %v5946_v20, 4  ;;  %v5641_v12 = vld [vmem:[#allocation2 + $0xb0] sm:$0x1] }
 0x293   :  { %v3235_v20 = vrot.slane %v3233_v31, 4  ;;  %v5993_v40 = vrot.slane %v5991_v42, 5  ;;  %v6007_v37 = vshll.u32 %v5641_v12, 16  ;;  %v11738_v12 = vld [vmem:[#allocation2 + $0x174] sm:$0xff]  }
 0x294   :  { %8573 = vmatmul.mubr.bf16.gmra.mrb[92].mxu1 %v10242_v62  ;;  %v5973_v62 = vshll.u32 %v5637_v15, 16  ;;  %v5969_v17 = vrot.slane %v5967_v19, 5  ;;  %v5961_v4 = vrot.slane %v5959_v14, 5  ;;  %v5952_v6 = vsel %vm12050_vm2, %v5947_v25, %v13872_v30 }
 0x295   :  { %8580 = vmatprep.mubr.bf16.mxu1 %v11729_v10  ;;  %v2925_v10 = vld [vmem:[#allocation2 + $0x150] sm:$0xe]  ;;  %v5985_v19 = vrot.slane %v5983_v0, 5  ;;  %v3236_v14 = vrot.slane %v2930_v38, 5  ;;  %v5990_v30 = vrot.slane %v5988_v45, 4 }
 0x296   :  { %v13884_v35 = vrot.slane %v5973_v62, 5  ;;  %v10213_v32 = vrot.slane %v2925_v10, 9  ;;  %v5970_v54 = vor.u32 %v5969_v17, %v5966_v52  ;;  %v6003_v10 = vrot.slane %v6001_v11, 4  ;;  %v5642_v52 = vld [vmem:[#allocation2 + $0xb4] sm:$0xf] }
 0x297   :  { %v5643_v17 = vld [vmem:[#allocation2 + $0xb8] sm:$0xf]  ;;  %v5994_v25 = vor.u32 %v5993_v40, %v5990_v30  ;;  %v5646_v38 = vld [vmem:[#allocation2 + $0xc4] sm:$0xf]  ;;  %v11734_v45 = vld [vmem:[#allocation2 + $0x90] sm:$0xff]  }
 0x298   :  { %v5980_v15 = vor.u32 %v5979_v36, %v13884_v35  ;;  %v3227_v39 = vsel %vm12077_vm8, %v10213_v32, %v3226_v21  ;;  %v5971_v53 = vrot.slane %v5970_v54, 4  ;;  %v11736_v36 = vld [vmem:[#allocation2 + $0x168] sm:$0xff]   ;;  %v6025_v0 = vshrl.u32 %v5643_v17, 16 }
 0x299   :  { %9023 = vmatmul.mubr.bf16.gmra.mrb[28].mxu0 %v11727_v27  ;;  %v5957_v27 = vrot.slane %v5956_v29, 4  ;;  %v13896_v29 = vrot.slane %v5997_v48, 5  ;;  %v2931_v32 = vld [vmem:[#allocation2 + $0x168] sm:$0xe]  ;;  %v5995_v42 = vrot.slane %v5994_v25, 4  ;;  %v11737_v25 = vld [vmem:[#allocation2 + $0x9c] sm:$0xff]  }
 0x29a   :  { %9030 = vmatprep.mubr.bf16.mxu0 %v10419_v5  ;;  %v3228_v5 = vrot.slane %v3226_v21, 4  ;;  %v5981_v55 = vrot.slane %v5980_v15, 4  ;;  %v2932_v21 = vld [vmem:[#allocation2 + $0x16c] sm:$0xf]  ;;  %v6009_v15 = vrot.slane %v6007_v37, 5 }
 0x29b   :  { %v5962_v50 = vsel %vm12050_vm2, %v5957_v27, %v5961_v4  ;;  %v6004_v4 = vor.u32 %v6003_v10, %v13896_v29  ;;  %v3240_v57 = vrot.slane %v2932_v21, 5  ;;  %v2933_v27 = vld [vmem:[#allocation2 + $0x170] sm:$0x1]  ;;  %v6000_v30 = vsel %vm12050_vm2, %v5995_v42, %v13896_v29 }
 0x29c   :  { %8581 = vmatmul.mubr.bf16.gmra.mrb[96].mxu1 %v10243_v59  ;;  %v3229_v59 = vrot.slane %v2927_v47, 5  ;;  %v10421_v47 = vcombine.low %v5952_v6, %v5962_v50  ;;  %v3243_v6 = vrot.slane %v2933_v27, 5  ;;  %v5648_v27 = vld [vmem:[#allocation2 + $0xcc] sm:$0xf] }
 0x29d   :  { %8588 = vmatprep.mubr.bf16.mxu1 %v11731_v8  ;;  %v2928_v8 = vld [vmem:[#allocation2 + $0x15c] sm:$0xe]  ;;  %v6005_v48 = vrot.slane %v6004_v4, 4  ;;  %v3242_v11 = vrot.slane %v3240_v57, 4  ;;  %v6060_v42 = vshrl.u32 %v5648_v27, 16 }
 0x29e   :  { %v3230_v46 = vsel %vm12077_vm8, %v3228_v5, %v3229_v59  ;;  %v10214_v62 = vrot.slane %v2928_v8, 9  ;;  %v6012_v5 = vshrl.u32 %v5642_v52, 16  ;;  %v6021_v59 = vshll.u32 %v5643_v17, 16  ;;  %v2934_v17 = vld [vmem:[#allocation2 + $0x174] sm:$0xe] }
 0x29f   :  { %v10245_v22 = vcombine.low %v3227_v39, %v3230_v46  ;;  %v10215_v8 = vrot.slane %v2931_v32, 9  ;;  %v5644_v39 = vld [vmem:[#allocation2 + $0xbc] sm:$0x1]  ;;  %v3244_v10 = vsel %vm12077_vm8, %v3242_v11, %v3243_v6  ;;  %v6010_v21 = vsel %vm12050_vm2, %v6005_v48, %v6009_v15 }
 0x2a0   :  { %v3234_v24 = vsel %vm12077_vm8, %v10214_v62, %v3233_v31  ;;  %v5645_v31 = vld [vmem:[#allocation2 + $0xc0] sm:$0xf]  ;;  %v6014_v50 = vrot.slane %v6012_v5, 4  ;;  %v6027_v62 = vrot.slane %v6025_v0, 4  ;;  %v10423_v4 = vcombine.low %v6000_v30, %v6010_v21  ;;  %v5649_v5 = vld [vmem:[#allocation2 + $0xd0] sm:$0xf] }
 0x2a1   :  { %9031 = vmatmul.mubr.bf16.gmra.mrb[32].mxu0 %v11730_v51  ;;  %v5976_v51 = vsel %vm12050_vm2, %v5971_v53, %v13884_v35  ;;  %v6015_v35 = vshll.u32 %v5642_v52, 16  ;;  %v6036_v53 = vshrl.u32 %v5645_v31, 16  ;;  %v3241_v40 = vsel %vm12077_vm8, %v10215_v8, %v3240_v57 }
 0x2a2   :  { %9038 = vmatprep.mubr.bf16.mxu0 %v10420_v63  ;;  %v3237_v63 = vsel %vm12077_vm8, %v3235_v20, %v3236_v14  ;;  %v6045_v20 = vshll.u32 %v5646_v38, 16  ;;  %v6049_v14 = vshrl.u32 %v5646_v38, 16  ;;  %v10247_v32 = vcombine.low %v3241_v40, %v3244_v10  ;;  %v2938_v38 = vld [vmem:[#allocation2 + $0x184] sm:$0xf]  ;;  %v5652_v40 = vld [vmem:[#allocation2 + $0xf4] sm:$0xf] }
 0x2a3   :  { %v10246_v54 = vcombine.low %v3234_v24, %v3237_v63  ;;  %v6017_v46 = vrot.slane %v6015_v35, 5  ;;  %v5647_v63 = vld [vmem:[#allocation2 + $0xc8] sm:$0x1]  ;;  %v10216_v0 = vrot.slane %v2934_v17, 9  ;;  %v6063_v48 = vshll.u32 %v5648_v27, 16 }
 0x2a4   :  { %8589 = vmatmul.mubr.bf16.gmra.mrb[100].mxu1 %v10244_v49  ;;  %v5986_v49 = vsel %vm12050_vm2, %v5981_v55, %v5985_v19  ;;  %v13908_v19 = vrot.slane %v6021_v59, 5  ;;  %v6039_v55 = vshll.u32 %v5645_v31, 16  ;;  %v13920_v24 = vrot.slane %v6045_v20, 5  ;;  %v5650_v10 = vld [vmem:[#allocation2 + $0xd4] sm:$0x1] }
 0x2a5   :  { %8596 = vmatprep.mubr.bf16.mxu1 %v11733_v16  ;;  %v10422_v16 = vcombine.low %v5976_v51, %v5986_v49  ;;  %v2936_v51 = vld [vmem:[#allocation2 + $0x17c] sm:$0x1]  ;;  %v6038_v49 = vrot.slane %v6036_v53, 4  ;;  %v6051_v37 = vrot.slane %v6049_v14, 4  ;;  %v6055_v31 = vshll.u32 %v5647_v63, 16 }
 0x2a6   :  { %v6028_v52 = vor.u32 %v6027_v62, %v13908_v19  ;;  %v6041_v29 = vrot.slane %v6039_v55, 5  ;;  %v6069_v11 = vshll.u32 %v5649_v5, 16  ;;  %v6073_v6 = vshrl.u32 %v5649_v5, 16  ;;  %v5651_v55 = vld [vmem:[#allocation2 + $0xf0] sm:$0xf] }
 0x2a7   :  { %v6052_v8 = vor.u32 %v6051_v37, %v13920_v24  ;;  %v3254_v53 = vrot.slane %v2938_v38, 5  ;;  %v6057_v30 = vrot.slane %v6055_v31, 5  ;;  %v6079_v27 = vshll.u32 %v5650_v10, 16  ;;  %v2940_v5 = vld [vmem:[#allocation2 + $0x18c] sm:$0xe] }
 0x2a8   :  { %v6029_v59 = vrot.slane %v6028_v52, 4  ;;  %v13932_v21 = vrot.slane %v6069_v11, 5  ;;  %v11739_v52 = vld [vmem:[#allocation2 + $0xa8] sm:$0xff]   ;;  %v5653_v38 = vld [vmem:[#allocation2 + $0xf8] sm:$0x1] }
 0x2a9   :  { %9039 = vmatmul.mubr.bf16.gmra.mrb[36].mxu0 %v11732_v61  ;;  %v2935_v61 = vld [vmem:[#allocation2 + $0x178] sm:$0xf]  ;;  %v3256_v37 = vrot.slane %v3254_v53, 4  ;;  %v6631_v10 = vld [vmem:[#allocation2 + $0x28] sm:$0xf] }
 0x2aa   :  { %9046 = vmatprep.mubr.bf16.mxu0 %v10421_v47  ;;  %v6031_v47 = vshll.u32 %v5644_v39, 16  ;;  %v2937_v39 = vld [vmem:[#allocation2 + $0x180] sm:$0xe] }
 0x2ac   :  { %8597 = vmatmul.mubr.bf16.gmra.mrb[104].mxu1 %v10245_v22  ;;  %v6018_v22 = vor.u32 %v6017_v46, %v6014_v50  ;;  %v6033_v57 = vrot.slane %v6031_v47, 5  ;;  %v6065_v47 = vrot.slane %v6063_v48, 5  ;;  %v10218_v48 = vrot.slane %v2940_v5, 9 }
 0x2ad   :  { %8604 = vmatprep.mubr.bf16.mxu1 %v11736_v36  ;;  %v3247_v36 = vrot.slane %v2935_v61, 5  ;;  %v2939_v61 = vld [vmem:[#allocation2 + $0x188] sm:$0x1] }
 0x2ae   :  { %v6019_v35 = vrot.slane %v6018_v22, 4  ;;  %v6034_v46 = vsel %vm12050_vm2, %v6029_v59, %v6033_v57  ;;  %v6075_v22 = vrot.slane %v6073_v6, 4  ;;  %v3257_v63 = vrot.slane %v2939_v61, 5 }
 0x2af   :  { %v3249_v15 = vrot.slane %v3247_v36, 4  ;;  %v3248_v62 = vsel %vm12077_vm8, %v10216_v0, %v3247_v36  ;;  %v10217_v36 = vrot.slane %v2937_v39, 9  ;;  %v6627_v39 = vld [vmem:[#allocation2 + $0x18] sm:$0xe]  ;;  %v6081_v61 = vrot.slane %v6079_v27, 5 }
 0x2b0   :  { %v6024_v50 = vsel %vm12050_vm2, %v6019_v35, %v13908_v19  ;;  %v6062_v19 = vrot.slane %v6060_v42, 4  ;;  %v11743_v35 = vld [vmem:[#allocation2 + $0x18c] sm:$0xff]   ;;  %v11745_v27 = vld [vmem:[#allocation2 + $0x198] sm:$0xff]  }
 0x2b1   :  { %9047 = vmatmul.mubr.bf16.gmra.mrb[40].mxu0 %v11734_v45  ;;  %v11740_v45 = vld [vmem:[#allocation2 + $0x180] sm:$0xff]   ;;  %v10424_v17 = vcombine.low %v6024_v50, %v6034_v46  ;;  %v3255_v31 = vsel %vm12077_vm8, %v10217_v36, %v3254_v53  ;;  %v5654_v46 = vld [vmem:[#allocation2 + $0xfc] sm:$0xf] }
 0x2b2   :  { %9054 = vmatprep.mubr.bf16.mxu0 %v10422_v16  ;;  %v3250_v16 = vrot.slane %v2936_v51, 5  ;;  %v2941_v51 = vld [vmem:[#allocation2 + $0x190] sm:$0xf]  ;;  %v6066_v0 = vor.u32 %v6065_v47, %v6062_v19  ;;  %v6629_v50 = vld [vmem:[#allocation2 + $0x20] sm:$0x1]  ;;  %v11741_v19 = vld [vmem:[#allocation2 + $0xb4] sm:$0xff]  }
 0x2b3   :  { %v5655_v53 = vld [vmem:[#allocation2 + $0x100] sm:$0xf] }
 0x2b4   :  { %8605 = vmatmul.mubr.bf16.gmra.mrb[108].mxu1 %v10246_v54  ;;  %v6042_v54 = vor.u32 %v6041_v29, %v6038_v49  ;;  %v3251_v20 = vsel %vm12077_vm8, %v3249_v15, %v3250_v16  ;;  %v6084_v49 = vshrl.u32 %v5651_v55, 16  ;;  %v6087_v29 = vshll.u32 %v5651_v55, 16  ;;  %v2942_v15 = vld [vmem:[#allocation2 + $0x194] sm:$0x1] }
 0x2b5   :  { %8612 = vmatprep.mubr.bf16.mxu1 %v11738_v12  ;;  %v6053_v12 = vrot.slane %v6052_v8, 4  ;;  %v6076_v16 = vor.u32 %v6075_v22, %v13932_v21  ;;  %v6628_v8 = vld [vmem:[#allocation2 + $0x1c] sm:$0xf]  ;;  %v3264_v55 = vrot.slane %v2942_v15, 5 }
 0x2b6   :  { %v6043_v14 = vrot.slane %v6042_v54, 4  ;;  %v3261_v54 = vrot.slane %v2941_v51, 5  ;;  %v6089_v42 = vrot.slane %v6087_v29, 5  ;;  %v6117_v29 = vshll.u32 %v5655_v53, 16 }
 0x2b7   :  { %v6058_v59 = vsel %vm12050_vm2, %v6053_v12, %v6057_v30  ;;  %v6077_v12 = vrot.slane %v6076_v16, 4  ;;  %v6634_v16 = vld [vmem:[#allocation2 + $0x34] sm:$0xf] }
 0x2b8   :  { %v6048_v57 = vsel %vm12050_vm2, %v6043_v14, %v13920_v24  ;;  %v3258_v24 = vsel %vm12077_vm8, %v3256_v37, %v3257_v63  ;;  %v6067_v14 = vrot.slane %v6066_v0, 4  ;;  %v3263_v30 = vrot.slane %v3261_v54, 4 }
 0x2b9   :  { %9055 = vmatmul.mubr.bf16.gmra.mrb[44].mxu0 %v11737_v25  ;;  %v6093_v25 = vshll.u32 %v5652_v40, 16  ;;  %v10249_v47 = vcombine.low %v3255_v31, %v3258_v24  ;;  %v13948_v36 = vsel %vm12077_vm8, %v10218_v48, %v3261_v54  ;;  %v6121_v37 = vshrl.u32 %v5655_v53, 16  ;;  %v6635_v53 = vld [vmem:[#allocation2 + $0x38] sm:$0x1] }
 0x2ba   :  { %9062 = vmatprep.mubr.bf16.mxu0 %v10423_v4  ;;  %v6097_v4 = vshrl.u32 %v5652_v40, 16  ;;  %v6103_v40 = vshll.u32 %v5653_v38, 16  ;;  %v10443_v63 = vrot.slane %v6627_v39, 9  ;;  %v6072_v5 = vsel %vm12050_vm2, %v6067_v14, %v13932_v21  ;;  %v11744_v14 = vld [vmem:[#allocation2 + $0xc0] sm:$0xff]  }
 0x2bb   :  { %v13944_v11 = vrot.slane %v6093_v25, 5  ;;  %v13958_v24 = vrot.slane %v6117_v29, 5  ;;  %v6123_v21 = vrot.slane %v6121_v37, 4  ;;  %v6838_v29 = vrot.slane %v6635_v53, 5  ;;  %v6638_v37 = vld [vmem:[#allocation2 + $0x44] sm:$0x1] }
 0x2bc   :  { %8613 = vmatmul.mubr.bf16.gmra.mrb[112].mxu1 %v10247_v32  ;;  %v10248_v32 = vcombine.low %v3248_v62, %v3251_v20  ;;  %v6099_v6 = vrot.slane %v6097_v4, 4  ;;  %v10425_v62 = vcombine.low %v6048_v57, %v6058_v59  ;;  %v6821_v20 = vrot.slane %v6628_v8, 5  ;;  %v6642_v53 = vld [vmem:[#allocation2 + $0x54] sm:$0xe] }
 0x2bd   :  { %8620 = vmatprep.mubr.bf16.mxu1 %v11740_v45  ;;  %v6086_v45 = vrot.slane %v6084_v49, 4  ;;  %v6630_v49 = vld [vmem:[#allocation2 + $0x24] sm:$0xe]  ;;  %v6824_v4 = vrot.slane %v6629_v50, 5  ;;  %v6828_v57 = vrot.slane %v6631_v10, 5  ;;  %v3265_v59 = vsel %vm12077_vm8, %v3263_v30, %v3264_v55 }
 0x2be   :  { %v6100_v51 = vor.u32 %v6099_v6, %v13944_v11  ;;  %v6823_v25 = vrot.slane %v6821_v20, 4  ;;  %v6105_v0 = vrot.slane %v6103_v40, 5  ;;  %v10444_v54 = vrot.slane %v6630_v49, 9  ;;  %v6633_v55 = vld [vmem:[#allocation2 + $0x30] sm:$0xe] }
 0x2bf   :  { %v6090_v22 = vor.u32 %v6089_v42, %v6086_v45  ;;  %v5656_v42 = vld [vmem:[#allocation2 + $0x104] sm:$0x1]  ;;  %v6822_v48 = vsel %vm12077_vm8, %v10443_v63, %v6821_v20  ;;  %v6830_v39 = vrot.slane %v6828_v57, 4  ;;  %v6835_v50 = vrot.slane %v6634_v16, 5  ;;  %v5657_v10 = vld [vmem:[#allocation2 + $0x108] sm:$0xf] }
 0x2c0   :  { %v6101_v38 = vrot.slane %v6100_v51, 4  ;;  %v6825_v6 = vsel %vm12077_vm8, %v6823_v25, %v6824_v4  ;;  %v13970_v20 = vsel %vm12077_vm8, %v10444_v54, %v6828_v57  ;;  %v6127_v40 = vshll.u32 %v5656_v42, 16  ;;  %v6639_v42 = vld [vmem:[#allocation2 + $0x48] sm:$0xe] }
 0x2c1   :  { %9063 = vmatmul.mubr.bf16.gmra.mrb[48].mxu0 %v11739_v52  ;;  %v6108_v52 = vshrl.u32 %v5654_v46, 16  ;;  %v6091_v15 = vrot.slane %v6090_v22, 4  ;;  %v10475_v22 = vcombine.low %v6822_v48, %v6825_v6  ;;  %v6837_v49 = vrot.slane %v6835_v50, 4 }
 0x2c2   :  { %9070 = vmatprep.mubr.bf16.mxu0 %v10424_v17  ;;  %v6111_v17 = vshll.u32 %v5654_v46, 16  ;;  %v6637_v46 = vld [vmem:[#allocation2 + $0x40] sm:$0xf]  ;;  %v6132_v63 = vshrl.u32 %v5657_v10, 16  ;;  %v6135_v25 = vshll.u32 %v5657_v10, 16  ;;  %v6845_v16 = vrot.slane %v6638_v37, 5 }
 0x2c3   :  { %v6110_v8 = vrot.slane %v6108_v52, 4  ;;  %v6124_v52 = vor.u32 %v6123_v21, %v13958_v24  ;;  %v6641_v21 = vld [vmem:[#allocation2 + $0x50] sm:$0x1] }
 0x2c4   :  { %8621 = vmatmul.mubr.bf16.gmra.mrb[116].mxu1 %v10248_v32  ;;  %v6632_v32 = vld [vmem:[#allocation2 + $0x2c] sm:$0x1]  ;;  %v6113_v31 = vrot.slane %v6111_v17, 5  ;;  %v6636_v17 = vld [vmem:[#allocation2 + $0x3c] sm:$0xe]  ;;  %v6134_v48 = vrot.slane %v6132_v63, 4 }
 0x2c5   :  { %8628 = vmatprep.mubr.bf16.mxu1 %v11743_v35  ;;  %v6082_v35 = vsel %vm12050_vm2, %v6077_v12, %v6081_v61  ;;  %v6831_v45 = vrot.slane %v6632_v32, 5  ;;  %v6096_v12 = vsel %vm12050_vm2, %v6091_v15, %v13944_v11  ;;  %v10445_v11 = vrot.slane %v6633_v55, 9  ;;  %v5660_v15 = vld [vmem:[#allocation2 + $0x114] sm:$0xf]  ;;  %v6644_v63 = vld [vmem:[#allocation2 + $0x5c] sm:$0x1] }
 0x2c6   :  { %v10426_v61 = vcombine.low %v6072_v5, %v6082_v35  ;;  %v6114_v30 = vor.u32 %v6113_v31, %v6110_v8  ;;  %v13979_v5 = vld [vmem:[#allocation2 + $0x4c] sm:$0xf]  ;;  %v6125_v35 = vrot.slane %v6124_v52, 4  ;;  %v6137_v6 = vrot.slane %v6135_v25, 5 }
 0x2c7   :  { %v13977_v51 = vsel %vm12077_vm8, %v6830_v39, %v6831_v45  ;;  %v6836_v31 = vsel %vm12077_vm8, %v10445_v11, %v6835_v50  ;;  %v5659_v45 = vld [vmem:[#allocation2 + $0x110] sm:$0x1]  ;;  %v6849_v50 = vrot.slane %v13979_v5, 5  ;;  %v6852_v11 = vrot.slane %v6641_v21, 5  ;;  %v6645_v5 = vld [vmem:[#allocation2 + $0x60] sm:$0xe] }
 0x2c8   :  { %v6115_v57 = vrot.slane %v6114_v30, 4  ;;  %v10476_v8 = vcombine.low %v13970_v20, %v13977_v51  ;;  %v5663_v21 = vld [vmem:[#allocation2 + $0x120] sm:$0xf] }
 0x2c9   :  { %9071 = vmatmul.mubr.bf16.gmra.mrb[52].mxu0 %v11741_v19  ;;  %v5658_v19 = vld [vmem:[#allocation2 + $0x10c] sm:$0xf]  ;;  %v6851_v37 = vrot.slane %v6849_v50, 4 }
 0x2ca   :  { %9078 = vmatprep.mubr.bf16.mxu0 %v10425_v62  ;;  %v10250_v62 = vcombine.low %v13948_v36, %v3265_v59  ;;  %v6842_v36 = vrot.slane %v6637_v46, 5  ;;  %v6141_v4 = vshll.u32 %v5658_v19, 16  ;;  %v6145_v32 = vshrl.u32 %v5658_v19, 16  ;;  %v6643_v19 = vld [vmem:[#allocation2 + $0x58] sm:$0xf] }
 0x2cb   :  { %v10446_v59 = vrot.slane %v6636_v17, 9  ;;  %v6120_v55 = vsel %vm12050_vm2, %v6115_v57, %v13958_v24  ;;  %v10447_v24 = vrot.slane %v6639_v42, 9  ;;  %v6138_v17 = vor.u32 %v6137_v6, %v6134_v48  ;;  %v11747_v48 = vld [vmem:[#allocation2 + $0xf0] sm:$0xff]  }
 0x2cc   :  { %8629 = vmatmul.mubr.bf16.gmra.mrb[120].mxu1 %v10249_v47  ;;  %v6106_v47 = vsel %vm12050_vm2, %v6101_v38, %v6105_v0  ;;  %v6844_v0 = vrot.slane %v6842_v36, 4  ;;  %v6839_v38 = vsel %vm12077_vm8, %v6837_v49, %v6838_v29  ;;  %v13987_v39 = vrot.slane %v6141_v4, 5  ;;  %v6646_v29 = vld [vmem:[#allocation2 + $0x64] sm:$0xf] }
 0x2cd   :  { %8636 = vmatprep.mubr.bf16.mxu1 %v11745_v27  ;;  %v6129_v27 = vrot.slane %v6127_v40, 5  ;;  %v10427_v54 = vcombine.low %v6096_v12, %v6106_v47  ;;  %v6147_v46 = vrot.slane %v6145_v32, 4  ;;  %v6159_v12 = vshll.u32 %v5660_v15, 16 }
 0x2ce   :  { %v10477_v30 = vcombine.low %v6836_v31, %v6839_v38  ;;  %v13997_v40 = vsel %vm12077_vm8, %v10446_v59, %v6842_v36  ;;  %v14001_v10 = vsel %vm12077_vm8, %v6844_v0, %v6845_v16  ;;  %v6151_v47 = vshll.u32 %v5659_v45, 16  ;;  %v6649_v31 = vld [vmem:[#allocation2 + $0x70] sm:$0xf] }
 0x2cf   :  { %v6130_v20 = vsel %vm12050_vm2, %v6125_v35, %v6129_v27  ;;  %v6148_v51 = vor.u32 %v6147_v46, %v13987_v39  ;;  %v10448_v49 = vrot.slane %v6642_v53, 9  ;;  %v6856_v36 = vrot.slane %v6643_v19, 5  ;;  %v5662_v27 = vld [vmem:[#allocation2 + $0x11c] sm:$0x1]  ;;  %v6647_v35 = vld [vmem:[#allocation2 + $0x68] sm:$0x1] }
 0x2d0   :  { %v6161_v4 = vrot.slane %v6159_v12, 5  ;;  %v10428_v32 = vcombine.low %v6120_v55, %v6130_v20  ;;  %v10478_v57 = vcombine.low %v13997_v40, %v14001_v10  ;;  %v6153_v59 = vrot.slane %v6151_v47, 5  ;;  %v6648_v12 = vld [vmem:[#allocation2 + $0x6c] sm:$0xe]  ;;  %v6650_v40 = vld [vmem:[#allocation2 + $0x74] sm:$0x1] }
 0x2d1   :  { %9079 = vmatmul.mubr.bf16.gmra.mrb[56].mxu0 %v11744_v14  ;;  %v6156_v14 = vshrl.u32 %v5660_v15, 16  ;;  %v6863_v15 = vrot.slane %v6646_v29, 5  ;;  %v6139_v38 = vrot.slane %v6138_v17, 4  ;;  %v6149_v45 = vrot.slane %v6148_v51, 4  ;;  %v6652_v29 = vld [vmem:[#allocation2 + $0x7c] sm:$0xf] }
 0x2d2   :  { %9086 = vmatprep.mubr.bf16.mxu0 %v10426_v61  ;;  %v5661_v61 = vld [vmem:[#allocation2 + $0x118] sm:$0xf]  ;;  %v6859_v42 = vrot.slane %v6644_v63, 5  ;;  %v6853_v6 = vsel %vm12077_vm8, %v6851_v37, %v6852_v11  ;;  %v6858_v46 = vrot.slane %v6856_v36, 4  ;;  %v6175_v55 = vshll.u32 %v5662_v27, 16 }
 0x2d3   :  { %v6169_v52 = vshrl.u32 %v5661_v61, 16  ;;  %v6158_v25 = vrot.slane %v6156_v14, 4  ;;  %v10449_v53 = vrot.slane %v6645_v5, 9  ;;  %v6866_v14 = vrot.slane %v6647_v35, 5 }
 0x2d4   :  { %8637 = vmatmul.mubr.bf16.gmra.mrb[124].mxu1 %v10250_v62  ;;  %v11746_v62 = vld [vmem:[#allocation2 + $0xcc] sm:$0xff]   ;;  %v6870_v20 = vrot.slane %v6649_v31, 5  ;;  %v6180_v10 = vshrl.u32 %v5663_v21, 16  ;;  %v6183_v19 = vshll.u32 %v5663_v21, 16  ;;  %v6144_v47 = vsel %vm12050_vm2, %v6139_v38, %v13987_v39  ;;  %v6654_v21 = vld [vmem:[#allocation2 + $0x84] sm:$0xe] }
 0x2d5   :  { %11177 = vmatprep.mubr.bf16.mxu1 %v10475_v22  ;;  %v6165_v22 = vshll.u32 %v5661_v61, 16  ;;  %v6171_v16 = vrot.slane %v6169_v52, 4  ;;  %v6162_v61 = vor.u32 %v6161_v4, %v6158_v25  ;;  %v6154_v17 = vsel %vm12050_vm2, %v6149_v45, %v6153_v59  ;;  %v5665_v25 = vld [vmem:[#allocation2 + $0x128] sm:$0x1]  ;;  %v11748_v45 = vld [vmem:[#allocation2 + $0xfc] sm:$0xff]  }
 0x2d6   :  { %v6860_v51 = vsel %vm12077_vm8, %v6858_v46, %v6859_v42  ;;  %v6177_v37 = vrot.slane %v6175_v55, 5  ;;  %v6864_v63 = vsel %vm12077_vm8, %v10449_v53, %v6863_v15  ;;  %v6873_v39 = vrot.slane %v6650_v40, 5  ;;  %v6655_v59 = vld [vmem:[#allocation2 + $0x88] sm:$0xf]  ;;  %v6653_v42 = vld [vmem:[#allocation2 + $0x80] sm:$0x1] }
 0x2d7   :  { %v14006_v0 = vrot.slane %v6165_v22, 5  ;;  %v6163_v11 = vrot.slane %v6162_v61, 4  ;;  %v6182_v5 = vrot.slane %v6180_v10, 4  ;;  %v6185_v35 = vrot.slane %v6183_v19, 5  ;;  %v5667_v55 = vld [vmem:[#allocation2 + $0x130] sm:$0xf] }
 0x2d8   :  { %v6877_v38 = vrot.slane %v6652_v29, 5  ;;  %v6884_v61 = vrot.slane %v6655_v59, 5  ;;  %v6880_v40 = vrot.slane %v6653_v42, 5  ;;  %v14045_v10 = vld [vmem:[#allocation2 + $0x94] sm:$0xf] }
 0x2d9   :  { %9087 = vmatmul.mubr.bf16.gmra.mrb[60].mxu0 %v11746_v62  ;;  %v5664_v62 = vld [vmem:[#allocation2 + $0x124] sm:$0xf]  ;;  %v6186_v53 = vor.u32 %v6185_v35, %v6182_v5  ;;  %v6659_v35 = vld [vmem:[#allocation2 + $0x98] sm:$0x1]  ;;  %v5670_v59 = vld [vmem:[#allocation2 + $0x13c] sm:$0xf] }
 0x2da   :  { %9094 = vmatprep.mubr.bf16.mxu0 %v10427_v54  ;;  %v6850_v54 = vsel %vm12077_vm8, %v10447_v24, %v6849_v50  ;;  %v6172_v50 = vor.u32 %v6171_v16, %v14006_v0  ;;  %v6189_v22 = vshll.u32 %v5664_v62, 16  ;;  %v6193_v52 = vshrl.u32 %v5664_v62, 16  ;;  %v5666_v62 = vld [vmem:[#allocation2 + $0x12c] sm:$0xf] }
 0x2db   :  { %v10479_v24 = vcombine.low %v6850_v54, %v6853_v6  ;;  %v10429_v54 = vcombine.low %v6144_v47, %v6154_v17  ;;  %v6204_v19 = vshrl.u32 %v5666_v62, 16  ;;  %v6207_v47 = vshll.u32 %v5666_v62, 16 }
 0x2dc   :  { %11178 = vmatmul.mubr.bf16.vlgmr.msra.gmra.mrb[128].mxu1 %v10476_v8  ;;  %v14014_v8 = vsel %vm12077_vm8, %v10448_v49, %v6856_v36  ;;  %v10450_v49 = vrot.slane %v6648_v12, 9  ;;  %v6872_v36 = vrot.slane %v6870_v20, 4  ;;  %v6173_v4 = vrot.slane %v6172_v50, 4 }
 0x2dd   :  { %11181 = vmatprep.mubr.bf16.mxu1 %v10477_v30  ;;  %v6865_v30 = vrot.slane %v6863_v15, 4  ;;  %v14028_v16 = vrot.slane %v6189_v22, 5  ;;  %v6195_v31 = vrot.slane %v6193_v52, 4  ;;  %v10480_v15 = vcombine.low %v14014_v8, %v6860_v51 }
 0x2de   :  { %v14040_v46 = vsel %vm12077_vm8, %v6872_v36, %v6873_v39  ;;  %v6178_v8 = vsel %vm12050_vm2, %v6173_v4, %v6177_v37  ;;  %v6217_v22 = vshrl.u32 %v5667_v55, 16  ;;  %v6886_v17 = vrot.slane %v6884_v61, 4  ;;  %v5669_v36 = vld [vmem:[#allocation2 + $0x138] sm:$0xf]  ;;  %v11749_v39 = vld [vmem:[#allocation2 + $0x108] sm:$0xff]  }
 0x2df   :  { %v6867_v27 = vsel %vm12077_vm8, %v6865_v30, %v6866_v14  ;;  %v6199_v14 = vshll.u32 %v5665_v25, 16  ;;  %v6196_v50 = vor.u32 %v6195_v31, %v14028_v16  ;;  %v6879_v30 = vrot.slane %v6877_v38, 4  ;;  %v5668_v31 = vld [vmem:[#allocation2 + $0x134] sm:$0x1] }
 0x2e0   :  { %v10481_v6 = vcombine.low %v6864_v63, %v6867_v27  ;;  %v6187_v29 = vrot.slane %v6186_v53, 4  ;;  %v6891_v63 = vrot.slane %v14045_v10, 5  ;;  %v6894_v62 = vrot.slane %v6659_v35, 5 }
 0x2e1   :  { %9095 = vmatmul.mubr.bf16.gmra.mrb[64].mxu0 %v11747_v48  ;;  %v6168_v48 = vsel %vm12050_vm2, %v6163_v11, %v14006_v0  ;;  %v10452_v0 = vrot.slane %v6654_v21, 9  ;;  %v6657_v11 = vld [vmem:[#allocation2 + $0x90] sm:$0xe]  ;;  %v6201_v37 = vrot.slane %v6199_v14, 5  ;;  %v6197_v25 = vrot.slane %v6196_v50, 4 }
 0x2e2   :  { %9102 = vmatprep.mubr.bf16.mxu0 %v10428_v32  ;;  %v6651_v32 = vld [vmem:[#allocation2 + $0x78] sm:$0xe]  ;;  %v6881_v27 = vsel %vm12077_vm8, %v6879_v30, %v6880_v40  ;;  %v10453_v42 = vrot.slane %v6657_v11, 9  ;;  %v14066_v21 = vld [vmem:[#allocation2 + $0xa0] sm:$0xf]  ;;  %v6192_v14 = vsel %vm12050_vm2, %v6187_v29, %v14028_v16 }
 0x2e3   :  { %v10451_v12 = vrot.slane %v6651_v32, 9  ;;  %v14056_v5 = vsel %vm12077_vm8, %v10452_v0, %v6884_v61  ;;  %v6206_v32 = vrot.slane %v6204_v19, 4  ;;  %v6893_v61 = vrot.slane %v6891_v63, 4  ;;  %v6660_v50 = vld [vmem:[#allocation2 + $0x9c] sm:$0xe] }
 0x2e4   :  { %11182 = vmatmul.mubr.bf16.gmra.mrb[132].mxu1 %v10478_v57  ;;  %v14033_v57 = vsel %vm12077_vm8, %v10450_v49, %v6870_v20  ;;  %v6656_v20 = vld [vmem:[#allocation2 + $0x8c] sm:$0x1]  ;;  %v10430_v49 = vcombine.low %v6168_v48, %v6178_v8  ;;  %v6228_v48 = vshrl.u32 %v5669_v36, 16  ;;  %v6241_v8 = vshrl.u32 %v5670_v59, 16  ;;  %v6662_v19 = vld [vmem:[#allocation2 + $0xa4] sm:$0x1] }
 0x2e5   :  { %11185 = vmatprep.mubr.bf16.mxu1 %v10479_v24  ;;  %v6213_v24 = vshll.u32 %v5667_v55, 16  ;;  %v10482_v52 = vcombine.low %v14033_v57, %v14040_v46  ;;  %v6887_v51 = vrot.slane %v6656_v20, 5  ;;  %v6878_v4 = vsel %vm12077_vm8, %v10451_v12, %v6877_v38  ;;  %v6663_v11 = vld [vmem:[#allocation2 + $0xa8] sm:$0xe] }
 0x2e6   :  { %v6237_v55 = vshll.u32 %v5670_v59, 16  ;;  %v10483_v12 = vcombine.low %v6878_v4, %v6881_v27  ;;  %v6223_v20 = vshll.u32 %v5668_v31, 16  ;;  %v6202_v40 = vsel %vm12050_vm2, %v6197_v25, %v6201_v37  ;;  %v6665_v25 = vld [vmem:[#allocation2 + $0xb0] sm:$0x1]  ;;  %v5672_v4 = vld [vmem:[#allocation2 + $0x144] sm:$0xf] }
 0x2e7   :  { %v14064_v38 = vsel %vm12077_vm8, %v6886_v17, %v6887_v51  ;;  %v6230_v17 = vrot.slane %v6228_v48, 4  ;;  %v6892_v29 = vsel %vm12077_vm8, %v10453_v42, %v6891_v63  ;;  %v6895_v37 = vsel %vm12077_vm8, %v6893_v61, %v6894_v62  ;;  %v14088_v31 = vld [vmem:[#allocation2 + $0xb8] sm:$0xf]  ;;  %v6666_v48 = vld [vmem:[#allocation2 + $0xb4] sm:$0xe] }
 0x2e8   :  { %v10484_v16 = vcombine.low %v14056_v5, %v14064_v38  ;;  %v10431_v27 = vcombine.low %v6192_v14, %v6202_v40  ;;  %v6225_v5 = vrot.slane %v6223_v20, 5  ;;  %v10454_v35 = vrot.slane %v6660_v50, 9  ;;  %v6668_v14 = vld [vmem:[#allocation2 + $0xbc] sm:$0x1] }
 0x2e9   :  { %9103 = vmatmul.mubr.bf16.gmra.mrb[68].mxu0 %v11748_v45  ;;  %v6209_v45 = vrot.slane %v6207_v47, 5  ;;  %v6898_v47 = vrot.slane %v14066_v21, 5  ;;  %v10485_v42 = vcombine.low %v6892_v29, %v6895_v37  ;;  %v10456_v29 = vrot.slane %v6666_v48, 9 }
 0x2ea   :  { %9110 = vmatprep.mubr.bf16.mxu0 %v10429_v54  ;;  %v14058_v54 = vrot.slane %v6213_v24, 5  ;;  %v14077_v24 = vld [vmem:[#allocation2 + $0xac] sm:$0xf] }
 0x2eb   :  { %v6210_v0 = vor.u32 %v6209_v45, %v6206_v32  ;;  %v6905_v59 = vrot.slane %v14077_v24, 5  ;;  %v6900_v63 = vrot.slane %v6898_v47, 4  ;;  %v6901_v45 = vrot.slane %v6662_v19, 5 }
 0x2ec   :  { %11186 = vmatmul.mubr.bf16.gmra.mrb[136].mxu1 %v10480_v15  ;;  %v6219_v15 = vrot.slane %v6217_v22, 4  ;;  %v5671_v22 = vld [vmem:[#allocation2 + $0x140] sm:$0x1] }
 0x2ed   :  { %11189 = vmatprep.mubr.bf16.mxu1 %v10481_v6  ;;  %v6231_v6 = vshll.u32 %v5669_v36, 16  ;;  %v14085_v36 = vrot.slane %v6237_v55, 5  ;;  %v6247_v55 = vshll.u32 %v5671_v22, 16  ;;  %v6907_v50 = vrot.slane %v6905_v59, 4 }
 0x2ee   :  { %v6220_v10 = vor.u32 %v6219_v15, %v14058_v54  ;;  %v5673_v15 = vld [vmem:[#allocation2 + $0x148] sm:$0xf]  ;;  %v6899_v22 = vsel %vm12077_vm8, %v10454_v35, %v6898_v47  ;;  %v5674_v35 = vld [vmem:[#allocation2 + $0x14c] sm:$0x1] }
 0x2ef   :  { %v14060_v57 = vpop.f32.mrb[32].mxu1  ;;  %v6233_v51 = vrot.slane %v6231_v6, 5  ;;  %v6252_v6 = vshrl.u32 %v5672_v4, 16  ;;  %v6261_v40 = vshll.u32 %v5673_v15, 16 }
 0x2f0   :  { %v8456_v46 = vpop.f32.mrb[33].mxu1  ;;  %v6221_v32 = vrot.slane %v6220_v10, 4 }
 0x2f1   :  { %v14068_v53 = vpop.f32.mrb[34].mxu1  ;;  %9111 = vmatmul.mubr.bf16.gmra.mrb[72].mxu0 %v11749_v39  ;;  %v6243_v39 = vrot.slane %v6241_v8, 4  ;;  %v6234_v21 = vor.u32 %v6233_v51, %v6230_v17  ;;  %v6255_v46 = vshll.u32 %v5672_v4, 16  ;;  %v10455_v8 = vrot.slane %v6663_v11, 9  ;;  %v14105_v51 = vld [vmem:[#allocation2 + $0xc4] sm:$0xf] }
 0x2f2   :  { %v8459_v30 = vpop.f32.mrb[35].mxu1  ;;  %9118 = vmatprep.mubr.bf16.mxu0 %v10430_v49  ;;  %v11750_v49 = vld [vmem:[#allocation2 + $0x114] sm:$0xff]   ;;  %v6226_v24 = vsel %vm12050_vm2, %v6221_v32, %v6225_v5  ;;  %v6902_v17 = vsel %vm12077_vm8, %v6900_v63, %v6901_v45  ;;  %v6254_v37 = vrot.slane %v6252_v6, 4  ;;  %v6673_v32 = vld [vmem:[#allocation2 + $0xd0] sm:$0xf]  ;;  %v11751_v63 = vld [vmem:[#allocation2 + $0x120] sm:$0xff]  }
 0x2f3   :  { %v6244_v62 = vor.u32 %v6243_v39, %v14085_v36  ;;  %v6908_v30 = vrot.slane %v6665_v25, 5  ;;  %v6235_v11 = vrot.slane %v6234_v21, 4  ;;  %v6257_v39 = vrot.slane %v6255_v46, 5  ;;  %v5675_v25 = vld [vmem:[#allocation2 + $0x150] sm:$0xf] }
 0x2f4   :  { %11190 = vmatmul.mubr.bf16.gmra.mrb[140].mxu1 %v10482_v52  ;;  %v6211_v52 = vrot.slane %v6210_v0, 4  ;;  %v6265_v0 = vshrl.u32 %v5673_v15, 16  ;;  %v6906_v47 = vsel %vm12077_vm8, %v10455_v8, %v6905_v59  ;;  %v6669_v45 = vld [vmem:[#allocation2 + $0xc0] sm:$0xe]  ;;  %v6276_v15 = vshrl.u32 %v5675_v25, 16 }
 0x2f5   :  { %11193 = vmatprep.mubr.bf16.mxu1 %v10483_v12  ;;  %v6912_v12 = vrot.slane %v14088_v31, 5  ;;  %v6245_v4 = vrot.slane %v6244_v62, 4  ;;  %v6915_v31 = vrot.slane %v6668_v14, 5  ;;  %v6909_v5 = vsel %vm12077_vm8, %v6907_v50, %v6908_v30  ;;  %v6672_v30 = vld [vmem:[#allocation2 + $0xcc] sm:$0xe] }
 0x2f6   :  { %v6216_v19 = vsel %vm12050_vm2, %v6211_v52, %v14058_v54  ;;  %v6249_v54 = vrot.slane %v6247_v55, 5  ;;  %v14111_v52 = vrot.slane %v6261_v40, 5  ;;  %v6279_v21 = vshll.u32 %v5675_v25, 16  ;;  %v5676_v40 = vld [vmem:[#allocation2 + $0x154] sm:$0xf] }
 0x2f7   :  { %v14090_v38 = vpop.f32.mrb[36].mxu1  ;;  %v10486_v6 = vcombine.low %v6899_v22, %v6902_v17  ;;  %v6240_v59 = vsel %vm12050_vm2, %v6235_v11, %v14085_v36  ;;  %v6258_v46 = vor.u32 %v6257_v39, %v6254_v37  ;;  %v10487_v8 = vcombine.low %v6906_v47, %v6909_v5  ;;  %v5677_v47 = vld [vmem:[#allocation2 + $0x158] sm:$0x1]  ;;  %v5678_v5 = vld [vmem:[#allocation2 + $0x15c] sm:$0xf] }
 0x2f8   :  { %v8464_v61 = vpop.f32.mrb[37].mxu1  ;;  %v6250_v55 = vsel %vm12050_vm2, %v6245_v4, %v6249_v54  ;;  %v14123_v14 = vsel %vm12077_vm8, %v10456_v29, %v6912_v12  ;;  %v6926_v22 = vrot.slane %v6673_v32, 5  ;;  %v6281_v29 = vrot.slane %v6279_v21, 5  ;;  %v14132_v54 = vld [vmem:[#allocation2 + $0xf4] sm:$0xf] }
 0x2f9   :  { %v14094_v20 = vpop.f32.mrb[38].mxu1  ;;  %9119 = vmatmul.mubr.bf16.gmra.mrb[76].mxu0 %v11750_v49  ;;  %v6914_v49 = vrot.slane %v6912_v12, 4  ;;  %v6671_v61 = vld [vmem:[#allocation2 + $0xc8] sm:$0x1]  ;;  %v6278_v12 = vrot.slane %v6276_v15, 4  ;;  %v6259_v37 = vrot.slane %v6258_v46, 4 }
 0x2fa   :  { %v8467_v10 = vpop.f32.mrb[39].mxu1  ;;  %9126 = vmatprep.mubr.bf16.mxu0 %v10431_v27  ;;  %v6267_v27 = vrot.slane %v6265_v0, 4  ;;  %v6922_v11 = vrot.slane %v6671_v61, 5  ;;  %v10458_v39 = vrot.slane %v6672_v30, 9  ;;  %v6285_v25 = vshll.u32 %v5676_v40, 16  ;;  %v11752_v15 = vld [vmem:[#allocation2 + $0x12c] sm:$0xff]  }
 0x2fb   :  { %v14127_v50 = vsel %vm12077_vm8, %v6914_v49, %v6915_v31  ;;  %v6271_v10 = vshll.u32 %v5674_v35, 16  ;;  %v6289_v4 = vshrl.u32 %v5676_v40, 16  ;;  %v10433_v49 = vcombine.low %v6240_v59, %v6250_v55  ;;  %v6675_v59 = vld [vmem:[#allocation2 + $0xf0] sm:$0xe]  ;;  %v14141_v61 = vld [vmem:[#allocation2 + $0x100] sm:$0xf] }
 0x2fc   :  { %11194 = vmatmul.mubr.bf16.gmra.mrb[144].mxu1 %v10484_v16  ;;  %v6919_v16 = vrot.slane %v14105_v51, 5  ;;  %v6268_v36 = vor.u32 %v6267_v27, %v14111_v52  ;;  %v10488_v31 = vcombine.low %v14123_v14, %v14127_v50  ;;  %v6928_v32 = vrot.slane %v6926_v22, 4  ;;  %v6677_v50 = vld [vmem:[#allocation2 + $0xf8] sm:$0x1] }
 0x2fd   :  { %11197 = vmatprep.mubr.bf16.mxu1 %v10485_v42  ;;  %v10432_v42 = vcombine.low %v6216_v19, %v6226_v24  ;;  %v10457_v19 = vrot.slane %v6669_v45, 9  ;;  %v6674_v24 = vld [vmem:[#allocation2 + $0xd4] sm:$0x1]  ;;  %v6273_v27 = vrot.slane %v6271_v10, 5  ;;  %v5679_v45 = vld [vmem:[#allocation2 + $0x160] sm:$0xf]  ;;  %v6264_v55 = vsel %vm12050_vm2, %v6259_v37, %v14111_v52 }
 0x2fe   :  { %v6921_v51 = vrot.slane %v6919_v16, 4  ;;  %v6269_v35 = vrot.slane %v6268_v36, 4  ;;  %v6933_v46 = vrot.slane %v14132_v54, 5  ;;  %v6291_v14 = vrot.slane %v6289_v4, 4  ;;  %v6680_v4 = vld [vmem:[#allocation2 + $0x104] sm:$0x1] }
 0x2ff   :  { %v14114_v48 = vpop.f32.mrb[40].mxu1  ;;  %v6920_v21 = vsel %vm12077_vm8, %v10457_v19, %v6919_v16  ;;  %v14152_v16 = vrot.slane %v6285_v25, 5  ;;  %v6300_v40 = vshrl.u32 %v5678_v5, 16  ;;  %v6303_v36 = vshll.u32 %v5678_v5, 16 }
 0x300   :  { %v8472_v62 = vpop.f32.mrb[41].mxu1  ;;  %v6309_v10 = vshll.u32 %v5679_v45, 16  ;;  %v6313_v19 = vshrl.u32 %v5679_v45, 16  ;;  %v10459_v37 = vrot.slane %v6675_v59, 9  ;;  %v6936_v25 = vrot.slane %v6677_v50, 5  ;;  %v11753_v50 = vld [vmem:[#allocation2 + $0x138] sm:$0xff]  }
 0x301   :  { %v14129_v0 = vpop.f32.mrb[42].mxu1  ;;  %9127 = vmatmul.mubr.bf16.gmra.mrb[80].mxu0 %v11751_v63  ;;  %v6929_v63 = vrot.slane %v6674_v24, 5  ;;  %v6292_v54 = vor.u32 %v6291_v14, %v14152_v16  ;;  %v6940_v5 = vrot.slane %v14141_v61, 5  ;;  %v6683_v59 = vld [vmem:[#allocation2 + $0x110] sm:$0x1] }
 0x302   :  { %14759 = vst [vmem:[#allocation4_spill] sm:$0xff] %v14129_v0  ;;  %v8475_v17 = vpop.f32.mrb[43].mxu1  ;;  %9134 = vmatprep.mubr.bf16.mxu0 %v10432_v42  ;;  %v6923_v42 = vsel %vm12077_vm8, %v6921_v51, %v6922_v11  ;;  %v6678_v11 = vld [vmem:[#allocation2 + $0xfc] sm:$0xe]  ;;  %v6315_v45 = vrot.slane %v6313_v19, 4  ;;  %v6934_v61 = vsel %vm12077_vm8, %v10459_v37, %v6933_v46 }
 0x303   :  { %v6274_v17 = vsel %vm12050_vm2, %v6269_v35, %v6273_v27  ;;  %v10489_v51 = vcombine.low %v6920_v21, %v6923_v42  ;;  %v14160_v52 = vsel %vm12077_vm8, %v6928_v32, %v6929_v63  ;;  %v5680_v35 = vld [vmem:[#allocation2 + $0x164] sm:$0x1]  ;;  %v6682_v27 = vld [vmem:[#allocation2 + $0x10c] sm:$0xf]  ;;  %v6302_v32 = vrot.slane %v6300_v40, 4 }
 0x304   :  { %11198 = vmatmul.mubr.bf16.gmra.mrb[148].mxu1 %v10486_v6  ;;  %v6282_v6 = vor.u32 %v6281_v29, %v6278_v12  ;;  %v6305_v63 = vrot.slane %v6303_v36, 5  ;;  %v10434_v21 = vcombine.low %v6264_v55, %v6274_v17  ;;  %v5681_v14 = vld [vmem:[#allocation2 + $0x168] sm:$0xf]  ;;  %v6685_v40 = vld [vmem:[#allocation2 + $0x118] sm:$0xf]  ;;  %v6942_v19 = vrot.slane %v6940_v5, 4 }
 0x305   :  { %11201 = vmatprep.mubr.bf16.mxu1 %v10487_v8  ;;  %v14150_v8 = vsel %vm12077_vm8, %v10458_v39, %v6926_v22  ;;  %v6295_v22 = vshll.u32 %v5677_v47, 16  ;;  %v6935_v39 = vrot.slane %v6933_v46, 4  ;;  %v14166_v47 = vrot.slane %v6309_v10, 5  ;;  %v5682_v36 = vld [vmem:[#allocation2 + $0x16c] sm:$0xf] }
 0x306   :  { %v14162_v29 = vrot.slane %v6282_v6, 4  ;;  %v10490_v42 = vcombine.low %v14150_v8, %v14160_v52  ;;  %v6293_v10 = vrot.slane %v6292_v54, 4  ;;  %v6943_v17 = vrot.slane %v6680_v4, 5 }
 0x307   :  { %v14143_v62 = vpop.f32.mrb[44].mxu1  ;;  %v6297_v6 = vrot.slane %v6295_v22, 5  ;;  %v6937_v55 = vsel %vm12077_vm8, %v6935_v39, %v6936_v25  ;;  %v6306_v22 = vor.u32 %v6305_v63, %v6302_v32  ;;  %v6337_v32 = vshrl.u32 %v5682_v36, 16 }
 0x308   :  { %14760 = vst [vmem:[#allocation5_spill] sm:$0xff] %v14143_v62  ;;  %v8480_v30 = vpop.f32.mrb[45].mxu1  ;;  %v10491_v37 = vcombine.low %v6934_v61, %v6937_v55  ;;  %v6688_v55 = vld [vmem:[#allocation2 + $0x124] sm:$0xf] }
 0x309   :  { %v14154_v24 = vpop.f32.mrb[46].mxu1  ;;  %9135 = vmatmul.mubr.bf16.gmra.mrb[84].mxu0 %v11752_v15  ;;  %v6681_v15 = vld [vmem:[#allocation2 + $0x108] sm:$0xe]  ;;  %v6947_v30 = vrot.slane %v6682_v27, 5  ;;  %v6686_v27 = vld [vmem:[#allocation2 + $0x11c] sm:$0x1]  ;;  %v6298_v63 = vsel %vm12050_vm2, %v6293_v10, %v6297_v6 }
 0x30a   :  { %14761 = vst [vmem:[#allocation6_spill] sm:$0xff] %v14154_v24  ;;  %v8483_v12 = vpop.f32.mrb[47].mxu1  ;;  %9142 = vmatprep.mubr.bf16.mxu0 %v10433_v49  ;;  %v10460_v49 = vrot.slane %v6678_v11, 9  ;;  %v6316_v11 = vor.u32 %v6315_v45, %v14166_v47  ;;  %v10461_v25 = vrot.slane %v6681_v15, 9  ;;  %v6944_v45 = vsel %vm12077_vm8, %v6942_v19, %v6943_v17  ;;  %v6687_v17 = vld [vmem:[#allocation2 + $0x120] sm:$0xe] }
 0x30b   :  { %v6324_v12 = vshrl.u32 %v5681_v14, 16  ;;  %v6949_v4 = vrot.slane %v6947_v30, 4  ;;  %v6339_v19 = vrot.slane %v6337_v32, 4 }
 0x30c   :  { %11202 = vmatmul.mubr.bf16.gmra.mrb[152].mxu1 %v10488_v31  ;;  %v6288_v31 = vsel %vm12050_vm2, %v14162_v29, %v14152_v16  ;;  %v6684_v16 = vld [vmem:[#allocation2 + $0x114] sm:$0xe]  ;;  %v6327_v29 = vshll.u32 %v5681_v14, 16  ;;  %v6941_v39 = vsel %vm12077_vm8, %v10460_v49, %v6940_v5  ;;  %v6307_v5 = vrot.slane %v6306_v22, 4 }
 0x30d   :  { %11205 = vmatprep.mubr.bf16.mxu1 %v10489_v51  ;;  %v6319_v51 = vshll.u32 %v5680_v35, 16  ;;  %v6950_v35 = vrot.slane %v6683_v59, 5  ;;  %v10462_v61 = vrot.slane %v6684_v16, 9  ;;  %v6317_v15 = vrot.slane %v6316_v11, 4  ;;  %v6689_v16 = vld [vmem:[#allocation2 + $0x128] sm:$0x1] }
 0x30e   :  { %v6326_v49 = vrot.slane %v6324_v12, 4  ;;  %v6948_v59 = vsel %vm12077_vm8, %v10461_v25, %v6947_v30  ;;  %v10435_v22 = vcombine.low %v6288_v31, %v6298_v63  ;;  %v10492_v11 = vcombine.low %v6941_v39, %v6944_v45  ;;  %v14197_v12 = vld [vmem:[#allocation2 + $0x130] sm:$0xf] }
 0x30f   :  { %v14178_v8 = vpop.f32.mrb[48].mxu1  ;;  %v6321_v14 = vrot.slane %v6319_v51, 5  ;;  %v6951_v6 = vsel %vm12077_vm8, %v6949_v4, %v6950_v35  ;;  %v5684_v4 = vld [vmem:[#allocation2 + $0x174] sm:$0xf]  ;;  %v5685_v35 = vld [vmem:[#allocation2 + $0x178] sm:$0xf] }
 0x310   :  { %14762 = vst [vmem:[#allocation7_spill] sm:$0xff] %v14178_v8  ;;  %v8488_v52 = vpop.f32.mrb[49].mxu1  ;;  %v6954_v8 = vrot.slane %v6685_v40, 5  ;;  %v10493_v39 = vcombine.low %v6948_v59, %v6951_v6  ;;  %v10463_v63 = vrot.slane %v6687_v17, 9  ;;  %v14216_v59 = vld [vmem:[#allocation2 + $0x13c] sm:$0xf] }
 0x311   :  { %v14181_v46 = vpop.f32.mrb[50].mxu1  ;;  %9143 = vmatmul.mubr.bf16.gmra.mrb[88].mxu0 %v11753_v50  ;;  %v6333_v52 = vshll.u32 %v5682_v36, 16  ;;  %v6329_v50 = vrot.slane %v6327_v29, 5  ;;  %v5683_v36 = vld [vmem:[#allocation2 + $0x170] sm:$0x1]  ;;  %v6312_v29 = vsel %vm12050_vm2, %v6307_v5, %v14166_v47  ;;  %v6348_v5 = vshrl.u32 %v5684_v4, 16 }
 0x312   :  { %14763 = vst [vmem:[#allocation8_spill] sm:$0xff] %v14181_v46  ;;  %v8491_v54 = vpop.f32.mrb[51].mxu1  ;;  %9150 = vmatprep.mubr.bf16.mxu0 %v10434_v21  ;;  %v6956_v40 = vrot.slane %v6954_v8, 4  ;;  %v6957_v21 = vrot.slane %v6686_v27, 5  ;;  %v14206_v25 = vsel %vm12077_vm8, %v10462_v61, %v6954_v8  ;;  %v6343_v32 = vshll.u32 %v5683_v36, 16 }
 0x313   :  { %v11754_v54 = vld [vmem:[#allocation2 + $0x144] sm:$0xff]   ;;  %v14193_v10 = vrot.slane %v6333_v52, 5  ;;  %v6330_v27 = vor.u32 %v6329_v50, %v6326_v49  ;;  %v6690_v8 = vld [vmem:[#allocation2 + $0x12c] sm:$0xe]  ;;  %v6968_v61 = vrot.slane %v14197_v12, 5  ;;  %v6357_v49 = vshll.u32 %v5685_v35, 16 }
 0x314   :  { %11206 = vmatmul.mubr.bf16.gmra.mrb[156].mxu1 %v10490_v42  ;;  %v6961_v42 = vrot.slane %v6688_v55, 5  ;;  %v14212_v52 = vsel %vm12077_vm8, %v6956_v40, %v6957_v21  ;;  %v6964_v55 = vrot.slane %v6689_v16, 5  ;;  %v6361_v50 = vshrl.u32 %v5685_v35, 16  ;;  %v6692_v36 = vld [vmem:[#allocation2 + $0x134] sm:$0x1] }
 0x315   :  { %11209 = vmatprep.mubr.bf16.mxu1 %v10491_v37  ;;  %v6322_v37 = vsel %vm12050_vm2, %v6317_v15, %v6321_v14  ;;  %v6340_v45 = vor.u32 %v6339_v19, %v14193_v10  ;;  %v6351_v15 = vshll.u32 %v5684_v4, 16  ;;  %v6331_v21 = vrot.slane %v6330_v27, 4  ;;  %v6693_v16 = vld [vmem:[#allocation2 + $0x138] sm:$0xe]  ;;  %v6695_v12 = vld [vmem:[#allocation2 + $0x140] sm:$0x1] }
 0x316   :  { %v6963_v14 = vrot.slane %v6961_v42, 4  ;;  %v10436_v40 = vcombine.low %v6312_v29, %v6322_v37  ;;  %v10494_v6 = vcombine.low %v14206_v25, %v14212_v52  ;;  %v6345_v19 = vrot.slane %v6343_v32, 5  ;;  %v11755_v4 = vld [vmem:[#allocation2 + $0x150] sm:$0xff]   ;;  %v5688_v27 = vld [vmem:[#allocation2 + $0x184] sm:$0xf] }
 0x317   :  { %v14195_v51 = vpop.f32.mrb[52].mxu1  ;;  %v6962_v17 = vsel %vm12077_vm8, %v10463_v63, %v6961_v42  ;;  %v6341_v35 = vrot.slane %v6340_v45, 4  ;;  %v6970_v29 = vrot.slane %v6968_v61, 4  ;;  %v6975_v37 = vrot.slane %v14216_v59, 5 }
 0x318   :  { %14764 = vst [vmem:[#allocation9_spill] sm:$0xff] %v14195_v51  ;;  %v8496_v30 = vpop.f32.mrb[53].mxu1  ;;  %v6350_v25 = vrot.slane %v6348_v5, 4  ;;  %v6353_v52 = vrot.slane %v6351_v15, 5  ;;  %v14227_v32 = vrot.slane %v6357_v49, 5  ;;  %v6363_v42 = vrot.slane %v6361_v50, 4 }
 0x319   :  { %v14208_v31 = vpop.f32.mrb[54].mxu1  ;;  %9151 = vmatmul.mubr.bf16.gmra.mrb[92].mxu0 %v11754_v54  ;;  %v5686_v54 = vld [vmem:[#allocation2 + $0x17c] sm:$0x1]  ;;  %v5687_v30 = vld [vmem:[#allocation2 + $0x180] sm:$0xf]  ;;  %v6971_v45 = vrot.slane %v6692_v36, 5  ;;  %v6346_v49 = vsel %vm12050_vm2, %v6341_v35, %v6345_v19 }
 0x31a   :  { %14765 = vst [vmem:[#allocation10_spill] sm:$0xff] %v14208_v31  ;;  %v8499_v47 = vpop.f32.mrb[55].mxu1  ;;  %9158 = vmatprep.mubr.bf16.mxu0 %v10435_v22  ;;  %v10464_v22 = vrot.slane %v6690_v8, 9  ;;  %v14232_v8 = vld [vmem:[#allocation2 + $0x148] sm:$0xf]  ;;  %v6367_v51 = vshll.u32 %v5686_v54, 16  ;;  %v6364_v36 = vor.u32 %v6363_v42, %v14227_v32 }
 0x31b   :  { %v6336_v47 = vsel %vm12050_vm2, %v6331_v21, %v14193_v10  ;;  %v6385_v5 = vshrl.u32 %v5688_v27, 16  ;;  %v10465_v50 = vrot.slane %v6693_v16, 9  ;;  %v6978_v46 = vrot.slane %v6695_v12, 5  ;;  %v6696_v10 = vld [vmem:[#allocation2 + $0x144] sm:$0xe] }
 0x31c   :  { %11210 = vmatmul.mubr.bf16.gmra.mrb[160].mxu1 %v10492_v11  ;;  %v6965_v11 = vsel %vm12077_vm8, %v6963_v14, %v6964_v55  ;;  %v6372_v14 = vshrl.u32 %v5687_v30, 16  ;;  %v6375_v55 = vshll.u32 %v5687_v30, 16  ;;  %v6354_v21 = vor.u32 %v6353_v52, %v6350_v25  ;;  %v6698_v30 = vld [vmem:[#allocation2 + $0x14c] sm:$0x1]  ;;  %v5689_v19 = vld [vmem:[#allocation2 + $0x188] sm:$0x1] }
 0x31d   :  { %11213 = vmatprep.mubr.bf16.mxu1 %v10493_v39  ;;  %v10495_v59 = vcombine.low %v6962_v17, %v6965_v11  ;;  %v6700_v17 = vld [vmem:[#allocation2 + $0x154] sm:$0xf]  ;;  %v6969_v54 = vsel %vm12077_vm8, %v10464_v22, %v6968_v61  ;;  %v6699_v12 = vld [vmem:[#allocation2 + $0x150] sm:$0xe]  ;;  %v11756_v11 = vld [vmem:[#allocation2 + $0x15c] sm:$0xff]   ;;  %v6387_v52 = vrot.slane %v6385_v5, 4 }
 0x31e   :  { %v6374_v16 = vrot.slane %v6372_v14, 4  ;;  %v6377_v35 = vrot.slane %v6375_v55, 5  ;;  %v5690_v42 = vld [vmem:[#allocation2 + $0x18c] sm:$0xf]  ;;  %v10466_v22 = vrot.slane %v6696_v10, 9  ;;  %v6355_v55 = vrot.slane %v6354_v21, 4 }
 0x31f   :  { %v14225_v39 = vpop.f32.mrb[56].mxu1  ;;  %v6396_v24 = vshrl.u32 %v5690_v42, 16  ;;  %v6399_v62 = vshll.u32 %v5690_v42, 16  ;;  %v10467_v10 = vrot.slane %v6699_v12, 9  ;;  %v6706_v12 = vld [vmem:[#allocation2 + $0x16c] sm:$0xf] }
 0x320   :  { %14766 = vst [vmem:[#allocation11_spill] sm:$0xff] %v14225_v39  ;;  %v8504_v63 = vpop.f32.mrb[57].mxu1  ;;  %v6381_v39 = vshll.u32 %v5688_v27, 16  ;;  %v6369_v27 = vrot.slane %v6367_v51, 5  ;;  %v6985_v51 = vrot.slane %v6698_v30, 5  ;;  %v6378_v5 = vor.u32 %v6377_v35, %v6374_v16 }
 0x321   :  { %v14234_v31 = vpop.f32.mrb[58].mxu1  ;;  %9159 = vmatmul.mubr.bf16.gmra.mrb[96].mxu0 %v11755_v4  ;;  %v6977_v63 = vrot.slane %v6975_v37, 4  ;;  %v6972_v4 = vsel %vm12077_vm8, %v6970_v29, %v6971_v45  ;;  %v6701_v29 = vld [vmem:[#allocation2 + $0x158] sm:$0x1]  ;;  %v6989_v45 = vrot.slane %v6700_v17, 5 }
 0x322   :  { %14767 = vst [vmem:[#allocation12_spill] sm:$0xff] %v14234_v31  ;;  %v8507_v15 = vpop.f32.mrb[59].mxu1  ;;  %9166 = vmatprep.mubr.bf16.mxu0 %v10436_v40  ;;  %v6982_v31 = vrot.slane %v14232_v8, 5  ;;  %v10437_v40 = vcombine.low %v6336_v47, %v6346_v49  ;;  %v14244_v25 = vrot.slane %v6381_v39, 5  ;;  %v5691_v8 = vld [vmem:[#allocation2 + $0x190] sm:$0xf] }
 0x323   :  { %v6979_v61 = vsel %vm12077_vm8, %v6977_v63, %v6978_v46  ;;  %v6365_v47 = vrot.slane %v6364_v36, 4  ;;  %v10496_v15 = vcombine.low %v6969_v54, %v6972_v4  ;;  %v6703_v49 = vld [vmem:[#allocation2 + $0x160] sm:$0xf]  ;;  %v6391_v63 = vshll.u32 %v5689_v19, 16  ;;  %v6702_v17 = vld [vmem:[#allocation2 + $0x15c] sm:$0xe] }
 0x324   :  { %11214 = vmatmul.mubr.bf16.gmra.mrb[164].mxu1 %v10494_v6  ;;  %v6976_v6 = vsel %vm12077_vm8, %v10465_v50, %v6975_v37  ;;  %v6388_v46 = vor.u32 %v6387_v52, %v14244_v25  ;;  %v6991_v21 = vrot.slane %v6989_v45, 4  ;;  %v6992_v36 = vrot.slane %v6701_v29, 5  ;;  %v6704_v35 = vld [vmem:[#allocation2 + $0x164] sm:$0x1]  ;;  %v5692_v42 = vld [vmem:[#allocation2 + $0x194] sm:$0x1] }
 0x325   :  { %11217 = vmatprep.mubr.bf16.mxu1 %v10495_v59  ;;  %v6984_v59 = vrot.slane %v6982_v31, 4  ;;  %v10497_v50 = vcombine.low %v6976_v6, %v6979_v61  ;;  %v6405_v0 = vshll.u32 %v5691_v8, 16  ;;  %v6409_v30 = vshrl.u32 %v5691_v8, 16  ;;  %v14266_v8 = vld [vmem:[#allocation2 + $0x178] sm:$0xf] }
 0x326   :  { %v6360_v54 = vsel %vm12050_vm2, %v6355_v55, %v14227_v32  ;;  %v6370_v4 = vsel %vm12050_vm2, %v6365_v47, %v6369_v27  ;;  %v6983_v16 = vsel %vm12077_vm8, %v10466_v22, %v6982_v31  ;;  %v6996_v52 = vrot.slane %v6703_v49, 5  ;;  %v11757_v31 = vld [vmem:[#allocation2 + $0x168] sm:$0xff]  }
 0x327   :  { %v14250_v14 = vpop.f32.mrb[60].mxu1  ;;  %v6986_v19 = vsel %vm12077_vm8, %v6984_v59, %v6985_v51  ;;  %v6401_v6 = vrot.slane %v6399_v62, 5  ;;  %v6389_v61 = vrot.slane %v6388_v46, 4  ;;  %v6393_v32 = vrot.slane %v6391_v63, 5  ;;  %v6705_v47 = vld [vmem:[#allocation2 + $0x168] sm:$0xe] }
 0x328   :  { %14768 = vst [vmem:[#allocation13_spill] sm:$0xff] %v14250_v14  ;;  %v8512_v39 = vpop.f32.mrb[61].mxu1  ;;  %v6990_v27 = vsel %vm12077_vm8, %v10467_v10, %v6989_v45  ;;  %v10468_v29 = vrot.slane %v6702_v17, 9  ;;  %v6993_v22 = vsel %vm12077_vm8, %v6991_v21, %v6992_v36  ;;  %v6411_v55 = vrot.slane %v6409_v30, 4  ;;  %v6708_v30 = vld [vmem:[#allocation2 + $0x174] sm:$0xe] }
 0x329   :  { %v14252_v37 = vpop.f32.mrb[62].mxu1  ;;  %9167 = vmatmul.mubr.bf16.gmra.mrb[100].mxu0 %v11756_v11  ;;  %v6379_v11 = vrot.slane %v6378_v5, 4  ;;  %v7003_v59 = vrot.slane %v6706_v12, 5  ;;  %v10438_v62 = vcombine.low %v6360_v54, %v6370_v4  ;;  %v10498_v51 = vcombine.low %v6983_v16, %v6986_v19  ;;  %v5693_v5 = vld [vmem:[#allocation2 + $0x198] sm:$0xf] }
 0x32a   :  { %v8515_v14 = vpop.f32.mrb[63].mxu1  ;;  %9174 = vmatprep.mubr.bf16.mxu0 %v10437_v40  ;;  %v6398_v40 = vrot.slane %v6396_v24, 4  ;;  %v6999_v39 = vrot.slane %v6704_v35, 5  ;;  %v6415_v63 = vshll.u32 %v5692_v42, 16  ;;  %v6394_v17 = vsel %vm12050_vm2, %v6389_v61, %v6393_v32  ;;  %v6710_v12 = vld [vmem:[#allocation2 + $0x17c] sm:$0x1] }
 0x32b   :  { %v14270_v14 = vrot.slane %v6405_v0, 5  ;;  %v6384_v49 = vsel %vm12050_vm2, %v6379_v11, %v14244_v25  ;;  %v5694_v0 = vld [vmem:[#allocation2 + $0x19c] sm:$0xf]  ;;  %v10499_v21 = vcombine.low %v6990_v27, %v6993_v22  ;;  %v10469_v36 = vrot.slane %v6705_v47, 9  ;;  %v14287_v61 = vld [vmem:[#allocation2 + $0x184] sm:$0xf] }
 0x32c   :  { %11218 = vmatmul.mubr.bf16.gmra.mrb[168].mxu1 %v10496_v15  ;;  %v6707_v15 = vld [vmem:[#allocation2 + $0x170] sm:$0x1]  ;;  %v6402_v46 = vor.u32 %v6401_v6, %v6398_v40  ;;  %v7010_v54 = vrot.slane %v14266_v8, 5  ;;  %v14284_v16 = vsel %vm12077_vm8, %v10468_v29, %v6996_v52  ;;  %v7005_v19 = vrot.slane %v7003_v59, 4  ;;  %v5695_v29 = vld [vmem:[#allocation2 + $0x1a0] sm:$0x1] }
 0x32d   :  { %11221 = vmatprep.mubr.bf16.mxu1 %v10497_v50  ;;  %v6998_v50 = vrot.slane %v6996_v52, 4  ;;  %v6412_v25 = vor.u32 %v6411_v55, %v14270_v14  ;;  %v7006_v35 = vrot.slane %v6707_v15, 5  ;;  %v6420_v11 = vshrl.u32 %v5693_v5, 16  ;;  %v6711_v15 = vld [vmem:[#allocation2 + $0x180] sm:$0xe] }
 0x32e   :  { %v6423_v42 = vshll.u32 %v5693_v5, 16  ;;  %v6429_v40 = vshll.u32 %v5694_v0, 16  ;;  %v6433_v6 = vshrl.u32 %v5694_v0, 16  ;;  %v10439_v32 = vcombine.low %v6384_v49, %v6394_v17 }
 0x32f   :  { %v14272_v24 = vpop.f32.mrb[64].mxu1  ;;  %v7000_v27 = vsel %vm12077_vm8, %v6998_v50, %v6999_v39  ;;  %v6403_v8 = vrot.slane %v6402_v46, 4  ;;  %v6417_v52 = vrot.slane %v6415_v63, 5  ;;  %v7004_v22 = vsel %vm12077_vm8, %v10469_v36, %v7003_v59  ;;  %v6713_v50 = vld [vmem:[#allocation2 + $0x188] sm:$0x1] }
 0x330   :  { %v8520_v45 = vpop.f32.mrb[65].mxu1  ;;  %v10470_v55 = vrot.slane %v6708_v30, 9  ;;  %v7012_v47 = vrot.slane %v7010_v54, 4  ;;  %v6413_v49 = vrot.slane %v6412_v25, 4  ;;  %v7007_v39 = vsel %vm12077_vm8, %v7005_v19, %v7006_v35  ;;  %v14310_v35 = vld [vmem:[#allocation2 + $0x190] sm:$0xf] }
 0x331   :  { %v14277_v10 = vpop.f32.mrb[66].mxu1  ;;  %9175 = vmatmul.mubr.bf16.gmra.mrb[104].mxu0 %v11757_v31  ;;  %v11758_v45 = vld [vmem:[#allocation2 + $0x174] sm:$0xff]   ;;  %v7017_v46 = vrot.slane %v14287_v61, 5  ;;  %v6422_v59 = vrot.slane %v6420_v11, 4  ;;  %v6425_v17 = vrot.slane %v6423_v42, 5  ;;  %v6435_v36 = vrot.slane %v6433_v6, 4 }
 0x332   :  { %v8523_v4 = vpop.f32.mrb[67].mxu1  ;;  %9182 = vmatprep.mubr.bf16.mxu0 %v10438_v62  ;;  %v7013_v62 = vrot.slane %v6710_v12, 5  ;;  %v10500_v25 = vcombine.low %v14284_v16, %v7000_v27  ;;  %v6408_v19 = vsel %vm12050_vm2, %v6403_v8, %v14270_v14  ;;  %v5696_v12 = vld [vmem:[#allocation2 + $0x1a4] sm:$0xf]  ;;  %v10501_v11 = vcombine.low %v7004_v22, %v7007_v39  ;;  %v6714_v6 = vld [vmem:[#allocation2 + $0x18c] sm:$0xe] }
 0x333   :  { %v14316_v42 = vsel %vm12077_vm8, %v10470_v55, %v7010_v54  ;;  %v5697_v16 = vld [vmem:[#allocation2 + $0x1a8] sm:$0xf]  ;;  %v6418_v14 = vsel %vm12050_vm2, %v6413_v49, %v6417_v52  ;;  %v10471_v8 = vrot.slane %v6711_v15, 9  ;;  %v6426_v22 = vor.u32 %v6425_v17, %v6422_v59  ;;  %v11759_v52 = vld [vmem:[#allocation2 + $0x180] sm:$0xff]  }
 0x334   :  { %11222 = vmatmul.mubr.bf16.gmra.mrb[172].mxu1 %v10498_v51  ;;  %v8968_v31 = vpop.f32.mrb[0].mxu0  ;;  %v7024_v55 = vrot.slane %v14310_v35, 5  ;;  %v6444_v39 = vshrl.u32 %v5696_v12, 16  ;;  %v10440_v15 = vcombine.low %v6408_v19, %v6418_v14  ;;  %v6717_v35 = vld [vmem:[#allocation2 + $0x198] sm:$0xe] }
 0x335   :  { %11225 = vmatprep.mubr.bf16.mxu1 %v10499_v21  ;;  %v14294_v5 = vadd.f32 %v8968_v31, %v13012_v2  ;;  %v8970_v51 = vpop.f32.mrb[1].mxu0  ;;  %v14301_v21 = vrot.slane %v6429_v40, 5  ;;  %v6439_v40 = vshll.u32 %v5695_v29, 16  ;;  %v7019_v31 = vrot.slane %v7017_v46, 4 }
 0x336   :  { %v8971_v63 = vpop.f32.mrb[2].mxu0  ;;  %v7020_v51 = vrot.slane %v6713_v50, 5  ;;  %v10472_v50 = vrot.slane %v6714_v6, 9  ;;  %v6427_v19 = vrot.slane %v6426_v22, 4  ;;  %v6446_v6 = vrot.slane %v6444_v39, 4 }
 0x337   :  { %v14299_v0 = vpop.f32.mrb[68].mxu1  ;;  %v14304_v2 = vadd.f32 %v8971_v63, %v13026_v3  ;;  %v8973_v30 = vpop.f32.mrb[3].mxu0  ;;  %v7014_v3 = vsel %vm12077_vm8, %v7012_v47, %v7013_v62  ;;  %v6716_v63 = vld [vmem:[#allocation2 + $0x194] sm:$0x1]  ;;  %v6436_v54 = vor.u32 %v6435_v36, %v14301_v21  ;;  %v6718_v47 = vld [vmem:[#allocation2 + $0x19c] sm:$0xf]  ;;  %v7018_v36 = vsel %vm12077_vm8, %v10471_v8, %v7017_v46 }
 0x338   :  { %v8528_v4 = vpop.f32.mrb[69].mxu1  ;;  %v10502_v29 = vcombine.low %v14316_v42, %v7014_v3  ;;  %v6447_v62 = vshll.u32 %v5696_v12, 16  ;;  %v6457_v30 = vshrl.u32 %v5697_v16, 16  ;;  %v6441_v49 = vrot.slane %v6439_v40, 5  ;;  %v6719_v12 = vld [vmem:[#allocation2 + $0x1a0] sm:$0x1] }
 0x339   :  { %v14312_v61 = vpop.f32.mrb[70].mxu1  ;;  %9183 = vmatmul.mubr.bf16.gmra.mrb[108].mxu0 %v11758_v45  ;;  %v6453_v45 = vshll.u32 %v5697_v16, 16  ;;  %v7031_v42 = vrot.slane %v6718_v47, 5  ;;  %v7026_v40 = vrot.slane %v7024_v55, 4  ;;  %v7034_v22 = vrot.slane %v6719_v12, 5  ;;  %v11760_v12 = vld [vmem:[#allocation2 + $0x18c] sm:$0xff]  }
 0x33a   :  { %v8531_v27 = vpop.f32.mrb[71].mxu1  ;;  %9190 = vmatprep.mubr.bf16.mxu0 %v10439_v32  ;;  %v7027_v32 = vrot.slane %v6716_v63, 5  ;;  %v6449_v63 = vrot.slane %v6447_v62, 5  ;;  %v6459_v8 = vrot.slane %v6457_v30, 4  ;;  %v7025_v62 = vsel %vm12077_vm8, %v10472_v50, %v7024_v55  ;;  %v6722_v50 = vld [vmem:[#allocation2 + $0x1ac] sm:$0x1] }
 0x33b   :  { %v6455_v46 = vrot.slane %v6453_v45, 5 }
 0x33c   :  { %11226 = vmatmul.mubr.bf16.gmra.mrb[176].mxu1 %v10500_v25  ;;  %v8976_v4 = vpop.f32.mrb[4].mxu0  ;;  %v7021_v25 = vsel %vm12077_vm8, %v7019_v31, %v7020_v51  ;;  %v5698_v51 = vld [vmem:[#allocation2 + $0x1ac] sm:$0x1]  ;;  %v7028_v45 = vsel %vm12077_vm8, %v7026_v40, %v7027_v32  ;;  %v6450_v30 = vor.u32 %v6449_v63, %v6446_v6 }
 0x33d   :  { %11229 = vmatprep.mubr.bf16.mxu1 %v10501_v11  ;;  %v14326_v59 = vadd.f32 %v8976_v4, %v13051_v58  ;;  %v8978_v17 = vpop.f32.mrb[5].mxu0  ;;  %v6437_v11 = vrot.slane %v6436_v54, 4  ;;  %v10503_v31 = vcombine.low %v7018_v36, %v7021_v25  ;;  %v6721_v54 = vld [vmem:[#allocation2 + $0x1a8] sm:$0xf]  ;;  %v6463_v36 = vshll.u32 %v5698_v51, 16 }
 0x33e   :  { %v8979_v3 = vpop.f32.mrb[6].mxu0  ;;  %v10473_v17 = vrot.slane %v6717_v35, 9  ;;  %v7041_v51 = vrot.slane %v6722_v50, 5 }
 0x33f   :  { %v14332_v16 = vpop.f32.mrb[72].mxu1  ;;  %v14335_v58 = vadd.f32 %v8979_v3, %v13062_v44  ;;  %v8981_v27 = vpop.f32.mrb[7].mxu0  ;;  %v6432_v44 = vsel %vm12050_vm2, %v6427_v19, %v14301_v21  ;;  %v6442_v39 = vsel %vm12050_vm2, %v6437_v11, %v6441_v49  ;;  %v10504_v11 = vcombine.low %v7025_v62, %v7028_v45  ;;  %v11761_v45 = vld [vmem:[#allocation2 + $0x198] sm:$0xff]  }
 0x340   :  { %14769 = vst [vmem:[#allocation14_spill] sm:$0xff] %v14332_v16  ;;  %v8536_v14 = vpop.f32.mrb[73].mxu1  ;;  %v7033_v16 = vrot.slane %v7031_v42, 4  ;;  %v7032_v49 = vsel %vm12077_vm8, %v10473_v17, %v7031_v42  ;;  %v10441_v19 = vcombine.low %v6432_v44, %v6442_v39  ;;  %v6451_v27 = vrot.slane %v6450_v30, 4 }
 0x341   :  { %v14337_v4 = vpop.f32.mrb[74].mxu1  ;;  %9191 = vmatmul.mubr.bf16.gmra.mrb[112].mxu0 %v11759_v52  ;;  %v6460_v52 = vor.u32 %v6459_v8, %v6455_v46  ;;  %v6465_v63 = vrot.slane %v6463_v36, 5 }
 0x342   :  { %v8539_v47 = vpop.f32.mrb[75].mxu1  ;;  %9198 = vmatprep.mubr.bf16.mxu0 %v10440_v15  ;;  %v7038_v15 = vrot.slane %v6721_v54, 5  ;;  %v7035_v55 = vsel %vm12077_vm8, %v7033_v16, %v7034_v22  ;;  %v6456_v17 = vsel %vm12050_vm2, %v6451_v27, %v6455_v46 }
 0x343   :  { %v6461_v14 = vrot.slane %v6460_v52, 4  ;;  %v10505_v42 = vcombine.low %v7032_v49, %v7035_v55  ;;  %v11762_v55 = vld [vmem:[#allocation2 + $0x1a4] sm:$0xff]  }
 0x344   :  { %11230 = vmatmul.mubr.bf16.gmra.mrb[180].mxu1 %v10502_v29  ;;  %v8984_v25 = vpop.f32.mrb[8].mxu0  ;;  %v6720_v29 = vld [vmem:[#allocation2 + $0x1a4] sm:$0xe]  ;;  %v7040_v16 = vrot.slane %v7038_v15, 4 }
 0x345   :  { %11233 = vmatprep.mubr.bf16.mxu1 %v10503_v31  ;;  %v14349_v35 = vadd.f32 %v8984_v25, %v13082_v7  ;;  %v8986_v21 = vpop.f32.mrb[9].mxu0  ;;  %v10474_v31 = vrot.slane %v6720_v29, 9 }
 0x346   :  { %v8987_v32 = vpop.f32.mrb[10].mxu0  ;;  %v7042_v44 = vsel %vm12077_vm8, %v7040_v16, %v7041_v51 }
 0x347   :  { %v14355_v3 = vpop.f32.mrb[76].mxu1  ;;  %v14358_v40 = vadd.f32 %v8987_v32, %v13093_v56  ;;  %v8989_v7 = vpop.f32.mrb[11].mxu0  ;;  %v6466_v56 = vsel %vm12050_vm2, %v6461_v14, %v6465_v63  ;;  %v7039_v54 = vsel %vm12077_vm8, %v10474_v31, %v7038_v15 }
 0x348   :  { %v8544_v6 = vpop.f32.mrb[77].mxu1  ;;  %v10442_v46 = vcombine.low %v6456_v17, %v6466_v56  ;;  %v10506_v21 = vcombine.low %v7039_v54, %v7042_v44 }
 0x349   :  { %v14360_v8 = vpop.f32.mrb[78].mxu1  ;;  %9199 = vmatmul.mubr.bf16.gmra.mrb[116].mxu0 %v11760_v12 }
 0x34a   :  { %v8547_v47 = vpop.f32.mrb[79].mxu1  ;;  %9206 = vmatprep.mubr.bf16.mxu0 %v10441_v19 }
 0x34c   :  { %11234 = vmatmul.mubr.bf16.gmra.mrb[184].mxu1 %v10504_v11  ;;  %v8992_v22 = vpop.f32.mrb[12].mxu0 }
 0x34d   :  { %11237 = vmatprep.mubr.bf16.mxu1 %v10505_v42  ;;  %v14371_v39 = vadd.f32 %v8992_v22, %v13149_v23  ;;  %v8994_v62 = vpop.f32.mrb[13].mxu0 }
 0x34e   :  { %v8995_v30 = vpop.f32.mrb[14].mxu0 }
 0x34f   :  { %v14373_v52 = vpop.f32.mrb[80].mxu1  ;;  %v14376_v43 = vadd.f32 %v8995_v30, %v13153_v28  ;;  %v8997_v36 = vpop.f32.mrb[15].mxu0 }
 0x350   :  { %v8552_v25 = vpop.f32.mrb[81].mxu1 }
 0x351   :  { %v14378_v12 = vpop.f32.mrb[82].mxu1  ;;  %9207 = vmatmul.mubr.bf16.gmra.mrb[120].mxu0 %v11761_v45 }
 0x352   :  { %v8555_v1 = vpop.f32.mrb[83].mxu1  ;;  %9214 = vmatprep.mubr.bf16.mxu0 %v10442_v46 }
 0x354   :  { %11238 = vmatmul.mubr.bf16.gmra.mrb[188].mxu1 %v10506_v21  ;;  %v9000_v23 = vpop.f32.mrb[16].mxu0 }
 0x355   :  { %v14381_v15 = vadd.f32 %v9000_v23, %v13186_v18  ;;  %v9002_v49 = vpop.f32.mrb[17].mxu0 }
 0x356   :  { %v9003_v29 = vpop.f32.mrb[18].mxu0 }
 0x357   :  { %v14383_v50 = vpop.f32.mrb[84].mxu1  ;;  %v14386_v28 = vadd.f32 %v9003_v29, %v13220_v41  ;;  %v9005_v32 = vpop.f32.mrb[19].mxu0 }
 0x358   :  { %v8560_v19 = vpop.f32.mrb[85].mxu1 }
 0x359   :  { %v14388_v11 = vpop.f32.mrb[86].mxu1  ;;  %9215 = vmatmul.mubr.bf16.gmra.mrb[124].mxu0 %v11762_v55 }
 0x35a   :  { %v8563_v7 = vpop.f32.mrb[87].mxu1 }
 0x35c   :  { %v9008_v6 = vpop.f32.mrb[20].mxu0 }
 0x35d   :  { %v14391_v27 = vadd.f32 %v9008_v6, %v13239_v33  ;;  %v9010_v18 = vpop.f32.mrb[21].mxu0 }
 0x35e   :  { %v9011_v14 = vpop.f32.mrb[22].mxu0 }
 0x35f   :  { %v14393_v63 = vpop.f32.mrb[88].mxu1  ;;  %v14396_v42 = vadd.f32 %v9011_v14, %v13255_v60  ;;  %v9013_v31 = vpop.f32.mrb[23].mxu0 }
 0x360   :  { %v8568_v41 = vpop.f32.mrb[89].mxu1 }
 0x361   :  { %v14398_v16 = vpop.f32.mrb[90].mxu1 }
 0x362   :  { %v8571_v51 = vpop.f32.mrb[91].mxu1 }
 0x364   :  { %v9016_v47 = vpop.f32.mrb[24].mxu0 }
 0x365   :  { %v14401_v17 = vadd.f32 %v9016_v47, %v13267_v26  ;;  %v9018_v56 = vpop.f32.mrb[25].mxu0 }
 0x366   :  { %v9019_v22 = vpop.f32.mrb[26].mxu0 }
 0x367   :  { %v14403_v33 = vpop.f32.mrb[92].mxu1  ;;  %v14406_v54 = vadd.f32 %v9019_v22, %v13280_v34  ;;  %v9021_v44 = vpop.f32.mrb[27].mxu0 }
 0x368   :  { %v8576_v62 = vpop.f32.mrb[93].mxu1 }
 0x369   :  { %v14408_v60 = vpop.f32.mrb[94].mxu1 }
 0x36a   :  { %v8579_v45 = vpop.f32.mrb[95].mxu1 }
 0x36c   :  { %v9024_v30 = vpop.f32.mrb[28].mxu0 }
 0x36d   :  { %v14411_v46 = vadd.f32 %v9024_v30, %v13301_v13  ;;  %v9026_v36 = vpop.f32.mrb[29].mxu0 }
 0x36e   :  { %v9027_v25 = vpop.f32.mrb[30].mxu0 }
 0x36f   :  { %v14413_v26 = vpop.f32.mrb[96].mxu1  ;;  %v14416_v21 = vadd.f32 %v9027_v25, %v13316_v9  ;;  %v9029_v1 = vpop.f32.mrb[31].mxu0 }
 0x370   :  { %14770 = vst [vmem:[#allocation15_spill] sm:$0xff] %v14413_v26  ;;  %v8584_v23 = vpop.f32.mrb[97].mxu1  ;;  %v14777_v1 = vld [vmem:[#allocation4_spill] sm:$0xff] }
 0x371   :  { %v14418_v34 = vpop.f32.mrb[98].mxu1 }
 0x372   :  { %14771 = vst [vmem:[#allocation16_spill] sm:$0xff] %v14418_v34  ;;  %v8587_v49 = vpop.f32.mrb[99].mxu1 }
 0x374   :  { %v9032_v55 = vpop.f32.mrb[32].mxu0 }
 0x375   :  { %v14421_v29 = vadd.f32 %v9032_v55, %v14060_v57  ;;  %v9034_v32 = vpop.f32.mrb[33].mxu0 }
 0x376   :  { %v9035_v19 = vpop.f32.mrb[34].mxu0 }
 0x377   :  { %v14423_v13 = vpop.f32.mrb[100].mxu1  ;;  %v14426_v7 = vadd.f32 %v9035_v19, %v14068_v53  ;;  %v9037_v6 = vpop.f32.mrb[35].mxu0 }
 0x378   :  { %14772 = vst [vmem:[#allocation17_spill] sm:$0xff] %v14423_v13  ;;  %v8592_v18 = vpop.f32.mrb[101].mxu1  ;;  %v14779_v6 = vld [vmem:[#allocation5_spill] sm:$0xff] }
 0x379   :  { %v14428_v9 = vpop.f32.mrb[102].mxu1 }
 0x37a   :  { %14773 = vst [vmem:[#allocation18_spill] sm:$0xff] %v14428_v9  ;;  %v8595_v14 = vpop.f32.mrb[103].mxu1 }
 0x37c   :  { %v9040_v31 = vpop.f32.mrb[36].mxu0 }
 0x37d   :  { %v14431_v41 = vadd.f32 %v9040_v31, %v14090_v38  ;;  %v9042_v51 = vpop.f32.mrb[37].mxu0 }
 0x37e   :  { %v9043_v47 = vpop.f32.mrb[38].mxu0  ;;  %v14781_v51 = vld [vmem:[#allocation6_spill] sm:$0xff] }
 0x37f   :  { %v14433_v57 = vpop.f32.mrb[104].mxu1  ;;  %v14436_v56 = vadd.f32 %v9043_v47, %v14094_v20  ;;  %v9045_v22 = vpop.f32.mrb[39].mxu0 }
 0x380   :  { %14774 = vst [vmem:[#allocation19_spill] sm:$0xff] %v14433_v57  ;;  %v8600_v44 = vpop.f32.mrb[105].mxu1 }
 0x381   :  { %v14438_v53 = vpop.f32.mrb[106].mxu1 }
 0x382   :  { %14775 = vst [vmem:[#allocation20_spill] sm:$0xff] %v14438_v53  ;;  %v8603_v62 = vpop.f32.mrb[107].mxu1 }
 0x384   :  { %v9048_v45 = vpop.f32.mrb[40].mxu0 }
 0x385   :  { %v14441_v30 = vadd.f32 %v9048_v45, %v14114_v48  ;;  %v9050_v36 = vpop.f32.mrb[41].mxu0 }
 0x386   :  { %v9051_v25 = vpop.f32.mrb[42].mxu0 }
 0x387   :  { %v14443_v38 = vpop.f32.mrb[108].mxu1  ;;  %v14446_v23 = vadd.f32 %v9051_v25, %v14777_v1  ;;  %v9053_v49 = vpop.f32.mrb[43].mxu0  ;;  %v14783_v25 = vld [vmem:[#allocation7_spill] sm:$0xff] }
 0x388   :  { %14776 = vst [vmem:[#allocation21_spill] sm:$0xff] %v14443_v38  ;;  %v8608_v55 = vpop.f32.mrb[109].mxu1 }
 0x389   :  { %v14448_v20 = vpop.f32.mrb[110].mxu1 }
 0x38a   :  { %14778 = vst [vmem:[#allocation4_spill] sm:$0xff] %v14448_v20  ;;  %v8611_v32 = vpop.f32.mrb[111].mxu1 }
 0x38c   :  { %v9056_v19 = vpop.f32.mrb[44].mxu0 }
 0x38d   :  { %v14451_v18 = vadd.f32 %v9056_v19, %v14779_v6  ;;  %v9058_v14 = vpop.f32.mrb[45].mxu0  ;;  %v14785_v19 = vld [vmem:[#allocation8_spill] sm:$0xff] }
 0x38e   :  { %v9059_v31 = vpop.f32.mrb[46].mxu0 }
 0x38f   :  { %v14453_v48 = vpop.f32.mrb[112].mxu1  ;;  %v14456_v47 = vadd.f32 %v9059_v31, %v14781_v51  ;;  %v9061_v22 = vpop.f32.mrb[47].mxu0 }
 0x390   :  { %14780 = vst [vmem:[#allocation5_spill] sm:$0xff] %v14453_v48  ;;  %v8616_v44 = vpop.f32.mrb[113].mxu1 }
 0x391   :  { %v14458_v62 = vpop.f32.mrb[114].mxu1  ;;  %v14787_v44 = vld [vmem:[#allocation9_spill] sm:$0xff] }
 0x392   :  { %14782 = vst [vmem:[#allocation6_spill] sm:$0xff] %v14458_v62  ;;  %v8619_v45 = vpop.f32.mrb[115].mxu1 }
 0x394   :  { %v9064_v36 = vpop.f32.mrb[48].mxu0 }
 0x395   :  { %v14461_v1 = vadd.f32 %v9064_v36, %v14783_v25  ;;  %v9066_v49 = vpop.f32.mrb[49].mxu0  ;;  %v14789_v25 = vld [vmem:[#allocation10_spill] sm:$0xff] }
 0x396   :  { %v9067_v55 = vpop.f32.mrb[50].mxu0 }
 0x397   :  { %v14463_v32 = vpop.f32.mrb[116].mxu1  ;;  %v14466_v6 = vadd.f32 %v9067_v55, %v14785_v19  ;;  %v9069_v14 = vpop.f32.mrb[51].mxu0 }
 0x398   :  { %14784 = vst [vmem:[#allocation7_spill] sm:$0xff] %v14463_v32  ;;  %v8624_v48 = vpop.f32.mrb[117].mxu1  ;;  %v14791_v14 = vld [vmem:[#allocation11_spill] sm:$0xff] }
 0x399   :  { %v14468_v31 = vpop.f32.mrb[118].mxu1 }
 0x39a   :  { %14786 = vst [vmem:[#allocation8_spill] sm:$0xff] %v14468_v31  ;;  %v8627_v51 = vpop.f32.mrb[119].mxu1 }
 0x39c   :  { %v9072_v22 = vpop.f32.mrb[52].mxu0 }
 0x39d   :  { %v14471_v62 = vadd.f32 %v9072_v22, %v14787_v44  ;;  %v9074_v45 = vpop.f32.mrb[53].mxu0  ;;  %v14793_v44 = vld [vmem:[#allocation12_spill] sm:$0xff] }
 0x39e   :  { %v9075_v20 = vpop.f32.mrb[54].mxu0 }
 0x39f   :  { %v14473_v36 = vpop.f32.mrb[120].mxu1  ;;  %v14476_v49 = vadd.f32 %v9075_v20, %v14789_v25  ;;  %v9077_v32 = vpop.f32.mrb[55].mxu0  ;;  %v14795_v25 = vld [vmem:[#allocation13_spill] sm:$0xff] }
 0x3a0   :  { %14788 = vst [vmem:[#allocation9_spill] sm:$0xff] %v14473_v36  ;;  %v8632_v38 = vpop.f32.mrb[121].mxu1 }
 0x3a1   :  { %v14478_v55 = vpop.f32.mrb[122].mxu1 }
 0x3a2   :  { %14790 = vst [vmem:[#allocation10_spill] sm:$0xff] %v14478_v55  ;;  %v8635_v19 = vpop.f32.mrb[123].mxu1 }
 0x3a4   :  { %v9080_v48 = vpop.f32.mrb[56].mxu0 }
 0x3a5   :  { %v14481_v31 = vadd.f32 %v9080_v48, %v14791_v14  ;;  %v9082_v51 = vpop.f32.mrb[57].mxu0 }
 0x3a6   :  { %v9083_v53 = vpop.f32.mrb[58].mxu0 }
 0x3a7   :  { %v14483_v22 = vpop.f32.mrb[124].mxu1  ;;  %v14486_v45 = vadd.f32 %v9083_v53, %v14793_v44  ;;  %v9085_v36 = vpop.f32.mrb[59].mxu0 }
 0x3a8   :  { %14792 = vst [vmem:[#allocation11_spill] sm:$0xff] %v14483_v22  ;;  %v8640_v57 = vpop.f32.mrb[125].mxu1 }
 0x3a9   :  { %v14488_v20 = vpop.f32.mrb[126].mxu1 }
 0x3aa   :  { %14794 = vst [vmem:[#allocation12_spill] sm:$0xff] %v14488_v20  ;;  %v8643_v32 = vpop.f32.mrb[127].mxu1 }
 0x3ac   :  { %v9088_v38 = vpop.f32.mrb[60].mxu0 }
 0x3ad   :  { %v14491_v55 = vadd.f32 %v9088_v38, %v14795_v25  ;;  %v9090_v19 = vpop.f32.mrb[61].mxu0 }
 0x3ae   :  { %v9091_v9 = vpop.f32.mrb[62].mxu0 }
 0x3af   :  { %v11179_v48 = vpop.f32.mrb[128].mxu1  ;;  %v14494_v14 = vadd.f32 %v9091_v9, %v14252_v37  ;;  %v9093_v51 = vpop.f32.mrb[63].mxu0 }
 0x3b0   :  { %v9266_v22 = vadd.f32 %v14326_v59, %v11179_v48  ;;  %v9257_v53 = vpop.f32.mrb[129].mxu1  ;;  %v11781_v51 = vmov 0.0  }
 0x3b1   :  { %v9258_v36 = vadd.f32 %v14294_v5, %v9257_v53  ;;  %v11180_v57 = vpop.f32.mrb[130].mxu1  ;;  %9515 = vst [vmem:[%s14745_s5] sm:$0x1] %v11781_v51  ;;  %9516 = vst [vmem:[%s14746_s6] sm:$0x1] %v11781_v51 }
 0x3b2   :  { %v9269_v44 = vadd.f32 %v14335_v58, %v11180_v57  ;;  %v9260_v32 = vpop.f32.mrb[131].mxu1  ;;  %v9592_v5 = vmul.f32 %v9266_v22, %v9266_v22 }
 0x3b3   :  { %v9261_v20 = vadd.f32 %v14304_v2, %v9260_v32  ;;  %v9590_v19 = vmul.f32 %v9258_v36, %v9258_v36 }
 0x3b4   :  { %v10907_v38 = vpack.c.bf16 %v9269_v44, %v9266_v22  ;;  %v9096_v25 = vpop.f32.mrb[64].mxu0 }
 0x3b5   :  { %v9518_v13 = vadd.f32 %v9261_v20, %v9258_v36  ;;  %v9591_v34 = vmul.f32 %v9261_v20, %v9261_v20  ;;  %v10902_v26 = vpack.c.bf16 %v9261_v20, %v9258_v36  ;;  %v14501_v37 = vadd.f32 %v9096_v25, %v14272_v24  ;;  %v9098_v9 = vpop.f32.mrb[65].mxu0 }
 0x3b6   :  { %11090 = vst [vmem:[%s14744_s4 + $0x8] sm:$0xff] %v10907_v38   ;;  %v9099_v59 = vpop.f32.mrb[66].mxu0 }
 0x3b7   :  { %v9519_v58 = vadd.f32 %v9518_v13, %v9266_v22  ;;  %v9654_v48 = vadd.f32 %v9591_v34, %v9590_v19  ;;  %10903 = vst [vmem:[%s14744_s4] sm:$0xff] %v10902_v26   ;;  %v11183_v2 = vpop.f32.mrb[132].mxu1  ;;  %v14516_v24 = vadd.f32 %v9099_v59, %v14277_v10  ;;  %v9101_v20 = vpop.f32.mrb[67].mxu0  ;;  %v9593_v22 = vmul.f32 %v9269_v44, %v9269_v44 }
 0x3b8   :  { %v9282_v34 = vadd.f32 %v14371_v39, %v11183_v2  ;;  %v9273_v13 = vpop.f32.mrb[133].mxu1 }
 0x3b9   :  { %14796 = vst [vmem:[#allocation13_spill] sm:$0xff] %v14516_v24  ;;  %v9655_v53 = vadd.f32 %v9654_v48, %v9592_v5  ;;  %v9274_v26 = vadd.f32 %v14349_v35, %v9273_v13  ;;  %v9520_v36 = vadd.f32 %v9519_v58, %v9269_v44  ;;  %v11184_v57 = vpop.f32.mrb[134].mxu1 }
 0x3ba   :  { %v9285_v32 = vadd.f32 %v14376_v43, %v11184_v57  ;;  %v9276_v38 = vpop.f32.mrb[135].mxu1  ;;  %v9596_v43 = vmul.f32 %v9282_v34, %v9282_v34 }
 0x3bb   :  { %v9521_v25 = vadd.f32 %v9520_v36, %v9274_v26  ;;  %v9594_v19 = vmul.f32 %v9274_v26, %v9274_v26  ;;  %v9656_v9 = vadd.f32 %v9655_v53, %v9593_v22  ;;  %v9277_v51 = vadd.f32 %v14358_v40, %v9276_v38 }
 0x3bc   :  { %v10917_v10 = vpack.c.bf16 %v9285_v32, %v9282_v34  ;;  %v9104_v59 = vpop.f32.mrb[68].mxu0 }
 0x3bd   :  { %v9657_v20 = vadd.f32 %v9656_v9, %v9594_v19  ;;  %v9522_v24 = vadd.f32 %v9521_v25, %v9277_v51  ;;  %v9595_v39 = vmul.f32 %v9277_v51, %v9277_v51  ;;  %v10912_v2 = vpack.c.bf16 %v9277_v51, %v9274_v26  ;;  %v9106_v35 = vpop.f32.mrb[69].mxu0 }
 0x3be   :  { %v14523_v5 = vadd.f32 %v9104_v59, %v14299_v0  ;;  %11092 = vst [vmem:[%s14744_s4 + $0x18] sm:$0xff] %v10917_v10   ;;  %v9107_v44 = vpop.f32.mrb[70].mxu0  ;;  %v9597_v26 = vmul.f32 %v9285_v32, %v9285_v32  ;;  %v14797_v35 = vld [vmem:[#allocation14_spill] sm:$0xff] }
 0x3bf   :  { %v9523_v58 = vadd.f32 %v9522_v24, %v9282_v34  ;;  %v9658_v48 = vadd.f32 %v9657_v20, %v9595_v39  ;;  %11091 = vst [vmem:[%s14744_s4 + $0x10] sm:$0xff] %v10912_v2   ;;  %v11187_v40 = vpop.f32.mrb[136].mxu1  ;;  %v14532_v13 = vadd.f32 %v9107_v44, %v14312_v61  ;;  %v9109_v22 = vpop.f32.mrb[71].mxu0 }
 0x3c0   :  { %v9298_v0 = vadd.f32 %v14391_v27, %v11187_v40  ;;  %v9289_v53 = vpop.f32.mrb[137].mxu1 }
 0x3c1   :  { %v9659_v36 = vadd.f32 %v9658_v48, %v9596_v43  ;;  %v9290_v57 = vadd.f32 %v14381_v15, %v9289_v53  ;;  %v9524_v38 = vadd.f32 %v9523_v58, %v9285_v32  ;;  %v11188_v25 = vpop.f32.mrb[138].mxu1 }
 0x3c2   :  { %v9301_v24 = vadd.f32 %v14396_v42, %v11188_v25  ;;  %v9292_v34 = vpop.f32.mrb[139].mxu1  ;;  %v9600_v42 = vmul.f32 %v9298_v0, %v9298_v0 }
 0x3c3   :  { %v9525_v19 = vadd.f32 %v9524_v38, %v9290_v57  ;;  %v9598_v9 = vmul.f32 %v9290_v57, %v9290_v57  ;;  %v9660_v51 = vadd.f32 %v9659_v36, %v9597_v26  ;;  %v9293_v10 = vadd.f32 %v14386_v28, %v9292_v34 }
 0x3c4   :  { %v10927_v61 = vpack.c.bf16 %v9301_v24, %v9298_v0  ;;  %v9112_v59 = vpop.f32.mrb[72].mxu0  ;;  %v9601_v26 = vmul.f32 %v9301_v24, %v9301_v24 }
 0x3c5   :  { %v9661_v20 = vadd.f32 %v9660_v51, %v9598_v9  ;;  %v9526_v39 = vadd.f32 %v9525_v19, %v9293_v10  ;;  %v9599_v27 = vmul.f32 %v9293_v10, %v9293_v10  ;;  %v10922_v2 = vpack.c.bf16 %v9293_v10, %v9290_v57  ;;  %v9114_v15 = vpop.f32.mrb[73].mxu0 }
 0x3c6   :  { %v14539_v43 = vadd.f32 %v9112_v59, %v14797_v35  ;;  %11094 = vst [vmem:[%s14744_s4 + $0x28] sm:$0xff] %v10927_v61   ;;  %v9115_v32 = vpop.f32.mrb[74].mxu0 }
 0x3c7   :  { %v9527_v44 = vadd.f32 %v9526_v39, %v9298_v0  ;;  %v9662_v58 = vadd.f32 %v9661_v20, %v9599_v27  ;;  %11093 = vst [vmem:[%s14744_s4 + $0x20] sm:$0xff] %v10922_v2   ;;  %v11191_v28 = vpop.f32.mrb[140].mxu1  ;;  %v14548_v48 = vadd.f32 %v9115_v32, %v14337_v4  ;;  %v9117_v40 = vpop.f32.mrb[75].mxu0 }
 0x3c8   :  { %v9314_v22 = vadd.f32 %v14411_v46, %v11191_v28  ;;  %v9305_v53 = vpop.f32.mrb[141].mxu1 }
 0x3c9   :  { %v9663_v36 = vadd.f32 %v9662_v58, %v9600_v42  ;;  %v9306_v57 = vadd.f32 %v14401_v17, %v9305_v53  ;;  %v9528_v38 = vadd.f32 %v9527_v44, %v9301_v24  ;;  %v11192_v25 = vpop.f32.mrb[142].mxu1 }
 0x3ca   :  { %v9317_v0 = vadd.f32 %v14416_v21, %v11192_v25  ;;  %v9308_v34 = vpop.f32.mrb[143].mxu1  ;;  %v9604_v21 = vmul.f32 %v9314_v22, %v9314_v22 }
 0x3cb   :  { %v9529_v19 = vadd.f32 %v9528_v38, %v9306_v57  ;;  %v9602_v9 = vmul.f32 %v9306_v57, %v9306_v57  ;;  %v9664_v51 = vadd.f32 %v9663_v36, %v9601_v26  ;;  %v9309_v10 = vadd.f32 %v14406_v54, %v9308_v34 }
 0x3cc   :  { %v10937_v4 = vpack.c.bf16 %v9317_v0, %v9314_v22  ;;  %v9120_v61 = vpop.f32.mrb[76].mxu0  ;;  %v9605_v44 = vmul.f32 %v9317_v0, %v9317_v0 }
 0x3cd   :  { %v9665_v59 = vadd.f32 %v9664_v51, %v9602_v9  ;;  %v9530_v20 = vadd.f32 %v9529_v19, %v9309_v10  ;;  %v9603_v46 = vmul.f32 %v9309_v10, %v9309_v10  ;;  %v10932_v39 = vpack.c.bf16 %v9309_v10, %v9306_v57  ;;  %v9122_v17 = vpop.f32.mrb[77].mxu0 }
 0x3ce   :  { %v14555_v27 = vadd.f32 %v9120_v61, %v14355_v3  ;;  %11096 = vst [vmem:[%s14744_s4 + $0x38] sm:$0xff] %v10937_v4   ;;  %v9123_v24 = vpop.f32.mrb[78].mxu0 }
 0x3cf   :  { %v9531_v2 = vadd.f32 %v9530_v20, %v9314_v22  ;;  %v9666_v35 = vadd.f32 %v9665_v59, %v9603_v46  ;;  %11095 = vst [vmem:[%s14744_s4 + $0x30] sm:$0xff] %v10932_v39   ;;  %v11195_v54 = vpop.f32.mrb[144].mxu1  ;;  %v14564_v15 = vadd.f32 %v9123_v24, %v14360_v8  ;;  %v9125_v42 = vpop.f32.mrb[79].mxu0 }
 0x3d0   :  { %v9330_v3 = vadd.f32 %v14431_v41, %v11195_v54  ;;  %v9321_v32 = vpop.f32.mrb[145].mxu1 }
 0x3d1   :  { %v9667_v58 = vadd.f32 %v9666_v35, %v9604_v21  ;;  %v9322_v28 = vadd.f32 %v14421_v29, %v9321_v32  ;;  %v9532_v40 = vadd.f32 %v9531_v2, %v9317_v0  ;;  %v11196_v53 = vpop.f32.mrb[146].mxu1 }
 0x3d2   :  { %v9333_v22 = vadd.f32 %v14436_v56, %v11196_v53  ;;  %v9324_v26 = vpop.f32.mrb[147].mxu1  ;;  %v9608_v56 = vmul.f32 %v9330_v3, %v9330_v3 }
 0x3d3   :  { %v9533_v36 = vadd.f32 %v9532_v40, %v9322_v28  ;;  %v9606_v57 = vmul.f32 %v9322_v28, %v9322_v28  ;;  %v9668_v38 = vadd.f32 %v9667_v58, %v9605_v44  ;;  %v9325_v25 = vadd.f32 %v14426_v7, %v9324_v26 }
 0x3d4   :  { %v10947_v8 = vpack.c.bf16 %v9333_v22, %v9330_v3  ;;  %v9128_v34 = vpop.f32.mrb[80].mxu0  ;;  %v9609_v39 = vmul.f32 %v9333_v22, %v9333_v22 }
 0x3d5   :  { %v9669_v19 = vadd.f32 %v9668_v38, %v9606_v57  ;;  %v9534_v9 = vadd.f32 %v9533_v36, %v9325_v25  ;;  %v9607_v41 = vmul.f32 %v9325_v25, %v9325_v25  ;;  %v10942_v51 = vpack.c.bf16 %v9325_v25, %v9322_v28  ;;  %v9130_v29 = vpop.f32.mrb[81].mxu0 }
 0x3d6   :  { %v14571_v10 = vadd.f32 %v9128_v34, %v14373_v52  ;;  %11098 = vst [vmem:[%s14744_s4 + $0x48] sm:$0xff] %v10947_v8   ;;  %v9131_v0 = vpop.f32.mrb[82].mxu0 }
 0x3d7   :  { %v9535_v4 = vadd.f32 %v9534_v9, %v9330_v3  ;;  %v9670_v61 = vadd.f32 %v9669_v19, %v9607_v41  ;;  %11097 = vst [vmem:[%s14744_s4 + $0x40] sm:$0xff] %v10942_v51   ;;  %v11199_v7 = vpop.f32.mrb[148].mxu1  ;;  %v14580_v59 = vadd.f32 %v9131_v0, %v14378_v12  ;;  %v9133_v20 = vpop.f32.mrb[83].mxu0 }
 0x3d8   :  { %v9346_v52 = vadd.f32 %v14451_v18, %v11199_v7  ;;  %v9337_v46 = vpop.f32.mrb[149].mxu1 }
 0x3d9   :  { %v9671_v17 = vadd.f32 %v9670_v61, %v9608_v56  ;;  %v9338_v21 = vadd.f32 %v14441_v30, %v9337_v46  ;;  %v9536_v24 = vadd.f32 %v9535_v4, %v9333_v22  ;;  %v11200_v2 = vpop.f32.mrb[150].mxu1 }
 0x3da   :  { %v9349_v35 = vadd.f32 %v14456_v47, %v11200_v2  ;;  %v9340_v54 = vpop.f32.mrb[151].mxu1  ;;  %v9612_v47 = vmul.f32 %v9346_v52, %v9346_v52 }
 0x3db   :  { %v9537_v42 = vadd.f32 %v9536_v24, %v9338_v21  ;;  %v9610_v3 = vmul.f32 %v9338_v21, %v9338_v21  ;;  %v9672_v32 = vadd.f32 %v9671_v17, %v9609_v39  ;;  %v9341_v44 = vadd.f32 %v14446_v23, %v9340_v54 }
 0x3dc   :  { %v10957_v12 = vpack.c.bf16 %v9349_v35, %v9346_v52  ;;  %v9136_v58 = vpop.f32.mrb[84].mxu0  ;;  %v9613_v34 = vmul.f32 %v9349_v35, %v9349_v35 }
 0x3dd   :  { %v9673_v28 = vadd.f32 %v9672_v32, %v9610_v3  ;;  %v9538_v40 = vadd.f32 %v9537_v42, %v9341_v44  ;;  %v9611_v18 = vmul.f32 %v9341_v44, %v9341_v44  ;;  %v10952_v53 = vpack.c.bf16 %v9341_v44, %v9338_v21  ;;  %v9138_v30 = vpop.f32.mrb[85].mxu0 }
 0x3de   :  { %v14587_v26 = vadd.f32 %v9136_v58, %v14383_v50  ;;  %11100 = vst [vmem:[%s14744_s4 + $0x58] sm:$0xff] %v10957_v12   ;;  %v9139_v22 = vpop.f32.mrb[86].mxu0 }
 0x3df   :  { %v9539_v36 = vadd.f32 %v9538_v40, %v9346_v52  ;;  %v9674_v57 = vadd.f32 %v9673_v28, %v9611_v18  ;;  %11099 = vst [vmem:[%s14744_s4 + $0x50] sm:$0xff] %v10952_v53   ;;  %v11203_v23 = vpop.f32.mrb[152].mxu1  ;;  %v14596_v38 = vadd.f32 %v9139_v22, %v14388_v11  ;;  %v9141_v25 = vpop.f32.mrb[87].mxu0 }
 0x3e0   :  { %v9362_v50 = vadd.f32 %v14471_v62, %v11203_v23  ;;  %v9353_v8 = vpop.f32.mrb[153].mxu1 }
 0x3e1   :  { %v9675_v19 = vadd.f32 %v9674_v57, %v9612_v47  ;;  %v9354_v9 = vadd.f32 %v14461_v1, %v9353_v8  ;;  %v9540_v41 = vadd.f32 %v9539_v36, %v9349_v35  ;;  %v11204_v51 = vpop.f32.mrb[154].mxu1 }
 0x3e2   :  { %v9365_v29 = vadd.f32 %v14476_v49, %v11204_v51  ;;  %v9356_v56 = vpop.f32.mrb[155].mxu1  ;;  %v9616_v49 = vmul.f32 %v9362_v50, %v9362_v50 }
 0x3e3   :  { %v9541_v0 = vadd.f32 %v9540_v41, %v9354_v9  ;;  %v9614_v4 = vmul.f32 %v9354_v9, %v9354_v9  ;;  %v9676_v61 = vadd.f32 %v9675_v19, %v9613_v34  ;;  %v9357_v7 = vadd.f32 %v14466_v6, %v9356_v56 }
 0x3e4   :  { %v10967_v11 = vpack.c.bf16 %v9365_v29, %v9362_v50  ;;  %v9144_v20 = vpop.f32.mrb[88].mxu0  ;;  %v9617_v3 = vmul.f32 %v9365_v29, %v9365_v29 }
 0x3e5   :  { %v9677_v52 = vadd.f32 %v9676_v61, %v9614_v4  ;;  %v9542_v46 = vadd.f32 %v9541_v0, %v9357_v7  ;;  %v9615_v62 = vmul.f32 %v9357_v7, %v9357_v7  ;;  %v10962_v39 = vpack.c.bf16 %v9357_v7, %v9354_v9  ;;  %v9146_v1 = vpop.f32.mrb[89].mxu0 }
 0x3e6   :  { %v14603_v17 = vadd.f32 %v9144_v20, %v14393_v63  ;;  %11102 = vst [vmem:[%s14744_s4 + $0x68] sm:$0xff] %v10967_v11   ;;  %v9147_v21 = vpop.f32.mrb[90].mxu0 }
 0x3e7   :  { %v9543_v24 = vadd.f32 %v9542_v46, %v9362_v50  ;;  %v9678_v2 = vadd.f32 %v9677_v52, %v9615_v62  ;;  %11101 = vst [vmem:[%s14744_s4 + $0x60] sm:$0xff] %v10962_v39   ;;  %v11207_v6 = vpop.f32.mrb[156].mxu1  ;;  %v14612_v35 = vadd.f32 %v9147_v21, %v14398_v16  ;;  %v9149_v54 = vpop.f32.mrb[91].mxu0  ;;  %v14798_v46 = vld [vmem:[#allocation13_spill] sm:$0xff] }
 0x3e8   :  { %v9378_v63 = vadd.f32 %v14491_v55, %v11207_v6  ;;  %v9369_v42 = vpop.f32.mrb[157].mxu1 }
 0x3e9   :  { %v9679_v32 = vadd.f32 %v9678_v2, %v9616_v49  ;;  %v9370_v44 = vadd.f32 %v14481_v31, %v9369_v42  ;;  %v9544_v12 = vadd.f32 %v9543_v24, %v9365_v29  ;;  %v11208_v58 = vpop.f32.mrb[158].mxu1  ;;  %v14799_v24 = vld [vmem:[#allocation15_spill] sm:$0xff] }
 0x3ea   :  { %v9381_v28 = vadd.f32 %v14494_v14, %v11208_v58  ;;  %v9372_v40 = vpop.f32.mrb[159].mxu1  ;;  %v9620_v14 = vmul.f32 %v9378_v63, %v9378_v63 }
 0x3eb   :  { %v9545_v18 = vadd.f32 %v9544_v12, %v9370_v44  ;;  %v9618_v53 = vmul.f32 %v9370_v44, %v9370_v44  ;;  %v9680_v30 = vadd.f32 %v9679_v32, %v9617_v3  ;;  %v9373_v47 = vadd.f32 %v14486_v45, %v9372_v40  ;;  %v14800_v3 = vld [vmem:[#allocation16_spill] sm:$0xff] }
 0x3ec   :  { %v10977_v16 = vpack.c.bf16 %v9381_v28, %v9378_v63  ;;  %v9152_v22 = vpop.f32.mrb[92].mxu0  ;;  %v9621_v51 = vmul.f32 %v9381_v28, %v9381_v28 }
 0x3ed   :  { %v9681_v36 = vadd.f32 %v9680_v30, %v9618_v53  ;;  %v9546_v57 = vadd.f32 %v9545_v18, %v9373_v47  ;;  %v9619_v55 = vmul.f32 %v9373_v47, %v9373_v47  ;;  %v10972_v23 = vpack.c.bf16 %v9373_v47, %v9370_v44  ;;  %v9154_v31 = vpop.f32.mrb[93].mxu0 }
 0x3ee   :  { %v14619_v25 = vadd.f32 %v9152_v22, %v14403_v33  ;;  %11104 = vst [vmem:[%s14744_s4 + $0x78] sm:$0xff] %v10977_v16   ;;  %v9155_v50 = vpop.f32.mrb[94].mxu0 }
 0x3ef   :  { %v9547_v8 = vadd.f32 %v9546_v57, %v9378_v63  ;;  %v9682_v34 = vadd.f32 %v9681_v36, %v9619_v55  ;;  %11103 = vst [vmem:[%s14744_s4 + $0x70] sm:$0xff] %v10972_v23   ;;  %v11211_v45 = vpop.f32.mrb[160].mxu1  ;;  %v14628_v19 = vadd.f32 %v9155_v50, %v14408_v60  ;;  %v9157_v9 = vpop.f32.mrb[95].mxu0 }
 0x3f0   :  { %v9394_v33 = vadd.f32 %v14523_v5, %v11211_v45  ;;  %v9385_v41 = vpop.f32.mrb[161].mxu1 }
 0x3f1   :  { %v9683_v29 = vadd.f32 %v9682_v34, %v9620_v14  ;;  %v9386_v56 = vadd.f32 %v14501_v37, %v9385_v41  ;;  %v9548_v0 = vadd.f32 %v9547_v8, %v9381_v28  ;;  %v11212_v4 = vpop.f32.mrb[162].mxu1  ;;  %v14801_v34 = vld [vmem:[#allocation17_spill] sm:$0xff] }
 0x3f2   :  { %v9397_v61 = vadd.f32 %v14532_v13, %v11212_v4  ;;  %v9388_v7 = vpop.f32.mrb[163].mxu1  ;;  %v9624_v13 = vmul.f32 %v9394_v33, %v9394_v33 }
 0x3f3   :  { %v9549_v11 = vadd.f32 %v9548_v0, %v9386_v56  ;;  %v9622_v20 = vmul.f32 %v9386_v56, %v9386_v56  ;;  %v9684_v52 = vadd.f32 %v9683_v29, %v9621_v51  ;;  %v9389_v62 = vadd.f32 %v14798_v46, %v9388_v7  ;;  %v14802_v51 = vld [vmem:[#allocation18_spill] sm:$0xff] }
 0x3f4   :  { %v10987_v60 = vpack.c.bf16 %v9397_v61, %v9394_v33  ;;  %v9160_v39 = vpop.f32.mrb[96].mxu0  ;;  %v9625_v28 = vmul.f32 %v9397_v61, %v9397_v61 }
 0x3f5   :  { %v9685_v1 = vadd.f32 %v9684_v52, %v9622_v20  ;;  %v9550_v49 = vadd.f32 %v9549_v11, %v9389_v62  ;;  %v9623_v5 = vmul.f32 %v9389_v62, %v9389_v62  ;;  %v10982_v21 = vpack.c.bf16 %v9389_v62, %v9386_v56  ;;  %v9162_v37 = vpop.f32.mrb[97].mxu0 }
 0x3f6   :  { %v14635_v2 = vadd.f32 %v9160_v39, %v14799_v24  ;;  %11106 = vst [vmem:[%s14744_s4 + $0x88] sm:$0xff] %v10987_v60   ;;  %v9163_v6 = vpop.f32.mrb[98].mxu0 }
 0x3f7   :  { %v9551_v54 = vadd.f32 %v9550_v49, %v9394_v33  ;;  %v9686_v63 = vadd.f32 %v9685_v1, %v9623_v5  ;;  %11105 = vst [vmem:[%s14744_s4 + $0x80] sm:$0xff] %v10982_v21   ;;  %v11215_v42 = vpop.f32.mrb[164].mxu1  ;;  %v14644_v32 = vadd.f32 %v9163_v6, %v14800_v3  ;;  %v9165_v44 = vpop.f32.mrb[99].mxu0  ;;  %v14803_v6 = vld [vmem:[#allocation19_spill] sm:$0xff] }
 0x3f8   :  { %v9410_v12 = vadd.f32 %v14555_v27, %v11215_v42  ;;  %v9401_v58 = vpop.f32.mrb[165].mxu1  ;;  %v14804_v44 = vld [vmem:[#allocation20_spill] sm:$0xff] }
 0x3f9   :  { %v9687_v40 = vadd.f32 %v9686_v63, %v9624_v13  ;;  %v9402_v18 = vadd.f32 %v14539_v43, %v9401_v58  ;;  %v9552_v53 = vadd.f32 %v9551_v54, %v9397_v61  ;;  %v11216_v30 = vpop.f32.mrb[166].mxu1 }
 0x3fa   :  { %v9413_v47 = vadd.f32 %v14564_v15, %v11216_v30  ;;  %v9404_v16 = vpop.f32.mrb[167].mxu1  ;;  %v9628_v15 = vmul.f32 %v9410_v12, %v9410_v12 }
 0x3fb   :  { %v9553_v22 = vadd.f32 %v9552_v53, %v9402_v18  ;;  %v9626_v36 = vmul.f32 %v9402_v18, %v9402_v18  ;;  %v9688_v57 = vadd.f32 %v9687_v40, %v9625_v28  ;;  %v9405_v55 = vadd.f32 %v14548_v48, %v9404_v16 }
 0x3fc   :  { %v10997_v23 = vpack.c.bf16 %v9413_v47, %v9410_v12  ;;  %v9168_v31 = vpop.f32.mrb[100].mxu0  ;;  %v9629_v61 = vmul.f32 %v9413_v47, %v9413_v47 }
 0x3fd   :  { %v9689_v14 = vadd.f32 %v9688_v57, %v9626_v36  ;;  %v9554_v50 = vadd.f32 %v9553_v22, %v9405_v55  ;;  %v9627_v27 = vmul.f32 %v9405_v55, %v9405_v55  ;;  %v10992_v8 = vpack.c.bf16 %v9405_v55, %v9402_v18  ;;  %v9170_v43 = vpop.f32.mrb[101].mxu0 }
 0x3fe   :  { %v14651_v45 = vadd.f32 %v9168_v31, %v14801_v34  ;;  %11108 = vst [vmem:[%s14744_s4 + $0x98] sm:$0xff] %v10997_v23   ;;  %v9171_v9 = vpop.f32.mrb[102].mxu0  ;;  %v14805_v43 = vld [vmem:[#allocation21_spill] sm:$0xff] }
 0x3ff   :  { %v9555_v33 = vadd.f32 %v9554_v50, %v9410_v12  ;;  %v9690_v41 = vadd.f32 %v9689_v14, %v9627_v27  ;;  %11107 = vst [vmem:[%s14744_s4 + $0x90] sm:$0xff] %v10992_v8   ;;  %v11219_v48 = vpop.f32.mrb[168].mxu1  ;;  %v14660_v29 = vadd.f32 %v9171_v9, %v14802_v51  ;;  %v9173_v56 = vpop.f32.mrb[103].mxu0 }
 0x400   :  { %v9426_v0 = vadd.f32 %v14587_v26, %v11219_v48  ;;  %v9417_v4 = vpop.f32.mrb[169].mxu1  ;;  %v14806_v48 = vld [vmem:[#allocation4_spill] sm:$0xff] }
 0x401   :  { %v9691_v7 = vadd.f32 %v9690_v41, %v9628_v15  ;;  %v9418_v11 = vadd.f32 %v14571_v10, %v9417_v4  ;;  %v9556_v20 = vadd.f32 %v9555_v33, %v9413_v47  ;;  %v11220_v52 = vpop.f32.mrb[170].mxu1 }
 0x402   :  { %v9429_v46 = vadd.f32 %v14596_v38, %v11220_v52  ;;  %v9420_v62 = vpop.f32.mrb[171].mxu1  ;;  %v9632_v38 = vmul.f32 %v9426_v0, %v9426_v0 }
 0x403   :  { %v9557_v60 = vadd.f32 %v9556_v20, %v9418_v11  ;;  %v9630_v39 = vmul.f32 %v9418_v11, %v9418_v11  ;;  %v9692_v1 = vadd.f32 %v9691_v7, %v9629_v61  ;;  %v9421_v49 = vadd.f32 %v14580_v59, %v9420_v62 }
 0x404   :  { %v11007_v5 = vpack.c.bf16 %v9429_v46, %v9426_v0  ;;  %v9176_v21 = vpop.f32.mrb[104].mxu0  ;;  %v9633_v18 = vmul.f32 %v9429_v46, %v9429_v46 }
 0x405   :  { %v9693_v24 = vadd.f32 %v9692_v1, %v9630_v39  ;;  %v9558_v37 = vadd.f32 %v9557_v60, %v9421_v49  ;;  %v9631_v26 = vmul.f32 %v9421_v49, %v9421_v49  ;;  %v11002_v13 = vpack.c.bf16 %v9421_v49, %v9418_v11  ;;  %v9178_v10 = vpop.f32.mrb[105].mxu0 }
 0x406   :  { %v14667_v54 = vadd.f32 %v9176_v21, %v14803_v6  ;;  %11110 = vst [vmem:[%s14744_s4 + $0xa8] sm:$0xff] %v11007_v5   ;;  %v9179_v63 = vpop.f32.mrb[106].mxu0 }
 0x407   :  { %v9559_v42 = vadd.f32 %v9558_v37, %v9426_v0  ;;  %v9694_v3 = vadd.f32 %v9693_v24, %v9631_v26  ;;  %11109 = vst [vmem:[%s14744_s4 + $0xa0] sm:$0xff] %v11002_v13   ;;  %v11223_v59 = vpop.f32.mrb[172].mxu1  ;;  %v14676_v12 = vadd.f32 %v9179_v63, %v14804_v44  ;;  %v9181_v58 = vpop.f32.mrb[107].mxu0  ;;  %v14807_v13 = vld [vmem:[#allocation5_spill] sm:$0xff] }
 0x408   :  { %v9442_v28 = vadd.f32 %v14619_v25, %v11223_v59  ;;  %v9433_v40 = vpop.f32.mrb[173].mxu1 }
 0x409   :  { %v9695_v53 = vadd.f32 %v9694_v3, %v9632_v38  ;;  %v9434_v30 = vadd.f32 %v14603_v17, %v9433_v40  ;;  %v9560_v47 = vadd.f32 %v9559_v42, %v9429_v46  ;;  %v11224_v16 = vpop.f32.mrb[174].mxu1  ;;  %v14808_v42 = vld [vmem:[#allocation6_spill] sm:$0xff] }
 0x40a   :  { %v9445_v22 = vadd.f32 %v14628_v19, %v11224_v16  ;;  %v9436_v36 = vpop.f32.mrb[175].mxu1  ;;  %v9636_v17 = vmul.f32 %v9442_v28, %v9442_v28 }
 0x40b   :  { %v9561_v57 = vadd.f32 %v9560_v47, %v9434_v30  ;;  %v9634_v55 = vmul.f32 %v9434_v30, %v9434_v30  ;;  %v9696_v23 = vadd.f32 %v9695_v53, %v9633_v18  ;;  %v9437_v31 = vadd.f32 %v14612_v35, %v9436_v36 }
 0x40c   :  { %v11017_v14 = vpack.c.bf16 %v9445_v22, %v9442_v28  ;;  %v9184_v50 = vpop.f32.mrb[108].mxu0  ;;  %v9637_v61 = vmul.f32 %v9445_v22, %v9445_v22 }
 0x40d   :  { %v9697_v27 = vadd.f32 %v9696_v23, %v9634_v55  ;;  %v9562_v8 = vadd.f32 %v9561_v57, %v9437_v31  ;;  %v9635_v25 = vmul.f32 %v9437_v31, %v9437_v31  ;;  %v11012_v34 = vpack.c.bf16 %v9437_v31, %v9434_v30  ;;  %v9186_v9 = vpop.f32.mrb[109].mxu0 }
 0x40e   :  { %v11327_v15 = vadd.f32 %v9184_v50, %v14805_v43  ;;  %11112 = vst [vmem:[%s14744_s4 + $0xb8] sm:$0xff] %v11017_v14   ;;  %v9187_v19 = vpop.f32.mrb[110].mxu0 }
 0x40f   :  { %v9563_v33 = vadd.f32 %v9562_v8, %v9442_v28  ;;  %v9698_v41 = vadd.f32 %v9697_v27, %v9635_v25  ;;  %11111 = vst [vmem:[%s14744_s4 + $0xb0] sm:$0xff] %v11012_v34   ;;  %v11227_v35 = vpop.f32.mrb[176].mxu1  ;;  %v11328_v51 = vadd.f32 %v9187_v19, %v14806_v48  ;;  %v9189_v56 = vpop.f32.mrb[111].mxu0  ;;  %v14809_v25 = vld [vmem:[#allocation7_spill] sm:$0xff]  ;;  %v14810_v19 = vld [vmem:[#allocation8_spill] sm:$0xff] }
 0x410   :  { %v9458_v0 = vadd.f32 %v14651_v45, %v11227_v35  ;;  %v9449_v4 = vpop.f32.mrb[177].mxu1 }
 0x411   :  { %v9699_v7 = vadd.f32 %v9698_v41, %v9636_v17  ;;  %v9450_v11 = vadd.f32 %v14635_v2, %v9449_v4  ;;  %v9564_v20 = vadd.f32 %v9563_v33, %v9445_v22  ;;  %v11228_v52 = vpop.f32.mrb[178].mxu1 }
 0x412   :  { %v9461_v46 = vadd.f32 %v14660_v29, %v11228_v52  ;;  %v9452_v62 = vpop.f32.mrb[179].mxu1  ;;  %v9640_v2 = vmul.f32 %v9458_v0, %v9458_v0 }
 0x413   :  { %v9565_v60 = vadd.f32 %v9564_v20, %v9450_v11  ;;  %v9638_v39 = vmul.f32 %v9450_v11, %v9450_v11  ;;  %v9700_v1 = vadd.f32 %v9699_v7, %v9637_v61  ;;  %v9453_v49 = vadd.f32 %v14644_v32, %v9452_v62 }
 0x414   :  { %v11027_v5 = vpack.c.bf16 %v9461_v46, %v9458_v0  ;;  %v9192_v21 = vpop.f32.mrb[112].mxu0  ;;  %v9641_v28 = vmul.f32 %v9461_v46, %v9461_v46 }
 0x415   :  { %v9701_v24 = vadd.f32 %v9700_v1, %v9638_v39  ;;  %v9566_v37 = vadd.f32 %v9565_v60, %v9453_v49  ;;  %v9639_v45 = vmul.f32 %v9453_v49, %v9453_v49  ;;  %v11022_v26 = vpack.c.bf16 %v9453_v49, %v9450_v11  ;;  %v9194_v10 = vpop.f32.mrb[113].mxu0 }
 0x416   :  { %v11329_v6 = vadd.f32 %v9192_v21, %v14807_v13  ;;  %11114 = vst [vmem:[%s14744_s4 + $0xc8] sm:$0xff] %v11027_v5   ;;  %v9195_v29 = vpop.f32.mrb[114].mxu0 }
 0x417   :  { %v9567_v38 = vadd.f32 %v9566_v37, %v9458_v0  ;;  %v9702_v63 = vadd.f32 %v9701_v24, %v9639_v45  ;;  %11113 = vst [vmem:[%s14744_s4 + $0xc0] sm:$0xff] %v11022_v26   ;;  %v11231_v32 = vpop.f32.mrb[180].mxu1  ;;  %v11330_v3 = vadd.f32 %v9195_v29, %v14808_v42  ;;  %v9197_v59 = vpop.f32.mrb[115].mxu0  ;;  %v14811_v24 = vld [vmem:[#allocation9_spill] sm:$0xff]  ;;  %v14812_v29 = vld [vmem:[#allocation10_spill] sm:$0xff] }
 0x418   :  { %v9474_v44 = vadd.f32 %v11327_v15, %v11231_v32  ;;  %v9465_v58 = vpop.f32.mrb[181].mxu1 }
 0x419   :  { %v9703_v40 = vadd.f32 %v9702_v63, %v9640_v2  ;;  %v9466_v18 = vadd.f32 %v14667_v54, %v9465_v58  ;;  %v9568_v53 = vadd.f32 %v9567_v38, %v9461_v46  ;;  %v11232_v30 = vpop.f32.mrb[182].mxu1 }
 0x41a   :  { %v9477_v47 = vadd.f32 %v11328_v51, %v11232_v30  ;;  %v9468_v16 = vpop.f32.mrb[183].mxu1  ;;  %v9644_v54 = vmul.f32 %v9474_v44, %v9474_v44 }
 0x41b   :  { %v9569_v22 = vadd.f32 %v9568_v53, %v9466_v18  ;;  %v9642_v36 = vmul.f32 %v9466_v18, %v9466_v18  ;;  %v9704_v57 = vadd.f32 %v9703_v40, %v9641_v28  ;;  %v9469_v55 = vadd.f32 %v14676_v12, %v9468_v16 }
 0x41c   :  { %v11037_v23 = vpack.c.bf16 %v9477_v47, %v9474_v44  ;;  %v9200_v31 = vpop.f32.mrb[116].mxu0  ;;  %v9645_v51 = vmul.f32 %v9477_v47, %v9477_v47 }
 0x41d   :  { %v9705_v14 = vadd.f32 %v9704_v57, %v9642_v36  ;;  %v9570_v50 = vadd.f32 %v9569_v22, %v9469_v55  ;;  %v9643_v27 = vmul.f32 %v9469_v55, %v9469_v55  ;;  %v11032_v8 = vpack.c.bf16 %v9469_v55, %v9466_v18  ;;  %v9202_v43 = vpop.f32.mrb[117].mxu0  ;;  %v14813_v55 = vld [vmem:[#allocation11_spill] sm:$0xff] }
 0x41e   :  { %v11331_v34 = vadd.f32 %v9200_v31, %v14809_v25  ;;  %11116 = vst [vmem:[%s14744_s4 + $0xd8] sm:$0xff] %v11037_v23   ;;  %v9203_v15 = vpop.f32.mrb[118].mxu0 }
 0x41f   :  { %v9571_v9 = vadd.f32 %v9570_v50, %v9474_v44  ;;  %v9706_v17 = vadd.f32 %v9705_v14, %v9643_v27  ;;  %11115 = vst [vmem:[%s14744_s4 + $0xd0] sm:$0xff] %v11032_v8   ;;  %v11235_v12 = vpop.f32.mrb[184].mxu1  ;;  %v11332_v33 = vadd.f32 %v9203_v15, %v14810_v19  ;;  %v9205_v41 = vpop.f32.mrb[119].mxu0  ;;  %v14814_v8 = vld [vmem:[#allocation12_spill] sm:$0xff] }
 0x420   :  { %v9490_v35 = vadd.f32 %v11331_v34, %v11235_v12  ;;  %v9481_v48 = vpop.f32.mrb[185].mxu1 }
 0x421   :  { %v9707_v56 = vadd.f32 %v9706_v17, %v9644_v54  ;;  %v9482_v0 = vadd.f32 %v11329_v6, %v9481_v48  ;;  %v9572_v4 = vadd.f32 %v9571_v9, %v9477_v47  ;;  %v11236_v61 = vpop.f32.mrb[186].mxu1 }
 0x422   :  { %v9493_v7 = vadd.f32 %v11332_v33, %v11236_v61  ;;  %v9484_v11 = vpop.f32.mrb[187].mxu1  ;;  %v9648_v26 = vmul.f32 %v9490_v35, %v9490_v35 }
 0x423   :  { %v9573_v20 = vadd.f32 %v9572_v4, %v9482_v0  ;;  %v9646_v52 = vmul.f32 %v9482_v0, %v9482_v0  ;;  %v9708_v46 = vadd.f32 %v9707_v56, %v9645_v51  ;;  %v9485_v62 = vadd.f32 %v11330_v3, %v9484_v11  ;;  %v9517_v11 = vld [vmem:[%s14745_s5] sm:$0x1] }
 0x424   :  { %v11047_v60 = vpack.c.bf16 %v9493_v7, %v9490_v35  ;;  %v9208_v39 = vpop.f32.mrb[120].mxu0  ;;  %v9649_v42 = vmul.f32 %v9493_v7, %v9493_v7 }
 0x425   :  { %v9709_v1 = vadd.f32 %v9708_v46, %v9646_v52  ;;  %v9574_v49 = vadd.f32 %v9573_v20, %v9485_v62  ;;  %v9647_v5 = vmul.f32 %v9485_v62, %v9485_v62  ;;  %v11042_v21 = vpack.c.bf16 %v9485_v62, %v9482_v0  ;;  %v9210_v45 = vpop.f32.mrb[121].mxu0  ;;  %v9589_v46 = vld [vmem:[%s14746_s6] sm:$0x1] }
 0x426   :  { %v11333_v37 = vadd.f32 %v9208_v39, %v14811_v24  ;;  %11118 = vst [vmem:[%s14744_s4 + $0xe8] sm:$0xff] %v11047_v60   ;;  %v9211_v13 = vpop.f32.mrb[122].mxu0 }
 0x427   :  { %v9575_v6 = vadd.f32 %v9574_v49, %v9490_v35  ;;  %v9710_v10 = vadd.f32 %v9709_v1, %v9647_v5  ;;  %11117 = vst [vmem:[%s14744_s4 + $0xe0] sm:$0xff] %v11042_v21   ;;  %v11239_v2 = vpop.f32.mrb[188].mxu1  ;;  %v11334_v38 = vadd.f32 %v9211_v13, %v14812_v29  ;;  %v9213_v63 = vpop.f32.mrb[123].mxu0 }
 0x428   :  { %v9497_v32 = vpop.f32.mrb[189].mxu1 }
 0x429   :  { %v9711_v3 = vadd.f32 %v9710_v10, %v9648_v26  ;;  %v9498_v59 = vadd.f32 %v11333_v37, %v9497_v32  ;;  %v9576_v44 = vadd.f32 %v9575_v6, %v9493_v7  ;;  %v11240_v58 = vpop.f32.mrb[190].mxu1 }
 0x42a   :  { %v9500_v28 = vpop.f32.mrb[191].mxu1 }
 0x42b   :  { %v9577_v40 = vadd.f32 %v9576_v44, %v9498_v59  ;;  %v9650_v18 = vmul.f32 %v9498_v59, %v9498_v59  ;;  %v9712_v53 = vadd.f32 %v9711_v3, %v9649_v42  ;;  %v9501_v30 = vadd.f32 %v11334_v38, %v9500_v28 }
 0x42c   :  { %v9216_v47 = vpop.f32.mrb[124].mxu0 }
 0x42d   :  { %v9713_v16 = vadd.f32 %v9712_v53, %v9650_v18  ;;  %v9578_v22 = vadd.f32 %v9577_v40, %v9501_v30  ;;  %v9651_v36 = vmul.f32 %v9501_v30, %v9501_v30  ;;  %v11052_v57 = vpack.c.bf16 %v9501_v30, %v9498_v59  ;;  %v9218_v31 = vpop.f32.mrb[125].mxu0 }
 0x42e   :  { %v11335_v23 = vadd.f32 %v9216_v47, %v14813_v55  ;;  %v9219_v14 = vpop.f32.mrb[126].mxu0 }
 0x42f   :  { %v9714_v50 = vadd.f32 %v9713_v16, %v9651_v36  ;;  %11119 = vst [vmem:[%s14744_s4 + $0xf0] sm:$0xff] %v11052_v57   ;;  %v11336_v25 = vadd.f32 %v9219_v14, %v14814_v8  ;;  %v9221_v34 = vpop.f32.mrb[127].mxu0 }
 0x430   :  { %v9506_v27 = vadd.f32 %v11335_v23, %v11239_v2 }
 0x431   :  { %v9509_v54 = vadd.f32 %v11336_v25, %v11240_v58 }
 0x432   :  { %v9652_v43 = vmul.f32 %v9506_v27, %v9506_v27  ;;  %v9579_v15 = vadd.f32 %v9578_v22, %v9506_v27 }
 0x433   :  { %v9653_v9 = vmul.f32 %v9509_v54, %v9509_v54  ;;  %v11057_v17 = vpack.c.bf16 %v9509_v54, %v9506_v27 }
 0x434   :  { %v9580_v12 = vadd.f32 %v9579_v15, %v9509_v54  ;;  %v9715_v19 = vadd.f32 %v9714_v50, %v9652_v43 }
 0x435   :  { %11120 = vst [vmem:[%s14744_s4 + $0xf8] sm:$0xff] %v11057_v17  }
 0x436   :  { %v9581_v33 = vrot.slane %v9580_v12, 4  ;;  %v9716_v41 = vadd.f32 %v9715_v19, %v9653_v9 }
 0x438   :  { %v9582_v35 = vadd.f32 %v9581_v33, %v9580_v12  ;;  %v9717_v48 = vrot.slane %v9716_v41, 4 }
 0x43a   :  { %v9583_v51 = vrot.slane %v9582_v35, 2  ;;  %v9718_v56 = vadd.f32 %v9717_v48, %v9716_v41 }
 0x43c   :  { %v9584_v0 = vadd.f32 %v9583_v51, %v9582_v35  ;;  %v9719_v4 = vrot.slane %v9718_v56, 2 }
 0x43e   :  { %v9585_v61 = vrot.slane %v9584_v0, 1  ;;  %v9720_v7 = vadd.f32 %v9719_v4, %v9718_v56 }
 0x440   :  { %v9586_v20 = vadd.f32 %v9585_v61, %v9584_v0  ;;  %v9721_v52 = vrot.slane %v9720_v7, 1 }
 0x442   :  { %v9587_v62 = vadd.f32 %v9586_v20, %v9517_v11  ;;  %v9722_v60 = vadd.f32 %v9721_v52, %v9720_v7 }
 0x444   :  { %9588 = vst [vmem:[%s14745_s5] sm:$0x1] %v9587_v62  ;;  %v9723_v39 = vadd.f32 %v9722_v60, %v9589_v46 }
 0x446   :  { %9724 = vst [vmem:[%s14746_s6] sm:$0x1] %v9723_v39 }

</bundles_post_ra>
